<compile_context>
chip_gen: v7x
topology: tpu7x:2x2x1
jax: 0.10.0
libtpu: 0.0.40
codegen_flags: <defaults>
</compile_context>

<pallas_src>
import math
import functools

import jax
import jax.numpy as jnp
from jax.experimental import pallas as pl
from jax.experimental.pallas import tpu as pltpu

NEG_INF = -1e9
LN_EPS = 1e-5
BF16 = jnp.bfloat16
F32 = jnp.float32

_VMEM_LIMIT = 48 * 1024 * 1024          # explicit scoped-VMEM cap (safe on v5e/v6e/v7x)
_SINGLE_BUFFER = [False]                # set by probe_single_buffer()


# ----------------------------------------------------------------------------
# Feature probe: single-buffered constant blocks (pl.Buffered(1))
# ----------------------------------------------------------------------------
def probe_single_buffer():
    """Detect whether pipeline_mode=pl.Buffered(1) is supported; fall back if not."""
    try:
        def _k(x_ref, o_ref):
            o_ref[...] = x_ref[...] * 2.0

        f = pl.pallas_call(
            _k,
            out_shape=jax.ShapeDtypeStruct((8, 128), F32),
            grid=(2,),
            in_specs=[pl.BlockSpec((8, 128), lambda i: (0, 0),
                                   pipeline_mode=pl.Buffered(1))],
            out_specs=pl.BlockSpec((8, 128), lambda i: (0, 0)),
        )
        jax.block_until_ready(f(jnp.ones((8, 128), F32)))
        _SINGLE_BUFFER[0] = True
    except Exception:
        _SINGLE_BUFFER[0] = False
    return _SINGLE_BUFFER[0]


def _const_spec(shape):
    """BlockSpec for a grid-invariant operand on a rank-1 grid.

    Single-buffered when supported so constant weight blocks don't pay the
    default 2x VMEM double-buffering."""
    idx = lambda g, _n=len(shape): (0,) * _n
    if _SINGLE_BUFFER[0]:
        return pl.BlockSpec(shape, idx, pipeline_mode=pl.Buffered(1))
    return pl.BlockSpec(shape, idx)


# ----------------------------------------------------------------------------
# In-kernel helpers (plain Python, traced inside the Pallas kernels)
# ----------------------------------------------------------------------------
def _ln(x, g, b):
    """LayerNorm in f32.  x: [M, D], g/b: [1, D]."""
    mu = jnp.mean(x, axis=-1, keepdims=True)
    xc = x - mu
    var = jnp.mean(xc * xc, axis=-1, keepdims=True)
    return xc * jax.lax.rsqrt(var + LN_EPS) * g + b


def _attention_heads(q, k, v, bias, *, H, dh, scale):
    """Multi-head softmax attention for one batch row group.

    q: [Sq, D] f32, k/v: [Sk, D] f32, bias broadcastable to [Sq, Sk] (f32).
    Returns head contexts concatenated along lanes: [Sq, D] f32 (the output
    projection is then a single [Sq,D] x [D,D] matmul done by the caller).
    """
    ctxs = []
    for h in range(H):
        lo = h * dh
        qh = q[:, lo:lo + dh].astype(BF16)
        kh = k[:, lo:lo + dh].astype(BF16)
        vh = v[:, lo:lo + dh].astype(BF16)
        s = jax.lax.dot_general(
            qh, kh, (((1,), (1,)), ((), ())),
            preferred_element_type=F32) * scale + bias
        m = jnp.max(s, axis=-1, keepdims=True)
        p = jnp.exp(s - m)
        p = p * pl.reciprocal(jnp.sum(p, axis=-1, keepdims=True), approx=True)
        ctxs.append(jnp.dot(p.astype(BF16), vh, preferred_element_type=F32))
    # TODO(synk): the per-head lane slices above still relayout when dh < 128;
    # a head-batched (leading-batch) dot_general would remove them entirely.
    return jnp.concatenate(ctxs, axis=-1)


# ----------------------------------------------------------------------------
# Fused encoder layer kernel (Bt batch elements per grid step, 2-D activations)
# ----------------------------------------------------------------------------
def _enc_layer_kernel(x_ref, pad_ref,
                      wqkv_ref, bqkv_ref, wo_ref, bo_ref,
                      ln1g_ref, ln1b_ref,
                      w1_ref, b1_ref, w2_ref, b2_ref,
                      ln2g_ref, ln2b_ref,
                      o_ref, *, Bt, S, H, dh, scale):
    D = H * dh
    x_bf = x_ref[...]                       # [Bt*S, D] bf16
    x = x_bf.astype(F32)

    # fused QKV projection over the whole Bt*S stack (K=D, N=3D -> MXU-friendly)
    qkv = jnp.dot(x_bf, wqkv_ref[...],
                  preferred_element_type=F32) + bqkv_ref[...]

    ctx_rows = []
    for b in range(Bt):
        qb = qkv[b * S:(b + 1) * S]
        ctx_rows.append(_attention_heads(
            qb[:, :D], qb[:, D:2 * D], qb[:, 2 * D:],
            pad_ref[b], H=H, dh=dh, scale=scale))
    ctx = jnp.concatenate(ctx_rows, axis=0)                    # [Bt*S, D]

    attn = jnp.dot(ctx.astype(BF16), wo_ref[...],
                   preferred_element_type=F32) + bo_ref[...]
    h1 = _ln(x + attn, ln1g_ref[...], ln1b_ref[...])

    ff = jnp.dot(h1.astype(BF16), w1_ref[...],
                 preferred_element_type=F32) + b1_ref[...]
    ff = jnp.maximum(ff, 0.0)
    ff = jnp.dot(ff.astype(BF16), w2_ref[...],
                 preferred_element_type=F32) + b2_ref[...]
    o_ref[...] = _ln(h1 + ff, ln2g_ref[...], ln2b_ref[...]).astype(o_ref.dtype)


def encoder_layer(x2d, src_pad_bias, lp, *, H, S, Bt):
    """x2d: [B*S, D] bf16, src_pad_bias: [B, 1, S] f32."""
    M, D = x2d.shape
    B = M // S
    F = lp["w1"].shape[1]
    dh = D // H
    sa = lp["self_attn"]
    return pl.pallas_call(
        functools.partial(_enc_layer_kernel, Bt=Bt, S=S, H=H, dh=dh,
                          scale=1.0 / math.sqrt(dh)),
        out_shape=jax.ShapeDtypeStruct((M, D), BF16),
        grid=(B // Bt,),
        in_specs=[
            pl.BlockSpec((Bt * S, D), lambda g: (g, 0)),       # x (bf16)
            pl.BlockSpec((Bt, 1, S), lambda g: (g, 0, 0)),     # key-pad bias rows
            _const_spec((D, 3 * D)),                           # wqkv (bf16)
            _const_spec((1, 3 * D)),                           # bqkv
            _const_spec((D, D)),                               # wo (bf16, 2-D)
            _const_spec((1, D)),                               # bo
            _const_spec((1, D)),                               # ln1 gamma
            _const_spec((1, D)),                               # ln1 beta
            _const_spec((D, F)),                               # w1 (bf16)
            _const_spec((1, F)),                               # b1
            _const_spec((F, D)),                               # w2 (bf16)
            _const_spec((1, D)),                               # b2
            _const_spec((1, D)),                               # ln2 gamma
            _const_spec((1, D)),                               # ln2 beta
        ],
        out_specs=pl.BlockSpec((Bt * S, D), lambda g: (g, 0)),
        compiler_params=pltpu.CompilerParams(
            dimension_semantics=("parallel",),
            vmem_limit_bytes=_VMEM_LIMIT),
    )(x2d, src_pad_bias,
      sa["wqkv"], sa["bqkv"], sa["wo"], sa["bo"],
      lp["ln1_g"], lp["ln1_b"],
      lp["w1"], lp["b1"], lp["w2"], lp["b2"],
      lp["ln2_g"], lp["ln2_b"])


# ----------------------------------------------------------------------------
# Fused decoder layer kernel (Bt batch elements per grid step, 2-D activations)
# ----------------------------------------------------------------------------
def _dec_layer_kernel(y_ref, mem_ref, causal_ref, tpad_ref, spad_ref,
                      swqkv_ref, sbqkv_ref, swo_ref, sbo_ref,
                      cwq_ref, cbq_ref, cwkv_ref, cbkv_ref, cwo_ref, cbo_ref,
                      ln1g_ref, ln1b_ref, ln2g_ref, ln2b_ref,
                      w1_ref, b1_ref, w2_ref, b2_ref,
                      ln3g_ref, ln3b_ref,
                      o_ref, *, Bt, Tt, Ss, H, dh, scale):
    D = H * dh
    y_bf = y_ref[...]                       # [Bt*Tt, D] bf16
    y = y_bf.astype(F32)
    mem_bf = mem_ref[...]                   # [Bt*Ss, D] bf16

    # --- masked self-attention ---
    qkv = jnp.dot(y_bf, swqkv_ref[...],
                  preferred_element_type=F32) + sbqkv_ref[...]
    ctx_rows = []
    for b in range(Bt):
        qb = qkv[b * Tt:(b + 1) * Tt]
        bias = causal_ref[...] + tpad_ref[b]                   # [Tt, Tt]
        ctx_rows.append(_attention_heads(
            qb[:, :D], qb[:, D:2 * D], qb[:, 2 * D:],
            bias, H=H, dh=dh, scale=scale))
    ctx = jnp.concatenate(ctx_rows, axis=0)
    sa = jnp.dot(ctx.astype(BF16), swo_ref[...],
                 preferred_element_type=F32) + sbo_ref[...]
    y1 = _ln(y + sa, ln1g_ref[...], ln1b_ref[...])

    # --- cross attention ---
    q = jnp.dot(y1.astype(BF16), cwq_ref[...],
                preferred_element_type=F32) + cbq_ref[...]     # [Bt*Tt, D]
    kv = jnp.dot(mem_bf, cwkv_ref[...],
                 preferred_element_type=F32) + cbkv_ref[...]   # [Bt*Ss, 2D]
    ctx_rows = []
    for b in range(Bt):
        qb = q[b * Tt:(b + 1) * Tt]
        kvb = kv[b * Ss:(b + 1) * Ss]
        ctx_rows.append(_attention_heads(
            qb, kvb[:, :D], kvb[:, D:],
            spad_ref[b], H=H, dh=dh, scale=scale))
    ctx = jnp.concatenate(ctx_rows, axis=0)
    ca = jnp.dot(ctx.astype(BF16), cwo_ref[...],
                 preferred_element_type=F32) + cbo_ref[...]
    y2 = _ln(y1 + ca, ln2g_ref[...], ln2b_ref[...])

    # --- FFN ---
    ff = jnp.dot(y2.astype(BF16), w1_ref[...],
                 preferred_element_type=F32) + b1_ref[...]
    ff = jnp.maximum(ff, 0.0)
    ff = jnp.dot(ff.astype(BF16), w2_ref[...],
                 preferred_element_type=F32) + b2_ref[...]
    o_ref[...] = _ln(y2 + ff, ln3g_ref[...], ln3b_ref[...]).astype(o_ref.dtype)


def decoder_layer(y2d, mem2d, causal, tgt_pad_bias, src_pad_bias, lp,
                  *, H, Tt, Ss, Bt):
    """y2d: [B*Tt, D] bf16, mem2d: [B*Ss, D] bf16."""
    M, D = y2d.shape
    B = M // Tt
    F = lp["w1"].shape[1]
    dh = D // H
    sa = lp["self_attn"]
    ca = lp["cross_attn"]
    return pl.pallas_call(
        functools.partial(_dec_layer_kernel, Bt=Bt, Tt=Tt, Ss=Ss, H=H, dh=dh,
                          scale=1.0 / math.sqrt(dh)),
        out_shape=jax.ShapeDtypeStruct((M, D), BF16),
        grid=(B // Bt,),
        in_specs=[
            pl.BlockSpec((Bt * Tt, D), lambda g: (g, 0)),      # y (bf16)
            pl.BlockSpec((Bt * Ss, D), lambda g: (g, 0)),      # memory (bf16)
            _const_spec((Tt, Tt)),                             # causal mask
            pl.BlockSpec((Bt, 1, Tt), lambda g: (g, 0, 0)),    # tgt key-pad bias
            pl.BlockSpec((Bt, 1, Ss), lambda g: (g, 0, 0)),    # src key-pad bias
            _const_spec((D, 3 * D)), _const_spec((1, 3 * D)),  # self wqkv / bqkv
            _const_spec((D, D)), _const_spec((1, D)),          # self wo / bo
            _const_spec((D, D)), _const_spec((1, D)),          # cross wq / bq
            _const_spec((D, 2 * D)), _const_spec((1, 2 * D)),  # cross wkv / bkv
            _const_spec((D, D)), _const_spec((1, D)),          # cross wo / bo
            _const_spec((1, D)), _const_spec((1, D)),          # ln1
            _const_spec((1, D)), _const_spec((1, D)),          # ln2
            _const_spec((D, F)), _const_spec((1, F)),          # w1 / b1
            _const_spec((F, D)), _const_spec((1, D)),          # w2 / b2
            _const_spec((1, D)), _const_spec((1, D)),          # ln3
        ],
        out_specs=pl.BlockSpec((Bt * Tt, D), lambda g: (g, 0)),
        compiler_params=pltpu.CompilerParams(
            dimension_semantics=("parallel",),
            vmem_limit_bytes=_VMEM_LIMIT),
    )(y2d, mem2d, causal, tgt_pad_bias, src_pad_bias,
      sa["wqkv"], sa["bqkv"], sa["wo"], sa["bo"],
      ca["wq"], ca["bq"], ca["wkv"], ca["bkv"], ca["wo"], ca["bo"],
      lp["ln1_g"], lp["ln1_b"], lp["ln2_g"], lp["ln2_b"],
      lp["w1"], lp["b1"], lp["w2"], lp["b2"],
      lp["ln3_g"], lp["ln3_b"])


# ----------------------------------------------------------------------------
# Output projection (tiled, lane-dense padded vocab; weight stationary over M)
# ----------------------------------------------------------------------------
def _proj_kernel(x_ref, w_ref, b_ref, o_ref):
    o_ref[...] = (jnp.dot(x_ref[...], w_ref[...],
                          preferred_element_type=F32) + b_ref[...])


def output_projection(x2d, w_bf16, b, *, tm=256, tn=1024):
    """x2d: [M, K] bf16, w_bf16: [K, N] bf16 (N multiple of 128), b: [1, N] f32."""
    M, K = x2d.shape
    N = w_bf16.shape[1]
    tm = min(tm, M)
    tn = min(tn, N)
    # Grid order (n, m): the (K, tn) weight tile is stationary across the inner
    # m loop, so it is not re-DMAed for every row tile.
    return pl.pallas_call(
        _proj_kernel,
        out_shape=jax.ShapeDtypeStruct((M, N), F32),
        grid=(pl.cdiv(N, tn), pl.cdiv(M, tm)),
        in_specs=[
            pl.BlockSpec((tm, K), lambda n, m: (m, 0)),
            pl.BlockSpec((K, tn), lambda n, m: (0, n)),
            pl.BlockSpec((1, tn), lambda n, m: (0, n)),
        ],
        out_specs=pl.BlockSpec((tm, tn), lambda n, m: (m, n)),
        compiler_params=pltpu.CompilerParams(
            dimension_semantics=("parallel", "parallel"),
            vmem_limit_bytes=_VMEM_LIMIT),
    )(x2d, w_bf16, b)


# ----------------------------------------------------------------------------
# Orthogonality penalty: tiled over matrices, output-resident accumulator
# ----------------------------------------------------------------------------
def _ortho_kernel(w_ref, o_ref, *, d):
    @pl.when(pl.program_id(0) == 0)
    def _():
        o_ref[...] = jnp.zeros_like(o_ref)
    w = w_ref[0]                                              # [d, d] f32
    # W^T W via a contraction on axis 0 of both operands (no transpose op)
    g = jax.lax.dot_general(w, w, (((0,), (0,)), ((), ())),
                            preferred_element_type=F32)
    ri = jax.lax.broadcasted_iota(jnp.int32, (d, d), 0)
    ci = jax.lax.broadcasted_iota(jnp.int32, (d, d), 1)
    diff = g - jnp.where(ri == ci, 1.0, 0.0).astype(F32)
    o_ref[...] += jnp.sum(diff * diff, keepdims=True)


def ortho_penalty(stacked_w, weight):
    """stacked_w: [NMAT, D, D] f32 -> scalar weight * sum ||W^T W - I||_F^2."""
    nmat, d, _ = stacked_w.shape
    out = pl.pallas_call(
        functools.partial(_ortho_kernel, d=d),
        out_shape=jax.ShapeDtypeStruct((1, 1), F32),
        grid=(nmat,),
        in_specs=[pl.BlockSpec((1, d, d), lambda i: (i, 0, 0))],
        out_specs=pl.BlockSpec((1, 1), lambda i: (0, 0)),
        compiler_params=pltpu.CompilerParams(
            dimension_semantics=("arbitrary",),
            vmem_limit_bytes=_VMEM_LIMIT),
    )(stacked_w)
    return weight * out[0, 0]


# ----------------------------------------------------------------------------
# Parameter initialization (deterministic, PyTorch-default-like).
# Weights are pre-cast to bf16 here (once); a separate f32 stack of the Q/K/V
# matrices is kept for the orthogonality penalty.
# ----------------------------------------------------------------------------
def _init_linear(key, fan_in, fan_out):
    k1, k2 = jax.random.split(key)
    bound = 1.0 / math.sqrt(fan_in)
    w = jax.random.uniform(k1, (fan_in, fan_out), F32, -bound, bound)
    b = jax.random.uniform(k2, (1, fan_out), F32, -bound, bound)
    return w, b


def _init_attn(key, D):
    kq, kk, kv, ko = jax.random.split(key, 4)
    wq, bq = _init_linear(kq, D, D)
    wk, bk = _init_linear(kk, D, D)
    wv, bv = _init_linear(kv, D, D)
    wo, bo = _init_linear(ko, D, D)
    return wq, bq, wk, bk, wv, bv, wo, bo


def _init_enc_layer(key, D, F, ortho_mats):
    k1, k2, k3 = jax.random.split(key, 3)
    wq, bq, wk, bk, wv, bv, wo, bo = _init_attn(k1, D)
    ortho_mats += [wq, wk, wv]
    p = {"self_attn": {
        "wqkv": jnp.concatenate([wq, wk, wv], axis=1).astype(BF16),
        "bqkv": jnp.concatenate([bq, bk, bv], axis=1),
        "wo": wo.astype(BF16), "bo": bo}}
    w1, b1 = _init_linear(k2, D, F)
    w2, b2 = _init_linear(k3, F, D)
    p["w1"], p["b1"] = w1.astype(BF16), b1
    p["w2"], p["b2"] = w2.astype(BF16), b2
    for n in ("ln1", "ln2"):
        p[n + "_g"] = jnp.ones((1, D), F32)
        p[n + "_b"] = jnp.zeros((1, D), F32)
    return p


def _init_dec_layer(key, D, F, ortho_mats):
    k1, k2, k3, k4 = jax.random.split(key, 4)
    wq, bq, wk, bk, wv, bv, wo, bo = _init_attn(k1, D)
    ortho_mats += [wq, wk, wv]
    p = {"self_attn": {
        "wqkv": jnp.concatenate([wq, wk, wv], axis=1).astype(BF16),
        "bqkv": jnp.concatenate([bq, bk, bv], axis=1),
        "wo": wo.astype(BF16), "bo": bo}}
    cq, cbq, ck, cbk, cv, cbv, cwo, cbo = _init_attn(k2, D)
    ortho_mats += [cq, ck, cv]
    p["cross_attn"] = {
        "wq": cq.astype(BF16), "bq": cbq,
        "wkv": jnp.concatenate([ck, cv], axis=1).astype(BF16),
        "bkv": jnp.concatenate([cbk, cbv], axis=1),
        "wo": cwo.astype(BF16), "bo": cbo}
    w1, b1 = _init_linear(k3, D, F)
    w2, b2 = _init_linear(k4, F, D)
    p["w1"], p["b1"] = w1.astype(BF16), b1
    p["w2"], p["b2"] = w2.astype(BF16), b2
    for n in ("ln1", "ln2", "ln3"):
        p[n + "_g"] = jnp.ones((1, D), F32)
        p[n + "_b"] = jnp.zeros((1, D), F32)
    return p


def _sinusoidal_pe(max_len, D):
    pos = jnp.arange(max_len, dtype=F32)[:, None]
    i = jnp.arange(0, D, 2, dtype=F32)[None, :]
    angle = pos / jnp.power(10000.0, i / D)
    pe = jnp.zeros((max_len, D), F32)
    pe = pe.at[:, 0::2].set(jnp.sin(angle))
    pe = pe.at[:, 1::2].set(jnp.cos(angle))
    return pe


def init_params(key, src_vocab, tgt_vocab, D, H, F, n_enc, n_dec,
                max_seq, pad_idx):
    assert D % H == 0
    ks = jax.random.split(key, 4 + n_enc + n_dec)
    src_emb = 0.02 * jax.random.normal(ks[0], (src_vocab, D), F32)
    tgt_emb = 0.02 * jax.random.normal(ks[1], (tgt_vocab, D), F32)
    src_emb = src_emb.at[pad_idx].set(0.0)      # padding_idx row is zero
    tgt_emb = tgt_emb.at[pad_idx].set(0.0)
    out_w, out_b = _init_linear(ks[2], D, tgt_vocab)
    # pad the vocab dim to a multiple of 128 for lane-dense MXU/vst tiles
    vpad = ((tgt_vocab + 127) // 128) * 128
    out_w = jnp.pad(out_w, ((0, 0), (0, vpad - tgt_vocab))).astype(BF16)
    out_b = jnp.pad(out_b, ((0, 0), (0, vpad - tgt_vocab)))

    ortho_mats = []
    enc_layers = [_init_enc_layer(ks[4 + i], D, F, ortho_mats)
                  for i in range(n_enc)]
    dec_layers = [_init_dec_layer(ks[4 + n_enc + i], D, F, ortho_mats)
                  for i in range(n_dec)]
    return {
        "src_emb": src_emb,
        "tgt_emb": tgt_emb,
        "pe": _sinusoidal_pe(max_seq, D),
        "out_w": out_w,
        "out_b": out_b,
        "enc_layers": enc_layers,
        "dec_layers": dec_layers,
        "ortho_mats": jnp.stack(ortho_mats, axis=0),   # f32, for the penalty
    }


# ----------------------------------------------------------------------------
# Batch-group size selection (how many batch rows per grid step)
# ----------------------------------------------------------------------------
def _pick_bt(B, seqs, *, max_rows=1024):
    """Largest divisor of B s.t. the stacked row count stays <= max_rows and
    the block's sublane dim is legal (multiple of 8 or the full dim)."""
    best = None
    for c in range(1, B + 1):
        if B % c:
            continue
        if c > 1 and c * max(seqs) > max_rows:
            continue
        if c == B or all((c * s) % 8 == 0 for s in seqs):
            best = c
    return best if best is not None else B


# ----------------------------------------------------------------------------
# Model forward (glue in plain JAX, fused Pallas kernels above)
# ----------------------------------------------------------------------------
def translation_forward(params, src_ids, tgt_ids, *, H, pad_idx,
                        ortho_penalty_weight, tgt_vocab):
    D = params["src_emb"].shape[1]
    B, Ss = src_ids.shape
    tgt_in = tgt_ids[:, :-1]
    Tt = tgt_in.shape[1]

    # additive key-padding bias rows (NOT duplicated per head or per query)
    src_pad_bias = jnp.where(src_ids == pad_idx, NEG_INF, 0.0)[:, None, :]
    tgt_pad_bias = jnp.where(tgt_in == pad_idx, NEG_INF, 0.0)[:, None, :]
    causal = jnp.where(jnp.tril(jnp.ones((Tt, Tt), F32)) == 1.0, 0.0, NEG_INF)

    # embeddings (gather glue) + scale + positional encoding (f32)
    scale = math.sqrt(D)
    src_x = jnp.take(params["src_emb"], src_ids, axis=0) * scale
    tgt_x = jnp.take(params["tgt_emb"], tgt_in, axis=0) * scale
    src_x = src_x + params["pe"][:Ss][None, :, :]
    tgt_x = tgt_x + params["pe"][:Tt][None, :, :]

    bt_enc = _pick_bt(B, (Ss,))
    bt_dec = _pick_bt(B, (Tt, Ss))

    # encoder (bf16 inter-layer activations, 2-D [B*S, D])
    x = src_x.reshape(B * Ss, D).astype(BF16)
    for lp in params["enc_layers"]:
        x = encoder_layer(x, src_pad_bias, lp, H=H, S=Ss, Bt=bt_enc)
    memory = x                                   # [B*Ss, D] bf16

    # decoder
    # TODO(synk): on v5e/v6e (128 MiB VMEM) two or more layers could be fused
    # per pallas_call / next-layer weights prefetched cross-call (P10).
    y = tgt_x.reshape(B * Tt, D).astype(BF16)
    for lp in params["dec_layers"]:
        y = decoder_layer(y, memory, causal, tgt_pad_bias, src_pad_bias,
                          lp, H=H, Tt=Tt, Ss=Ss, Bt=bt_dec)

    # output projection (padded vocab, slice back)
    logits_pad = output_projection(y, params["out_w"], params["out_b"])
    logits = logits_pad[:, :tgt_vocab].reshape(B, Tt, tgt_vocab)

    # orthogonality penalty over the (f32) Q/K/V projection matrices
    penalty = ortho_penalty(params["ortho_mats"], ortho_penalty_weight)

    return logits, penalty


# ----------------------------------------------------------------------------
# Main
# ----------------------------------------------------------------------------
if __name__ == "__main__":
    # small config consistent with the module's __init__ signature
    SRC_VOCAB, TGT_VOCAB = 50, 60
    D_MODEL, NHEAD = 32, 4
    N_ENC, N_DEC = 2, 2
    DIM_FF = 64
    MAX_SEQ = 16
    PAD_IDX = 1
    ORTHO_W = 0.01

    B, S_SRC, S_TGT = 2, 8, 9  # tgt input length = S_TGT - 1 = 8

    # feature-detect single-buffered constant blocks before any tracing
    probe_single_buffer()

    key = jax.random.PRNGKey(0)
    kp, ks, kt = jax.random.split(key, 3)

    params = init_params(kp, SRC_VOCAB, TGT_VOCAB, D_MODEL, NHEAD, DIM_FF,
                         N_ENC, N_DEC, MAX_SEQ, PAD_IDX)

    src_ids = jax.random.randint(ks, (B, S_SRC), 2, SRC_VOCAB, dtype=jnp.int32)
    tgt_ids = jax.random.randint(kt, (B, S_TGT), 2, TGT_VOCAB, dtype=jnp.int32)
    # introduce some padding tokens
    src_ids = src_ids.at[:, -2:].set(PAD_IDX)
    tgt_ids = tgt_ids.at[:, -1:].set(PAD_IDX)

    fwd = jax.jit(
        functools.partial(
            translation_forward,
            H=NHEAD,
            pad_idx=PAD_IDX,
            ortho_penalty_weight=ORTHO_W,
            tgt_vocab=TGT_VOCAB,
        )
    )
    logits, penalty = fwd(params, src_ids, tgt_ids)
    jax.block_until_ready((logits, penalty))

    assert logits.shape == (B, S_TGT - 1, TGT_VOCAB)
    assert penalty.shape == ()
    assert bool(jnp.all(jnp.isfinite(logits))) and bool(jnp.isfinite(penalty))
    print("KERNEL_OK")
</pallas_src>

<mosaic_0001>
module attributes {stable_mosaic.version = 11 : i64} {
  func.func @_k(%arg0: i32, %arg1: memref<8x128xf32, #tpu.memory_space<vmem>>, %arg2: memref<8x128xf32, #tpu.memory_space<vmem>>) attributes {dimension_semantics = [#tpu.dimension_semantics<arbitrary>], iteration_bounds = array<i64: 2>, scalar_prefetch = 0 : i64, scratch_operands = 0 : i64, tpu.core_type = #tpu.core_type<tc>, window_params = [{pipeline_mode = #tpu.pipeline_mode<synchronous>, transform_indices = @transform_0, window_bounds = array<i64: 8, 128>}, {pipeline_mode = #tpu.pipeline_mode<synchronous>, transform_indices = @transform_1, window_bounds = array<i64: 8, 128>}]} {
    %c0 = arith.constant 0 : index
    %c0_0 = arith.constant 0 : index
    %0 = vector.load %arg1[%c0, %c0_0] : memref<8x128xf32, #tpu.memory_space<vmem>>, vector<8x128xf32>
    %cst = arith.constant 2.000000e+00 : f32
    %1 = vector.broadcast %cst : f32 to vector<8x128xf32>
    %2 = arith.mulf %0, %1 : vector<8x128xf32>
    %c0_1 = arith.constant 0 : index
    %c0_2 = arith.constant 0 : index
    %3 = vector.load %arg2[%c0_1, %c0_2] : memref<8x128xf32, #tpu.memory_space<vmem>>, vector<8x128xf32>
    tpu.vector_store %arg2[%c0_1, %c0_2], %2 {strides = array<i32>} : memref<8x128xf32, #tpu.memory_space<vmem>>, vector<8x128xf32>,
    return
  }
  func.func @transform_0(%arg0: i32) -> (i32, i32) {
    %c0_i32 = arith.constant 0 : i32
    %c0_i32_0 = arith.constant 0 : i32
    %c0_i32_1 = arith.constant 0 : i32
    return %c0_i32, %c0_i32_0 : i32, i32
  }
  func.func @transform_1(%arg0: i32) -> (i32, i32) {
    %c0_i32 = arith.constant 0 : i32
    %c0_i32_0 = arith.constant 0 : i32
    %c0_i32_1 = arith.constant 0 : i32
    return %c0_i32, %c0_i32_0 : i32, i32
  }
}

module attributes {stable_mosaic.version = 11 : i64} {
  func.func @_enc_layer_kernel(%arg0: i32, %arg1: memref<16x32xbf16, #tpu.memory_space<vmem>>, %arg2: memref<2x1x8xf32, #tpu.memory_space<vmem>>, %arg3: memref<32x96xbf16, #tpu.memory_space<vmem>>, %arg4: memref<1x96xf32, #tpu.memory_space<vmem>>, %arg5: memref<32x32xbf16, #tpu.memory_space<vmem>>, %arg6: memref<1x32xf32, #tpu.memory_space<vmem>>, %arg7: memref<1x32xf32, #tpu.memory_space<vmem>>, %arg8: memref<1x32xf32, #tpu.memory_space<vmem>>, %arg9: memref<32x64xbf16, #tpu.memory_space<vmem>>, %arg10: memref<1x64xf32, #tpu.memory_space<vmem>>, %arg11: memref<64x32xbf16, #tpu.memory_space<vmem>>, %arg12: memref<1x32xf32, #tpu.memory_space<vmem>>, %arg13: memref<1x32xf32, #tpu.memory_space<vmem>>, %arg14: memref<1x32xf32, #tpu.memory_space<vmem>>, %arg15: memref<16x32xbf16, #tpu.memory_space<vmem>>) attributes {dimension_semantics = [#tpu.dimension_semantics<parallel>], iteration_bounds = array<i64: 1>, scalar_prefetch = 0 : i64, scratch_operands = 0 : i64, tpu.core_type = #tpu.core_type<tc>, window_params = [{transform_indices = @transform_0, window_bounds = array<i64: 16, 32>}, {transform_indices = @transform_1, window_bounds = array<i64: 2, 1, 8>}, {pipeline_mode = #tpu.pipeline_mode<synchronous>, transform_indices = @transform_2, window_bounds = array<i64: 32, 96>}, {pipeline_mode = #tpu.pipeline_mode<synchronous>, transform_indices = @transform_3, window_bounds = array<i64: 1, 96>}, {pipeline_mode = #tpu.pipeline_mode<synchronous>, transform_indices = @transform_4, window_bounds = array<i64: 32, 32>}, {pipeline_mode = #tpu.pipeline_mode<synchronous>, transform_indices = @transform_5, window_bounds = array<i64: 1, 32>}, {pipeline_mode = #tpu.pipeline_mode<synchronous>, transform_indices = @transform_6, window_bounds = array<i64: 1, 32>}, {pipeline_mode = #tpu.pipeline_mode<synchronous>, transform_indices = @transform_7, window_bounds = array<i64: 1, 32>}, {pipeline_mode = #tpu.pipeline_mode<synchronous>, transform_indices = @transform_8, window_bounds = array<i64: 32, 64>}, {pipeline_mode = #tpu.pipeline_mode<synchronous>, transform_indices = @transform_9, window_bounds = array<i64: 1, 64>}, {pipeline_mode = #tpu.pipeline_mode<synchronous>, transform_indices = @transform_10, window_bounds = array<i64: 64, 32>}, {pipeline_mode = #tpu.pipeline_mode<synchronous>, transform_indices = @transform_11, window_bounds = array<i64: 1, 32>}, {pipeline_mode = #tpu.pipeline_mode<synchronous>, transform_indices = @transform_12, window_bounds = array<i64: 1, 32>}, {pipeline_mode = #tpu.pipeline_mode<synchronous>, transform_indices = @transform_13, window_bounds = array<i64: 1, 32>}, {transform_indices = @transform_14, window_bounds = array<i64: 16, 32>}]} {
    %c0 = arith.constant 0 : index
    %c0_0 = arith.constant 0 : index
    %0 = vector.load %arg1[%c0, %c0_0] : memref<16x32xbf16, #tpu.memory_space<vmem>>, vector<16x32xbf16>
    %1 = arith.extf %0 : vector<16x32xbf16> to vector<16x32xf32>
    %c0_1 = arith.constant 0 : index
    %c0_2 = arith.constant 0 : index
    %2 = vector.load %arg3[%c0_1, %c0_2] : memref<32x96xbf16, #tpu.memory_space<vmem>>, vector<32x96xbf16>
    %cst = arith.constant dense<0.000000e+00> : vector<16x96xf32>
    %3 = tpu.matmul %0, %2, %cst {dimension_numbers = #tpu.dot_dimension_numbers<[1], [0], [0], [1], [0, 0, 1, 1], [], []>} : vector<16x32xbf16>, vector<32x96xbf16>, vector<16x96xf32> -> vector<16x96xf32>
    %c0_3 = arith.constant 0 : index
    %c0_4 = arith.constant 0 : index
    %4 = vector.load %arg4[%c0_3, %c0_4] : memref<1x96xf32, #tpu.memory_space<vmem>>, vector<1x96xf32>
    %5 = vector.broadcast %4 : vector<1x96xf32> to vector<16x96xf32>
    %6 = arith.addf %3, %5 : vector<16x96xf32>
    %7 = vector.extract_strided_slice %6 {offsets = [0, 0], sizes = [8, 96], strides = [1, 1]} : vector<16x96xf32> to vector<8x96xf32>
    %8 = vector.extract_strided_slice %7 {offsets = [0, 0], sizes = [8, 32], strides = [1, 1]} : vector<8x96xf32> to vector<8x32xf32>
    %9 = vector.extract_strided_slice %7 {offsets = [0, 32], sizes = [8, 32], strides = [1, 1]} : vector<8x96xf32> to vector<8x32xf32>
    %10 = vector.extract_strided_slice %7 {offsets = [0, 64], sizes = [8, 32], strides = [1, 1]} : vector<8x96xf32> to vector<8x32xf32>
    %c0_5 = arith.constant 0 : index
    %c0_6 = arith.constant 0 : index
    %c0_7 = arith.constant 0 : index
    %11 = vector.load %arg2[%c0_5, %c0_6, %c0_7] : memref<2x1x8xf32, #tpu.memory_space<vmem>>, vector<1x1x8xf32>
    %12 = vector.shape_cast %11 : vector<1x1x8xf32> to vector<1x8xf32>
    %13 = vector.extract_strided_slice %8 {offsets = [0, 0], sizes = [8, 8], strides = [1, 1]} : vector<8x32xf32> to vector<8x8xf32>
    %14 = arith.truncf %13 : vector<8x8xf32> to vector<8x8xbf16>
    %15 = vector.extract_strided_slice %9 {offsets = [0, 0], sizes = [8, 8], strides = [1, 1]} : vector<8x32xf32> to vector<8x8xf32>
    %16 = arith.truncf %15 : vector<8x8xf32> to vector<8x8xbf16>
    %17 = vector.extract_strided_slice %10 {offsets = [0, 0], sizes = [8, 8], strides = [1, 1]} : vector<8x32xf32> to vector<8x8xf32>
    %18 = arith.truncf %17 : vector<8x8xf32> to vector<8x8xbf16>
    %cst_8 = arith.constant dense<0.000000e+00> : vector<8x8xf32>
    %19 = tpu.matmul %14, %16, %cst_8 {dimension_numbers = #tpu.dot_dimension_numbers<[1], [1], [0], [0], [0, 0, 1, 0], [], []>} : vector<8x8xbf16>, vector<8x8xbf16>, vector<8x8xf32> -> vector<8x8xf32>
    %cst_9 = arith.constant 0.353553385 : f32
    %20 = vector.broadcast %cst_9 : f32 to vector<8x8xf32>
    %21 = arith.mulf %19, %20 : vector<8x8xf32>
    %22 = vector.broadcast %12 : vector<1x8xf32> to vector<8x8xf32>
    %23 = arith.addf %21, %22 : vector<8x8xf32>
    %cst_10 = arith.constant dense<0xFF800000> : vector<8xf32>
    %24 = vector.multi_reduction <maximumf>, %23, %cst_10 [1] : vector<8x8xf32> to vector<8xf32>
    %25 = vector.shape_cast %24 : vector<8xf32> to vector<8x1xf32>
    %26 = vector.broadcast %25 : vector<8x1xf32> to vector<8x8xf32>
    %27 = arith.subf %23, %26 : vector<8x8xf32>
    %28 = math.exp %27 : vector<8x8xf32>
    %cst_11 = arith.constant dense<0.000000e+00> : vector<8xf32>
    %29 = vector.multi_reduction <add>, %28, %cst_11 [1] : vector<8x8xf32> to vector<8xf32>
    %30 = vector.shape_cast %29 : vector<8xf32> to vector<8x1xf32>
    %31 = tpu.reciprocal %30 {approx = true} : vector<8x1xf32> -> vector<8x1xf32>
    %32 = vector.broadcast %31 : vector<8x1xf32> to vector<8x8xf32>
    %33 = arith.mulf %28, %32 : vector<8x8xf32>
    %34 = arith.truncf %33 : vector<8x8xf32> to vector<8x8xbf16>
    %cst_12 = arith.constant dense<0.000000e+00> : vector<8x8xf32>
    %35 = tpu.matmul %34, %18, %cst_12 {dimension_numbers = #tpu.dot_dimension_numbers<[1], [0], [0], [1], [0, 0, 1, 1], [], []>} : vector<8x8xbf16>, vector<8x8xbf16>, vector<8x8xf32> -> vector<8x8xf32>
    %36 = vector.extract_strided_slice %8 {offsets = [0, 8], sizes = [8, 8], strides = [1, 1]} : vector<8x32xf32> to vector<8x8xf32>
    %37 = arith.truncf %36 : vector<8x8xf32> to vector<8x8xbf16>
    %38 = vector.extract_strided_slice %9 {offsets = [0, 8], sizes = [8, 8], strides = [1, 1]} : vector<8x32xf32> to vector<8x8xf32>
    %39 = arith.truncf %38 : vector<8x8xf32> to vector<8x8xbf16>
    %40 = vector.extract_strided_slice %10 {offsets = [0, 8], sizes = [8, 8], strides = [1, 1]} : vector<8x32xf32> to vector<8x8xf32>
    %41 = arith.truncf %40 : vector<8x8xf32> to vector<8x8xbf16>
    %cst_13 = arith.constant dense<0.000000e+00> : vector<8x8xf32>
    %42 = tpu.matmul %37, %39, %cst_13 {dimension_numbers = #tpu.dot_dimension_numbers<[1], [1], [0], [0], [0, 0, 1, 0], [], []>} : vector<8x8xbf16>, vector<8x8xbf16>, vector<8x8xf32> -> vector<8x8xf32>
    %cst_14 = arith.constant 0.353553385 : f32
    %43 = vector.broadcast %cst_14 : f32 to vector<8x8xf32>
    %44 = arith.mulf %42, %43 : vector<8x8xf32>
    %45 = vector.broadcast %12 : vector<1x8xf32> to vector<8x8xf32>
    %46 = arith.addf %44, %45 : vector<8x8xf32>
    %cst_15 = arith.constant dense<0xFF800000> : vector<8xf32>
    %47 = vector.multi_reduction <maximumf>, %46, %cst_15 [1] : vector<8x8xf32> to vector<8xf32>
    %48 = vector.shape_cast %47 : vector<8xf32> to vector<8x1xf32>
    %49 = vector.broadcast %48 : vector<8x1xf32> to vector<8x8xf32>
    %50 = arith.subf %46, %49 : vector<8x8xf32>
    %51 = math.exp %50 : vector<8x8xf32>
    %cst_16 = arith.constant dense<0.000000e+00> : vector<8xf32>
    %52 = vector.multi_reduction <add>, %51, %cst_16 [1] : vector<8x8xf32> to vector<8xf32>
    %53 = vector.shape_cast %52 : vector<8xf32> to vector<8x1xf32>
    %54 = tpu.reciprocal %53 {approx = true} : vector<8x1xf32> -> vector<8x1xf32>
    %55 = vector.broadcast %54 : vector<8x1xf32> to vector<8x8xf32>
    %56 = arith.mulf %51, %55 : vector<8x8xf32>
    %57 = arith.truncf %56 : vector<8x8xf32> to vector<8x8xbf16>
    %cst_17 = arith.constant dense<0.000000e+00> : vector<8x8xf32>
    %58 = tpu.matmul %57, %41, %cst_17 {dimension_numbers = #tpu.dot_dimension_numbers<[1], [0], [0], [1], [0, 0, 1, 1], [], []>} : vector<8x8xbf16>, vector<8x8xbf16>, vector<8x8xf32> -> vector<8x8xf32>
    %59 = vector.extract_strided_slice %8 {offsets = [0, 16], sizes = [8, 8], strides = [1, 1]} : vector<8x32xf32> to vector<8x8xf32>
    %60 = arith.truncf %59 : vector<8x8xf32> to vector<8x8xbf16>
    %61 = vector.extract_strided_slice %9 {offsets = [0, 16], sizes = [8, 8], strides = [1, 1]} : vector<8x32xf32> to vector<8x8xf32>
    %62 = arith.truncf %61 : vector<8x8xf32> to vector<8x8xbf16>
    %63 = vector.extract_strided_slice %10 {offsets = [0, 16], sizes = [8, 8], strides = [1, 1]} : vector<8x32xf32> to vector<8x8xf32>
    %64 = arith.truncf %63 : vector<8x8xf32> to vector<8x8xbf16>
    %cst_18 = arith.constant dense<0.000000e+00> : vector<8x8xf32>
    %65 = tpu.matmul %60, %62, %cst_18 {dimension_numbers = #tpu.dot_dimension_numbers<[1], [1], [0], [0], [0, 0, 1, 0], [], []>} : vector<8x8xbf16>, vector<8x8xbf16>, vector<8x8xf32> -> vector<8x8xf32>
    %cst_19 = arith.constant 0.353553385 : f32
    %66 = vector.broadcast %cst_19 : f32 to vector<8x8xf32>
    %67 = arith.mulf %65, %66 : vector<8x8xf32>
    %68 = vector.broadcast %12 : vector<1x8xf32> to vector<8x8xf32>
    %69 = arith.addf %67, %68 : vector<8x8xf32>
    %cst_20 = arith.constant dense<0xFF800000> : vector<8xf32>
    %70 = vector.multi_reduction <maximumf>, %69, %cst_20 [1] : vector<8x8xf32> to vector<8xf32>
    %71 = vector.shape_cast %70 : vector<8xf32> to vector<8x1xf32>
    %72 = vector.broadcast %71 : vector<8x1xf32> to vector<8x8xf32>
    %73 = arith.subf %69, %72 : vector<8x8xf32>
    %74 = math.exp %73 : vector<8x8xf32>
    %cst_21 = arith.constant dense<0.000000e+00> : vector<8xf32>
    %75 = vector.multi_reduction <add>, %74, %cst_21 [1] : vector<8x8xf32> to vector<8xf32>
    %76 = vector.shape_cast %75 : vector<8xf32> to vector<8x1xf32>
    %77 = tpu.reciprocal %76 {approx = true} : vector<8x1xf32> -> vector<8x1xf32>
    %78 = vector.broadcast %77 : vector<8x1xf32> to vector<8x8xf32>
    %79 = arith.mulf %74, %78 : vector<8x8xf32>
    %80 = arith.truncf %79 : vector<8x8xf32> to vector<8x8xbf16>
    %cst_22 = arith.constant dense<0.000000e+00> : vector<8x8xf32>
    %81 = tpu.matmul %80, %64, %cst_22 {dimension_numbers = #tpu.dot_dimension_numbers<[1], [0], [0], [1], [0, 0, 1, 1], [], []>} : vector<8x8xbf16>, vector<8x8xbf16>, vector<8x8xf32> -> vector<8x8xf32>
    %82 = vector.extract_strided_slice %8 {offsets = [0, 24], sizes = [8, 8], strides = [1, 1]} : vector<8x32xf32> to vector<8x8xf32>
    %83 = arith.truncf %82 : vector<8x8xf32> to vector<8x8xbf16>
    %84 = vector.extract_strided_slice %9 {offsets = [0, 24], sizes = [8, 8], strides = [1, 1]} : vector<8x32xf32> to vector<8x8xf32>
    %85 = arith.truncf %84 : vector<8x8xf32> to vector<8x8xbf16>
    %86 = vector.extract_strided_slice %10 {offsets = [0, 24], sizes = [8, 8], strides = [1, 1]} : vector<8x32xf32> to vector<8x8xf32>
    %87 = arith.truncf %86 : vector<8x8xf32> to vector<8x8xbf16>
    %cst_23 = arith.constant dense<0.000000e+00> : vector<8x8xf32>
    %88 = tpu.matmul %83, %85, %cst_23 {dimension_numbers = #tpu.dot_dimension_numbers<[1], [1], [0], [0], [0, 0, 1, 0], [], []>} : vector<8x8xbf16>, vector<8x8xbf16>, vector<8x8xf32> -> vector<8x8xf32>
    %cst_24 = arith.constant 0.353553385 : f32
    %89 = vector.broadcast %cst_24 : f32 to vector<8x8xf32>
    %90 = arith.mulf %88, %89 : vector<8x8xf32>
    %91 = vector.broadcast %12 : vector<1x8xf32> to vector<8x8xf32>
    %92 = arith.addf %90, %91 : vector<8x8xf32>
    %cst_25 = arith.constant dense<0xFF800000> : vector<8xf32>
    %93 = vector.multi_reduction <maximumf>, %92, %cst_25 [1] : vector<8x8xf32> to vector<8xf32>
    %94 = vector.shape_cast %93 : vector<8xf32> to vector<8x1xf32>
    %95 = vector.broadcast %94 : vector<8x1xf32> to vector<8x8xf32>
    %96 = arith.subf %92, %95 : vector<8x8xf32>
    %97 = math.exp %96 : vector<8x8xf32>
    %cst_26 = arith.constant dense<0.000000e+00> : vector<8xf32>
    %98 = vector.multi_reduction <add>, %97, %cst_26 [1] : vector<8x8xf32> to vector<8xf32>
    %99 = vector.shape_cast %98 : vector<8xf32> to vector<8x1xf32>
    %100 = tpu.reciprocal %99 {approx = true} : vector<8x1xf32> -> vector<8x1xf32>
    %101 = vector.broadcast %100 : vector<8x1xf32> to vector<8x8xf32>
    %102 = arith.mulf %97, %101 : vector<8x8xf32>
    %103 = arith.truncf %102 : vector<8x8xf32> to vector<8x8xbf16>
    %cst_27 = arith.constant dense<0.000000e+00> : vector<8x8xf32>
    %104 = tpu.matmul %103, %87, %cst_27 {dimension_numbers = #tpu.dot_dimension_numbers<[1], [0], [0], [1], [0, 0, 1, 1], [], []>} : vector<8x8xbf16>, vector<8x8xbf16>, vector<8x8xf32> -> vector<8x8xf32>
    %105 = tpu.concatenate %35, %58, %81, %104 in 1 : vector<8x8xf32>, vector<8x8xf32>, vector<8x8xf32>, vector<8x8xf32> -> vector<8x32xf32>
    %106 = vector.extract_strided_slice %6 {offsets = [8, 0], sizes = [8, 96], strides = [1, 1]} : vector<16x96xf32> to vector<8x96xf32>
    %107 = vector.extract_strided_slice %106 {offsets = [0, 0], sizes = [8, 32], strides = [1, 1]} : vector<8x96xf32> to vector<8x32xf32>
    %108 = vector.extract_strided_slice %106 {offsets = [0, 32], sizes = [8, 32], strides = [1, 1]} : vector<8x96xf32> to vector<8x32xf32>
    %109 = vector.extract_strided_slice %106 {offsets = [0, 64], sizes = [8, 32], strides = [1, 1]} : vector<8x96xf32> to vector<8x32xf32>
    %c1 = arith.constant 1 : index
    %c0_28 = arith.constant 0 : index
    %c0_29 = arith.constant 0 : index
    %110 = vector.load %arg2[%c1, %c0_28, %c0_29] : memref<2x1x8xf32, #tpu.memory_space<vmem>>, vector<1x1x8xf32>
    %111 = vector.shape_cast %110 : vector<1x1x8xf32> to vector<1x8xf32>
    %112 = vector.extract_strided_slice %107 {offsets = [0, 0], sizes = [8, 8], strides = [1, 1]} : vector<8x32xf32> to vector<8x8xf32>
    %113 = arith.truncf %112 : vector<8x8xf32> to vector<8x8xbf16>
    %114 = vector.extract_strided_slice %108 {offsets = [0, 0], sizes = [8, 8], strides = [1, 1]} : vector<8x32xf32> to vector<8x8xf32>
    %115 = arith.truncf %114 : vector<8x8xf32> to vector<8x8xbf16>
    %116 = vector.extract_strided_slice %109 {offsets = [0, 0], sizes = [8, 8], strides = [1, 1]} : vector<8x32xf32> to vector<8x8xf32>
    %117 = arith.truncf %116 : vector<8x8xf32> to vector<8x8xbf16>
    %cst_30 = arith.constant dense<0.000000e+00> : vector<8x8xf32>
    %118 = tpu.matmul %113, %115, %cst_30 {dimension_numbers = #tpu.dot_dimension_numbers<[1], [1], [0], [0], [0, 0, 1, 0], [], []>} : vector<8x8xbf16>, vector<8x8xbf16>, vector<8x8xf32> -> vector<8x8xf32>
    %cst_31 = arith.constant 0.353553385 : f32
    %119 = vector.broadcast %cst_31 : f32 to vector<8x8xf32>
    %120 = arith.mulf %118, %119 : vector<8x8xf32>
    %121 = vector.broadcast %111 : vector<1x8xf32> to vector<8x8xf32>
    %122 = arith.addf %120, %121 : vector<8x8xf32>
    %cst_32 = arith.constant dense<0xFF800000> : vector<8xf32>
    %123 = vector.multi_reduction <maximumf>, %122, %cst_32 [1] : vector<8x8xf32> to vector<8xf32>
    %124 = vector.shape_cast %123 : vector<8xf32> to vector<8x1xf32>
    %125 = vector.broadcast %124 : vector<8x1xf32> to vector<8x8xf32>
    %126 = arith.subf %122, %125 : vector<8x8xf32>
    %127 = math.exp %126 : vector<8x8xf32>
    %cst_33 = arith.constant dense<0.000000e+00> : vector<8xf32>
    %128 = vector.multi_reduction <add>, %127, %cst_33 [1] : vector<8x8xf32> to vector<8xf32>
    %129 = vector.shape_cast %128 : vector<8xf32> to vector<8x1xf32>
    %130 = tpu.reciprocal %129 {approx = true} : vector<8x1xf32> -> vector<8x1xf32>
    %131 = vector.broadcast %130 : vector<8x1xf32> to vector<8x8xf32>
    %132 = arith.mulf %127, %131 : vector<8x8xf32>
    %133 = arith.truncf %132 : vector<8x8xf32> to vector<8x8xbf16>
    %cst_34 = arith.constant dense<0.000000e+00> : vector<8x8xf32>
    %134 = tpu.matmul %133, %117, %cst_34 {dimension_numbers = #tpu.dot_dimension_numbers<[1], [0], [0], [1], [0, 0, 1, 1], [], []>} : vector<8x8xbf16>, vector<8x8xbf16>, vector<8x8xf32> -> vector<8x8xf32>
    %135 = vector.extract_strided_slice %107 {offsets = [0, 8], sizes = [8, 8], strides = [1, 1]} : vector<8x32xf32> to vector<8x8xf32>
    %136 = arith.truncf %135 : vector<8x8xf32> to vector<8x8xbf16>
    %137 = vector.extract_strided_slice %108 {offsets = [0, 8], sizes = [8, 8], strides = [1, 1]} : vector<8x32xf32> to vector<8x8xf32>
    %138 = arith.truncf %137 : vector<8x8xf32> to vector<8x8xbf16>
    %139 = vector.extract_strided_slice %109 {offsets = [0, 8], sizes = [8, 8], strides = [1, 1]} : vector<8x32xf32> to vector<8x8xf32>
    %140 = arith.truncf %139 : vector<8x8xf32> to vector<8x8xbf16>
    %cst_35 = arith.constant dense<0.000000e+00> : vector<8x8xf32>
    %141 = tpu.matmul %136, %138, %cst_35 {dimension_numbers = #tpu.dot_dimension_numbers<[1], [1], [0], [0], [0, 0, 1, 0], [], []>} : vector<8x8xbf16>, vector<8x8xbf16>, vector<8x8xf32> -> vector<8x8xf32>
    %cst_36 = arith.constant 0.353553385 : f32
    %142 = vector.broadcast %cst_36 : f32 to vector<8x8xf32>
    %143 = arith.mulf %141, %142 : vector<8x8xf32>
    %144 = vector.broadcast %111 : vector<1x8xf32> to vector<8x8xf32>
    %145 = arith.addf %143, %144 : vector<8x8xf32>
    %cst_37 = arith.constant dense<0xFF800000> : vector<8xf32>
    %146 = vector.multi_reduction <maximumf>, %145, %cst_37 [1] : vector<8x8xf32> to vector<8xf32>
    %147 = vector.shape_cast %146 : vector<8xf32> to vector<8x1xf32>
    %148 = vector.broadcast %147 : vector<8x1xf32> to vector<8x8xf32>
    %149 = arith.subf %145, %148 : vector<8x8xf32>
    %150 = math.exp %149 : vector<8x8xf32>
    %cst_38 = arith.constant dense<0.000000e+00> : vector<8xf32>
    %151 = vector.multi_reduction <add>, %150, %cst_38 [1] : vector<8x8xf32> to vector<8xf32>
    %152 = vector.shape_cast %151 : vector<8xf32> to vector<8x1xf32>
    %153 = tpu.reciprocal %152 {approx = true} : vector<8x1xf32> -> vector<8x1xf32>
    %154 = vector.broadcast %153 : vector<8x1xf32> to vector<8x8xf32>
    %155 = arith.mulf %150, %154 : vector<8x8xf32>
    %156 = arith.truncf %155 : vector<8x8xf32> to vector<8x8xbf16>
    %cst_39 = arith.constant dense<0.000000e+00> : vector<8x8xf32>
    %157 = tpu.matmul %156, %140, %cst_39 {dimension_numbers = #tpu.dot_dimension_numbers<[1], [0], [0], [1], [0, 0, 1, 1], [], []>} : vector<8x8xbf16>, vector<8x8xbf16>, vector<8x8xf32> -> vector<8x8xf32>
    %158 = vector.extract_strided_slice %107 {offsets = [0, 16], sizes = [8, 8], strides = [1, 1]} : vector<8x32xf32> to vector<8x8xf32>
    %159 = arith.truncf %158 : vector<8x8xf32> to vector<8x8xbf16>
    %160 = vector.extract_strided_slice %108 {offsets = [0, 16], sizes = [8, 8], strides = [1, 1]} : vector<8x32xf32> to vector<8x8xf32>
    %161 = arith.truncf %160 : vector<8x8xf32> to vector<8x8xbf16>
    %162 = vector.extract_strided_slice %109 {offsets = [0, 16], sizes = [8, 8], strides = [1, 1]} : vector<8x32xf32> to vector<8x8xf32>
    %163 = arith.truncf %162 : vector<8x8xf32> to vector<8x8xbf16>
    %cst_40 = arith.constant dense<0.000000e+00> : vector<8x8xf32>
    %164 = tpu.matmul %159, %161, %cst_40 {dimension_numbers = #tpu.dot_dimension_numbers<[1], [1], [0], [0], [0, 0, 1, 0], [], []>} : vector<8x8xbf16>, vector<8x8xbf16>, vector<8x8xf32> -> vector<8x8xf32>
    %cst_41 = arith.constant 0.353553385 : f32
    %165 = vector.broadcast %cst_41 : f32 to vector<8x8xf32>
    %166 = arith.mulf %164, %165 : vector<8x8xf32>
    %167 = vector.broadcast %111 : vector<1x8xf32> to vector<8x8xf32>
    %168 = arith.addf %166, %167 : vector<8x8xf32>
    %cst_42 = arith.constant dense<0xFF800000> : vector<8xf32>
    %169 = vector.multi_reduction <maximumf>, %168, %cst_42 [1] : vector<8x8xf32> to vector<8xf32>
    %170 = vector.shape_cast %169 : vector<8xf32> to vector<8x1xf32>
    %171 = vector.broadcast %170 : vector<8x1xf32> to vector<8x8xf32>
    %172 = arith.subf %168, %171 : vector<8x8xf32>
    %173 = math.exp %172 : vector<8x8xf32>
    %cst_43 = arith.constant dense<0.000000e+00> : vector<8xf32>
    %174 = vector.multi_reduction <add>, %173, %cst_43 [1] : vector<8x8xf32> to vector<8xf32>
    %175 = vector.shape_cast %174 : vector<8xf32> to vector<8x1xf32>
    %176 = tpu.reciprocal %175 {approx = true} : vector<8x1xf32> -> vector<8x1xf32>
    %177 = vector.broadcast %176 : vector<8x1xf32> to vector<8x8xf32>
    %178 = arith.mulf %173, %177 : vector<8x8xf32>
    %179 = arith.truncf %178 : vector<8x8xf32> to vector<8x8xbf16>
    %cst_44 = arith.constant dense<0.000000e+00> : vector<8x8xf32>
    %180 = tpu.matmul %179, %163, %cst_44 {dimension_numbers = #tpu.dot_dimension_numbers<[1], [0], [0], [1], [0, 0, 1, 1], [], []>} : vector<8x8xbf16>, vector<8x8xbf16>, vector<8x8xf32> -> vector<8x8xf32>
    %181 = vector.extract_strided_slice %107 {offsets = [0, 24], sizes = [8, 8], strides = [1, 1]} : vector<8x32xf32> to vector<8x8xf32>
    %182 = arith.truncf %181 : vector<8x8xf32> to vector<8x8xbf16>
    %183 = vector.extract_strided_slice %108 {offsets = [0, 24], sizes = [8, 8], strides = [1, 1]} : vector<8x32xf32> to vector<8x8xf32>
    %184 = arith.truncf %183 : vector<8x8xf32> to vector<8x8xbf16>
    %185 = vector.extract_strided_slice %109 {offsets = [0, 24], sizes = [8, 8], strides = [1, 1]} : vector<8x32xf32> to vector<8x8xf32>
    %186 = arith.truncf %185 : vector<8x8xf32> to vector<8x8xbf16>
    %cst_45 = arith.constant dense<0.000000e+00> : vector<8x8xf32>
    %187 = tpu.matmul %182, %184, %cst_45 {dimension_numbers = #tpu.dot_dimension_numbers<[1], [1], [0], [0], [0, 0, 1, 0], [], []>} : vector<8x8xbf16>, vector<8x8xbf16>, vector<8x8xf32> -> vector<8x8xf32>
    %cst_46 = arith.constant 0.353553385 : f32
    %188 = vector.broadcast %cst_46 : f32 to vector<8x8xf32>
    %189 = arith.mulf %187, %188 : vector<8x8xf32>
    %190 = vector.broadcast %111 : vector<1x8xf32> to vector<8x8xf32>
    %191 = arith.addf %189, %190 : vector<8x8xf32>
    %cst_47 = arith.constant dense<0xFF800000> : vector<8xf32>
    %192 = vector.multi_reduction <maximumf>, %191, %cst_47 [1] : vector<8x8xf32> to vector<8xf32>
    %193 = vector.shape_cast %192 : vector<8xf32> to vector<8x1xf32>
    %194 = vector.broadcast %193 : vector<8x1xf32> to vector<8x8xf32>
    %195 = arith.subf %191, %194 : vector<8x8xf32>
    %196 = math.exp %195 : vector<8x8xf32>
    %cst_48 = arith.constant dense<0.000000e+00> : vector<8xf32>
    %197 = vector.multi_reduction <add>, %196, %cst_48 [1] : vector<8x8xf32> to vector<8xf32>
    %198 = vector.shape_cast %197 : vector<8xf32> to vector<8x1xf32>
    %199 = tpu.reciprocal %198 {approx = true} : vector<8x1xf32> -> vector<8x1xf32>
    %200 = vector.broadcast %199 : vector<8x1xf32> to vector<8x8xf32>
    %201 = arith.mulf %196, %200 : vector<8x8xf32>
    %202 = arith.truncf %201 : vector<8x8xf32> to vector<8x8xbf16>
    %cst_49 = arith.constant dense<0.000000e+00> : vector<8x8xf32>
    %203 = tpu.matmul %202, %186, %cst_49 {dimension_numbers = #tpu.dot_dimension_numbers<[1], [0], [0], [1], [0, 0, 1, 1], [], []>} : vector<8x8xbf16>, vector<8x8xbf16>, vector<8x8xf32> -> vector<8x8xf32>
    %204 = tpu.concatenate %134, %157, %180, %203 in 1 : vector<8x8xf32>, vector<8x8xf32>, vector<8x8xf32>, vector<8x8xf32> -> vector<8x32xf32>
    %205 = tpu.concatenate %105, %204 in 0 : vector<8x32xf32>, vector<8x32xf32> -> vector<16x32xf32>
    %206 = arith.truncf %205 : vector<16x32xf32> to vector<16x32xbf16>
    %c0_50 = arith.constant 0 : index
    %c0_51 = arith.constant 0 : index
    %207 = vector.load %arg5[%c0_50, %c0_51] : memref<32x32xbf16, #tpu.memory_space<vmem>>, vector<32x32xbf16>
    %cst_52 = arith.constant dense<0.000000e+00> : vector<16x32xf32>
    %208 = tpu.matmul %206, %207, %cst_52 {dimension_numbers = #tpu.dot_dimension_numbers<[1], [0], [0], [1], [0, 0, 1, 1], [], []>} : vector<16x32xbf16>, vector<32x32xbf16>, vector<16x32xf32> -> vector<16x32xf32>
    %c0_53 = arith.constant 0 : index
    %c0_54 = arith.constant 0 : index
    %209 = vector.load %arg6[%c0_53, %c0_54] : memref<1x32xf32, #tpu.memory_space<vmem>>, vector<1x32xf32>
    %210 = vector.broadcast %209 : vector<1x32xf32> to vector<16x32xf32>
    %211 = arith.addf %208, %210 : vector<16x32xf32>
    %212 = arith.addf %1, %211 : vector<16x32xf32>
    %c0_55 = arith.constant 0 : index
    %c0_56 = arith.constant 0 : index
    %213 = vector.load %arg7[%c0_55, %c0_56] : memref<1x32xf32, #tpu.memory_space<vmem>>, vector<1x32xf32>
    %c0_57 = arith.constant 0 : index
    %c0_58 = arith.constant 0 : index
    %214 = vector.load %arg8[%c0_57, %c0_58] : memref<1x32xf32, #tpu.memory_space<vmem>>, vector<1x32xf32>
    %cst_59 = arith.constant dense<0.000000e+00> : vector<16xf32>
    %215 = vector.multi_reduction <add>, %212, %cst_59 [1] : vector<16x32xf32> to vector<16xf32>
    %216 = vector.shape_cast %215 : vector<16xf32> to vector<16x1xf32>
    %cst_60 = arith.constant 3.200000e+01 : f32
    %217 = vector.broadcast %cst_60 : f32 to vector<16x1xf32>
    %218 = arith.divf %216, %217 : vector<16x1xf32>
    %219 = vector.broadcast %218 : vector<16x1xf32> to vector<16x32xf32>
    %220 = arith.subf %212, %219 : vector<16x32xf32>
    %221 = arith.mulf %220, %220 : vector<16x32xf32>
    %cst_61 = arith.constant dense<0.000000e+00> : vector<16xf32>
    %222 = vector.multi_reduction <add>, %221, %cst_61 [1] : vector<16x32xf32> to vector<16xf32>
    %223 = vector.shape_cast %222 : vector<16xf32> to vector<16x1xf32>
    %cst_62 = arith.constant 3.200000e+01 : f32
    %224 = vector.broadcast %cst_62 : f32 to vector<16x1xf32>
    %225 = arith.divf %223, %224 : vector<16x1xf32>
    %cst_63 = arith.constant 9.99999974E-6 : f32
    %226 = vector.broadcast %cst_63 : f32 to vector<16x1xf32>
    %227 = arith.addf %225, %226 : vector<16x1xf32>
    %228 = math.rsqrt %227 : vector<16x1xf32>
    %229 = vector.broadcast %228 : vector<16x1xf32> to vector<16x32xf32>
    %230 = arith.mulf %220, %229 : vector<16x32xf32>
    %231 = vector.broadcast %213 : vector<1x32xf32> to vector<16x32xf32>
    %232 = arith.mulf %230, %231 : vector<16x32xf32>
    %233 = vector.broadcast %214 : vector<1x32xf32> to vector<16x32xf32>
    %234 = arith.addf %232, %233 : vector<16x32xf32>
    %235 = arith.truncf %234 : vector<16x32xf32> to vector<16x32xbf16>
    %c0_64 = arith.constant 0 : index
    %c0_65 = arith.constant 0 : index
    %236 = vector.load %arg9[%c0_64, %c0_65] : memref<32x64xbf16, #tpu.memory_space<vmem>>, vector<32x64xbf16>
    %cst_66 = arith.constant dense<0.000000e+00> : vector<16x64xf32>
    %237 = tpu.matmul %235, %236, %cst_66 {dimension_numbers = #tpu.dot_dimension_numbers<[1], [0], [0], [1], [0, 0, 1, 1], [], []>} : vector<16x32xbf16>, vector<32x64xbf16>, vector<16x64xf32> -> vector<16x64xf32>
    %c0_67 = arith.constant 0 : index
    %c0_68 = arith.constant 0 : index
    %238 = vector.load %arg10[%c0_67, %c0_68] : memref<1x64xf32, #tpu.memory_space<vmem>>, vector<1x64xf32>
    %239 = vector.broadcast %238 : vector<1x64xf32> to vector<16x64xf32>
    %240 = arith.addf %237, %239 : vector<16x64xf32>
    %cst_69 = arith.constant 0.000000e+00 : f32
    %241 = vector.broadcast %cst_69 : f32 to vector<16x64xf32>
    %242 = arith.maximumf %240, %241 : vector<16x64xf32>
    %243 = arith.truncf %242 : vector<16x64xf32> to vector<16x64xbf16>
    %c0_70 = arith.constant 0 : index
    %c0_71 = arith.constant 0 : index
    %244 = vector.load %arg11[%c0_70, %c0_71] : memref<64x32xbf16, #tpu.memory_space<vmem>>, vector<64x32xbf16>
    %cst_72 = arith.constant dense<0.000000e+00> : vector<16x32xf32>
    %245 = tpu.matmul %243, %244, %cst_72 {dimension_numbers = #tpu.dot_dimension_numbers<[1], [0], [0], [1], [0, 0, 1, 1], [], []>} : vector<16x64xbf16>, vector<64x32xbf16>, vector<16x32xf32> -> vector<16x32xf32>
    %c0_73 = arith.constant 0 : index
    %c0_74 = arith.constant 0 : index
    %246 = vector.load %arg12[%c0_73, %c0_74] : memref<1x32xf32, #tpu.memory_space<vmem>>, vector<1x32xf32>
    %247 = vector.broadcast %246 : vector<1x32xf32> to vector<16x32xf32>
    %248 = arith.addf %245, %247 : vector<16x32xf32>
    %249 = arith.addf %234, %248 : vector<16x32xf32>
    %c0_75 = arith.constant 0 : index
    %c0_76 = arith.constant 0 : index
    %250 = vector.load %arg13[%c0_75, %c0_76] : memref<1x32xf32, #tpu.memory_space<vmem>>, vector<1x32xf32>
    %c0_77 = arith.constant 0 : index
    %c0_78 = arith.constant 0 : index
    %251 = vector.load %arg14[%c0_77, %c0_78] : memref<1x32xf32, #tpu.memory_space<vmem>>, vector<1x32xf32>
    %cst_79 = arith.constant dense<0.000000e+00> : vector<16xf32>
    %252 = vector.multi_reduction <add>, %249, %cst_79 [1] : vector<16x32xf32> to vector<16xf32>
    %253 = vector.shape_cast %252 : vector<16xf32> to vector<16x1xf32>
    %cst_80 = arith.constant 3.200000e+01 : f32
    %254 = vector.broadcast %cst_80 : f32 to vector<16x1xf32>
    %255 = arith.divf %253, %254 : vector<16x1xf32>
    %256 = vector.broadcast %255 : vector<16x1xf32> to vector<16x32xf32>
    %257 = arith.subf %249, %256 : vector<16x32xf32>
    %258 = arith.mulf %257, %257 : vector<16x32xf32>
    %cst_81 = arith.constant dense<0.000000e+00> : vector<16xf32>
    %259 = vector.multi_reduction <add>, %258, %cst_81 [1] : vector<16x32xf32> to vector<16xf32>
    %260 = vector.shape_cast %259 : vector<16xf32> to vector<16x1xf32>
    %cst_82 = arith.constant 3.200000e+01 : f32
    %261 = vector.broadcast %cst_82 : f32 to vector<16x1xf32>
    %262 = arith.divf %260, %261 : vector<16x1xf32>
    %cst_83 = arith.constant 9.99999974E-6 : f32
    %263 = vector.broadcast %cst_83 : f32 to vector<16x1xf32>
    %264 = arith.addf %262, %263 : vector<16x1xf32>
    %265 = math.rsqrt %264 : vector<16x1xf32>
    %266 = vector.broadcast %265 : vector<16x1xf32> to vector<16x32xf32>
    %267 = arith.mulf %257, %266 : vector<16x32xf32>
    %268 = vector.broadcast %250 : vector<1x32xf32> to vector<16x32xf32>
    %269 = arith.mulf %267, %268 : vector<16x32xf32>
    %270 = vector.broadcast %251 : vector<1x32xf32> to vector<16x32xf32>
    %271 = arith.addf %269, %270 : vector<16x32xf32>
    %272 = arith.truncf %271 : vector<16x32xf32> to vector<16x32xbf16>
    %c0_84 = arith.constant 0 : index
    %c0_85 = arith.constant 0 : index
    %273 = vector.load %arg15[%c0_84, %c0_85] : memref<16x32xbf16, #tpu.memory_space<vmem>>, vector<16x32xbf16>
    tpu.vector_store %arg15[%c0_84, %c0_85], %272 {strides = array<i32>} : memref<16x32xbf16, #tpu.memory_space<vmem>>, vector<16x32xbf16>,
    return
  }
  func.func @transform_0(%arg0: i32) -> (i32, i32) {
    %c0_i32 = arith.constant 0 : i32
    %c0_i32_0 = arith.constant 0 : i32
    return %arg0, %c0_i32 : i32, i32
  }
  func.func @transform_1(%arg0: i32) -> (i32, i32, i32) {
    %c0_i32 = arith.constant 0 : i32
    %c0_i32_0 = arith.constant 0 : i32
    %c0_i32_1 = arith.constant 0 : i32
    return %arg0, %c0_i32, %c0_i32_0 : i32, i32, i32
  }
  func.func @transform_2(%arg0: i32) -> (i32, i32) {
    %c0_i32 = arith.constant 0 : i32
    %c0_i32_0 = arith.constant 0 : i32
    %c0_i32_1 = arith.constant 0 : i32
    return %c0_i32, %c0_i32_0 : i32, i32
  }
  func.func @transform_3(%arg0: i32) -> (i32, i32) {
    %c0_i32 = arith.constant 0 : i32
    %c0_i32_0 = arith.constant 0 : i32
    %c0_i32_1 = arith.constant 0 : i32
    return %c0_i32, %c0_i32_0 : i32, i32
  }
  func.func @transform_4(%arg0: i32) -> (i32, i32) {
    %c0_i32 = arith.constant 0 : i32
    %c0_i32_0 = arith.constant 0 : i32
    %c0_i32_1 = arith.constant 0 : i32
    return %c0_i32, %c0_i32_0 : i32, i32
  }
  func.func @transform_5(%arg0: i32) -> (i32, i32) {
    %c0_i32 = arith.constant 0 : i32
    %c0_i32_0 = arith.constant 0 : i32
    %c0_i32_1 = arith.constant 0 : i32
    return %c0_i32, %c0_i32_0 : i32, i32
  }
  func.func @transform_6(%arg0: i32) -> (i32, i32) {
    %c0_i32 = arith.constant 0 : i32
    %c0_i32_0 = arith.constant 0 : i32
    %c0_i32_1 = arith.constant 0 : i32
    return %c0_i32, %c0_i32_0 : i32, i32
  }
  func.func @transform_7(%arg0: i32) -> (i32, i32) {
    %c0_i32 = arith.constant 0 : i32
    %c0_i32_0 = arith.constant 0 : i32
    %c0_i32_1 = arith.constant 0 : i32
    return %c0_i32, %c0_i32_0 : i32, i32
  }
  func.func @transform_8(%arg0: i32) -> (i32, i32) {
    %c0_i32 = arith.constant 0 : i32
    %c0_i32_0 = arith.constant 0 : i32
    %c0_i32_1 = arith.constant 0 : i32
    return %c0_i32, %c0_i32_0 : i32, i32
  }
  func.func @transform_9(%arg0: i32) -> (i32, i32) {
    %c0_i32 = arith.constant 0 : i32
    %c0_i32_0 = arith.constant 0 : i32
    %c0_i32_1 = arith.constant 0 : i32
    return %c0_i32, %c0_i32_0 : i32, i32
  }
  func.func @transform_10(%arg0: i32) -> (i32, i32) {
    %c0_i32 = arith.constant 0 : i32
    %c0_i32_0 = arith.constant 0 : i32
    %c0_i32_1 = arith.constant 0 : i32
    return %c0_i32, %c0_i32_0 : i32, i32
  }
  func.func @transform_11(%arg0: i32) -> (i32, i32) {
    %c0_i32 = arith.constant 0 : i32
    %c0_i32_0 = arith.constant 0 : i32
    %c0_i32_1 = arith.constant 0 : i32
    return %c0_i32, %c0_i32_0 : i32, i32
  }
  func.func @transform_12(%arg0: i32) -> (i32, i32) {
    %c0_i32 = arith.constant 0 : i32
    %c0_i32_0 = arith.constant 0 : i32
    %c0_i32_1 = arith.constant 0 : i32
    return %c0_i32, %c0_i32_0 : i32, i32
  }
  func.func @transform_13(%arg0: i32) -> (i32, i32) {
    %c0_i32 = arith.constant 0 : i32
    %c0_i32_0 = arith.constant 0 : i32
    %c0_i32_1 = arith.constant 0 : i32
    return %c0_i32, %c0_i32_0 : i32, i32
  }
  func.func @transform_14(%arg0: i32) -> (i32, i32) {
    %c0_i32 = arith.constant 0 : i32
    %c0_i32_0 = arith.constant 0 : i32
    return %arg0, %c0_i32 : i32, i32
  }
}

module attributes {stable_mosaic.version = 11 : i64} {
  func.func @_proj_kernel(%arg0: i32, %arg1: i32, %arg2: memref<16x32xbf16, #tpu.memory_space<vmem>>, %arg3: memref<32x128xbf16, #tpu.memory_space<vmem>>, %arg4: memref<1x128xf32, #tpu.memory_space<vmem>>, %arg5: memref<16x128xf32, #tpu.memory_space<vmem>>) attributes {dimension_semantics = [#tpu.dimension_semantics<parallel>, #tpu.dimension_semantics<parallel>], iteration_bounds = array<i64: 1, 1>, scalar_prefetch = 0 : i64, scratch_operands = 0 : i64, tpu.core_type = #tpu.core_type<tc>, window_params = [{transform_indices = @transform_0, window_bounds = array<i64: 16, 32>}, {transform_indices = @transform_1, window_bounds = array<i64: 32, 128>}, {transform_indices = @transform_2, window_bounds = array<i64: 1, 128>}, {transform_indices = @transform_3, window_bounds = array<i64: 16, 128>}]} {
    %c0 = arith.constant 0 : index
    %c0_0 = arith.constant 0 : index
    %0 = vector.load %arg2[%c0, %c0_0] : memref<16x32xbf16, #tpu.memory_space<vmem>>, vector<16x32xbf16>
    %c0_1 = arith.constant 0 : index
    %c0_2 = arith.constant 0 : index
    %1 = vector.load %arg3[%c0_1, %c0_2] : memref<32x128xbf16, #tpu.memory_space<vmem>>, vector<32x128xbf16>
    %cst = arith.constant dense<0.000000e+00> : vector<16x128xf32>
    %2 = tpu.matmul %0, %1, %cst {dimension_numbers = #tpu.dot_dimension_numbers<[1], [0], [0], [1], [0, 0, 1, 1], [], []>} : vector<16x32xbf16>, vector<32x128xbf16>, vector<16x128xf32> -> vector<16x128xf32>
    %c0_3 = arith.constant 0 : index
    %c0_4 = arith.constant 0 : index
    %3 = vector.load %arg4[%c0_3, %c0_4] : memref<1x128xf32, #tpu.memory_space<vmem>>, vector<1x128xf32>
    %4 = vector.broadcast %3 : vector<1x128xf32> to vector<16x128xf32>
    %5 = arith.addf %2, %4 : vector<16x128xf32>
    %c0_5 = arith.constant 0 : index
    %c0_6 = arith.constant 0 : index
    %6 = vector.load %arg5[%c0_5, %c0_6] : memref<16x128xf32, #tpu.memory_space<vmem>>, vector<16x128xf32>
    tpu.vector_store %arg5[%c0_5, %c0_6], %5 {strides = array<i32>} : memref<16x128xf32, #tpu.memory_space<vmem>>, vector<16x128xf32>,
    return
  }
  func.func @transform_0(%arg0: i32, %arg1: i32) -> (i32, i32) {
    %c0_i32 = arith.constant 0 : i32
    %c0_i32_0 = arith.constant 0 : i32
    return %arg1, %c0_i32 : i32, i32
  }
  func.func @transform_1(%arg0: i32, %arg1: i32) -> (i32, i32) {
    %c0_i32 = arith.constant 0 : i32
    %c0_i32_0 = arith.constant 0 : i32
    return %c0_i32, %arg0 : i32, i32
  }
  func.func @transform_2(%arg0: i32, %arg1: i32) -> (i32, i32) {
    %c0_i32 = arith.constant 0 : i32
    %c0_i32_0 = arith.constant 0 : i32
    return %c0_i32, %arg0 : i32, i32
  }
  func.func @transform_3(%arg0: i32, %arg1: i32) -> (i32, i32) {
    %c0_i32 = arith.constant 0 : i32
    return %arg1, %arg0 : i32, i32
  }
}

module attributes {stable_mosaic.version = 11 : i64} {
  func.func @_dec_layer_kernel(%arg0: i32, %arg1: memref<16x32xbf16, #tpu.memory_space<vmem>>, %arg2: memref<16x32xbf16, #tpu.memory_space<vmem>>, %arg3: memref<8x8xf32, #tpu.memory_space<vmem>>, %arg4: memref<2x1x8xf32, #tpu.memory_space<vmem>>, %arg5: memref<2x1x8xf32, #tpu.memory_space<vmem>>, %arg6: memref<32x96xbf16, #tpu.memory_space<vmem>>, %arg7: memref<1x96xf32, #tpu.memory_space<vmem>>, %arg8: memref<32x32xbf16, #tpu.memory_space<vmem>>, %arg9: memref<1x32xf32, #tpu.memory_space<vmem>>, %arg10: memref<32x32xbf16, #tpu.memory_space<vmem>>, %arg11: memref<1x32xf32, #tpu.memory_space<vmem>>, %arg12: memref<32x64xbf16, #tpu.memory_space<vmem>>, %arg13: memref<1x64xf32, #tpu.memory_space<vmem>>, %arg14: memref<32x32xbf16, #tpu.memory_space<vmem>>, %arg15: memref<1x32xf32, #tpu.memory_space<vmem>>, %arg16: memref<1x32xf32, #tpu.memory_space<vmem>>, %arg17: memref<1x32xf32, #tpu.memory_space<vmem>>, %arg18: memref<1x32xf32, #tpu.memory_space<vmem>>, %arg19: memref<1x32xf32, #tpu.memory_space<vmem>>, %arg20: memref<32x64xbf16, #tpu.memory_space<vmem>>, %arg21: memref<1x64xf32, #tpu.memory_space<vmem>>, %arg22: memref<64x32xbf16, #tpu.memory_space<vmem>>, %arg23: memref<1x32xf32, #tpu.memory_space<vmem>>, %arg24: memref<1x32xf32, #tpu.memory_space<vmem>>, %arg25: memref<1x32xf32, #tpu.memory_space<vmem>>, %arg26: memref<16x32xbf16, #tpu.memory_space<vmem>>) attributes {dimension_semantics = [#tpu.dimension_semantics<parallel>], iteration_bounds = array<i64: 1>, scalar_prefetch = 0 : i64, scratch_operands = 0 : i64, tpu.core_type = #tpu.core_type<tc>, window_params = [{transform_indices = @transform_0, window_bounds = array<i64: 16, 32>}, {transform_indices = @transform_1, window_bounds = array<i64: 16, 32>}, {pipeline_mode = #tpu.pipeline_mode<synchronous>, transform_indices = @transform_2, window_bounds = array<i64: 8, 8>}, {transform_indices = @transform_3, window_bounds = array<i64: 2, 1, 8>}, {transform_indices = @transform_4, window_bounds = array<i64: 2, 1, 8>}, {pipeline_mode = #tpu.pipeline_mode<synchronous>, transform_indices = @transform_5, window_bounds = array<i64: 32, 96>}, {pipeline_mode = #tpu.pipeline_mode<synchronous>, transform_indices = @transform_6, window_bounds = array<i64: 1, 96>}, {pipeline_mode = #tpu.pipeline_mode<synchronous>, transform_indices = @transform_7, window_bounds = array<i64: 32, 32>}, {pipeline_mode = #tpu.pipeline_mode<synchronous>, transform_indices = @transform_8, window_bounds = array<i64: 1, 32>}, {pipeline_mode = #tpu.pipeline_mode<synchronous>, transform_indices = @transform_9, window_bounds = array<i64: 32, 32>}, {pipeline_mode = #tpu.pipeline_mode<synchronous>, transform_indices = @transform_10, window_bounds = array<i64: 1, 32>}, {pipeline_mode = #tpu.pipeline_mode<synchronous>, transform_indices = @transform_11, window_bounds = array<i64: 32, 64>}, {pipeline_mode = #tpu.pipeline_mode<synchronous>, transform_indices = @transform_12, window_bounds = array<i64: 1, 64>}, {pipeline_mode = #tpu.pipeline_mode<synchronous>, transform_indices = @transform_13, window_bounds = array<i64: 32, 32>}, {pipeline_mode = #tpu.pipeline_mode<synchronous>, transform_indices = @transform_14, window_bounds = array<i64: 1, 32>}, {pipeline_mode = #tpu.pipeline_mode<synchronous>, transform_indices = @transform_15, window_bounds = array<i64: 1, 32>}, {pipeline_mode = #tpu.pipeline_mode<synchronous>, transform_indices = @transform_16, window_bounds = array<i64: 1, 32>}, {pipeline_mode = #tpu.pipeline_mode<synchronous>, transform_indices = @transform_17, window_bounds = array<i64: 1, 32>}, {pipeline_mode = #tpu.pipeline_mode<synchronous>, transform_indices = @transform_18, window_bounds = array<i64: 1, 32>}, {pipeline_mode = #tpu.pipeline_mode<synchronous>, transform_indices = @transform_19, window_bounds = array<i64: 32, 64>}, {pipeline_mode = #tpu.pipeline_mode<synchronous>, transform_indices = @transform_20, window_bounds = array<i64: 1, 64>}, {pipeline_mode = #tpu.pipeline_mode<synchronous>, transform_indices = @transform_21, window_bounds = array<i64: 64, 32>}, {pipeline_mode = #tpu.pipeline_mode<synchronous>, transform_indices = @transform_22, window_bounds = array<i64: 1, 32>}, {pipeline_mode = #tpu.pipeline_mode<synchronous>, transform_indices = @transform_23, window_bounds = array<i64: 1, 32>}, {pipeline_mode = #tpu.pipeline_mode<synchronous>, transform_indices = @transform_24, window_bounds = array<i64: 1, 32>}, {transform_indices = @transform_25, window_bounds = array<i64: 16, 32>}]} {
    %c0 = arith.constant 0 : index
    %c0_0 = arith.constant 0 : index
    %0 = vector.load %arg1[%c0, %c0_0] : memref<16x32xbf16, #tpu.memory_space<vmem>>, vector<16x32xbf16>
    %1 = arith.extf %0 : vector<16x32xbf16> to vector<16x32xf32>
    %c0_1 = arith.constant 0 : index
    %c0_2 = arith.constant 0 : index
    %2 = vector.load %arg2[%c0_1, %c0_2] : memref<16x32xbf16, #tpu.memory_space<vmem>>, vector<16x32xbf16>
    %c0_3 = arith.constant 0 : index
    %c0_4 = arith.constant 0 : index
    %3 = vector.load %arg6[%c0_3, %c0_4] : memref<32x96xbf16, #tpu.memory_space<vmem>>, vector<32x96xbf16>
    %cst = arith.constant dense<0.000000e+00> : vector<16x96xf32>
    %4 = tpu.matmul %0, %3, %cst {dimension_numbers = #tpu.dot_dimension_numbers<[1], [0], [0], [1], [0, 0, 1, 1], [], []>} : vector<16x32xbf16>, vector<32x96xbf16>, vector<16x96xf32> -> vector<16x96xf32>
    %c0_5 = arith.constant 0 : index
    %c0_6 = arith.constant 0 : index
    %5 = vector.load %arg7[%c0_5, %c0_6] : memref<1x96xf32, #tpu.memory_space<vmem>>, vector<1x96xf32>
    %6 = vector.broadcast %5 : vector<1x96xf32> to vector<16x96xf32>
    %7 = arith.addf %4, %6 : vector<16x96xf32>
    %8 = vector.extract_strided_slice %7 {offsets = [0, 0], sizes = [8, 96], strides = [1, 1]} : vector<16x96xf32> to vector<8x96xf32>
    %c0_7 = arith.constant 0 : index
    %c0_8 = arith.constant 0 : index
    %9 = vector.load %arg3[%c0_7, %c0_8] : memref<8x8xf32, #tpu.memory_space<vmem>>, vector<8x8xf32>
    %10 = vector.shape_cast %9 : vector<8x8xf32> to vector<8x8xf32>
    %c0_9 = arith.constant 0 : index
    %c0_10 = arith.constant 0 : index
    %c0_11 = arith.constant 0 : index
    %11 = vector.load %arg4[%c0_9, %c0_10, %c0_11] : memref<2x1x8xf32, #tpu.memory_space<vmem>>, vector<1x1x8xf32>
    %12 = vector.shape_cast %11 : vector<1x1x8xf32> to vector<1x8xf32>
    %13 = vector.broadcast %12 : vector<1x8xf32> to vector<8x8xf32>
    %14 = arith.addf %10, %13 : vector<8x8xf32>
    %15 = vector.extract_strided_slice %8 {offsets = [0, 0], sizes = [8, 32], strides = [1, 1]} : vector<8x96xf32> to vector<8x32xf32>
    %16 = vector.extract_strided_slice %8 {offsets = [0, 32], sizes = [8, 32], strides = [1, 1]} : vector<8x96xf32> to vector<8x32xf32>
    %17 = vector.extract_strided_slice %8 {offsets = [0, 64], sizes = [8, 32], strides = [1, 1]} : vector<8x96xf32> to vector<8x32xf32>
    %18 = vector.extract_strided_slice %15 {offsets = [0, 0], sizes = [8, 8], strides = [1, 1]} : vector<8x32xf32> to vector<8x8xf32>
    %19 = arith.truncf %18 : vector<8x8xf32> to vector<8x8xbf16>
    %20 = vector.extract_strided_slice %16 {offsets = [0, 0], sizes = [8, 8], strides = [1, 1]} : vector<8x32xf32> to vector<8x8xf32>
    %21 = arith.truncf %20 : vector<8x8xf32> to vector<8x8xbf16>
    %22 = vector.extract_strided_slice %17 {offsets = [0, 0], sizes = [8, 8], strides = [1, 1]} : vector<8x32xf32> to vector<8x8xf32>
    %23 = arith.truncf %22 : vector<8x8xf32> to vector<8x8xbf16>
    %cst_12 = arith.constant dense<0.000000e+00> : vector<8x8xf32>
    %24 = tpu.matmul %19, %21, %cst_12 {dimension_numbers = #tpu.dot_dimension_numbers<[1], [1], [0], [0], [0, 0, 1, 0], [], []>} : vector<8x8xbf16>, vector<8x8xbf16>, vector<8x8xf32> -> vector<8x8xf32>
    %cst_13 = arith.constant 0.353553385 : f32
    %25 = vector.broadcast %cst_13 : f32 to vector<8x8xf32>
    %26 = arith.mulf %24, %25 : vector<8x8xf32>
    %27 = arith.addf %26, %14 : vector<8x8xf32>
    %cst_14 = arith.constant dense<0xFF800000> : vector<8xf32>
    %28 = vector.multi_reduction <maximumf>, %27, %cst_14 [1] : vector<8x8xf32> to vector<8xf32>
    %29 = vector.shape_cast %28 : vector<8xf32> to vector<8x1xf32>
    %30 = vector.broadcast %29 : vector<8x1xf32> to vector<8x8xf32>
    %31 = arith.subf %27, %30 : vector<8x8xf32>
    %32 = math.exp %31 : vector<8x8xf32>
    %cst_15 = arith.constant dense<0.000000e+00> : vector<8xf32>
    %33 = vector.multi_reduction <add>, %32, %cst_15 [1] : vector<8x8xf32> to vector<8xf32>
    %34 = vector.shape_cast %33 : vector<8xf32> to vector<8x1xf32>
    %35 = tpu.reciprocal %34 {approx = true} : vector<8x1xf32> -> vector<8x1xf32>
    %36 = vector.broadcast %35 : vector<8x1xf32> to vector<8x8xf32>
    %37 = arith.mulf %32, %36 : vector<8x8xf32>
    %38 = arith.truncf %37 : vector<8x8xf32> to vector<8x8xbf16>
    %cst_16 = arith.constant dense<0.000000e+00> : vector<8x8xf32>
    %39 = tpu.matmul %38, %23, %cst_16 {dimension_numbers = #tpu.dot_dimension_numbers<[1], [0], [0], [1], [0, 0, 1, 1], [], []>} : vector<8x8xbf16>, vector<8x8xbf16>, vector<8x8xf32> -> vector<8x8xf32>
    %40 = vector.extract_strided_slice %15 {offsets = [0, 8], sizes = [8, 8], strides = [1, 1]} : vector<8x32xf32> to vector<8x8xf32>
    %41 = arith.truncf %40 : vector<8x8xf32> to vector<8x8xbf16>
    %42 = vector.extract_strided_slice %16 {offsets = [0, 8], sizes = [8, 8], strides = [1, 1]} : vector<8x32xf32> to vector<8x8xf32>
    %43 = arith.truncf %42 : vector<8x8xf32> to vector<8x8xbf16>
    %44 = vector.extract_strided_slice %17 {offsets = [0, 8], sizes = [8, 8], strides = [1, 1]} : vector<8x32xf32> to vector<8x8xf32>
    %45 = arith.truncf %44 : vector<8x8xf32> to vector<8x8xbf16>
    %cst_17 = arith.constant dense<0.000000e+00> : vector<8x8xf32>
    %46 = tpu.matmul %41, %43, %cst_17 {dimension_numbers = #tpu.dot_dimension_numbers<[1], [1], [0], [0], [0, 0, 1, 0], [], []>} : vector<8x8xbf16>, vector<8x8xbf16>, vector<8x8xf32> -> vector<8x8xf32>
    %cst_18 = arith.constant 0.353553385 : f32
    %47 = vector.broadcast %cst_18 : f32 to vector<8x8xf32>
    %48 = arith.mulf %46, %47 : vector<8x8xf32>
    %49 = arith.addf %48, %14 : vector<8x8xf32>
    %cst_19 = arith.constant dense<0xFF800000> : vector<8xf32>
    %50 = vector.multi_reduction <maximumf>, %49, %cst_19 [1] : vector<8x8xf32> to vector<8xf32>
    %51 = vector.shape_cast %50 : vector<8xf32> to vector<8x1xf32>
    %52 = vector.broadcast %51 : vector<8x1xf32> to vector<8x8xf32>
    %53 = arith.subf %49, %52 : vector<8x8xf32>
    %54 = math.exp %53 : vector<8x8xf32>
    %cst_20 = arith.constant dense<0.000000e+00> : vector<8xf32>
    %55 = vector.multi_reduction <add>, %54, %cst_20 [1] : vector<8x8xf32> to vector<8xf32>
    %56 = vector.shape_cast %55 : vector<8xf32> to vector<8x1xf32>
    %57 = tpu.reciprocal %56 {approx = true} : vector<8x1xf32> -> vector<8x1xf32>
    %58 = vector.broadcast %57 : vector<8x1xf32> to vector<8x8xf32>
    %59 = arith.mulf %54, %58 : vector<8x8xf32>
    %60 = arith.truncf %59 : vector<8x8xf32> to vector<8x8xbf16>
    %cst_21 = arith.constant dense<0.000000e+00> : vector<8x8xf32>
    %61 = tpu.matmul %60, %45, %cst_21 {dimension_numbers = #tpu.dot_dimension_numbers<[1], [0], [0], [1], [0, 0, 1, 1], [], []>} : vector<8x8xbf16>, vector<8x8xbf16>, vector<8x8xf32> -> vector<8x8xf32>
    %62 = vector.extract_strided_slice %15 {offsets = [0, 16], sizes = [8, 8], strides = [1, 1]} : vector<8x32xf32> to vector<8x8xf32>
    %63 = arith.truncf %62 : vector<8x8xf32> to vector<8x8xbf16>
    %64 = vector.extract_strided_slice %16 {offsets = [0, 16], sizes = [8, 8], strides = [1, 1]} : vector<8x32xf32> to vector<8x8xf32>
    %65 = arith.truncf %64 : vector<8x8xf32> to vector<8x8xbf16>
    %66 = vector.extract_strided_slice %17 {offsets = [0, 16], sizes = [8, 8], strides = [1, 1]} : vector<8x32xf32> to vector<8x8xf32>
    %67 = arith.truncf %66 : vector<8x8xf32> to vector<8x8xbf16>
    %cst_22 = arith.constant dense<0.000000e+00> : vector<8x8xf32>
    %68 = tpu.matmul %63, %65, %cst_22 {dimension_numbers = #tpu.dot_dimension_numbers<[1], [1], [0], [0], [0, 0, 1, 0], [], []>} : vector<8x8xbf16>, vector<8x8xbf16>, vector<8x8xf32> -> vector<8x8xf32>
    %cst_23 = arith.constant 0.353553385 : f32
    %69 = vector.broadcast %cst_23 : f32 to vector<8x8xf32>
    %70 = arith.mulf %68, %69 : vector<8x8xf32>
    %71 = arith.addf %70, %14 : vector<8x8xf32>
    %cst_24 = arith.constant dense<0xFF800000> : vector<8xf32>
    %72 = vector.multi_reduction <maximumf>, %71, %cst_24 [1] : vector<8x8xf32> to vector<8xf32>
    %73 = vector.shape_cast %72 : vector<8xf32> to vector<8x1xf32>
    %74 = vector.broadcast %73 : vector<8x1xf32> to vector<8x8xf32>
    %75 = arith.subf %71, %74 : vector<8x8xf32>
    %76 = math.exp %75 : vector<8x8xf32>
    %cst_25 = arith.constant dense<0.000000e+00> : vector<8xf32>
    %77 = vector.multi_reduction <add>, %76, %cst_25 [1] : vector<8x8xf32> to vector<8xf32>
    %78 = vector.shape_cast %77 : vector<8xf32> to vector<8x1xf32>
    %79 = tpu.reciprocal %78 {approx = true} : vector<8x1xf32> -> vector<8x1xf32>
    %80 = vector.broadcast %79 : vector<8x1xf32> to vector<8x8xf32>
    %81 = arith.mulf %76, %80 : vector<8x8xf32>
    %82 = arith.truncf %81 : vector<8x8xf32> to vector<8x8xbf16>
    %cst_26 = arith.constant dense<0.000000e+00> : vector<8x8xf32>
    %83 = tpu.matmul %82, %67, %cst_26 {dimension_numbers = #tpu.dot_dimension_numbers<[1], [0], [0], [1], [0, 0, 1, 1], [], []>} : vector<8x8xbf16>, vector<8x8xbf16>, vector<8x8xf32> -> vector<8x8xf32>
    %84 = vector.extract_strided_slice %15 {offsets = [0, 24], sizes = [8, 8], strides = [1, 1]} : vector<8x32xf32> to vector<8x8xf32>
    %85 = arith.truncf %84 : vector<8x8xf32> to vector<8x8xbf16>
    %86 = vector.extract_strided_slice %16 {offsets = [0, 24], sizes = [8, 8], strides = [1, 1]} : vector<8x32xf32> to vector<8x8xf32>
    %87 = arith.truncf %86 : vector<8x8xf32> to vector<8x8xbf16>
    %88 = vector.extract_strided_slice %17 {offsets = [0, 24], sizes = [8, 8], strides = [1, 1]} : vector<8x32xf32> to vector<8x8xf32>
    %89 = arith.truncf %88 : vector<8x8xf32> to vector<8x8xbf16>
    %cst_27 = arith.constant dense<0.000000e+00> : vector<8x8xf32>
    %90 = tpu.matmul %85, %87, %cst_27 {dimension_numbers = #tpu.dot_dimension_numbers<[1], [1], [0], [0], [0, 0, 1, 0], [], []>} : vector<8x8xbf16>, vector<8x8xbf16>, vector<8x8xf32> -> vector<8x8xf32>
    %cst_28 = arith.constant 0.353553385 : f32
    %91 = vector.broadcast %cst_28 : f32 to vector<8x8xf32>
    %92 = arith.mulf %90, %91 : vector<8x8xf32>
    %93 = arith.addf %92, %14 : vector<8x8xf32>
    %cst_29 = arith.constant dense<0xFF800000> : vector<8xf32>
    %94 = vector.multi_reduction <maximumf>, %93, %cst_29 [1] : vector<8x8xf32> to vector<8xf32>
    %95 = vector.shape_cast %94 : vector<8xf32> to vector<8x1xf32>
    %96 = vector.broadcast %95 : vector<8x1xf32> to vector<8x8xf32>
    %97 = arith.subf %93, %96 : vector<8x8xf32>
    %98 = math.exp %97 : vector<8x8xf32>
    %cst_30 = arith.constant dense<0.000000e+00> : vector<8xf32>
    %99 = vector.multi_reduction <add>, %98, %cst_30 [1] : vector<8x8xf32> to vector<8xf32>
    %100 = vector.shape_cast %99 : vector<8xf32> to vector<8x1xf32>
    %101 = tpu.reciprocal %100 {approx = true} : vector<8x1xf32> -> vector<8x1xf32>
    %102 = vector.broadcast %101 : vector<8x1xf32> to vector<8x8xf32>
    %103 = arith.mulf %98, %102 : vector<8x8xf32>
    %104 = arith.truncf %103 : vector<8x8xf32> to vector<8x8xbf16>
    %cst_31 = arith.constant dense<0.000000e+00> : vector<8x8xf32>
    %105 = tpu.matmul %104, %89, %cst_31 {dimension_numbers = #tpu.dot_dimension_numbers<[1], [0], [0], [1], [0, 0, 1, 1], [], []>} : vector<8x8xbf16>, vector<8x8xbf16>, vector<8x8xf32> -> vector<8x8xf32>
    %106 = tpu.concatenate %39, %61, %83, %105 in 1 : vector<8x8xf32>, vector<8x8xf32>, vector<8x8xf32>, vector<8x8xf32> -> vector<8x32xf32>
    %107 = vector.extract_strided_slice %7 {offsets = [8, 0], sizes = [8, 96], strides = [1, 1]} : vector<16x96xf32> to vector<8x96xf32>
    %c0_32 = arith.constant 0 : index
    %c0_33 = arith.constant 0 : index
    %108 = vector.load %arg3[%c0_32, %c0_33] : memref<8x8xf32, #tpu.memory_space<vmem>>, vector<8x8xf32>
    %109 = vector.shape_cast %108 : vector<8x8xf32> to vector<8x8xf32>
    %c1 = arith.constant 1 : index
    %c0_34 = arith.constant 0 : index
    %c0_35 = arith.constant 0 : index
    %110 = vector.load %arg4[%c1, %c0_34, %c0_35] : memref<2x1x8xf32, #tpu.memory_space<vmem>>, vector<1x1x8xf32>
    %111 = vector.shape_cast %110 : vector<1x1x8xf32> to vector<1x8xf32>
    %112 = vector.broadcast %111 : vector<1x8xf32> to vector<8x8xf32>
    %113 = arith.addf %109, %112 : vector<8x8xf32>
    %114 = vector.extract_strided_slice %107 {offsets = [0, 0], sizes = [8, 32], strides = [1, 1]} : vector<8x96xf32> to vector<8x32xf32>
    %115 = vector.extract_strided_slice %107 {offsets = [0, 32], sizes = [8, 32], strides = [1, 1]} : vector<8x96xf32> to vector<8x32xf32>
    %116 = vector.extract_strided_slice %107 {offsets = [0, 64], sizes = [8, 32], strides = [1, 1]} : vector<8x96xf32> to vector<8x32xf32>
    %117 = vector.extract_strided_slice %114 {offsets = [0, 0], sizes = [8, 8], strides = [1, 1]} : vector<8x32xf32> to vector<8x8xf32>
    %118 = arith.truncf %117 : vector<8x8xf32> to vector<8x8xbf16>
    %119 = vector.extract_strided_slice %115 {offsets = [0, 0], sizes = [8, 8], strides = [1, 1]} : vector<8x32xf32> to vector<8x8xf32>
    %120 = arith.truncf %119 : vector<8x8xf32> to vector<8x8xbf16>
    %121 = vector.extract_strided_slice %116 {offsets = [0, 0], sizes = [8, 8], strides = [1, 1]} : vector<8x32xf32> to vector<8x8xf32>
    %122 = arith.truncf %121 : vector<8x8xf32> to vector<8x8xbf16>
    %cst_36 = arith.constant dense<0.000000e+00> : vector<8x8xf32>
    %123 = tpu.matmul %118, %120, %cst_36 {dimension_numbers = #tpu.dot_dimension_numbers<[1], [1], [0], [0], [0, 0, 1, 0], [], []>} : vector<8x8xbf16>, vector<8x8xbf16>, vector<8x8xf32> -> vector<8x8xf32>
    %cst_37 = arith.constant 0.353553385 : f32
    %124 = vector.broadcast %cst_37 : f32 to vector<8x8xf32>
    %125 = arith.mulf %123, %124 : vector<8x8xf32>
    %126 = arith.addf %125, %113 : vector<8x8xf32>
    %cst_38 = arith.constant dense<0xFF800000> : vector<8xf32>
    %127 = vector.multi_reduction <maximumf>, %126, %cst_38 [1] : vector<8x8xf32> to vector<8xf32>
    %128 = vector.shape_cast %127 : vector<8xf32> to vector<8x1xf32>
    %129 = vector.broadcast %128 : vector<8x1xf32> to vector<8x8xf32>
    %130 = arith.subf %126, %129 : vector<8x8xf32>
    %131 = math.exp %130 : vector<8x8xf32>
    %cst_39 = arith.constant dense<0.000000e+00> : vector<8xf32>
    %132 = vector.multi_reduction <add>, %131, %cst_39 [1] : vector<8x8xf32> to vector<8xf32>
    %133 = vector.shape_cast %132 : vector<8xf32> to vector<8x1xf32>
    %134 = tpu.reciprocal %133 {approx = true} : vector<8x1xf32> -> vector<8x1xf32>
    %135 = vector.broadcast %134 : vector<8x1xf32> to vector<8x8xf32>
    %136 = arith.mulf %131, %135 : vector<8x8xf32>
    %137 = arith.truncf %136 : vector<8x8xf32> to vector<8x8xbf16>
    %cst_40 = arith.constant dense<0.000000e+00> : vector<8x8xf32>
    %138 = tpu.matmul %137, %122, %cst_40 {dimension_numbers = #tpu.dot_dimension_numbers<[1], [0], [0], [1], [0, 0, 1, 1], [], []>} : vector<8x8xbf16>, vector<8x8xbf16>, vector<8x8xf32> -> vector<8x8xf32>
    %139 = vector.extract_strided_slice %114 {offsets = [0, 8], sizes = [8, 8], strides = [1, 1]} : vector<8x32xf32> to vector<8x8xf32>
    %140 = arith.truncf %139 : vector<8x8xf32> to vector<8x8xbf16>
    %141 = vector.extract_strided_slice %115 {offsets = [0, 8], sizes = [8, 8], strides = [1, 1]} : vector<8x32xf32> to vector<8x8xf32>
    %142 = arith.truncf %141 : vector<8x8xf32> to vector<8x8xbf16>
    %143 = vector.extract_strided_slice %116 {offsets = [0, 8], sizes = [8, 8], strides = [1, 1]} : vector<8x32xf32> to vector<8x8xf32>
    %144 = arith.truncf %143 : vector<8x8xf32> to vector<8x8xbf16>
    %cst_41 = arith.constant dense<0.000000e+00> : vector<8x8xf32>
    %145 = tpu.matmul %140, %142, %cst_41 {dimension_numbers = #tpu.dot_dimension_numbers<[1], [1], [0], [0], [0, 0, 1, 0], [], []>} : vector<8x8xbf16>, vector<8x8xbf16>, vector<8x8xf32> -> vector<8x8xf32>
    %cst_42 = arith.constant 0.353553385 : f32
    %146 = vector.broadcast %cst_42 : f32 to vector<8x8xf32>
    %147 = arith.mulf %145, %146 : vector<8x8xf32>
    %148 = arith.addf %147, %113 : vector<8x8xf32>
    %cst_43 = arith.constant dense<0xFF800000> : vector<8xf32>
    %149 = vector.multi_reduction <maximumf>, %148, %cst_43 [1] : vector<8x8xf32> to vector<8xf32>
    %150 = vector.shape_cast %149 : vector<8xf32> to vector<8x1xf32>
    %151 = vector.broadcast %150 : vector<8x1xf32> to vector<8x8xf32>
    %152 = arith.subf %148, %151 : vector<8x8xf32>
    %153 = math.exp %152 : vector<8x8xf32>
    %cst_44 = arith.constant dense<0.000000e+00> : vector<8xf32>
    %154 = vector.multi_reduction <add>, %153, %cst_44 [1] : vector<8x8xf32> to vector<8xf32>
    %155 = vector.shape_cast %154 : vector<8xf32> to vector<8x1xf32>
    %156 = tpu.reciprocal %155 {approx = true} : vector<8x1xf32> -> vector<8x1xf32>
    %157 = vector.broadcast %156 : vector<8x1xf32> to vector<8x8xf32>
    %158 = arith.mulf %153, %157 : vector<8x8xf32>
    %159 = arith.truncf %158 : vector<8x8xf32> to vector<8x8xbf16>
    %cst_45 = arith.constant dense<0.000000e+00> : vector<8x8xf32>
    %160 = tpu.matmul %159, %144, %cst_45 {dimension_numbers = #tpu.dot_dimension_numbers<[1], [0], [0], [1], [0, 0, 1, 1], [], []>} : vector<8x8xbf16>, vector<8x8xbf16>, vector<8x8xf32> -> vector<8x8xf32>
    %161 = vector.extract_strided_slice %114 {offsets = [0, 16], sizes = [8, 8], strides = [1, 1]} : vector<8x32xf32> to vector<8x8xf32>
    %162 = arith.truncf %161 : vector<8x8xf32> to vector<8x8xbf16>
    %163 = vector.extract_strided_slice %115 {offsets = [0, 16], sizes = [8, 8], strides = [1, 1]} : vector<8x32xf32> to vector<8x8xf32>
    %164 = arith.truncf %163 : vector<8x8xf32> to vector<8x8xbf16>
    %165 = vector.extract_strided_slice %116 {offsets = [0, 16], sizes = [8, 8], strides = [1, 1]} : vector<8x32xf32> to vector<8x8xf32>
    %166 = arith.truncf %165 : vector<8x8xf32> to vector<8x8xbf16>
    %cst_46 = arith.constant dense<0.000000e+00> : vector<8x8xf32>
    %167 = tpu.matmul %162, %164, %cst_46 {dimension_numbers = #tpu.dot_dimension_numbers<[1], [1], [0], [0], [0, 0, 1, 0], [], []>} : vector<8x8xbf16>, vector<8x8xbf16>, vector<8x8xf32> -> vector<8x8xf32>
    %cst_47 = arith.constant 0.353553385 : f32
    %168 = vector.broadcast %cst_47 : f32 to vector<8x8xf32>
    %169 = arith.mulf %167, %168 : vector<8x8xf32>
    %170 = arith.addf %169, %113 : vector<8x8xf32>
    %cst_48 = arith.constant dense<0xFF800000> : vector<8xf32>
    %171 = vector.multi_reduction <maximumf>, %170, %cst_48 [1] : vector<8x8xf32> to vector<8xf32>
    %172 = vector.shape_cast %171 : vector<8xf32> to vector<8x1xf32>
    %173 = vector.broadcast %172 : vector<8x1xf32> to vector<8x8xf32>
    %174 = arith.subf %170, %173 : vector<8x8xf32>
    %175 = math.exp %174 : vector<8x8xf32>
    %cst_49 = arith.constant dense<0.000000e+00> : vector<8xf32>
    %176 = vector.multi_reduction <add>, %175, %cst_49 [1] : vector<8x8xf32> to vector<8xf32>
    %177 = vector.shape_cast %176 : vector<8xf32> to vector<8x1xf32>
    %178 = tpu.reciprocal %177 {approx = true} : vector<8x1xf32> -> vector<8x1xf32>
    %179 = vector.broadcast %178 : vector<8x1xf32> to vector<8x8xf32>
    %180 = arith.mulf %175, %179 : vector<8x8xf32>
    %181 = arith.truncf %180 : vector<8x8xf32> to vector<8x8xbf16>
    %cst_50 = arith.constant dense<0.000000e+00> : vector<8x8xf32>
    %182 = tpu.matmul %181, %166, %cst_50 {dimension_numbers = #tpu.dot_dimension_numbers<[1], [0], [0], [1], [0, 0, 1, 1], [], []>} : vector<8x8xbf16>, vector<8x8xbf16>, vector<8x8xf32> -> vector<8x8xf32>
    %183 = vector.extract_strided_slice %114 {offsets = [0, 24], sizes = [8, 8], strides = [1, 1]} : vector<8x32xf32> to vector<8x8xf32>
    %184 = arith.truncf %183 : vector<8x8xf32> to vector<8x8xbf16>
    %185 = vector.extract_strided_slice %115 {offsets = [0, 24], sizes = [8, 8], strides = [1, 1]} : vector<8x32xf32> to vector<8x8xf32>
    %186 = arith.truncf %185 : vector<8x8xf32> to vector<8x8xbf16>
    %187 = vector.extract_strided_slice %116 {offsets = [0, 24], sizes = [8, 8], strides = [1, 1]} : vector<8x32xf32> to vector<8x8xf32>
    %188 = arith.truncf %187 : vector<8x8xf32> to vector<8x8xbf16>
    %cst_51 = arith.constant dense<0.000000e+00> : vector<8x8xf32>
    %189 = tpu.matmul %184, %186, %cst_51 {dimension_numbers = #tpu.dot_dimension_numbers<[1], [1], [0], [0], [0, 0, 1, 0], [], []>} : vector<8x8xbf16>, vector<8x8xbf16>, vector<8x8xf32> -> vector<8x8xf32>
    %cst_52 = arith.constant 0.353553385 : f32
    %190 = vector.broadcast %cst_52 : f32 to vector<8x8xf32>
    %191 = arith.mulf %189, %190 : vector<8x8xf32>
    %192 = arith.addf %191, %113 : vector<8x8xf32>
    %cst_53 = arith.constant dense<0xFF800000> : vector<8xf32>
    %193 = vector.multi_reduction <maximumf>, %192, %cst_53 [1] : vector<8x8xf32> to vector<8xf32>
    %194 = vector.shape_cast %193 : vector<8xf32> to vector<8x1xf32>
    %195 = vector.broadcast %194 : vector<8x1xf32> to vector<8x8xf32>
    %196 = arith.subf %192, %195 : vector<8x8xf32>
    %197 = math.exp %196 : vector<8x8xf32>
    %cst_54 = arith.constant dense<0.000000e+00> : vector<8xf32>
    %198 = vector.multi_reduction <add>, %197, %cst_54 [1] : vector<8x8xf32> to vector<8xf32>
    %199 = vector.shape_cast %198 : vector<8xf32> to vector<8x1xf32>
    %200 = tpu.reciprocal %199 {approx = true} : vector<8x1xf32> -> vector<8x1xf32>
    %201 = vector.broadcast %200 : vector<8x1xf32> to vector<8x8xf32>
    %202 = arith.mulf %197, %201 : vector<8x8xf32>
    %203 = arith.truncf %202 : vector<8x8xf32> to vector<8x8xbf16>
    %cst_55 = arith.constant dense<0.000000e+00> : vector<8x8xf32>
    %204 = tpu.matmul %203, %188, %cst_55 {dimension_numbers = #tpu.dot_dimension_numbers<[1], [0], [0], [1], [0, 0, 1, 1], [], []>} : vector<8x8xbf16>, vector<8x8xbf16>, vector<8x8xf32> -> vector<8x8xf32>
    %205 = tpu.concatenate %138, %160, %182, %204 in 1 : vector<8x8xf32>, vector<8x8xf32>, vector<8x8xf32>, vector<8x8xf32> -> vector<8x32xf32>
    %206 = tpu.concatenate %106, %205 in 0 : vector<8x32xf32>, vector<8x32xf32> -> vector<16x32xf32>
    %207 = arith.truncf %206 : vector<16x32xf32> to vector<16x32xbf16>
    %c0_56 = arith.constant 0 : index
    %c0_57 = arith.constant 0 : index
    %208 = vector.load %arg8[%c0_56, %c0_57] : memref<32x32xbf16, #tpu.memory_space<vmem>>, vector<32x32xbf16>
    %cst_58 = arith.constant dense<0.000000e+00> : vector<16x32xf32>
    %209 = tpu.matmul %207, %208, %cst_58 {dimension_numbers = #tpu.dot_dimension_numbers<[1], [0], [0], [1], [0, 0, 1, 1], [], []>} : vector<16x32xbf16>, vector<32x32xbf16>, vector<16x32xf32> -> vector<16x32xf32>
    %c0_59 = arith.constant 0 : index
    %c0_60 = arith.constant 0 : index
    %210 = vector.load %arg9[%c0_59, %c0_60] : memref<1x32xf32, #tpu.memory_space<vmem>>, vector<1x32xf32>
    %211 = vector.broadcast %210 : vector<1x32xf32> to vector<16x32xf32>
    %212 = arith.addf %209, %211 : vector<16x32xf32>
    %213 = arith.addf %1, %212 : vector<16x32xf32>
    %c0_61 = arith.constant 0 : index
    %c0_62 = arith.constant 0 : index
    %214 = vector.load %arg16[%c0_61, %c0_62] : memref<1x32xf32, #tpu.memory_space<vmem>>, vector<1x32xf32>
    %c0_63 = arith.constant 0 : index
    %c0_64 = arith.constant 0 : index
    %215 = vector.load %arg17[%c0_63, %c0_64] : memref<1x32xf32, #tpu.memory_space<vmem>>, vector<1x32xf32>
    %cst_65 = arith.constant dense<0.000000e+00> : vector<16xf32>
    %216 = vector.multi_reduction <add>, %213, %cst_65 [1] : vector<16x32xf32> to vector<16xf32>
    %217 = vector.shape_cast %216 : vector<16xf32> to vector<16x1xf32>
    %cst_66 = arith.constant 3.200000e+01 : f32
    %218 = vector.broadcast %cst_66 : f32 to vector<16x1xf32>
    %219 = arith.divf %217, %218 : vector<16x1xf32>
    %220 = vector.broadcast %219 : vector<16x1xf32> to vector<16x32xf32>
    %221 = arith.subf %213, %220 : vector<16x32xf32>
    %222 = arith.mulf %221, %221 : vector<16x32xf32>
    %cst_67 = arith.constant dense<0.000000e+00> : vector<16xf32>
    %223 = vector.multi_reduction <add>, %222, %cst_67 [1] : vector<16x32xf32> to vector<16xf32>
    %224 = vector.shape_cast %223 : vector<16xf32> to vector<16x1xf32>
    %cst_68 = arith.constant 3.200000e+01 : f32
    %225 = vector.broadcast %cst_68 : f32 to vector<16x1xf32>
    %226 = arith.divf %224, %225 : vector<16x1xf32>
    %cst_69 = arith.constant 9.99999974E-6 : f32
    %227 = vector.broadcast %cst_69 : f32 to vector<16x1xf32>
    %228 = arith.addf %226, %227 : vector<16x1xf32>
    %229 = math.rsqrt %228 : vector<16x1xf32>
    %230 = vector.broadcast %229 : vector<16x1xf32> to vector<16x32xf32>
    %231 = arith.mulf %221, %230 : vector<16x32xf32>
    %232 = vector.broadcast %214 : vector<1x32xf32> to vector<16x32xf32>
    %233 = arith.mulf %231, %232 : vector<16x32xf32>
    %234 = vector.broadcast %215 : vector<1x32xf32> to vector<16x32xf32>
    %235 = arith.addf %233, %234 : vector<16x32xf32>
    %236 = arith.truncf %235 : vector<16x32xf32> to vector<16x32xbf16>
    %c0_70 = arith.constant 0 : index
    %c0_71 = arith.constant 0 : index
    %237 = vector.load %arg10[%c0_70, %c0_71] : memref<32x32xbf16, #tpu.memory_space<vmem>>, vector<32x32xbf16>
    %cst_72 = arith.constant dense<0.000000e+00> : vector<16x32xf32>
    %238 = tpu.matmul %236, %237, %cst_72 {dimension_numbers = #tpu.dot_dimension_numbers<[1], [0], [0], [1], [0, 0, 1, 1], [], []>} : vector<16x32xbf16>, vector<32x32xbf16>, vector<16x32xf32> -> vector<16x32xf32>
    %c0_73 = arith.constant 0 : index
    %c0_74 = arith.constant 0 : index
    %239 = vector.load %arg11[%c0_73, %c0_74] : memref<1x32xf32, #tpu.memory_space<vmem>>, vector<1x32xf32>
    %240 = vector.broadcast %239 : vector<1x32xf32> to vector<16x32xf32>
    %241 = arith.addf %238, %240 : vector<16x32xf32>
    %c0_75 = arith.constant 0 : index
    %c0_76 = arith.constant 0 : index
    %242 = vector.load %arg12[%c0_75, %c0_76] : memref<32x64xbf16, #tpu.memory_space<vmem>>, vector<32x64xbf16>
    %cst_77 = arith.constant dense<0.000000e+00> : vector<16x64xf32>
    %243 = tpu.matmul %2, %242, %cst_77 {dimension_numbers = #tpu.dot_dimension_numbers<[1], [0], [0], [1], [0, 0, 1, 1], [], []>} : vector<16x32xbf16>, vector<32x64xbf16>, vector<16x64xf32> -> vector<16x64xf32>
    %c0_78 = arith.constant 0 : index
    %c0_79 = arith.constant 0 : index
    %244 = vector.load %arg13[%c0_78, %c0_79] : memref<1x64xf32, #tpu.memory_space<vmem>>, vector<1x64xf32>
    %245 = vector.broadcast %244 : vector<1x64xf32> to vector<16x64xf32>
    %246 = arith.addf %243, %245 : vector<16x64xf32>
    %247 = vector.extract_strided_slice %241 {offsets = [0, 0], sizes = [8, 32], strides = [1, 1]} : vector<16x32xf32> to vector<8x32xf32>
    %248 = vector.extract_strided_slice %246 {offsets = [0, 0], sizes = [8, 64], strides = [1, 1]} : vector<16x64xf32> to vector<8x64xf32>
    %249 = vector.extract_strided_slice %248 {offsets = [0, 0], sizes = [8, 32], strides = [1, 1]} : vector<8x64xf32> to vector<8x32xf32>
    %250 = vector.extract_strided_slice %248 {offsets = [0, 32], sizes = [8, 32], strides = [1, 1]} : vector<8x64xf32> to vector<8x32xf32>
    %c0_80 = arith.constant 0 : index
    %c0_81 = arith.constant 0 : index
    %c0_82 = arith.constant 0 : index
    %251 = vector.load %arg5[%c0_80, %c0_81, %c0_82] : memref<2x1x8xf32, #tpu.memory_space<vmem>>, vector<1x1x8xf32>
    %252 = vector.shape_cast %251 : vector<1x1x8xf32> to vector<1x8xf32>
    %253 = vector.extract_strided_slice %247 {offsets = [0, 0], sizes = [8, 8], strides = [1, 1]} : vector<8x32xf32> to vector<8x8xf32>
    %254 = arith.truncf %253 : vector<8x8xf32> to vector<8x8xbf16>
    %255 = vector.extract_strided_slice %249 {offsets = [0, 0], sizes = [8, 8], strides = [1, 1]} : vector<8x32xf32> to vector<8x8xf32>
    %256 = arith.truncf %255 : vector<8x8xf32> to vector<8x8xbf16>
    %257 = vector.extract_strided_slice %250 {offsets = [0, 0], sizes = [8, 8], strides = [1, 1]} : vector<8x32xf32> to vector<8x8xf32>
    %258 = arith.truncf %257 : vector<8x8xf32> to vector<8x8xbf16>
    %cst_83 = arith.constant dense<0.000000e+00> : vector<8x8xf32>
    %259 = tpu.matmul %254, %256, %cst_83 {dimension_numbers = #tpu.dot_dimension_numbers<[1], [1], [0], [0], [0, 0, 1, 0], [], []>} : vector<8x8xbf16>, vector<8x8xbf16>, vector<8x8xf32> -> vector<8x8xf32>
    %cst_84 = arith.constant 0.353553385 : f32
    %260 = vector.broadcast %cst_84 : f32 to vector<8x8xf32>
    %261 = arith.mulf %259, %260 : vector<8x8xf32>
    %262 = vector.broadcast %252 : vector<1x8xf32> to vector<8x8xf32>
    %263 = arith.addf %261, %262 : vector<8x8xf32>
    %cst_85 = arith.constant dense<0xFF800000> : vector<8xf32>
    %264 = vector.multi_reduction <maximumf>, %263, %cst_85 [1] : vector<8x8xf32> to vector<8xf32>
    %265 = vector.shape_cast %264 : vector<8xf32> to vector<8x1xf32>
    %266 = vector.broadcast %265 : vector<8x1xf32> to vector<8x8xf32>
    %267 = arith.subf %263, %266 : vector<8x8xf32>
    %268 = math.exp %267 : vector<8x8xf32>
    %cst_86 = arith.constant dense<0.000000e+00> : vector<8xf32>
    %269 = vector.multi_reduction <add>, %268, %cst_86 [1] : vector<8x8xf32> to vector<8xf32>
    %270 = vector.shape_cast %269 : vector<8xf32> to vector<8x1xf32>
    %271 = tpu.reciprocal %270 {approx = true} : vector<8x1xf32> -> vector<8x1xf32>
    %272 = vector.broadcast %271 : vector<8x1xf32> to vector<8x8xf32>
    %273 = arith.mulf %268, %272 : vector<8x8xf32>
    %274 = arith.truncf %273 : vector<8x8xf32> to vector<8x8xbf16>
    %cst_87 = arith.constant dense<0.000000e+00> : vector<8x8xf32>
    %275 = tpu.matmul %274, %258, %cst_87 {dimension_numbers = #tpu.dot_dimension_numbers<[1], [0], [0], [1], [0, 0, 1, 1], [], []>} : vector<8x8xbf16>, vector<8x8xbf16>, vector<8x8xf32> -> vector<8x8xf32>
    %276 = vector.extract_strided_slice %247 {offsets = [0, 8], sizes = [8, 8], strides = [1, 1]} : vector<8x32xf32> to vector<8x8xf32>
    %277 = arith.truncf %276 : vector<8x8xf32> to vector<8x8xbf16>
    %278 = vector.extract_strided_slice %249 {offsets = [0, 8], sizes = [8, 8], strides = [1, 1]} : vector<8x32xf32> to vector<8x8xf32>
    %279 = arith.truncf %278 : vector<8x8xf32> to vector<8x8xbf16>
    %280 = vector.extract_strided_slice %250 {offsets = [0, 8], sizes = [8, 8], strides = [1, 1]} : vector<8x32xf32> to vector<8x8xf32>
    %281 = arith.truncf %280 : vector<8x8xf32> to vector<8x8xbf16>
    %cst_88 = arith.constant dense<0.000000e+00> : vector<8x8xf32>
    %282 = tpu.matmul %277, %279, %cst_88 {dimension_numbers = #tpu.dot_dimension_numbers<[1], [1], [0], [0], [0, 0, 1, 0], [], []>} : vector<8x8xbf16>, vector<8x8xbf16>, vector<8x8xf32> -> vector<8x8xf32>
    %cst_89 = arith.constant 0.353553385 : f32
    %283 = vector.broadcast %cst_89 : f32 to vector<8x8xf32>
    %284 = arith.mulf %282, %283 : vector<8x8xf32>
    %285 = vector.broadcast %252 : vector<1x8xf32> to vector<8x8xf32>
    %286 = arith.addf %284, %285 : vector<8x8xf32>
    %cst_90 = arith.constant dense<0xFF800000> : vector<8xf32>
    %287 = vector.multi_reduction <maximumf>, %286, %cst_90 [1] : vector<8x8xf32> to vector<8xf32>
    %288 = vector.shape_cast %287 : vector<8xf32> to vector<8x1xf32>
    %289 = vector.broadcast %288 : vector<8x1xf32> to vector<8x8xf32>
    %290 = arith.subf %286, %289 : vector<8x8xf32>
    %291 = math.exp %290 : vector<8x8xf32>
    %cst_91 = arith.constant dense<0.000000e+00> : vector<8xf32>
    %292 = vector.multi_reduction <add>, %291, %cst_91 [1] : vector<8x8xf32> to vector<8xf32>
    %293 = vector.shape_cast %292 : vector<8xf32> to vector<8x1xf32>
    %294 = tpu.reciprocal %293 {approx = true} : vector<8x1xf32> -> vector<8x1xf32>
    %295 = vector.broadcast %294 : vector<8x1xf32> to vector<8x8xf32>
    %296 = arith.mulf %291, %295 : vector<8x8xf32>
    %297 = arith.truncf %296 : vector<8x8xf32> to vector<8x8xbf16>
    %cst_92 = arith.constant dense<0.000000e+00> : vector<8x8xf32>
    %298 = tpu.matmul %297, %281, %cst_92 {dimension_numbers = #tpu.dot_dimension_numbers<[1], [0], [0], [1], [0, 0, 1, 1], [], []>} : vector<8x8xbf16>, vector<8x8xbf16>, vector<8x8xf32> -> vector<8x8xf32>
    %299 = vector.extract_strided_slice %247 {offsets = [0, 16], sizes = [8, 8], strides = [1, 1]} : vector<8x32xf32> to vector<8x8xf32>
    %300 = arith.truncf %299 : vector<8x8xf32> to vector<8x8xbf16>
    %301 = vector.extract_strided_slice %249 {offsets = [0, 16], sizes = [8, 8], strides = [1, 1]} : vector<8x32xf32> to vector<8x8xf32>
    %302 = arith.truncf %301 : vector<8x8xf32> to vector<8x8xbf16>
    %303 = vector.extract_strided_slice %250 {offsets = [0, 16], sizes = [8, 8], strides = [1, 1]} : vector<8x32xf32> to vector<8x8xf32>
    %304 = arith.truncf %303 : vector<8x8xf32> to vector<8x8xbf16>
    %cst_93 = arith.constant dense<0.000000e+00> : vector<8x8xf32>
    %305 = tpu.matmul %300, %302, %cst_93 {dimension_numbers = #tpu.dot_dimension_numbers<[1], [1], [0], [0], [0, 0, 1, 0], [], []>} : vector<8x8xbf16>, vector<8x8xbf16>, vector<8x8xf32> -> vector<8x8xf32>
    %cst_94 = arith.constant 0.353553385 : f32
    %306 = vector.broadcast %cst_94 : f32 to vector<8x8xf32>
    %307 = arith.mulf %305, %306 : vector<8x8xf32>
    %308 = vector.broadcast %252 : vector<1x8xf32> to vector<8x8xf32>
    %309 = arith.addf %307, %308 : vector<8x8xf32>
    %cst_95 = arith.constant dense<0xFF800000> : vector<8xf32>
    %310 = vector.multi_reduction <maximumf>, %309, %cst_95 [1] : vector<8x8xf32> to vector<8xf32>
    %311 = vector.shape_cast %310 : vector<8xf32> to vector<8x1xf32>
    %312 = vector.broadcast %311 : vector<8x1xf32> to vector<8x8xf32>
    %313 = arith.subf %309, %312 : vector<8x8xf32>
    %314 = math.exp %313 : vector<8x8xf32>
    %cst_96 = arith.constant dense<0.000000e+00> : vector<8xf32>
    %315 = vector.multi_reduction <add>, %314, %cst_96 [1] : vector<8x8xf32> to vector<8xf32>
    %316 = vector.shape_cast %315 : vector<8xf32> to vector<8x1xf32>
    %317 = tpu.reciprocal %316 {approx = true} : vector<8x1xf32> -> vector<8x1xf32>
    %318 = vector.broadcast %317 : vector<8x1xf32> to vector<8x8xf32>
    %319 = arith.mulf %314, %318 : vector<8x8xf32>
    %320 = arith.truncf %319 : vector<8x8xf32> to vector<8x8xbf16>
    %cst_97 = arith.constant dense<0.000000e+00> : vector<8x8xf32>
    %321 = tpu.matmul %320, %304, %cst_97 {dimension_numbers = #tpu.dot_dimension_numbers<[1], [0], [0], [1], [0, 0, 1, 1], [], []>} : vector<8x8xbf16>, vector<8x8xbf16>, vector<8x8xf32> -> vector<8x8xf32>
    %322 = vector.extract_strided_slice %247 {offsets = [0, 24], sizes = [8, 8], strides = [1, 1]} : vector<8x32xf32> to vector<8x8xf32>
    %323 = arith.truncf %322 : vector<8x8xf32> to vector<8x8xbf16>
    %324 = vector.extract_strided_slice %249 {offsets = [0, 24], sizes = [8, 8], strides = [1, 1]} : vector<8x32xf32> to vector<8x8xf32>
    %325 = arith.truncf %324 : vector<8x8xf32> to vector<8x8xbf16>
    %326 = vector.extract_strided_slice %250 {offsets = [0, 24], sizes = [8, 8], strides = [1, 1]} : vector<8x32xf32> to vector<8x8xf32>
    %327 = arith.truncf %326 : vector<8x8xf32> to vector<8x8xbf16>
    %cst_98 = arith.constant dense<0.000000e+00> : vector<8x8xf32>
    %328 = tpu.matmul %323, %325, %cst_98 {dimension_numbers = #tpu.dot_dimension_numbers<[1], [1], [0], [0], [0, 0, 1, 0], [], []>} : vector<8x8xbf16>, vector<8x8xbf16>, vector<8x8xf32> -> vector<8x8xf32>
    %cst_99 = arith.constant 0.353553385 : f32
    %329 = vector.broadcast %cst_99 : f32 to vector<8x8xf32>
    %330 = arith.mulf %328, %329 : vector<8x8xf32>
    %331 = vector.broadcast %252 : vector<1x8xf32> to vector<8x8xf32>
    %332 = arith.addf %330, %331 : vector<8x8xf32>
    %cst_100 = arith.constant dense<0xFF800000> : vector<8xf32>
    %333 = vector.multi_reduction <maximumf>, %332, %cst_100 [1] : vector<8x8xf32> to vector<8xf32>
    %334 = vector.shape_cast %333 : vector<8xf32> to vector<8x1xf32>
    %335 = vector.broadcast %334 : vector<8x1xf32> to vector<8x8xf32>
    %336 = arith.subf %332, %335 : vector<8x8xf32>
    %337 = math.exp %336 : vector<8x8xf32>
    %cst_101 = arith.constant dense<0.000000e+00> : vector<8xf32>
    %338 = vector.multi_reduction <add>, %337, %cst_101 [1] : vector<8x8xf32> to vector<8xf32>
    %339 = vector.shape_cast %338 : vector<8xf32> to vector<8x1xf32>
    %340 = tpu.reciprocal %339 {approx = true} : vector<8x1xf32> -> vector<8x1xf32>
    %341 = vector.broadcast %340 : vector<8x1xf32> to vector<8x8xf32>
    %342 = arith.mulf %337, %341 : vector<8x8xf32>
    %343 = arith.truncf %342 : vector<8x8xf32> to vector<8x8xbf16>
    %cst_102 = arith.constant dense<0.000000e+00> : vector<8x8xf32>
    %344 = tpu.matmul %343, %327, %cst_102 {dimension_numbers = #tpu.dot_dimension_numbers<[1], [0], [0], [1], [0, 0, 1, 1], [], []>} : vector<8x8xbf16>, vector<8x8xbf16>, vector<8x8xf32> -> vector<8x8xf32>
    %345 = tpu.concatenate %275, %298, %321, %344 in 1 : vector<8x8xf32>, vector<8x8xf32>, vector<8x8xf32>, vector<8x8xf32> -> vector<8x32xf32>
    %346 = vector.extract_strided_slice %241 {offsets = [8, 0], sizes = [8, 32], strides = [1, 1]} : vector<16x32xf32> to vector<8x32xf32>
    %347 = vector.extract_strided_slice %246 {offsets = [8, 0], sizes = [8, 64], strides = [1, 1]} : vector<16x64xf32> to vector<8x64xf32>
    %348 = vector.extract_strided_slice %347 {offsets = [0, 0], sizes = [8, 32], strides = [1, 1]} : vector<8x64xf32> to vector<8x32xf32>
    %349 = vector.extract_strided_slice %347 {offsets = [0, 32], sizes = [8, 32], strides = [1, 1]} : vector<8x64xf32> to vector<8x32xf32>
    %c1_103 = arith.constant 1 : index
    %c0_104 = arith.constant 0 : index
    %c0_105 = arith.constant 0 : index
    %350 = vector.load %arg5[%c1_103, %c0_104, %c0_105] : memref<2x1x8xf32, #tpu.memory_space<vmem>>, vector<1x1x8xf32>
    %351 = vector.shape_cast %350 : vector<1x1x8xf32> to vector<1x8xf32>
    %352 = vector.extract_strided_slice %346 {offsets = [0, 0], sizes = [8, 8], strides = [1, 1]} : vector<8x32xf32> to vector<8x8xf32>
    %353 = arith.truncf %352 : vector<8x8xf32> to vector<8x8xbf16>
    %354 = vector.extract_strided_slice %348 {offsets = [0, 0], sizes = [8, 8], strides = [1, 1]} : vector<8x32xf32> to vector<8x8xf32>
    %355 = arith.truncf %354 : vector<8x8xf32> to vector<8x8xbf16>
    %356 = vector.extract_strided_slice %349 {offsets = [0, 0], sizes = [8, 8], strides = [1, 1]} : vector<8x32xf32> to vector<8x8xf32>
    %357 = arith.truncf %356 : vector<8x8xf32> to vector<8x8xbf16>
    %cst_106 = arith.constant dense<0.000000e+00> : vector<8x8xf32>
    %358 = tpu.matmul %353, %355, %cst_106 {dimension_numbers = #tpu.dot_dimension_numbers<[1], [1], [0], [0], [0, 0, 1, 0], [], []>} : vector<8x8xbf16>, vector<8x8xbf16>, vector<8x8xf32> -> vector<8x8xf32>
    %cst_107 = arith.constant 0.353553385 : f32
    %359 = vector.broadcast %cst_107 : f32 to vector<8x8xf32>
    %360 = arith.mulf %358, %359 : vector<8x8xf32>
    %361 = vector.broadcast %351 : vector<1x8xf32> to vector<8x8xf32>
    %362 = arith.addf %360, %361 : vector<8x8xf32>
    %cst_108 = arith.constant dense<0xFF800000> : vector<8xf32>
    %363 = vector.multi_reduction <maximumf>, %362, %cst_108 [1] : vector<8x8xf32> to vector<8xf32>
    %364 = vector.shape_cast %363 : vector<8xf32> to vector<8x1xf32>
    %365 = vector.broadcast %364 : vector<8x1xf32> to vector<8x8xf32>
    %366 = arith.subf %362, %365 : vector<8x8xf32>
    %367 = math.exp %366 : vector<8x8xf32>
    %cst_109 = arith.constant dense<0.000000e+00> : vector<8xf32>
    %368 = vector.multi_reduction <add>, %367, %cst_109 [1] : vector<8x8xf32> to vector<8xf32>
    %369 = vector.shape_cast %368 : vector<8xf32> to vector<8x1xf32>
    %370 = tpu.reciprocal %369 {approx = true} : vector<8x1xf32> -> vector<8x1xf32>
    %371 = vector.broadcast %370 : vector<8x1xf32> to vector<8x8xf32>
    %372 = arith.mulf %367, %371 : vector<8x8xf32>
    %373 = arith.truncf %372 : vector<8x8xf32> to vector<8x8xbf16>
    %cst_110 = arith.constant dense<0.000000e+00> : vector<8x8xf32>
    %374 = tpu.matmul %373, %357, %cst_110 {dimension_numbers = #tpu.dot_dimension_numbers<[1], [0], [0], [1], [0, 0, 1, 1], [], []>} : vector<8x8xbf16>, vector<8x8xbf16>, vector<8x8xf32> -> vector<8x8xf32>
    %375 = vector.extract_strided_slice %346 {offsets = [0, 8], sizes = [8, 8], strides = [1, 1]} : vector<8x32xf32> to vector<8x8xf32>
    %376 = arith.truncf %375 : vector<8x8xf32> to vector<8x8xbf16>
    %377 = vector.extract_strided_slice %348 {offsets = [0, 8], sizes = [8, 8], strides = [1, 1]} : vector<8x32xf32> to vector<8x8xf32>
    %378 = arith.truncf %377 : vector<8x8xf32> to vector<8x8xbf16>
    %379 = vector.extract_strided_slice %349 {offsets = [0, 8], sizes = [8, 8], strides = [1, 1]} : vector<8x32xf32> to vector<8x8xf32>
    %380 = arith.truncf %379 : vector<8x8xf32> to vector<8x8xbf16>
    %cst_111 = arith.constant dense<0.000000e+00> : vector<8x8xf32>
    %381 = tpu.matmul %376, %378, %cst_111 {dimension_numbers = #tpu.dot_dimension_numbers<[1], [1], [0], [0], [0, 0, 1, 0], [], []>} : vector<8x8xbf16>, vector<8x8xbf16>, vector<8x8xf32> -> vector<8x8xf32>
    %cst_112 = arith.constant 0.353553385 : f32
    %382 = vector.broadcast %cst_112 : f32 to vector<8x8xf32>
    %383 = arith.mulf %381, %382 : vector<8x8xf32>
    %384 = vector.broadcast %351 : vector<1x8xf32> to vector<8x8xf32>
    %385 = arith.addf %383, %384 : vector<8x8xf32>
    %cst_113 = arith.constant dense<0xFF800000> : vector<8xf32>
    %386 = vector.multi_reduction <maximumf>, %385, %cst_113 [1] : vector<8x8xf32> to vector<8xf32>
    %387 = vector.shape_cast %386 : vector<8xf32> to vector<8x1xf32>
    %388 = vector.broadcast %387 : vector<8x1xf32> to vector<8x8xf32>
    %389 = arith.subf %385, %388 : vector<8x8xf32>
    %390 = math.exp %389 : vector<8x8xf32>
    %cst_114 = arith.constant dense<0.000000e+00> : vector<8xf32>
    %391 = vector.multi_reduction <add>, %390, %cst_114 [1] : vector<8x8xf32> to vector<8xf32>
    %392 = vector.shape_cast %391 : vector<8xf32> to vector<8x1xf32>
    %393 = tpu.reciprocal %392 {approx = true} : vector<8x1xf32> -> vector<8x1xf32>
    %394 = vector.broadcast %393 : vector<8x1xf32> to vector<8x8xf32>
    %395 = arith.mulf %390, %394 : vector<8x8xf32>
    %396 = arith.truncf %395 : vector<8x8xf32> to vector<8x8xbf16>
    %cst_115 = arith.constant dense<0.000000e+00> : vector<8x8xf32>
    %397 = tpu.matmul %396, %380, %cst_115 {dimension_numbers = #tpu.dot_dimension_numbers<[1], [0], [0], [1], [0, 0, 1, 1], [], []>} : vector<8x8xbf16>, vector<8x8xbf16>, vector<8x8xf32> -> vector<8x8xf32>
    %398 = vector.extract_strided_slice %346 {offsets = [0, 16], sizes = [8, 8], strides = [1, 1]} : vector<8x32xf32> to vector<8x8xf32>
    %399 = arith.truncf %398 : vector<8x8xf32> to vector<8x8xbf16>
    %400 = vector.extract_strided_slice %348 {offsets = [0, 16], sizes = [8, 8], strides = [1, 1]} : vector<8x32xf32> to vector<8x8xf32>
    %401 = arith.truncf %400 : vector<8x8xf32> to vector<8x8xbf16>
    %402 = vector.extract_strided_slice %349 {offsets = [0, 16], sizes = [8, 8], strides = [1, 1]} : vector<8x32xf32> to vector<8x8xf32>
    %403 = arith.truncf %402 : vector<8x8xf32> to vector<8x8xbf16>
    %cst_116 = arith.constant dense<0.000000e+00> : vector<8x8xf32>
    %404 = tpu.matmul %399, %401, %cst_116 {dimension_numbers = #tpu.dot_dimension_numbers<[1], [1], [0], [0], [0, 0, 1, 0], [], []>} : vector<8x8xbf16>, vector<8x8xbf16>, vector<8x8xf32> -> vector<8x8xf32>
    %cst_117 = arith.constant 0.353553385 : f32
    %405 = vector.broadcast %cst_117 : f32 to vector<8x8xf32>
    %406 = arith.mulf %404, %405 : vector<8x8xf32>
    %407 = vector.broadcast %351 : vector<1x8xf32> to vector<8x8xf32>
    %408 = arith.addf %406, %407 : vector<8x8xf32>
    %cst_118 = arith.constant dense<0xFF800000> : vector<8xf32>
    %409 = vector.multi_reduction <maximumf>, %408, %cst_118 [1] : vector<8x8xf32> to vector<8xf32>
    %410 = vector.shape_cast %409 : vector<8xf32> to vector<8x1xf32>
    %411 = vector.broadcast %410 : vector<8x1xf32> to vector<8x8xf32>
    %412 = arith.subf %408, %411 : vector<8x8xf32>
    %413 = math.exp %412 : vector<8x8xf32>
    %cst_119 = arith.constant dense<0.000000e+00> : vector<8xf32>
    %414 = vector.multi_reduction <add>, %413, %cst_119 [1] : vector<8x8xf32> to vector<8xf32>
    %415 = vector.shape_cast %414 : vector<8xf32> to vector<8x1xf32>
    %416 = tpu.reciprocal %415 {approx = true} : vector<8x1xf32> -> vector<8x1xf32>
    %417 = vector.broadcast %416 : vector<8x1xf32> to vector<8x8xf32>
    %418 = arith.mulf %413, %417 : vector<8x8xf32>
    %419 = arith.truncf %418 : vector<8x8xf32> to vector<8x8xbf16>
    %cst_120 = arith.constant dense<0.000000e+00> : vector<8x8xf32>
    %420 = tpu.matmul %419, %403, %cst_120 {dimension_numbers = #tpu.dot_dimension_numbers<[1], [0], [0], [1], [0, 0, 1, 1], [], []>} : vector<8x8xbf16>, vector<8x8xbf16>, vector<8x8xf32> -> vector<8x8xf32>
    %421 = vector.extract_strided_slice %346 {offsets = [0, 24], sizes = [8, 8], strides = [1, 1]} : vector<8x32xf32> to vector<8x8xf32>
    %422 = arith.truncf %421 : vector<8x8xf32> to vector<8x8xbf16>
    %423 = vector.extract_strided_slice %348 {offsets = [0, 24], sizes = [8, 8], strides = [1, 1]} : vector<8x32xf32> to vector<8x8xf32>
    %424 = arith.truncf %423 : vector<8x8xf32> to vector<8x8xbf16>
    %425 = vector.extract_strided_slice %349 {offsets = [0, 24], sizes = [8, 8], strides = [1, 1]} : vector<8x32xf32> to vector<8x8xf32>
    %426 = arith.truncf %425 : vector<8x8xf32> to vector<8x8xbf16>
    %cst_121 = arith.constant dense<0.000000e+00> : vector<8x8xf32>
    %427 = tpu.matmul %422, %424, %cst_121 {dimension_numbers = #tpu.dot_dimension_numbers<[1], [1], [0], [0], [0, 0, 1, 0], [], []>} : vector<8x8xbf16>, vector<8x8xbf16>, vector<8x8xf32> -> vector<8x8xf32>
    %cst_122 = arith.constant 0.353553385 : f32
    %428 = vector.broadcast %cst_122 : f32 to vector<8x8xf32>
    %429 = arith.mulf %427, %428 : vector<8x8xf32>
    %430 = vector.broadcast %351 : vector<1x8xf32> to vector<8x8xf32>
    %431 = arith.addf %429, %430 : vector<8x8xf32>
    %cst_123 = arith.constant dense<0xFF800000> : vector<8xf32>
    %432 = vector.multi_reduction <maximumf>, %431, %cst_123 [1] : vector<8x8xf32> to vector<8xf32>
    %433 = vector.shape_cast %432 : vector<8xf32> to vector<8x1xf32>
    %434 = vector.broadcast %433 : vector<8x1xf32> to vector<8x8xf32>
    %435 = arith.subf %431, %434 : vector<8x8xf32>
    %436 = math.exp %435 : vector<8x8xf32>
    %cst_124 = arith.constant dense<0.000000e+00> : vector<8xf32>
    %437 = vector.multi_reduction <add>, %436, %cst_124 [1] : vector<8x8xf32> to vector<8xf32>
    %438 = vector.shape_cast %437 : vector<8xf32> to vector<8x1xf32>
    %439 = tpu.reciprocal %438 {approx = true} : vector<8x1xf32> -> vector<8x1xf32>
    %440 = vector.broadcast %439 : vector<8x1xf32> to vector<8x8xf32>
    %441 = arith.mulf %436, %440 : vector<8x8xf32>
    %442 = arith.truncf %441 : vector<8x8xf32> to vector<8x8xbf16>
    %cst_125 = arith.constant dense<0.000000e+00> : vector<8x8xf32>
    %443 = tpu.matmul %442, %426, %cst_125 {dimension_numbers = #tpu.dot_dimension_numbers<[1], [0], [0], [1], [0, 0, 1, 1], [], []>} : vector<8x8xbf16>, vector<8x8xbf16>, vector<8x8xf32> -> vector<8x8xf32>
    %444 = tpu.concatenate %374, %397, %420, %443 in 1 : vector<8x8xf32>, vector<8x8xf32>, vector<8x8xf32>, vector<8x8xf32> -> vector<8x32xf32>
    %445 = tpu.concatenate %345, %444 in 0 : vector<8x32xf32>, vector<8x32xf32> -> vector<16x32xf32>
    %446 = arith.truncf %445 : vector<16x32xf32> to vector<16x32xbf16>
    %c0_126 = arith.constant 0 : index
    %c0_127 = arith.constant 0 : index
    %447 = vector.load %arg14[%c0_126, %c0_127] : memref<32x32xbf16, #tpu.memory_space<vmem>>, vector<32x32xbf16>
    %cst_128 = arith.constant dense<0.000000e+00> : vector<16x32xf32>
    %448 = tpu.matmul %446, %447, %cst_128 {dimension_numbers = #tpu.dot_dimension_numbers<[1], [0], [0], [1], [0, 0, 1, 1], [], []>} : vector<16x32xbf16>, vector<32x32xbf16>, vector<16x32xf32> -> vector<16x32xf32>
    %c0_129 = arith.constant 0 : index
    %c0_130 = arith.constant 0 : index
    %449 = vector.load %arg15[%c0_129, %c0_130] : memref<1x32xf32, #tpu.memory_space<vmem>>, vector<1x32xf32>
    %450 = vector.broadcast %449 : vector<1x32xf32> to vector<16x32xf32>
    %451 = arith.addf %448, %450 : vector<16x32xf32>
    %452 = arith.addf %235, %451 : vector<16x32xf32>
    %c0_131 = arith.constant 0 : index
    %c0_132 = arith.constant 0 : index
    %453 = vector.load %arg18[%c0_131, %c0_132] : memref<1x32xf32, #tpu.memory_space<vmem>>, vector<1x32xf32>
    %c0_133 = arith.constant 0 : index
    %c0_134 = arith.constant 0 : index
    %454 = vector.load %arg19[%c0_133, %c0_134] : memref<1x32xf32, #tpu.memory_space<vmem>>, vector<1x32xf32>
    %cst_135 = arith.constant dense<0.000000e+00> : vector<16xf32>
    %455 = vector.multi_reduction <add>, %452, %cst_135 [1] : vector<16x32xf32> to vector<16xf32>
    %456 = vector.shape_cast %455 : vector<16xf32> to vector<16x1xf32>
    %cst_136 = arith.constant 3.200000e+01 : f32
    %457 = vector.broadcast %cst_136 : f32 to vector<16x1xf32>
    %458 = arith.divf %456, %457 : vector<16x1xf32>
    %459 = vector.broadcast %458 : vector<16x1xf32> to vector<16x32xf32>
    %460 = arith.subf %452, %459 : vector<16x32xf32>
    %461 = arith.mulf %460, %460 : vector<16x32xf32>
    %cst_137 = arith.constant dense<0.000000e+00> : vector<16xf32>
    %462 = vector.multi_reduction <add>, %461, %cst_137 [1] : vector<16x32xf32> to vector<16xf32>
    %463 = vector.shape_cast %462 : vector<16xf32> to vector<16x1xf32>
    %cst_138 = arith.constant 3.200000e+01 : f32
    %464 = vector.broadcast %cst_138 : f32 to vector<16x1xf32>
    %465 = arith.divf %463, %464 : vector<16x1xf32>
    %cst_139 = arith.constant 9.99999974E-6 : f32
    %466 = vector.broadcast %cst_139 : f32 to vector<16x1xf32>
    %467 = arith.addf %465, %466 : vector<16x1xf32>
    %468 = math.rsqrt %467 : vector<16x1xf32>
    %469 = vector.broadcast %468 : vector<16x1xf32> to vector<16x32xf32>
    %470 = arith.mulf %460, %469 : vector<16x32xf32>
    %471 = vector.broadcast %453 : vector<1x32xf32> to vector<16x32xf32>
    %472 = arith.mulf %470, %471 : vector<16x32xf32>
    %473 = vector.broadcast %454 : vector<1x32xf32> to vector<16x32xf32>
    %474 = arith.addf %472, %473 : vector<16x32xf32>
    %475 = arith.truncf %474 : vector<16x32xf32> to vector<16x32xbf16>
    %c0_140 = arith.constant 0 : index
    %c0_141 = arith.constant 0 : index
    %476 = vector.load %arg20[%c0_140, %c0_141] : memref<32x64xbf16, #tpu.memory_space<vmem>>, vector<32x64xbf16>
    %cst_142 = arith.constant dense<0.000000e+00> : vector<16x64xf32>
    %477 = tpu.matmul %475, %476, %cst_142 {dimension_numbers = #tpu.dot_dimension_numbers<[1], [0], [0], [1], [0, 0, 1, 1], [], []>} : vector<16x32xbf16>, vector<32x64xbf16>, vector<16x64xf32> -> vector<16x64xf32>
    %c0_143 = arith.constant 0 : index
    %c0_144 = arith.constant 0 : index
    %478 = vector.load %arg21[%c0_143, %c0_144] : memref<1x64xf32, #tpu.memory_space<vmem>>, vector<1x64xf32>
    %479 = vector.broadcast %478 : vector<1x64xf32> to vector<16x64xf32>
    %480 = arith.addf %477, %479 : vector<16x64xf32>
    %cst_145 = arith.constant 0.000000e+00 : f32
    %481 = vector.broadcast %cst_145 : f32 to vector<16x64xf32>
    %482 = arith.maximumf %480, %481 : vector<16x64xf32>
    %483 = arith.truncf %482 : vector<16x64xf32> to vector<16x64xbf16>
    %c0_146 = arith.constant 0 : index
    %c0_147 = arith.constant 0 : index
    %484 = vector.load %arg22[%c0_146, %c0_147] : memref<64x32xbf16, #tpu.memory_space<vmem>>, vector<64x32xbf16>
    %cst_148 = arith.constant dense<0.000000e+00> : vector<16x32xf32>
    %485 = tpu.matmul %483, %484, %cst_148 {dimension_numbers = #tpu.dot_dimension_numbers<[1], [0], [0], [1], [0, 0, 1, 1], [], []>} : vector<16x64xbf16>, vector<64x32xbf16>, vector<16x32xf32> -> vector<16x32xf32>
    %c0_149 = arith.constant 0 : index
    %c0_150 = arith.constant 0 : index
    %486 = vector.load %arg23[%c0_149, %c0_150] : memref<1x32xf32, #tpu.memory_space<vmem>>, vector<1x32xf32>
    %487 = vector.broadcast %486 : vector<1x32xf32> to vector<16x32xf32>
    %488 = arith.addf %485, %487 : vector<16x32xf32>
    %489 = arith.addf %474, %488 : vector<16x32xf32>
    %c0_151 = arith.constant 0 : index
    %c0_152 = arith.constant 0 : index
    %490 = vector.load %arg24[%c0_151, %c0_152] : memref<1x32xf32, #tpu.memory_space<vmem>>, vector<1x32xf32>
    %c0_153 = arith.constant 0 : index
    %c0_154 = arith.constant 0 : index
    %491 = vector.load %arg25[%c0_153, %c0_154] : memref<1x32xf32, #tpu.memory_space<vmem>>, vector<1x32xf32>
    %cst_155 = arith.constant dense<0.000000e+00> : vector<16xf32>
    %492 = vector.multi_reduction <add>, %489, %cst_155 [1] : vector<16x32xf32> to vector<16xf32>
    %493 = vector.shape_cast %492 : vector<16xf32> to vector<16x1xf32>
    %cst_156 = arith.constant 3.200000e+01 : f32
    %494 = vector.broadcast %cst_156 : f32 to vector<16x1xf32>
    %495 = arith.divf %493, %494 : vector<16x1xf32>
    %496 = vector.broadcast %495 : vector<16x1xf32> to vector<16x32xf32>
    %497 = arith.subf %489, %496 : vector<16x32xf32>
    %498 = arith.mulf %497, %497 : vector<16x32xf32>
    %cst_157 = arith.constant dense<0.000000e+00> : vector<16xf32>
    %499 = vector.multi_reduction <add>, %498, %cst_157 [1] : vector<16x32xf32> to vector<16xf32>
    %500 = vector.shape_cast %499 : vector<16xf32> to vector<16x1xf32>
    %cst_158 = arith.constant 3.200000e+01 : f32
    %501 = vector.broadcast %cst_158 : f32 to vector<16x1xf32>
    %502 = arith.divf %500, %501 : vector<16x1xf32>
    %cst_159 = arith.constant 9.99999974E-6 : f32
    %503 = vector.broadcast %cst_159 : f32 to vector<16x1xf32>
    %504 = arith.addf %502, %503 : vector<16x1xf32>
    %505 = math.rsqrt %504 : vector<16x1xf32>
    %506 = vector.broadcast %505 : vector<16x1xf32> to vector<16x32xf32>
    %507 = arith.mulf %497, %506 : vector<16x32xf32>
    %508 = vector.broadcast %490 : vector<1x32xf32> to vector<16x32xf32>
    %509 = arith.mulf %507, %508 : vector<16x32xf32>
    %510 = vector.broadcast %491 : vector<1x32xf32> to vector<16x32xf32>
    %511 = arith.addf %509, %510 : vector<16x32xf32>
    %512 = arith.truncf %511 : vector<16x32xf32> to vector<16x32xbf16>
    %c0_160 = arith.constant 0 : index
    %c0_161 = arith.constant 0 : index
    %513 = vector.load %arg26[%c0_160, %c0_161] : memref<16x32xbf16, #tpu.memory_space<vmem>>, vector<16x32xbf16>
    tpu.vector_store %arg26[%c0_160, %c0_161], %512 {strides = array<i32>} : memref<16x32xbf16, #tpu.memory_space<vmem>>, vector<16x32xbf16>,
    return
  }
  func.func @transform_0(%arg0: i32) -> (i32, i32) {
    %c0_i32 = arith.constant 0 : i32
    %c0_i32_0 = arith.constant 0 : i32
    return %arg0, %c0_i32 : i32, i32
  }
  func.func @transform_1(%arg0: i32) -> (i32, i32) {
    %c0_i32 = arith.constant 0 : i32
    %c0_i32_0 = arith.constant 0 : i32
    return %arg0, %c0_i32 : i32, i32
  }
  func.func @transform_2(%arg0: i32) -> (i32, i32) {
    %c0_i32 = arith.constant 0 : i32
    %c0_i32_0 = arith.constant 0 : i32
    %c0_i32_1 = arith.constant 0 : i32
    return %c0_i32, %c0_i32_0 : i32, i32
  }
  func.func @transform_3(%arg0: i32) -> (i32, i32, i32) {
    %c0_i32 = arith.constant 0 : i32
    %c0_i32_0 = arith.constant 0 : i32
    %c0_i32_1 = arith.constant 0 : i32
    return %arg0, %c0_i32, %c0_i32_0 : i32, i32, i32
  }
  func.func @transform_4(%arg0: i32) -> (i32, i32, i32) {
    %c0_i32 = arith.constant 0 : i32
    %c0_i32_0 = arith.constant 0 : i32
    %c0_i32_1 = arith.constant 0 : i32
    return %arg0, %c0_i32, %c0_i32_0 : i32, i32, i32
  }
  func.func @transform_5(%arg0: i32) -> (i32, i32) {
    %c0_i32 = arith.constant 0 : i32
    %c0_i32_0 = arith.constant 0 : i32
    %c0_i32_1 = arith.constant 0 : i32
    return %c0_i32, %c0_i32_0 : i32, i32
  }
  func.func @transform_6(%arg0: i32) -> (i32, i32) {
    %c0_i32 = arith.constant 0 : i32
    %c0_i32_0 = arith.constant 0 : i32
    %c0_i32_1 = arith.constant 0 : i32
    return %c0_i32, %c0_i32_0 : i32, i32
  }
  func.func @transform_7(%arg0: i32) -> (i32, i32) {
    %c0_i32 = arith.constant 0 : i32
    %c0_i32_0 = arith.constant 0 : i32
    %c0_i32_1 = arith.constant 0 : i32
    return %c0_i32, %c0_i32_0 : i32, i32
  }
  func.func @transform_8(%arg0: i32) -> (i32, i32) {
    %c0_i32 = arith.constant 0 : i32
    %c0_i32_0 = arith.constant 0 : i32
    %c0_i32_1 = arith.constant 0 : i32
    return %c0_i32, %c0_i32_0 : i32, i32
  }
  func.func @transform_9(%arg0: i32) -> (i32, i32) {
    %c0_i32 = arith.constant 0 : i32
    %c0_i32_0 = arith.constant 0 : i32
    %c0_i32_1 = arith.constant 0 : i32
    return %c0_i32, %c0_i32_0 : i32, i32
  }
  func.func @transform_10(%arg0: i32) -> (i32, i32) {
    %c0_i32 = arith.constant 0 : i32
    %c0_i32_0 = arith.constant 0 : i32
    %c0_i32_1 = arith.constant 0 : i32
    return %c0_i32, %c0_i32_0 : i32, i32
  }
  func.func @transform_11(%arg0: i32) -> (i32, i32) {
    %c0_i32 = arith.constant 0 : i32
    %c0_i32_0 = arith.constant 0 : i32
    %c0_i32_1 = arith.constant 0 : i32
    return %c0_i32, %c0_i32_0 : i32, i32
  }
  func.func @transform_12(%arg0: i32) -> (i32, i32) {
    %c0_i32 = arith.constant 0 : i32
    %c0_i32_0 = arith.constant 0 : i32
    %c0_i32_1 = arith.constant 0 : i32
    return %c0_i32, %c0_i32_0 : i32, i32
  }
  func.func @transform_13(%arg0: i32) -> (i32, i32) {
    %c0_i32 = arith.constant 0 : i32
    %c0_i32_0 = arith.constant 0 : i32
    %c0_i32_1 = arith.constant 0 : i32
    return %c0_i32, %c0_i32_0 : i32, i32
  }
  func.func @transform_14(%arg0: i32) -> (i32, i32) {
    %c0_i32 = arith.constant 0 : i32
    %c0_i32_0 = arith.constant 0 : i32
    %c0_i32_1 = arith.constant 0 : i32
    return %c0_i32, %c0_i32_0 : i32, i32
  }
  func.func @transform_15(%arg0: i32) -> (i32, i32) {
    %c0_i32 = arith.constant 0 : i32
    %c0_i32_0 = arith.constant 0 : i32
    %c0_i32_1 = arith.constant 0 : i32
    return %c0_i32, %c0_i32_0 : i32, i32
  }
  func.func @transform_16(%arg0: i32) -> (i32, i32) {
    %c0_i32 = arith.constant 0 : i32
    %c0_i32_0 = arith.constant 0 : i32
    %c0_i32_1 = arith.constant 0 : i32
    return %c0_i32, %c0_i32_0 : i32, i32
  }
  func.func @transform_17(%arg0: i32) -> (i32, i32) {
    %c0_i32 = arith.constant 0 : i32
    %c0_i32_0 = arith.constant 0 : i32
    %c0_i32_1 = arith.constant 0 : i32
    return %c0_i32, %c0_i32_0 : i32, i32
  }
  func.func @transform_18(%arg0: i32) -> (i32, i32) {
    %c0_i32 = arith.constant 0 : i32
    %c0_i32_0 = arith.constant 0 : i32
    %c0_i32_1 = arith.constant 0 : i32
    return %c0_i32, %c0_i32_0 : i32, i32
  }
  func.func @transform_19(%arg0: i32) -> (i32, i32) {
    %c0_i32 = arith.constant 0 : i32
    %c0_i32_0 = arith.constant 0 : i32
    %c0_i32_1 = arith.constant 0 : i32
    return %c0_i32, %c0_i32_0 : i32, i32
  }
  func.func @transform_20(%arg0: i32) -> (i32, i32) {
    %c0_i32 = arith.constant 0 : i32
    %c0_i32_0 = arith.constant 0 : i32
    %c0_i32_1 = arith.constant 0 : i32
    return %c0_i32, %c0_i32_0 : i32, i32
  }
  func.func @transform_21(%arg0: i32) -> (i32, i32) {
    %c0_i32 = arith.constant 0 : i32
    %c0_i32_0 = arith.constant 0 : i32
    %c0_i32_1 = arith.constant 0 : i32
    return %c0_i32, %c0_i32_0 : i32, i32
  }
  func.func @transform_22(%arg0: i32) -> (i32, i32) {
    %c0_i32 = arith.constant 0 : i32
    %c0_i32_0 = arith.constant 0 : i32
    %c0_i32_1 = arith.constant 0 : i32
    return %c0_i32, %c0_i32_0 : i32, i32
  }
  func.func @transform_23(%arg0: i32) -> (i32, i32) {
    %c0_i32 = arith.constant 0 : i32
    %c0_i32_0 = arith.constant 0 : i32
    %c0_i32_1 = arith.constant 0 : i32
    return %c0_i32, %c0_i32_0 : i32, i32
  }
  func.func @transform_24(%arg0: i32) -> (i32, i32) {
    %c0_i32 = arith.constant 0 : i32
    %c0_i32_0 = arith.constant 0 : i32
    %c0_i32_1 = arith.constant 0 : i32
    return %c0_i32, %c0_i32_0 : i32, i32
  }
  func.func @transform_25(%arg0: i32) -> (i32, i32) {
    %c0_i32 = arith.constant 0 : i32
    %c0_i32_0 = arith.constant 0 : i32
    return %arg0, %c0_i32 : i32, i32
  }
}

module attributes {stable_mosaic.version = 11 : i64} {
  func.func @_dec_layer_kernel(%arg0: i32, %arg1: memref<16x32xbf16, #tpu.memory_space<vmem>>, %arg2: memref<16x32xbf16, #tpu.memory_space<vmem>>, %arg3: memref<8x8xf32, #tpu.memory_space<vmem>>, %arg4: memref<2x1x8xf32, #tpu.memory_space<vmem>>, %arg5: memref<2x1x8xf32, #tpu.memory_space<vmem>>, %arg6: memref<32x96xbf16, #tpu.memory_space<vmem>>, %arg7: memref<1x96xf32, #tpu.memory_space<vmem>>, %arg8: memref<32x32xbf16, #tpu.memory_space<vmem>>, %arg9: memref<1x32xf32, #tpu.memory_space<vmem>>, %arg10: memref<32x32xbf16, #tpu.memory_space<vmem>>, %arg11: memref<1x32xf32, #tpu.memory_space<vmem>>, %arg12: memref<32x64xbf16, #tpu.memory_space<vmem>>, %arg13: memref<1x64xf32, #tpu.memory_space<vmem>>, %arg14: memref<32x32xbf16, #tpu.memory_space<vmem>>, %arg15: memref<1x32xf32, #tpu.memory_space<vmem>>, %arg16: memref<1x32xf32, #tpu.memory_space<vmem>>, %arg17: memref<1x32xf32, #tpu.memory_space<vmem>>, %arg18: memref<1x32xf32, #tpu.memory_space<vmem>>, %arg19: memref<1x32xf32, #tpu.memory_space<vmem>>, %arg20: memref<32x64xbf16, #tpu.memory_space<vmem>>, %arg21: memref<1x64xf32, #tpu.memory_space<vmem>>, %arg22: memref<64x32xbf16, #tpu.memory_space<vmem>>, %arg23: memref<1x32xf32, #tpu.memory_space<vmem>>, %arg24: memref<1x32xf32, #tpu.memory_space<vmem>>, %arg25: memref<1x32xf32, #tpu.memory_space<vmem>>, %arg26: memref<16x32xbf16, #tpu.memory_space<vmem>>) attributes {dimension_semantics = [#tpu.dimension_semantics<parallel>], iteration_bounds = array<i64: 1>, scalar_prefetch = 0 : i64, scratch_operands = 0 : i64, tpu.core_type = #tpu.core_type<tc>, window_params = [{transform_indices = @transform_0, window_bounds = array<i64: 16, 32>}, {transform_indices = @transform_1, window_bounds = array<i64: 16, 32>}, {pipeline_mode = #tpu.pipeline_mode<synchronous>, transform_indices = @transform_2, window_bounds = array<i64: 8, 8>}, {transform_indices = @transform_3, window_bounds = array<i64: 2, 1, 8>}, {transform_indices = @transform_4, window_bounds = array<i64: 2, 1, 8>}, {pipeline_mode = #tpu.pipeline_mode<synchronous>, transform_indices = @transform_5, window_bounds = array<i64: 32, 96>}, {pipeline_mode = #tpu.pipeline_mode<synchronous>, transform_indices = @transform_6, window_bounds = array<i64: 1, 96>}, {pipeline_mode = #tpu.pipeline_mode<synchronous>, transform_indices = @transform_7, window_bounds = array<i64: 32, 32>}, {pipeline_mode = #tpu.pipeline_mode<synchronous>, transform_indices = @transform_8, window_bounds = array<i64: 1, 32>}, {pipeline_mode = #tpu.pipeline_mode<synchronous>, transform_indices = @transform_9, window_bounds = array<i64: 32, 32>}, {pipeline_mode = #tpu.pipeline_mode<synchronous>, transform_indices = @transform_10, window_bounds = array<i64: 1, 32>}, {pipeline_mode = #tpu.pipeline_mode<synchronous>, transform_indices = @transform_11, window_bounds = array<i64: 32, 64>}, {pipeline_mode = #tpu.pipeline_mode<synchronous>, transform_indices = @transform_12, window_bounds = array<i64: 1, 64>}, {pipeline_mode = #tpu.pipeline_mode<synchronous>, transform_indices = @transform_13, window_bounds = array<i64: 32, 32>}, {pipeline_mode = #tpu.pipeline_mode<synchronous>, transform_indices = @transform_14, window_bounds = array<i64: 1, 32>}, {pipeline_mode = #tpu.pipeline_mode<synchronous>, transform_indices = @transform_15, window_bounds = array<i64: 1, 32>}, {pipeline_mode = #tpu.pipeline_mode<synchronous>, transform_indices = @transform_16, window_bounds = array<i64: 1, 32>}, {pipeline_mode = #tpu.pipeline_mode<synchronous>, transform_indices = @transform_17, window_bounds = array<i64: 1, 32>}, {pipeline_mode = #tpu.pipeline_mode<synchronous>, transform_indices = @transform_18, window_bounds = array<i64: 1, 32>}, {pipeline_mode = #tpu.pipeline_mode<synchronous>, transform_indices = @transform_19, window_bounds = array<i64: 32, 64>}, {pipeline_mode = #tpu.pipeline_mode<synchronous>, transform_indices = @transform_20, window_bounds = array<i64: 1, 64>}, {pipeline_mode = #tpu.pipeline_mode<synchronous>, transform_indices = @transform_21, window_bounds = array<i64: 64, 32>}, {pipeline_mode = #tpu.pipeline_mode<synchronous>, transform_indices = @transform_22, window_bounds = array<i64: 1, 32>}, {pipeline_mode = #tpu.pipeline_mode<synchronous>, transform_indices = @transform_23, window_bounds = array<i64: 1, 32>}, {pipeline_mode = #tpu.pipeline_mode<synchronous>, transform_indices = @transform_24, window_bounds = array<i64: 1, 32>}, {transform_indices = @transform_25, window_bounds = array<i64: 16, 32>}]} {
    %c0 = arith.constant 0 : index
    %c0_0 = arith.constant 0 : index
    %0 = vector.load %arg1[%c0, %c0_0] : memref<16x32xbf16, #tpu.memory_space<vmem>>, vector<16x32xbf16>
    %1 = arith.extf %0 : vector<16x32xbf16> to vector<16x32xf32>
    %c0_1 = arith.constant 0 : index
    %c0_2 = arith.constant 0 : index
    %2 = vector.load %arg2[%c0_1, %c0_2] : memref<16x32xbf16, #tpu.memory_space<vmem>>, vector<16x32xbf16>
    %c0_3 = arith.constant 0 : index
    %c0_4 = arith.constant 0 : index
    %3 = vector.load %arg6[%c0_3, %c0_4] : memref<32x96xbf16, #tpu.memory_space<vmem>>, vector<32x96xbf16>
    %cst = arith.constant dense<0.000000e+00> : vector<16x96xf32>
    %4 = tpu.matmul %0, %3, %cst {dimension_numbers = #tpu.dot_dimension_numbers<[1], [0], [0], [1], [0, 0, 1, 1], [], []>} : vector<16x32xbf16>, vector<32x96xbf16>, vector<16x96xf32> -> vector<16x96xf32>
    %c0_5 = arith.constant 0 : index
    %c0_6 = arith.constant 0 : index
    %5 = vector.load %arg7[%c0_5, %c0_6] : memref<1x96xf32, #tpu.memory_space<vmem>>, vector<1x96xf32>
    %6 = vector.broadcast %5 : vector<1x96xf32> to vector<16x96xf32>
    %7 = arith.addf %4, %6 : vector<16x96xf32>
    %8 = vector.extract_strided_slice %7 {offsets = [0, 0], sizes = [8, 96], strides = [1, 1]} : vector<16x96xf32> to vector<8x96xf32>
    %c0_7 = arith.constant 0 : index
    %c0_8 = arith.constant 0 : index
    %9 = vector.load %arg3[%c0_7, %c0_8] : memref<8x8xf32, #tpu.memory_space<vmem>>, vector<8x8xf32>
    %10 = vector.shape_cast %9 : vector<8x8xf32> to vector<8x8xf32>
    %c0_9 = arith.constant 0 : index
    %c0_10 = arith.constant 0 : index
    %c0_11 = arith.constant 0 : index
    %11 = vector.load %arg4[%c0_9, %c0_10, %c0_11] : memref<2x1x8xf32, #tpu.memory_space<vmem>>, vector<1x1x8xf32>
    %12 = vector.shape_cast %11 : vector<1x1x8xf32> to vector<1x8xf32>
    %13 = vector.broadcast %12 : vector<1x8xf32> to vector<8x8xf32>
    %14 = arith.addf %10, %13 : vector<8x8xf32>
    %15 = vector.extract_strided_slice %8 {offsets = [0, 0], sizes = [8, 32], strides = [1, 1]} : vector<8x96xf32> to vector<8x32xf32>
    %16 = vector.extract_strided_slice %8 {offsets = [0, 32], sizes = [8, 32], strides = [1, 1]} : vector<8x96xf32> to vector<8x32xf32>
    %17 = vector.extract_strided_slice %8 {offsets = [0, 64], sizes = [8, 32], strides = [1, 1]} : vector<8x96xf32> to vector<8x32xf32>
    %18 = vector.extract_strided_slice %15 {offsets = [0, 0], sizes = [8, 8], strides = [1, 1]} : vector<8x32xf32> to vector<8x8xf32>
    %19 = arith.truncf %18 : vector<8x8xf32> to vector<8x8xbf16>
    %20 = vector.extract_strided_slice %16 {offsets = [0, 0], sizes = [8, 8], strides = [1, 1]} : vector<8x32xf32> to vector<8x8xf32>
    %21 = arith.truncf %20 : vector<8x8xf32> to vector<8x8xbf16>
    %22 = vector.extract_strided_slice %17 {offsets = [0, 0], sizes = [8, 8], strides = [1, 1]} : vector<8x32xf32> to vector<8x8xf32>
    %23 = arith.truncf %22 : vector<8x8xf32> to vector<8x8xbf16>
    %cst_12 = arith.constant dense<0.000000e+00> : vector<8x8xf32>
    %24 = tpu.matmul %19, %21, %cst_12 {dimension_numbers = #tpu.dot_dimension_numbers<[1], [1], [0], [0], [0, 0, 1, 0], [], []>} : vector<8x8xbf16>, vector<8x8xbf16>, vector<8x8xf32> -> vector<8x8xf32>
    %cst_13 = arith.constant 0.353553385 : f32
    %25 = vector.broadcast %cst_13 : f32 to vector<8x8xf32>
    %26 = arith.mulf %24, %25 : vector<8x8xf32>
    %27 = arith.addf %26, %14 : vector<8x8xf32>
    %cst_14 = arith.constant dense<0xFF800000> : vector<8xf32>
    %28 = vector.multi_reduction <maximumf>, %27, %cst_14 [1] : vector<8x8xf32> to vector<8xf32>
    %29 = vector.shape_cast %28 : vector<8xf32> to vector<8x1xf32>
    %30 = vector.broadcast %29 : vector<8x1xf32> to vector<8x8xf32>
    %31 = arith.subf %27, %30 : vector<8x8xf32>
    %32 = math.exp %31 : vector<8x8xf32>
    %cst_15 = arith.constant dense<0.000000e+00> : vector<8xf32>
    %33 = vector.multi_reduction <add>, %32, %cst_15 [1] : vector<8x8xf32> to vector<8xf32>
    %34 = vector.shape_cast %33 : vector<8xf32> to vector<8x1xf32>
    %35 = tpu.reciprocal %34 {approx = true} : vector<8x1xf32> -> vector<8x1xf32>
    %36 = vector.broadcast %35 : vector<8x1xf32> to vector<8x8xf32>
    %37 = arith.mulf %32, %36 : vector<8x8xf32>
    %38 = arith.truncf %37 : vector<8x8xf32> to vector<8x8xbf16>
    %cst_16 = arith.constant dense<0.000000e+00> : vector<8x8xf32>
    %39 = tpu.matmul %38, %23, %cst_16 {dimension_numbers = #tpu.dot_dimension_numbers<[1], [0], [0], [1], [0, 0, 1, 1], [], []>} : vector<8x8xbf16>, vector<8x8xbf16>, vector<8x8xf32> -> vector<8x8xf32>
    %40 = vector.extract_strided_slice %15 {offsets = [0, 8], sizes = [8, 8], strides = [1, 1]} : vector<8x32xf32> to vector<8x8xf32>
    %41 = arith.truncf %40 : vector<8x8xf32> to vector<8x8xbf16>
    %42 = vector.extract_strided_slice %16 {offsets = [0, 8], sizes = [8, 8], strides = [1, 1]} : vector<8x32xf32> to vector<8x8xf32>
    %43 = arith.truncf %42 : vector<8x8xf32> to vector<8x8xbf16>
    %44 = vector.extract_strided_slice %17 {offsets = [0, 8], sizes = [8, 8], strides = [1, 1]} : vector<8x32xf32> to vector<8x8xf32>
    %45 = arith.truncf %44 : vector<8x8xf32> to vector<8x8xbf16>
    %cst_17 = arith.constant dense<0.000000e+00> : vector<8x8xf32>
    %46 = tpu.matmul %41, %43, %cst_17 {dimension_numbers = #tpu.dot_dimension_numbers<[1], [1], [0], [0], [0, 0, 1, 0], [], []>} : vector<8x8xbf16>, vector<8x8xbf16>, vector<8x8xf32> -> vector<8x8xf32>
    %cst_18 = arith.constant 0.353553385 : f32
    %47 = vector.broadcast %cst_18 : f32 to vector<8x8xf32>
    %48 = arith.mulf %46, %47 : vector<8x8xf32>
    %49 = arith.addf %48, %14 : vector<8x8xf32>
    %cst_19 = arith.constant dense<0xFF800000> : vector<8xf32>
    %50 = vector.multi_reduction <maximumf>, %49, %cst_19 [1] : vector<8x8xf32> to vector<8xf32>
    %51 = vector.shape_cast %50 : vector<8xf32> to vector<8x1xf32>
    %52 = vector.broadcast %51 : vector<8x1xf32> to vector<8x8xf32>
    %53 = arith.subf %49, %52 : vector<8x8xf32>
    %54 = math.exp %53 : vector<8x8xf32>
    %cst_20 = arith.constant dense<0.000000e+00> : vector<8xf32>
    %55 = vector.multi_reduction <add>, %54, %cst_20 [1] : vector<8x8xf32> to vector<8xf32>
    %56 = vector.shape_cast %55 : vector<8xf32> to vector<8x1xf32>
    %57 = tpu.reciprocal %56 {approx = true} : vector<8x1xf32> -> vector<8x1xf32>
    %58 = vector.broadcast %57 : vector<8x1xf32> to vector<8x8xf32>
    %59 = arith.mulf %54, %58 : vector<8x8xf32>
    %60 = arith.truncf %59 : vector<8x8xf32> to vector<8x8xbf16>
    %cst_21 = arith.constant dense<0.000000e+00> : vector<8x8xf32>
    %61 = tpu.matmul %60, %45, %cst_21 {dimension_numbers = #tpu.dot_dimension_numbers<[1], [0], [0], [1], [0, 0, 1, 1], [], []>} : vector<8x8xbf16>, vector<8x8xbf16>, vector<8x8xf32> -> vector<8x8xf32>
    %62 = vector.extract_strided_slice %15 {offsets = [0, 16], sizes = [8, 8], strides = [1, 1]} : vector<8x32xf32> to vector<8x8xf32>
    %63 = arith.truncf %62 : vector<8x8xf32> to vector<8x8xbf16>
    %64 = vector.extract_strided_slice %16 {offsets = [0, 16], sizes = [8, 8], strides = [1, 1]} : vector<8x32xf32> to vector<8x8xf32>
    %65 = arith.truncf %64 : vector<8x8xf32> to vector<8x8xbf16>
    %66 = vector.extract_strided_slice %17 {offsets = [0, 16], sizes = [8, 8], strides = [1, 1]} : vector<8x32xf32> to vector<8x8xf32>
    %67 = arith.truncf %66 : vector<8x8xf32> to vector<8x8xbf16>
    %cst_22 = arith.constant dense<0.000000e+00> : vector<8x8xf32>
    %68 = tpu.matmul %63, %65, %cst_22 {dimension_numbers = #tpu.dot_dimension_numbers<[1], [1], [0], [0], [0, 0, 1, 0], [], []>} : vector<8x8xbf16>, vector<8x8xbf16>, vector<8x8xf32> -> vector<8x8xf32>
    %cst_23 = arith.constant 0.353553385 : f32
    %69 = vector.broadcast %cst_23 : f32 to vector<8x8xf32>
    %70 = arith.mulf %68, %69 : vector<8x8xf32>
    %71 = arith.addf %70, %14 : vector<8x8xf32>
    %cst_24 = arith.constant dense<0xFF800000> : vector<8xf32>
    %72 = vector.multi_reduction <maximumf>, %71, %cst_24 [1] : vector<8x8xf32> to vector<8xf32>
    %73 = vector.shape_cast %72 : vector<8xf32> to vector<8x1xf32>
    %74 = vector.broadcast %73 : vector<8x1xf32> to vector<8x8xf32>
    %75 = arith.subf %71, %74 : vector<8x8xf32>
    %76 = math.exp %75 : vector<8x8xf32>
    %cst_25 = arith.constant dense<0.000000e+00> : vector<8xf32>
    %77 = vector.multi_reduction <add>, %76, %cst_25 [1] : vector<8x8xf32> to vector<8xf32>
    %78 = vector.shape_cast %77 : vector<8xf32> to vector<8x1xf32>
    %79 = tpu.reciprocal %78 {approx = true} : vector<8x1xf32> -> vector<8x1xf32>
    %80 = vector.broadcast %79 : vector<8x1xf32> to vector<8x8xf32>
    %81 = arith.mulf %76, %80 : vector<8x8xf32>
    %82 = arith.truncf %81 : vector<8x8xf32> to vector<8x8xbf16>
    %cst_26 = arith.constant dense<0.000000e+00> : vector<8x8xf32>
    %83 = tpu.matmul %82, %67, %cst_26 {dimension_numbers = #tpu.dot_dimension_numbers<[1], [0], [0], [1], [0, 0, 1, 1], [], []>} : vector<8x8xbf16>, vector<8x8xbf16>, vector<8x8xf32> -> vector<8x8xf32>
    %84 = vector.extract_strided_slice %15 {offsets = [0, 24], sizes = [8, 8], strides = [1, 1]} : vector<8x32xf32> to vector<8x8xf32>
    %85 = arith.truncf %84 : vector<8x8xf32> to vector<8x8xbf16>
    %86 = vector.extract_strided_slice %16 {offsets = [0, 24], sizes = [8, 8], strides = [1, 1]} : vector<8x32xf32> to vector<8x8xf32>
    %87 = arith.truncf %86 : vector<8x8xf32> to vector<8x8xbf16>
    %88 = vector.extract_strided_slice %17 {offsets = [0, 24], sizes = [8, 8], strides = [1, 1]} : vector<8x32xf32> to vector<8x8xf32>
    %89 = arith.truncf %88 : vector<8x8xf32> to vector<8x8xbf16>
    %cst_27 = arith.constant dense<0.000000e+00> : vector<8x8xf32>
    %90 = tpu.matmul %85, %87, %cst_27 {dimension_numbers = #tpu.dot_dimension_numbers<[1], [1], [0], [0], [0, 0, 1, 0], [], []>} : vector<8x8xbf16>, vector<8x8xbf16>, vector<8x8xf32> -> vector<8x8xf32>
    %cst_28 = arith.constant 0.353553385 : f32
    %91 = vector.broadcast %cst_28 : f32 to vector<8x8xf32>
    %92 = arith.mulf %90, %91 : vector<8x8xf32>
    %93 = arith.addf %92, %14 : vector<8x8xf32>
    %cst_29 = arith.constant dense<0xFF800000> : vector<8xf32>
    %94 = vector.multi_reduction <maximumf>, %93, %cst_29 [1] : vector<8x8xf32> to vector<8xf32>
    %95 = vector.shape_cast %94 : vector<8xf32> to vector<8x1xf32>
    %96 = vector.broadcast %95 : vector<8x1xf32> to vector<8x8xf32>
    %97 = arith.subf %93, %96 : vector<8x8xf32>
    %98 = math.exp %97 : vector<8x8xf32>
    %cst_30 = arith.constant dense<0.000000e+00> : vector<8xf32>
    %99 = vector.multi_reduction <add>, %98, %cst_30 [1] : vector<8x8xf32> to vector<8xf32>
    %100 = vector.shape_cast %99 : vector<8xf32> to vector<8x1xf32>
    %101 = tpu.reciprocal %100 {approx = true} : vector<8x1xf32> -> vector<8x1xf32>
    %102 = vector.broadcast %101 : vector<8x1xf32> to vector<8x8xf32>
    %103 = arith.mulf %98, %102 : vector<8x8xf32>
    %104 = arith.truncf %103 : vector<8x8xf32> to vector<8x8xbf16>
    %cst_31 = arith.constant dense<0.000000e+00> : vector<8x8xf32>
    %105 = tpu.matmul %104, %89, %cst_31 {dimension_numbers = #tpu.dot_dimension_numbers<[1], [0], [0], [1], [0, 0, 1, 1], [], []>} : vector<8x8xbf16>, vector<8x8xbf16>, vector<8x8xf32> -> vector<8x8xf32>
    %106 = tpu.concatenate %39, %61, %83, %105 in 1 : vector<8x8xf32>, vector<8x8xf32>, vector<8x8xf32>, vector<8x8xf32> -> vector<8x32xf32>
    %107 = vector.extract_strided_slice %7 {offsets = [8, 0], sizes = [8, 96], strides = [1, 1]} : vector<16x96xf32> to vector<8x96xf32>
    %c0_32 = arith.constant 0 : index
    %c0_33 = arith.constant 0 : index
    %108 = vector.load %arg3[%c0_32, %c0_33] : memref<8x8xf32, #tpu.memory_space<vmem>>, vector<8x8xf32>
    %109 = vector.shape_cast %108 : vector<8x8xf32> to vector<8x8xf32>
    %c1 = arith.constant 1 : index
    %c0_34 = arith.constant 0 : index
    %c0_35 = arith.constant 0 : index
    %110 = vector.load %arg4[%c1, %c0_34, %c0_35] : memref<2x1x8xf32, #tpu.memory_space<vmem>>, vector<1x1x8xf32>
    %111 = vector.shape_cast %110 : vector<1x1x8xf32> to vector<1x8xf32>
    %112 = vector.broadcast %111 : vector<1x8xf32> to vector<8x8xf32>
    %113 = arith.addf %109, %112 : vector<8x8xf32>
    %114 = vector.extract_strided_slice %107 {offsets = [0, 0], sizes = [8, 32], strides = [1, 1]} : vector<8x96xf32> to vector<8x32xf32>
    %115 = vector.extract_strided_slice %107 {offsets = [0, 32], sizes = [8, 32], strides = [1, 1]} : vector<8x96xf32> to vector<8x32xf32>
    %116 = vector.extract_strided_slice %107 {offsets = [0, 64], sizes = [8, 32], strides = [1, 1]} : vector<8x96xf32> to vector<8x32xf32>
    %117 = vector.extract_strided_slice %114 {offsets = [0, 0], sizes = [8, 8], strides = [1, 1]} : vector<8x32xf32> to vector<8x8xf32>
    %118 = arith.truncf %117 : vector<8x8xf32> to vector<8x8xbf16>
    %119 = vector.extract_strided_slice %115 {offsets = [0, 0], sizes = [8, 8], strides = [1, 1]} : vector<8x32xf32> to vector<8x8xf32>
    %120 = arith.truncf %119 : vector<8x8xf32> to vector<8x8xbf16>
    %121 = vector.extract_strided_slice %116 {offsets = [0, 0], sizes = [8, 8], strides = [1, 1]} : vector<8x32xf32> to vector<8x8xf32>
    %122 = arith.truncf %121 : vector<8x8xf32> to vector<8x8xbf16>
    %cst_36 = arith.constant dense<0.000000e+00> : vector<8x8xf32>
    %123 = tpu.matmul %118, %120, %cst_36 {dimension_numbers = #tpu.dot_dimension_numbers<[1], [1], [0], [0], [0, 0, 1, 0], [], []>} : vector<8x8xbf16>, vector<8x8xbf16>, vector<8x8xf32> -> vector<8x8xf32>
    %cst_37 = arith.constant 0.353553385 : f32
    %124 = vector.broadcast %cst_37 : f32 to vector<8x8xf32>
    %125 = arith.mulf %123, %124 : vector<8x8xf32>
    %126 = arith.addf %125, %113 : vector<8x8xf32>
    %cst_38 = arith.constant dense<0xFF800000> : vector<8xf32>
    %127 = vector.multi_reduction <maximumf>, %126, %cst_38 [1] : vector<8x8xf32> to vector<8xf32>
    %128 = vector.shape_cast %127 : vector<8xf32> to vector<8x1xf32>
    %129 = vector.broadcast %128 : vector<8x1xf32> to vector<8x8xf32>
    %130 = arith.subf %126, %129 : vector<8x8xf32>
    %131 = math.exp %130 : vector<8x8xf32>
    %cst_39 = arith.constant dense<0.000000e+00> : vector<8xf32>
    %132 = vector.multi_reduction <add>, %131, %cst_39 [1] : vector<8x8xf32> to vector<8xf32>
    %133 = vector.shape_cast %132 : vector<8xf32> to vector<8x1xf32>
    %134 = tpu.reciprocal %133 {approx = true} : vector<8x1xf32> -> vector<8x1xf32>
    %135 = vector.broadcast %134 : vector<8x1xf32> to vector<8x8xf32>
    %136 = arith.mulf %131, %135 : vector<8x8xf32>
    %137 = arith.truncf %136 : vector<8x8xf32> to vector<8x8xbf16>
    %cst_40 = arith.constant dense<0.000000e+00> : vector<8x8xf32>
    %138 = tpu.matmul %137, %122, %cst_40 {dimension_numbers = #tpu.dot_dimension_numbers<[1], [0], [0], [1], [0, 0, 1, 1], [], []>} : vector<8x8xbf16>, vector<8x8xbf16>, vector<8x8xf32> -> vector<8x8xf32>
    %139 = vector.extract_strided_slice %114 {offsets = [0, 8], sizes = [8, 8], strides = [1, 1]} : vector<8x32xf32> to vector<8x8xf32>
    %140 = arith.truncf %139 : vector<8x8xf32> to vector<8x8xbf16>
    %141 = vector.extract_strided_slice %115 {offsets = [0, 8], sizes = [8, 8], strides = [1, 1]} : vector<8x32xf32> to vector<8x8xf32>
    %142 = arith.truncf %141 : vector<8x8xf32> to vector<8x8xbf16>
    %143 = vector.extract_strided_slice %116 {offsets = [0, 8], sizes = [8, 8], strides = [1, 1]} : vector<8x32xf32> to vector<8x8xf32>
    %144 = arith.truncf %143 : vector<8x8xf32> to vector<8x8xbf16>
    %cst_41 = arith.constant dense<0.000000e+00> : vector<8x8xf32>
    %145 = tpu.matmul %140, %142, %cst_41 {dimension_numbers = #tpu.dot_dimension_numbers<[1], [1], [0], [0], [0, 0, 1, 0], [], []>} : vector<8x8xbf16>, vector<8x8xbf16>, vector<8x8xf32> -> vector<8x8xf32>
    %cst_42 = arith.constant 0.353553385 : f32
    %146 = vector.broadcast %cst_42 : f32 to vector<8x8xf32>
    %147 = arith.mulf %145, %146 : vector<8x8xf32>
    %148 = arith.addf %147, %113 : vector<8x8xf32>
    %cst_43 = arith.constant dense<0xFF800000> : vector<8xf32>
    %149 = vector.multi_reduction <maximumf>, %148, %cst_43 [1] : vector<8x8xf32> to vector<8xf32>
    %150 = vector.shape_cast %149 : vector<8xf32> to vector<8x1xf32>
    %151 = vector.broadcast %150 : vector<8x1xf32> to vector<8x8xf32>
    %152 = arith.subf %148, %151 : vector<8x8xf32>
    %153 = math.exp %152 : vector<8x8xf32>
    %cst_44 = arith.constant dense<0.000000e+00> : vector<8xf32>
    %154 = vector.multi_reduction <add>, %153, %cst_44 [1] : vector<8x8xf32> to vector<8xf32>
    %155 = vector.shape_cast %154 : vector<8xf32> to vector<8x1xf32>
    %156 = tpu.reciprocal %155 {approx = true} : vector<8x1xf32> -> vector<8x1xf32>
    %157 = vector.broadcast %156 : vector<8x1xf32> to vector<8x8xf32>
    %158 = arith.mulf %153, %157 : vector<8x8xf32>
    %159 = arith.truncf %158 : vector<8x8xf32> to vector<8x8xbf16>
    %cst_45 = arith.constant dense<0.000000e+00> : vector<8x8xf32>
    %160 = tpu.matmul %159, %144, %cst_45 {dimension_numbers = #tpu.dot_dimension_numbers<[1], [0], [0], [1], [0, 0, 1, 1], [], []>} : vector<8x8xbf16>, vector<8x8xbf16>, vector<8x8xf32> -> vector<8x8xf32>
    %161 = vector.extract_strided_slice %114 {offsets = [0, 16], sizes = [8, 8], strides = [1, 1]} : vector<8x32xf32> to vector<8x8xf32>
    %162 = arith.truncf %161 : vector<8x8xf32> to vector<8x8xbf16>
    %163 = vector.extract_strided_slice %115 {offsets = [0, 16], sizes = [8, 8], strides = [1, 1]} : vector<8x32xf32> to vector<8x8xf32>
    %164 = arith.truncf %163 : vector<8x8xf32> to vector<8x8xbf16>
    %165 = vector.extract_strided_slice %116 {offsets = [0, 16], sizes = [8, 8], strides = [1, 1]} : vector<8x32xf32> to vector<8x8xf32>
    %166 = arith.truncf %165 : vector<8x8xf32> to vector<8x8xbf16>
    %cst_46 = arith.constant dense<0.000000e+00> : vector<8x8xf32>
    %167 = tpu.matmul %162, %164, %cst_46 {dimension_numbers = #tpu.dot_dimension_numbers<[1], [1], [0], [0], [0, 0, 1, 0], [], []>} : vector<8x8xbf16>, vector<8x8xbf16>, vector<8x8xf32> -> vector<8x8xf32>
    %cst_47 = arith.constant 0.353553385 : f32
    %168 = vector.broadcast %cst_47 : f32 to vector<8x8xf32>
    %169 = arith.mulf %167, %168 : vector<8x8xf32>
    %170 = arith.addf %169, %113 : vector<8x8xf32>
    %cst_48 = arith.constant dense<0xFF800000> : vector<8xf32>
    %171 = vector.multi_reduction <maximumf>, %170, %cst_48 [1] : vector<8x8xf32> to vector<8xf32>
    %172 = vector.shape_cast %171 : vector<8xf32> to vector<8x1xf32>
    %173 = vector.broadcast %172 : vector<8x1xf32> to vector<8x8xf32>
    %174 = arith.subf %170, %173 : vector<8x8xf32>
    %175 = math.exp %174 : vector<8x8xf32>
    %cst_49 = arith.constant dense<0.000000e+00> : vector<8xf32>
    %176 = vector.multi_reduction <add>, %175, %cst_49 [1] : vector<8x8xf32> to vector<8xf32>
    %177 = vector.shape_cast %176 : vector<8xf32> to vector<8x1xf32>
    %178 = tpu.reciprocal %177 {approx = true} : vector<8x1xf32> -> vector<8x1xf32>
    %179 = vector.broadcast %178 : vector<8x1xf32> to vector<8x8xf32>
    %180 = arith.mulf %175, %179 : vector<8x8xf32>
    %181 = arith.truncf %180 : vector<8x8xf32> to vector<8x8xbf16>
    %cst_50 = arith.constant dense<0.000000e+00> : vector<8x8xf32>
    %182 = tpu.matmul %181, %166, %cst_50 {dimension_numbers = #tpu.dot_dimension_numbers<[1], [0], [0], [1], [0, 0, 1, 1], [], []>} : vector<8x8xbf16>, vector<8x8xbf16>, vector<8x8xf32> -> vector<8x8xf32>
    %183 = vector.extract_strided_slice %114 {offsets = [0, 24], sizes = [8, 8], strides = [1, 1]} : vector<8x32xf32> to vector<8x8xf32>
    %184 = arith.truncf %183 : vector<8x8xf32> to vector<8x8xbf16>
    %185 = vector.extract_strided_slice %115 {offsets = [0, 24], sizes = [8, 8], strides = [1, 1]} : vector<8x32xf32> to vector<8x8xf32>
    %186 = arith.truncf %185 : vector<8x8xf32> to vector<8x8xbf16>
    %187 = vector.extract_strided_slice %116 {offsets = [0, 24], sizes = [8, 8], strides = [1, 1]} : vector<8x32xf32> to vector<8x8xf32>
    %188 = arith.truncf %187 : vector<8x8xf32> to vector<8x8xbf16>
    %cst_51 = arith.constant dense<0.000000e+00> : vector<8x8xf32>
    %189 = tpu.matmul %184, %186, %cst_51 {dimension_numbers = #tpu.dot_dimension_numbers<[1], [1], [0], [0], [0, 0, 1, 0], [], []>} : vector<8x8xbf16>, vector<8x8xbf16>, vector<8x8xf32> -> vector<8x8xf32>
    %cst_52 = arith.constant 0.353553385 : f32
    %190 = vector.broadcast %cst_52 : f32 to vector<8x8xf32>
    %191 = arith.mulf %189, %190 : vector<8x8xf32>
    %192 = arith.addf %191, %113 : vector<8x8xf32>
    %cst_53 = arith.constant dense<0xFF800000> : vector<8xf32>
    %193 = vector.multi_reduction <maximumf>, %192, %cst_53 [1] : vector<8x8xf32> to vector<8xf32>
    %194 = vector.shape_cast %193 : vector<8xf32> to vector<8x1xf32>
    %195 = vector.broadcast %194 : vector<8x1xf32> to vector<8x8xf32>
    %196 = arith.subf %192, %195 : vector<8x8xf32>
    %197 = math.exp %196 : vector<8x8xf32>
    %cst_54 = arith.constant dense<0.000000e+00> : vector<8xf32>
    %198 = vector.multi_reduction <add>, %197, %cst_54 [1] : vector<8x8xf32> to vector<8xf32>
    %199 = vector.shape_cast %198 : vector<8xf32> to vector<8x1xf32>
    %200 = tpu.reciprocal %199 {approx = true} : vector<8x1xf32> -> vector<8x1xf32>
    %201 = vector.broadcast %200 : vector<8x1xf32> to vector<8x8xf32>
    %202 = arith.mulf %197, %201 : vector<8x8xf32>
    %203 = arith.truncf %202 : vector<8x8xf32> to vector<8x8xbf16>
    %cst_55 = arith.constant dense<0.000000e+00> : vector<8x8xf32>
    %204 = tpu.matmul %203, %188, %cst_55 {dimension_numbers = #tpu.dot_dimension_numbers<[1], [0], [0], [1], [0, 0, 1, 1], [], []>} : vector<8x8xbf16>, vector<8x8xbf16>, vector<8x8xf32> -> vector<8x8xf32>
    %205 = tpu.concatenate %138, %160, %182, %204 in 1 : vector<8x8xf32>, vector<8x8xf32>, vector<8x8xf32>, vector<8x8xf32> -> vector<8x32xf32>
    %206 = tpu.concatenate %106, %205 in 0 : vector<8x32xf32>, vector<8x32xf32> -> vector<16x32xf32>
    %207 = arith.truncf %206 : vector<16x32xf32> to vector<16x32xbf16>
    %c0_56 = arith.constant 0 : index
    %c0_57 = arith.constant 0 : index
    %208 = vector.load %arg8[%c0_56, %c0_57] : memref<32x32xbf16, #tpu.memory_space<vmem>>, vector<32x32xbf16>
    %cst_58 = arith.constant dense<0.000000e+00> : vector<16x32xf32>
    %209 = tpu.matmul %207, %208, %cst_58 {dimension_numbers = #tpu.dot_dimension_numbers<[1], [0], [0], [1], [0, 0, 1, 1], [], []>} : vector<16x32xbf16>, vector<32x32xbf16>, vector<16x32xf32> -> vector<16x32xf32>
    %c0_59 = arith.constant 0 : index
    %c0_60 = arith.constant 0 : index
    %210 = vector.load %arg9[%c0_59, %c0_60] : memref<1x32xf32, #tpu.memory_space<vmem>>, vector<1x32xf32>
    %211 = vector.broadcast %210 : vector<1x32xf32> to vector<16x32xf32>
    %212 = arith.addf %209, %211 : vector<16x32xf32>
    %213 = arith.addf %1, %212 : vector<16x32xf32>
    %c0_61 = arith.constant 0 : index
    %c0_62 = arith.constant 0 : index
    %214 = vector.load %arg16[%c0_61, %c0_62] : memref<1x32xf32, #tpu.memory_space<vmem>>, vector<1x32xf32>
    %c0_63 = arith.constant 0 : index
    %c0_64 = arith.constant 0 : index
    %215 = vector.load %arg17[%c0_63, %c0_64] : memref<1x32xf32, #tpu.memory_space<vmem>>, vector<1x32xf32>
    %cst_65 = arith.constant dense<0.000000e+00> : vector<16xf32>
    %216 = vector.multi_reduction <add>, %213, %cst_65 [1] : vector<16x32xf32> to vector<16xf32>
    %217 = vector.shape_cast %216 : vector<16xf32> to vector<16x1xf32>
    %cst_66 = arith.constant 3.200000e+01 : f32
    %218 = vector.broadcast %cst_66 : f32 to vector<16x1xf32>
    %219 = arith.divf %217, %218 : vector<16x1xf32>
    %220 = vector.broadcast %219 : vector<16x1xf32> to vector<16x32xf32>
    %221 = arith.subf %213, %220 : vector<16x32xf32>
    %222 = arith.mulf %221, %221 : vector<16x32xf32>
    %cst_67 = arith.constant dense<0.000000e+00> : vector<16xf32>
    %223 = vector.multi_reduction <add>, %222, %cst_67 [1] : vector<16x32xf32> to vector<16xf32>
    %224 = vector.shape_cast %223 : vector<16xf32> to vector<16x1xf32>
    %cst_68 = arith.constant 3.200000e+01 : f32
    %225 = vector.broadcast %cst_68 : f32 to vector<16x1xf32>
    %226 = arith.divf %224, %225 : vector<16x1xf32>
    %cst_69 = arith.constant 9.99999974E-6 : f32
    %227 = vector.broadcast %cst_69 : f32 to vector<16x1xf32>
    %228 = arith.addf %226, %227 : vector<16x1xf32>
    %229 = math.rsqrt %228 : vector<16x1xf32>
    %230 = vector.broadcast %229 : vector<16x1xf32> to vector<16x32xf32>
    %231 = arith.mulf %221, %230 : vector<16x32xf32>
    %232 = vector.broadcast %214 : vector<1x32xf32> to vector<16x32xf32>
    %233 = arith.mulf %231, %232 : vector<16x32xf32>
    %234 = vector.broadcast %215 : vector<1x32xf32> to vector<16x32xf32>
    %235 = arith.addf %233, %234 : vector<16x32xf32>
    %236 = arith.truncf %235 : vector<16x32xf32> to vector<16x32xbf16>
    %c0_70 = arith.constant 0 : index
    %c0_71 = arith.constant 0 : index
    %237 = vector.load %arg10[%c0_70, %c0_71] : memref<32x32xbf16, #tpu.memory_space<vmem>>, vector<32x32xbf16>
    %cst_72 = arith.constant dense<0.000000e+00> : vector<16x32xf32>
    %238 = tpu.matmul %236, %237, %cst_72 {dimension_numbers = #tpu.dot_dimension_numbers<[1], [0], [0], [1], [0, 0, 1, 1], [], []>} : vector<16x32xbf16>, vector<32x32xbf16>, vector<16x32xf32> -> vector<16x32xf32>
    %c0_73 = arith.constant 0 : index
    %c0_74 = arith.constant 0 : index
    %239 = vector.load %arg11[%c0_73, %c0_74] : memref<1x32xf32, #tpu.memory_space<vmem>>, vector<1x32xf32>
    %240 = vector.broadcast %239 : vector<1x32xf32> to vector<16x32xf32>
    %241 = arith.addf %238, %240 : vector<16x32xf32>
    %c0_75 = arith.constant 0 : index
    %c0_76 = arith.constant 0 : index
    %242 = vector.load %arg12[%c0_75, %c0_76] : memref<32x64xbf16, #tpu.memory_space<vmem>>, vector<32x64xbf16>
    %cst_77 = arith.constant dense<0.000000e+00> : vector<16x64xf32>
    %243 = tpu.matmul %2, %242, %cst_77 {dimension_numbers = #tpu.dot_dimension_numbers<[1], [0], [0], [1], [0, 0, 1, 1], [], []>} : vector<16x32xbf16>, vector<32x64xbf16>, vector<16x64xf32> -> vector<16x64xf32>
    %c0_78 = arith.constant 0 : index
    %c0_79 = arith.constant 0 : index
    %244 = vector.load %arg13[%c0_78, %c0_79] : memref<1x64xf32, #tpu.memory_space<vmem>>, vector<1x64xf32>
    %245 = vector.broadcast %244 : vector<1x64xf32> to vector<16x64xf32>
    %246 = arith.addf %243, %245 : vector<16x64xf32>
    %247 = vector.extract_strided_slice %241 {offsets = [0, 0], sizes = [8, 32], strides = [1, 1]} : vector<16x32xf32> to vector<8x32xf32>
    %248 = vector.extract_strided_slice %246 {offsets = [0, 0], sizes = [8, 64], strides = [1, 1]} : vector<16x64xf32> to vector<8x64xf32>
    %249 = vector.extract_strided_slice %248 {offsets = [0, 0], sizes = [8, 32], strides = [1, 1]} : vector<8x64xf32> to vector<8x32xf32>
    %250 = vector.extract_strided_slice %248 {offsets = [0, 32], sizes = [8, 32], strides = [1, 1]} : vector<8x64xf32> to vector<8x32xf32>
    %c0_80 = arith.constant 0 : index
    %c0_81 = arith.constant 0 : index
    %c0_82 = arith.constant 0 : index
    %251 = vector.load %arg5[%c0_80, %c0_81, %c0_82] : memref<2x1x8xf32, #tpu.memory_space<vmem>>, vector<1x1x8xf32>
    %252 = vector.shape_cast %251 : vector<1x1x8xf32> to vector<1x8xf32>
    %253 = vector.extract_strided_slice %247 {offsets = [0, 0], sizes = [8, 8], strides = [1, 1]} : vector<8x32xf32> to vector<8x8xf32>
    %254 = arith.truncf %253 : vector<8x8xf32> to vector<8x8xbf16>
    %255 = vector.extract_strided_slice %249 {offsets = [0, 0], sizes = [8, 8], strides = [1, 1]} : vector<8x32xf32> to vector<8x8xf32>
    %256 = arith.truncf %255 : vector<8x8xf32> to vector<8x8xbf16>
    %257 = vector.extract_strided_slice %250 {offsets = [0, 0], sizes = [8, 8], strides = [1, 1]} : vector<8x32xf32> to vector<8x8xf32>
    %258 = arith.truncf %257 : vector<8x8xf32> to vector<8x8xbf16>
    %cst_83 = arith.constant dense<0.000000e+00> : vector<8x8xf32>
    %259 = tpu.matmul %254, %256, %cst_83 {dimension_numbers = #tpu.dot_dimension_numbers<[1], [1], [0], [0], [0, 0, 1, 0], [], []>} : vector<8x8xbf16>, vector<8x8xbf16>, vector<8x8xf32> -> vector<8x8xf32>
    %cst_84 = arith.constant 0.353553385 : f32
    %260 = vector.broadcast %cst_84 : f32 to vector<8x8xf32>
    %261 = arith.mulf %259, %260 : vector<8x8xf32>
    %262 = vector.broadcast %252 : vector<1x8xf32> to vector<8x8xf32>
    %263 = arith.addf %261, %262 : vector<8x8xf32>
    %cst_85 = arith.constant dense<0xFF800000> : vector<8xf32>
    %264 = vector.multi_reduction <maximumf>, %263, %cst_85 [1] : vector<8x8xf32> to vector<8xf32>
    %265 = vector.shape_cast %264 : vector<8xf32> to vector<8x1xf32>
    %266 = vector.broadcast %265 : vector<8x1xf32> to vector<8x8xf32>
    %267 = arith.subf %263, %266 : vector<8x8xf32>
    %268 = math.exp %267 : vector<8x8xf32>
    %cst_86 = arith.constant dense<0.000000e+00> : vector<8xf32>
    %269 = vector.multi_reduction <add>, %268, %cst_86 [1] : vector<8x8xf32> to vector<8xf32>
    %270 = vector.shape_cast %269 : vector<8xf32> to vector<8x1xf32>
    %271 = tpu.reciprocal %270 {approx = true} : vector<8x1xf32> -> vector<8x1xf32>
    %272 = vector.broadcast %271 : vector<8x1xf32> to vector<8x8xf32>
    %273 = arith.mulf %268, %272 : vector<8x8xf32>
    %274 = arith.truncf %273 : vector<8x8xf32> to vector<8x8xbf16>
    %cst_87 = arith.constant dense<0.000000e+00> : vector<8x8xf32>
    %275 = tpu.matmul %274, %258, %cst_87 {dimension_numbers = #tpu.dot_dimension_numbers<[1], [0], [0], [1], [0, 0, 1, 1], [], []>} : vector<8x8xbf16>, vector<8x8xbf16>, vector<8x8xf32> -> vector<8x8xf32>
    %276 = vector.extract_strided_slice %247 {offsets = [0, 8], sizes = [8, 8], strides = [1, 1]} : vector<8x32xf32> to vector<8x8xf32>
    %277 = arith.truncf %276 : vector<8x8xf32> to vector<8x8xbf16>
    %278 = vector.extract_strided_slice %249 {offsets = [0, 8], sizes = [8, 8], strides = [1, 1]} : vector<8x32xf32> to vector<8x8xf32>
    %279 = arith.truncf %278 : vector<8x8xf32> to vector<8x8xbf16>
    %280 = vector.extract_strided_slice %250 {offsets = [0, 8], sizes = [8, 8], strides = [1, 1]} : vector<8x32xf32> to vector<8x8xf32>
    %281 = arith.truncf %280 : vector<8x8xf32> to vector<8x8xbf16>
    %cst_88 = arith.constant dense<0.000000e+00> : vector<8x8xf32>
    %282 = tpu.matmul %277, %279, %cst_88 {dimension_numbers = #tpu.dot_dimension_numbers<[1], [1], [0], [0], [0, 0, 1, 0], [], []>} : vector<8x8xbf16>, vector<8x8xbf16>, vector<8x8xf32> -> vector<8x8xf32>
    %cst_89 = arith.constant 0.353553385 : f32
    %283 = vector.broadcast %cst_89 : f32 to vector<8x8xf32>
    %284 = arith.mulf %282, %283 : vector<8x8xf32>
    %285 = vector.broadcast %252 : vector<1x8xf32> to vector<8x8xf32>
    %286 = arith.addf %284, %285 : vector<8x8xf32>
    %cst_90 = arith.constant dense<0xFF800000> : vector<8xf32>
    %287 = vector.multi_reduction <maximumf>, %286, %cst_90 [1] : vector<8x8xf32> to vector<8xf32>
    %288 = vector.shape_cast %287 : vector<8xf32> to vector<8x1xf32>
    %289 = vector.broadcast %288 : vector<8x1xf32> to vector<8x8xf32>
    %290 = arith.subf %286, %289 : vector<8x8xf32>
    %291 = math.exp %290 : vector<8x8xf32>
    %cst_91 = arith.constant dense<0.000000e+00> : vector<8xf32>
    %292 = vector.multi_reduction <add>, %291, %cst_91 [1] : vector<8x8xf32> to vector<8xf32>
    %293 = vector.shape_cast %292 : vector<8xf32> to vector<8x1xf32>
    %294 = tpu.reciprocal %293 {approx = true} : vector<8x1xf32> -> vector<8x1xf32>
    %295 = vector.broadcast %294 : vector<8x1xf32> to vector<8x8xf32>
    %296 = arith.mulf %291, %295 : vector<8x8xf32>
    %297 = arith.truncf %296 : vector<8x8xf32> to vector<8x8xbf16>
    %cst_92 = arith.constant dense<0.000000e+00> : vector<8x8xf32>
    %298 = tpu.matmul %297, %281, %cst_92 {dimension_numbers = #tpu.dot_dimension_numbers<[1], [0], [0], [1], [0, 0, 1, 1], [], []>} : vector<8x8xbf16>, vector<8x8xbf16>, vector<8x8xf32> -> vector<8x8xf32>
    %299 = vector.extract_strided_slice %247 {offsets = [0, 16], sizes = [8, 8], strides = [1, 1]} : vector<8x32xf32> to vector<8x8xf32>
    %300 = arith.truncf %299 : vector<8x8xf32> to vector<8x8xbf16>
    %301 = vector.extract_strided_slice %249 {offsets = [0, 16], sizes = [8, 8], strides = [1, 1]} : vector<8x32xf32> to vector<8x8xf32>
    %302 = arith.truncf %301 : vector<8x8xf32> to vector<8x8xbf16>
    %303 = vector.extract_strided_slice %250 {offsets = [0, 16], sizes = [8, 8], strides = [1, 1]} : vector<8x32xf32> to vector<8x8xf32>
    %304 = arith.truncf %303 : vector<8x8xf32> to vector<8x8xbf16>
    %cst_93 = arith.constant dense<0.000000e+00> : vector<8x8xf32>
    %305 = tpu.matmul %300, %302, %cst_93 {dimension_numbers = #tpu.dot_dimension_numbers<[1], [1], [0], [0], [0, 0, 1, 0], [], []>} : vector<8x8xbf16>, vector<8x8xbf16>, vector<8x8xf32> -> vector<8x8xf32>
    %cst_94 = arith.constant 0.353553385 : f32
    %306 = vector.broadcast %cst_94 : f32 to vector<8x8xf32>
    %307 = arith.mulf %305, %306 : vector<8x8xf32>
    %308 = vector.broadcast %252 : vector<1x8xf32> to vector<8x8xf32>
    %309 = arith.addf %307, %308 : vector<8x8xf32>
    %cst_95 = arith.constant dense<0xFF800000> : vector<8xf32>
    %310 = vector.multi_reduction <maximumf>, %309, %cst_95 [1] : vector<8x8xf32> to vector<8xf32>
    %311 = vector.shape_cast %310 : vector<8xf32> to vector<8x1xf32>
    %312 = vector.broadcast %311 : vector<8x1xf32> to vector<8x8xf32>
    %313 = arith.subf %309, %312 : vector<8x8xf32>
    %314 = math.exp %313 : vector<8x8xf32>
    %cst_96 = arith.constant dense<0.000000e+00> : vector<8xf32>
    %315 = vector.multi_reduction <add>, %314, %cst_96 [1] : vector<8x8xf32> to vector<8xf32>
    %316 = vector.shape_cast %315 : vector<8xf32> to vector<8x1xf32>
    %317 = tpu.reciprocal %316 {approx = true} : vector<8x1xf32> -> vector<8x1xf32>
    %318 = vector.broadcast %317 : vector<8x1xf32> to vector<8x8xf32>
    %319 = arith.mulf %314, %318 : vector<8x8xf32>
    %320 = arith.truncf %319 : vector<8x8xf32> to vector<8x8xbf16>
    %cst_97 = arith.constant dense<0.000000e+00> : vector<8x8xf32>
    %321 = tpu.matmul %320, %304, %cst_97 {dimension_numbers = #tpu.dot_dimension_numbers<[1], [0], [0], [1], [0, 0, 1, 1], [], []>} : vector<8x8xbf16>, vector<8x8xbf16>, vector<8x8xf32> -> vector<8x8xf32>
    %322 = vector.extract_strided_slice %247 {offsets = [0, 24], sizes = [8, 8], strides = [1, 1]} : vector<8x32xf32> to vector<8x8xf32>
    %323 = arith.truncf %322 : vector<8x8xf32> to vector<8x8xbf16>
    %324 = vector.extract_strided_slice %249 {offsets = [0, 24], sizes = [8, 8], strides = [1, 1]} : vector<8x32xf32> to vector<8x8xf32>
    %325 = arith.truncf %324 : vector<8x8xf32> to vector<8x8xbf16>
    %326 = vector.extract_strided_slice %250 {offsets = [0, 24], sizes = [8, 8], strides = [1, 1]} : vector<8x32xf32> to vector<8x8xf32>
    %327 = arith.truncf %326 : vector<8x8xf32> to vector<8x8xbf16>
    %cst_98 = arith.constant dense<0.000000e+00> : vector<8x8xf32>
    %328 = tpu.matmul %323, %325, %cst_98 {dimension_numbers = #tpu.dot_dimension_numbers<[1], [1], [0], [0], [0, 0, 1, 0], [], []>} : vector<8x8xbf16>, vector<8x8xbf16>, vector<8x8xf32> -> vector<8x8xf32>
    %cst_99 = arith.constant 0.353553385 : f32
    %329 = vector.broadcast %cst_99 : f32 to vector<8x8xf32>
    %330 = arith.mulf %328, %329 : vector<8x8xf32>
    %331 = vector.broadcast %252 : vector<1x8xf32> to vector<8x8xf32>
    %332 = arith.addf %330, %331 : vector<8x8xf32>
    %cst_100 = arith.constant dense<0xFF800000> : vector<8xf32>
    %333 = vector.multi_reduction <maximumf>, %332, %cst_100 [1] : vector<8x8xf32> to vector<8xf32>
    %334 = vector.shape_cast %333 : vector<8xf32> to vector<8x1xf32>
    %335 = vector.broadcast %334 : vector<8x1xf32> to vector<8x8xf32>
    %336 = arith.subf %332, %335 : vector<8x8xf32>
    %337 = math.exp %336 : vector<8x8xf32>
    %cst_101 = arith.constant dense<0.000000e+00> : vector<8xf32>
    %338 = vector.multi_reduction <add>, %337, %cst_101 [1] : vector<8x8xf32> to vector<8xf32>
    %339 = vector.shape_cast %338 : vector<8xf32> to vector<8x1xf32>
    %340 = tpu.reciprocal %339 {approx = true} : vector<8x1xf32> -> vector<8x1xf32>
    %341 = vector.broadcast %340 : vector<8x1xf32> to vector<8x8xf32>
    %342 = arith.mulf %337, %341 : vector<8x8xf32>
    %343 = arith.truncf %342 : vector<8x8xf32> to vector<8x8xbf16>
    %cst_102 = arith.constant dense<0.000000e+00> : vector<8x8xf32>
    %344 = tpu.matmul %343, %327, %cst_102 {dimension_numbers = #tpu.dot_dimension_numbers<[1], [0], [0], [1], [0, 0, 1, 1], [], []>} : vector<8x8xbf16>, vector<8x8xbf16>, vector<8x8xf32> -> vector<8x8xf32>
    %345 = tpu.concatenate %275, %298, %321, %344 in 1 : vector<8x8xf32>, vector<8x8xf32>, vector<8x8xf32>, vector<8x8xf32> -> vector<8x32xf32>
    %346 = vector.extract_strided_slice %241 {offsets = [8, 0], sizes = [8, 32], strides = [1, 1]} : vector<16x32xf32> to vector<8x32xf32>
    %347 = vector.extract_strided_slice %246 {offsets = [8, 0], sizes = [8, 64], strides = [1, 1]} : vector<16x64xf32> to vector<8x64xf32>
    %348 = vector.extract_strided_slice %347 {offsets = [0, 0], sizes = [8, 32], strides = [1, 1]} : vector<8x64xf32> to vector<8x32xf32>
    %349 = vector.extract_strided_slice %347 {offsets = [0, 32], sizes = [8, 32], strides = [1, 1]} : vector<8x64xf32> to vector<8x32xf32>
    %c1_103 = arith.constant 1 : index
    %c0_104 = arith.constant 0 : index
    %c0_105 = arith.constant 0 : index
    %350 = vector.load %arg5[%c1_103, %c0_104, %c0_105] : memref<2x1x8xf32, #tpu.memory_space<vmem>>, vector<1x1x8xf32>
    %351 = vector.shape_cast %350 : vector<1x1x8xf32> to vector<1x8xf32>
    %352 = vector.extract_strided_slice %346 {offsets = [0, 0], sizes = [8, 8], strides = [1, 1]} : vector<8x32xf32> to vector<8x8xf32>
    %353 = arith.truncf %352 : vector<8x8xf32> to vector<8x8xbf16>
    %354 = vector.extract_strided_slice %348 {offsets = [0, 0], sizes = [8, 8], strides = [1, 1]} : vector<8x32xf32> to vector<8x8xf32>
    %355 = arith.truncf %354 : vector<8x8xf32> to vector<8x8xbf16>
    %356 = vector.extract_strided_slice %349 {offsets = [0, 0], sizes = [8, 8], strides = [1, 1]} : vector<8x32xf32> to vector<8x8xf32>
    %357 = arith.truncf %356 : vector<8x8xf32> to vector<8x8xbf16>
    %cst_106 = arith.constant dense<0.000000e+00> : vector<8x8xf32>
    %358 = tpu.matmul %353, %355, %cst_106 {dimension_numbers = #tpu.dot_dimension_numbers<[1], [1], [0], [0], [0, 0, 1, 0], [], []>} : vector<8x8xbf16>, vector<8x8xbf16>, vector<8x8xf32> -> vector<8x8xf32>
    %cst_107 = arith.constant 0.353553385 : f32
    %359 = vector.broadcast %cst_107 : f32 to vector<8x8xf32>
    %360 = arith.mulf %358, %359 : vector<8x8xf32>
    %361 = vector.broadcast %351 : vector<1x8xf32> to vector<8x8xf32>
    %362 = arith.addf %360, %361 : vector<8x8xf32>
    %cst_108 = arith.constant dense<0xFF800000> : vector<8xf32>
    %363 = vector.multi_reduction <maximumf>, %362, %cst_108 [1] : vector<8x8xf32> to vector<8xf32>
    %364 = vector.shape_cast %363 : vector<8xf32> to vector<8x1xf32>
    %365 = vector.broadcast %364 : vector<8x1xf32> to vector<8x8xf32>
    %366 = arith.subf %362, %365 : vector<8x8xf32>
    %367 = math.exp %366 : vector<8x8xf32>
    %cst_109 = arith.constant dense<0.000000e+00> : vector<8xf32>
    %368 = vector.multi_reduction <add>, %367, %cst_109 [1] : vector<8x8xf32> to vector<8xf32>
    %369 = vector.shape_cast %368 : vector<8xf32> to vector<8x1xf32>
    %370 = tpu.reciprocal %369 {approx = true} : vector<8x1xf32> -> vector<8x1xf32>
    %371 = vector.broadcast %370 : vector<8x1xf32> to vector<8x8xf32>
    %372 = arith.mulf %367, %371 : vector<8x8xf32>
    %373 = arith.truncf %372 : vector<8x8xf32> to vector<8x8xbf16>
    %cst_110 = arith.constant dense<0.000000e+00> : vector<8x8xf32>
    %374 = tpu.matmul %373, %357, %cst_110 {dimension_numbers = #tpu.dot_dimension_numbers<[1], [0], [0], [1], [0, 0, 1, 1], [], []>} : vector<8x8xbf16>, vector<8x8xbf16>, vector<8x8xf32> -> vector<8x8xf32>
    %375 = vector.extract_strided_slice %346 {offsets = [0, 8], sizes = [8, 8], strides = [1, 1]} : vector<8x32xf32> to vector<8x8xf32>
    %376 = arith.truncf %375 : vector<8x8xf32> to vector<8x8xbf16>
    %377 = vector.extract_strided_slice %348 {offsets = [0, 8], sizes = [8, 8], strides = [1, 1]} : vector<8x32xf32> to vector<8x8xf32>
    %378 = arith.truncf %377 : vector<8x8xf32> to vector<8x8xbf16>
    %379 = vector.extract_strided_slice %349 {offsets = [0, 8], sizes = [8, 8], strides = [1, 1]} : vector<8x32xf32> to vector<8x8xf32>
    %380 = arith.truncf %379 : vector<8x8xf32> to vector<8x8xbf16>
    %cst_111 = arith.constant dense<0.000000e+00> : vector<8x8xf32>
    %381 = tpu.matmul %376, %378, %cst_111 {dimension_numbers = #tpu.dot_dimension_numbers<[1], [1], [0], [0], [0, 0, 1, 0], [], []>} : vector<8x8xbf16>, vector<8x8xbf16>, vector<8x8xf32> -> vector<8x8xf32>
    %cst_112 = arith.constant 0.353553385 : f32
    %382 = vector.broadcast %cst_112 : f32 to vector<8x8xf32>
    %383 = arith.mulf %381, %382 : vector<8x8xf32>
    %384 = vector.broadcast %351 : vector<1x8xf32> to vector<8x8xf32>
    %385 = arith.addf %383, %384 : vector<8x8xf32>
    %cst_113 = arith.constant dense<0xFF800000> : vector<8xf32>
    %386 = vector.multi_reduction <maximumf>, %385, %cst_113 [1] : vector<8x8xf32> to vector<8xf32>
    %387 = vector.shape_cast %386 : vector<8xf32> to vector<8x1xf32>
    %388 = vector.broadcast %387 : vector<8x1xf32> to vector<8x8xf32>
    %389 = arith.subf %385, %388 : vector<8x8xf32>
    %390 = math.exp %389 : vector<8x8xf32>
    %cst_114 = arith.constant dense<0.000000e+00> : vector<8xf32>
    %391 = vector.multi_reduction <add>, %390, %cst_114 [1] : vector<8x8xf32> to vector<8xf32>
    %392 = vector.shape_cast %391 : vector<8xf32> to vector<8x1xf32>
    %393 = tpu.reciprocal %392 {approx = true} : vector<8x1xf32> -> vector<8x1xf32>
    %394 = vector.broadcast %393 : vector<8x1xf32> to vector<8x8xf32>
    %395 = arith.mulf %390, %394 : vector<8x8xf32>
    %396 = arith.truncf %395 : vector<8x8xf32> to vector<8x8xbf16>
    %cst_115 = arith.constant dense<0.000000e+00> : vector<8x8xf32>
    %397 = tpu.matmul %396, %380, %cst_115 {dimension_numbers = #tpu.dot_dimension_numbers<[1], [0], [0], [1], [0, 0, 1, 1], [], []>} : vector<8x8xbf16>, vector<8x8xbf16>, vector<8x8xf32> -> vector<8x8xf32>
    %398 = vector.extract_strided_slice %346 {offsets = [0, 16], sizes = [8, 8], strides = [1, 1]} : vector<8x32xf32> to vector<8x8xf32>
    %399 = arith.truncf %398 : vector<8x8xf32> to vector<8x8xbf16>
    %400 = vector.extract_strided_slice %348 {offsets = [0, 16], sizes = [8, 8], strides = [1, 1]} : vector<8x32xf32> to vector<8x8xf32>
    %401 = arith.truncf %400 : vector<8x8xf32> to vector<8x8xbf16>
    %402 = vector.extract_strided_slice %349 {offsets = [0, 16], sizes = [8, 8], strides = [1, 1]} : vector<8x32xf32> to vector<8x8xf32>
    %403 = arith.truncf %402 : vector<8x8xf32> to vector<8x8xbf16>
    %cst_116 = arith.constant dense<0.000000e+00> : vector<8x8xf32>
    %404 = tpu.matmul %399, %401, %cst_116 {dimension_numbers = #tpu.dot_dimension_numbers<[1], [1], [0], [0], [0, 0, 1, 0], [], []>} : vector<8x8xbf16>, vector<8x8xbf16>, vector<8x8xf32> -> vector<8x8xf32>
    %cst_117 = arith.constant 0.353553385 : f32
    %405 = vector.broadcast %cst_117 : f32 to vector<8x8xf32>
    %406 = arith.mulf %404, %405 : vector<8x8xf32>
    %407 = vector.broadcast %351 : vector<1x8xf32> to vector<8x8xf32>
    %408 = arith.addf %406, %407 : vector<8x8xf32>
    %cst_118 = arith.constant dense<0xFF800000> : vector<8xf32>
    %409 = vector.multi_reduction <maximumf>, %408, %cst_118 [1] : vector<8x8xf32> to vector<8xf32>
    %410 = vector.shape_cast %409 : vector<8xf32> to vector<8x1xf32>
    %411 = vector.broadcast %410 : vector<8x1xf32> to vector<8x8xf32>
    %412 = arith.subf %408, %411 : vector<8x8xf32>
    %413 = math.exp %412 : vector<8x8xf32>
    %cst_119 = arith.constant dense<0.000000e+00> : vector<8xf32>
    %414 = vector.multi_reduction <add>, %413, %cst_119 [1] : vector<8x8xf32> to vector<8xf32>
    %415 = vector.shape_cast %414 : vector<8xf32> to vector<8x1xf32>
    %416 = tpu.reciprocal %415 {approx = true} : vector<8x1xf32> -> vector<8x1xf32>
    %417 = vector.broadcast %416 : vector<8x1xf32> to vector<8x8xf32>
    %418 = arith.mulf %413, %417 : vector<8x8xf32>
    %419 = arith.truncf %418 : vector<8x8xf32> to vector<8x8xbf16>
    %cst_120 = arith.constant dense<0.000000e+00> : vector<8x8xf32>
    %420 = tpu.matmul %419, %403, %cst_120 {dimension_numbers = #tpu.dot_dimension_numbers<[1], [0], [0], [1], [0, 0, 1, 1], [], []>} : vector<8x8xbf16>, vector<8x8xbf16>, vector<8x8xf32> -> vector<8x8xf32>
    %421 = vector.extract_strided_slice %346 {offsets = [0, 24], sizes = [8, 8], strides = [1, 1]} : vector<8x32xf32> to vector<8x8xf32>
    %422 = arith.truncf %421 : vector<8x8xf32> to vector<8x8xbf16>
    %423 = vector.extract_strided_slice %348 {offsets = [0, 24], sizes = [8, 8], strides = [1, 1]} : vector<8x32xf32> to vector<8x8xf32>
    %424 = arith.truncf %423 : vector<8x8xf32> to vector<8x8xbf16>
    %425 = vector.extract_strided_slice %349 {offsets = [0, 24], sizes = [8, 8], strides = [1, 1]} : vector<8x32xf32> to vector<8x8xf32>
    %426 = arith.truncf %425 : vector<8x8xf32> to vector<8x8xbf16>
    %cst_121 = arith.constant dense<0.000000e+00> : vector<8x8xf32>
    %427 = tpu.matmul %422, %424, %cst_121 {dimension_numbers = #tpu.dot_dimension_numbers<[1], [1], [0], [0], [0, 0, 1, 0], [], []>} : vector<8x8xbf16>, vector<8x8xbf16>, vector<8x8xf32> -> vector<8x8xf32>
    %cst_122 = arith.constant 0.353553385 : f32
    %428 = vector.broadcast %cst_122 : f32 to vector<8x8xf32>
    %429 = arith.mulf %427, %428 : vector<8x8xf32>
    %430 = vector.broadcast %351 : vector<1x8xf32> to vector<8x8xf32>
    %431 = arith.addf %429, %430 : vector<8x8xf32>
    %cst_123 = arith.constant dense<0xFF800000> : vector<8xf32>
    %432 = vector.multi_reduction <maximumf>, %431, %cst_123 [1] : vector<8x8xf32> to vector<8xf32>
    %433 = vector.shape_cast %432 : vector<8xf32> to vector<8x1xf32>
    %434 = vector.broadcast %433 : vector<8x1xf32> to vector<8x8xf32>
    %435 = arith.subf %431, %434 : vector<8x8xf32>
    %436 = math.exp %435 : vector<8x8xf32>
    %cst_124 = arith.constant dense<0.000000e+00> : vector<8xf32>
    %437 = vector.multi_reduction <add>, %436, %cst_124 [1] : vector<8x8xf32> to vector<8xf32>
    %438 = vector.shape_cast %437 : vector<8xf32> to vector<8x1xf32>
    %439 = tpu.reciprocal %438 {approx = true} : vector<8x1xf32> -> vector<8x1xf32>
    %440 = vector.broadcast %439 : vector<8x1xf32> to vector<8x8xf32>
    %441 = arith.mulf %436, %440 : vector<8x8xf32>
    %442 = arith.truncf %441 : vector<8x8xf32> to vector<8x8xbf16>
    %cst_125 = arith.constant dense<0.000000e+00> : vector<8x8xf32>
    %443 = tpu.matmul %442, %426, %cst_125 {dimension_numbers = #tpu.dot_dimension_numbers<[1], [0], [0], [1], [0, 0, 1, 1], [], []>} : vector<8x8xbf16>, vector<8x8xbf16>, vector<8x8xf32> -> vector<8x8xf32>
    %444 = tpu.concatenate %374, %397, %420, %443 in 1 : vector<8x8xf32>, vector<8x8xf32>, vector<8x8xf32>, vector<8x8xf32> -> vector<8x32xf32>
    %445 = tpu.concatenate %345, %444 in 0 : vector<8x32xf32>, vector<8x32xf32> -> vector<16x32xf32>
    %446 = arith.truncf %445 : vector<16x32xf32> to vector<16x32xbf16>
    %c0_126 = arith.constant 0 : index
    %c0_127 = arith.constant 0 : index
    %447 = vector.load %arg14[%c0_126, %c0_127] : memref<32x32xbf16, #tpu.memory_space<vmem>>, vector<32x32xbf16>
    %cst_128 = arith.constant dense<0.000000e+00> : vector<16x32xf32>
    %448 = tpu.matmul %446, %447, %cst_128 {dimension_numbers = #tpu.dot_dimension_numbers<[1], [0], [0], [1], [0, 0, 1, 1], [], []>} : vector<16x32xbf16>, vector<32x32xbf16>, vector<16x32xf32> -> vector<16x32xf32>
    %c0_129 = arith.constant 0 : index
    %c0_130 = arith.constant 0 : index
    %449 = vector.load %arg15[%c0_129, %c0_130] : memref<1x32xf32, #tpu.memory_space<vmem>>, vector<1x32xf32>
    %450 = vector.broadcast %449 : vector<1x32xf32> to vector<16x32xf32>
    %451 = arith.addf %448, %450 : vector<16x32xf32>
    %452 = arith.addf %235, %451 : vector<16x32xf32>
    %c0_131 = arith.constant 0 : index
    %c0_132 = arith.constant 0 : index
    %453 = vector.load %arg18[%c0_131, %c0_132] : memref<1x32xf32, #tpu.memory_space<vmem>>, vector<1x32xf32>
    %c0_133 = arith.constant 0 : index
    %c0_134 = arith.constant 0 : index
    %454 = vector.load %arg19[%c0_133, %c0_134] : memref<1x32xf32, #tpu.memory_space<vmem>>, vector<1x32xf32>
    %cst_135 = arith.constant dense<0.000000e+00> : vector<16xf32>
    %455 = vector.multi_reduction <add>, %452, %cst_135 [1] : vector<16x32xf32> to vector<16xf32>
    %456 = vector.shape_cast %455 : vector<16xf32> to vector<16x1xf32>
    %cst_136 = arith.constant 3.200000e+01 : f32
    %457 = vector.broadcast %cst_136 : f32 to vector<16x1xf32>
    %458 = arith.divf %456, %457 : vector<16x1xf32>
    %459 = vector.broadcast %458 : vector<16x1xf32> to vector<16x32xf32>
    %460 = arith.subf %452, %459 : vector<16x32xf32>
    %461 = arith.mulf %460, %460 : vector<16x32xf32>
    %cst_137 = arith.constant dense<0.000000e+00> : vector<16xf32>
    %462 = vector.multi_reduction <add>, %461, %cst_137 [1] : vector<16x32xf32> to vector<16xf32>
    %463 = vector.shape_cast %462 : vector<16xf32> to vector<16x1xf32>
    %cst_138 = arith.constant 3.200000e+01 : f32
    %464 = vector.broadcast %cst_138 : f32 to vector<16x1xf32>
    %465 = arith.divf %463, %464 : vector<16x1xf32>
    %cst_139 = arith.constant 9.99999974E-6 : f32
    %466 = vector.broadcast %cst_139 : f32 to vector<16x1xf32>
    %467 = arith.addf %465, %466 : vector<16x1xf32>
    %468 = math.rsqrt %467 : vector<16x1xf32>
    %469 = vector.broadcast %468 : vector<16x1xf32> to vector<16x32xf32>
    %470 = arith.mulf %460, %469 : vector<16x32xf32>
    %471 = vector.broadcast %453 : vector<1x32xf32> to vector<16x32xf32>
    %472 = arith.mulf %470, %471 : vector<16x32xf32>
    %473 = vector.broadcast %454 : vector<1x32xf32> to vector<16x32xf32>
    %474 = arith.addf %472, %473 : vector<16x32xf32>
    %475 = arith.truncf %474 : vector<16x32xf32> to vector<16x32xbf16>
    %c0_140 = arith.constant 0 : index
    %c0_141 = arith.constant 0 : index
    %476 = vector.load %arg20[%c0_140, %c0_141] : memref<32x64xbf16, #tpu.memory_space<vmem>>, vector<32x64xbf16>
    %cst_142 = arith.constant dense<0.000000e+00> : vector<16x64xf32>
    %477 = tpu.matmul %475, %476, %cst_142 {dimension_numbers = #tpu.dot_dimension_numbers<[1], [0], [0], [1], [0, 0, 1, 1], [], []>} : vector<16x32xbf16>, vector<32x64xbf16>, vector<16x64xf32> -> vector<16x64xf32>
    %c0_143 = arith.constant 0 : index
    %c0_144 = arith.constant 0 : index
    %478 = vector.load %arg21[%c0_143, %c0_144] : memref<1x64xf32, #tpu.memory_space<vmem>>, vector<1x64xf32>
    %479 = vector.broadcast %478 : vector<1x64xf32> to vector<16x64xf32>
    %480 = arith.addf %477, %479 : vector<16x64xf32>
    %cst_145 = arith.constant 0.000000e+00 : f32
    %481 = vector.broadcast %cst_145 : f32 to vector<16x64xf32>
    %482 = arith.maximumf %480, %481 : vector<16x64xf32>
    %483 = arith.truncf %482 : vector<16x64xf32> to vector<16x64xbf16>
    %c0_146 = arith.constant 0 : index
    %c0_147 = arith.constant 0 : index
    %484 = vector.load %arg22[%c0_146, %c0_147] : memref<64x32xbf16, #tpu.memory_space<vmem>>, vector<64x32xbf16>
    %cst_148 = arith.constant dense<0.000000e+00> : vector<16x32xf32>
    %485 = tpu.matmul %483, %484, %cst_148 {dimension_numbers = #tpu.dot_dimension_numbers<[1], [0], [0], [1], [0, 0, 1, 1], [], []>} : vector<16x64xbf16>, vector<64x32xbf16>, vector<16x32xf32> -> vector<16x32xf32>
    %c0_149 = arith.constant 0 : index
    %c0_150 = arith.constant 0 : index
    %486 = vector.load %arg23[%c0_149, %c0_150] : memref<1x32xf32, #tpu.memory_space<vmem>>, vector<1x32xf32>
    %487 = vector.broadcast %486 : vector<1x32xf32> to vector<16x32xf32>
    %488 = arith.addf %485, %487 : vector<16x32xf32>
    %489 = arith.addf %474, %488 : vector<16x32xf32>
    %c0_151 = arith.constant 0 : index
    %c0_152 = arith.constant 0 : index
    %490 = vector.load %arg24[%c0_151, %c0_152] : memref<1x32xf32, #tpu.memory_space<vmem>>, vector<1x32xf32>
    %c0_153 = arith.constant 0 : index
    %c0_154 = arith.constant 0 : index
    %491 = vector.load %arg25[%c0_153, %c0_154] : memref<1x32xf32, #tpu.memory_space<vmem>>, vector<1x32xf32>
    %cst_155 = arith.constant dense<0.000000e+00> : vector<16xf32>
    %492 = vector.multi_reduction <add>, %489, %cst_155 [1] : vector<16x32xf32> to vector<16xf32>
    %493 = vector.shape_cast %492 : vector<16xf32> to vector<16x1xf32>
    %cst_156 = arith.constant 3.200000e+01 : f32
    %494 = vector.broadcast %cst_156 : f32 to vector<16x1xf32>
    %495 = arith.divf %493, %494 : vector<16x1xf32>
    %496 = vector.broadcast %495 : vector<16x1xf32> to vector<16x32xf32>
    %497 = arith.subf %489, %496 : vector<16x32xf32>
    %498 = arith.mulf %497, %497 : vector<16x32xf32>
    %cst_157 = arith.constant dense<0.000000e+00> : vector<16xf32>
    %499 = vector.multi_reduction <add>, %498, %cst_157 [1] : vector<16x32xf32> to vector<16xf32>
    %500 = vector.shape_cast %499 : vector<16xf32> to vector<16x1xf32>
    %cst_158 = arith.constant 3.200000e+01 : f32
    %501 = vector.broadcast %cst_158 : f32 to vector<16x1xf32>
    %502 = arith.divf %500, %501 : vector<16x1xf32>
    %cst_159 = arith.constant 9.99999974E-6 : f32
    %503 = vector.broadcast %cst_159 : f32 to vector<16x1xf32>
    %504 = arith.addf %502, %503 : vector<16x1xf32>
    %505 = math.rsqrt %504 : vector<16x1xf32>
    %506 = vector.broadcast %505 : vector<16x1xf32> to vector<16x32xf32>
    %507 = arith.mulf %497, %506 : vector<16x32xf32>
    %508 = vector.broadcast %490 : vector<1x32xf32> to vector<16x32xf32>
    %509 = arith.mulf %507, %508 : vector<16x32xf32>
    %510 = vector.broadcast %491 : vector<1x32xf32> to vector<16x32xf32>
    %511 = arith.addf %509, %510 : vector<16x32xf32>
    %512 = arith.truncf %511 : vector<16x32xf32> to vector<16x32xbf16>
    %c0_160 = arith.constant 0 : index
    %c0_161 = arith.constant 0 : index
    %513 = vector.load %arg26[%c0_160, %c0_161] : memref<16x32xbf16, #tpu.memory_space<vmem>>, vector<16x32xbf16>
    tpu.vector_store %arg26[%c0_160, %c0_161], %512 {strides = array<i32>} : memref<16x32xbf16, #tpu.memory_space<vmem>>, vector<16x32xbf16>,
    return
  }
  func.func @transform_0(%arg0: i32) -> (i32, i32) {
    %c0_i32 = arith.constant 0 : i32
    %c0_i32_0 = arith.constant 0 : i32
    return %arg0, %c0_i32 : i32, i32
  }
  func.func @transform_1(%arg0: i32) -> (i32, i32) {
    %c0_i32 = arith.constant 0 : i32
    %c0_i32_0 = arith.constant 0 : i32
    return %arg0, %c0_i32 : i32, i32
  }
  func.func @transform_2(%arg0: i32) -> (i32, i32) {
    %c0_i32 = arith.constant 0 : i32
    %c0_i32_0 = arith.constant 0 : i32
    %c0_i32_1 = arith.constant 0 : i32
    return %c0_i32, %c0_i32_0 : i32, i32
  }
  func.func @transform_3(%arg0: i32) -> (i32, i32, i32) {
    %c0_i32 = arith.constant 0 : i32
    %c0_i32_0 = arith.constant 0 : i32
    %c0_i32_1 = arith.constant 0 : i32
    return %arg0, %c0_i32, %c0_i32_0 : i32, i32, i32
  }
  func.func @transform_4(%arg0: i32) -> (i32, i32, i32) {
    %c0_i32 = arith.constant 0 : i32
    %c0_i32_0 = arith.constant 0 : i32
    %c0_i32_1 = arith.constant 0 : i32
    return %arg0, %c0_i32, %c0_i32_0 : i32, i32, i32
  }
  func.func @transform_5(%arg0: i32) -> (i32, i32) {
    %c0_i32 = arith.constant 0 : i32
    %c0_i32_0 = arith.constant 0 : i32
    %c0_i32_1 = arith.constant 0 : i32
    return %c0_i32, %c0_i32_0 : i32, i32
  }
  func.func @transform_6(%arg0: i32) -> (i32, i32) {
    %c0_i32 = arith.constant 0 : i32
    %c0_i32_0 = arith.constant 0 : i32
    %c0_i32_1 = arith.constant 0 : i32
    return %c0_i32, %c0_i32_0 : i32, i32
  }
  func.func @transform_7(%arg0: i32) -> (i32, i32) {
    %c0_i32 = arith.constant 0 : i32
    %c0_i32_0 = arith.constant 0 : i32
    %c0_i32_1 = arith.constant 0 : i32
    return %c0_i32, %c0_i32_0 : i32, i32
  }
  func.func @transform_8(%arg0: i32) -> (i32, i32) {
    %c0_i32 = arith.constant 0 : i32
    %c0_i32_0 = arith.constant 0 : i32
    %c0_i32_1 = arith.constant 0 : i32
    return %c0_i32, %c0_i32_0 : i32, i32
  }
  func.func @transform_9(%arg0: i32) -> (i32, i32) {
    %c0_i32 = arith.constant 0 : i32
    %c0_i32_0 = arith.constant 0 : i32
    %c0_i32_1 = arith.constant 0 : i32
    return %c0_i32, %c0_i32_0 : i32, i32
  }
  func.func @transform_10(%arg0: i32) -> (i32, i32) {
    %c0_i32 = arith.constant 0 : i32
    %c0_i32_0 = arith.constant 0 : i32
    %c0_i32_1 = arith.constant 0 : i32
    return %c0_i32, %c0_i32_0 : i32, i32
  }
  func.func @transform_11(%arg0: i32) -> (i32, i32) {
    %c0_i32 = arith.constant 0 : i32
    %c0_i32_0 = arith.constant 0 : i32
    %c0_i32_1 = arith.constant 0 : i32
    return %c0_i32, %c0_i32_0 : i32, i32
  }
  func.func @transform_12(%arg0: i32) -> (i32, i32) {
    %c0_i32 = arith.constant 0 : i32
    %c0_i32_0 = arith.constant 0 : i32
    %c0_i32_1 = arith.constant 0 : i32
    return %c0_i32, %c0_i32_0 : i32, i32
  }
  func.func @transform_13(%arg0: i32) -> (i32, i32) {
    %c0_i32 = arith.constant 0 : i32
    %c0_i32_0 = arith.constant 0 : i32
    %c0_i32_1 = arith.constant 0 : i32
    return %c0_i32, %c0_i32_0 : i32, i32
  }
  func.func @transform_14(%arg0: i32) -> (i32, i32) {
    %c0_i32 = arith.constant 0 : i32
    %c0_i32_0 = arith.constant 0 : i32
    %c0_i32_1 = arith.constant 0 : i32
    return %c0_i32, %c0_i32_0 : i32, i32
  }
  func.func @transform_15(%arg0: i32) -> (i32, i32) {
    %c0_i32 = arith.constant 0 : i32
    %c0_i32_0 = arith.constant 0 : i32
    %c0_i32_1 = arith.constant 0 : i32
    return %c0_i32, %c0_i32_0 : i32, i32
  }
  func.func @transform_16(%arg0: i32) -> (i32, i32) {
    %c0_i32 = arith.constant 0 : i32
    %c0_i32_0 = arith.constant 0 : i32
    %c0_i32_1 = arith.constant 0 : i32
    return %c0_i32, %c0_i32_0 : i32, i32
  }
  func.func @transform_17(%arg0: i32) -> (i32, i32) {
    %c0_i32 = arith.constant 0 : i32
    %c0_i32_0 = arith.constant 0 : i32
    %c0_i32_1 = arith.constant 0 : i32
    return %c0_i32, %c0_i32_0 : i32, i32
  }
  func.func @transform_18(%arg0: i32) -> (i32, i32) {
    %c0_i32 = arith.constant 0 : i32
    %c0_i32_0 = arith.constant 0 : i32
    %c0_i32_1 = arith.constant 0 : i32
    return %c0_i32, %c0_i32_0 : i32, i32
  }
  func.func @transform_19(%arg0: i32) -> (i32, i32) {
    %c0_i32 = arith.constant 0 : i32
    %c0_i32_0 = arith.constant 0 : i32
    %c0_i32_1 = arith.constant 0 : i32
    return %c0_i32, %c0_i32_0 : i32, i32
  }
  func.func @transform_20(%arg0: i32) -> (i32, i32) {
    %c0_i32 = arith.constant 0 : i32
    %c0_i32_0 = arith.constant 0 : i32
    %c0_i32_1 = arith.constant 0 : i32
    return %c0_i32, %c0_i32_0 : i32, i32
  }
  func.func @transform_21(%arg0: i32) -> (i32, i32) {
    %c0_i32 = arith.constant 0 : i32
    %c0_i32_0 = arith.constant 0 : i32
    %c0_i32_1 = arith.constant 0 : i32
    return %c0_i32, %c0_i32_0 : i32, i32
  }
  func.func @transform_22(%arg0: i32) -> (i32, i32) {
    %c0_i32 = arith.constant 0 : i32
    %c0_i32_0 = arith.constant 0 : i32
    %c0_i32_1 = arith.constant 0 : i32
    return %c0_i32, %c0_i32_0 : i32, i32
  }
  func.func @transform_23(%arg0: i32) -> (i32, i32) {
    %c0_i32 = arith.constant 0 : i32
    %c0_i32_0 = arith.constant 0 : i32
    %c0_i32_1 = arith.constant 0 : i32
    return %c0_i32, %c0_i32_0 : i32, i32
  }
  func.func @transform_24(%arg0: i32) -> (i32, i32) {
    %c0_i32 = arith.constant 0 : i32
    %c0_i32_0 = arith.constant 0 : i32
    %c0_i32_1 = arith.constant 0 : i32
    return %c0_i32, %c0_i32_0 : i32, i32
  }
  func.func @transform_25(%arg0: i32) -> (i32, i32) {
    %c0_i32 = arith.constant 0 : i32
    %c0_i32_0 = arith.constant 0 : i32
    return %arg0, %c0_i32 : i32, i32
  }
}

module attributes {stable_mosaic.version = 11 : i64} {
  func.func @_ortho_kernel(%arg0: i32, %arg1: memref<1x32x32xf32, #tpu.memory_space<vmem>>, %arg2: memref<1x1xf32, #tpu.memory_space<vmem>>) attributes {dimension_semantics = [#tpu.dimension_semantics<arbitrary>], iteration_bounds = array<i64: 18>, scalar_prefetch = 0 : i64, scratch_operands = 0 : i64, tpu.core_type = #tpu.core_type<tc>, window_params = [{transform_indices = @transform_0, window_bounds = array<i64: 1, 32, 32>}, {pipeline_mode = #tpu.pipeline_mode<synchronous>, transform_indices = @transform_1, window_bounds = array<i64: 1, 1>}]} {
    %c0_i32 = arith.constant 0 : i32
    %0 = arith.cmpi eq, %arg0, %c0_i32 : i32
    %1 = arith.extui %0 : i1 to i32
    %c0_i32_0 = arith.constant 0 : i32
    %2 = arith.cmpi ne, %1, %c0_i32_0 : i32
    scf.if %2 {
      %cst_10 = arith.constant 0.000000e+00 : f32
      %22 = vector.broadcast %cst_10 : f32 to vector<1x1xf32>
      %c0_11 = arith.constant 0 : index
      %c0_12 = arith.constant 0 : index
      %23 = vector.load %arg2[%c0_11, %c0_12] : memref<1x1xf32, #tpu.memory_space<vmem>>, vector<1x1xf32>
      tpu.vector_store %arg2[%c0_11, %c0_12], %22 {strides = array<i32>} : memref<1x1xf32, #tpu.memory_space<vmem>>, vector<1x1xf32>,
    } else {
    }
    %c0 = arith.constant 0 : index
    %c0_1 = arith.constant 0 : index
    %c0_2 = arith.constant 0 : index
    %3 = vector.load %arg1[%c0, %c0_1, %c0_2] : memref<1x32x32xf32, #tpu.memory_space<vmem>>, vector<1x32x32xf32>
    %4 = vector.shape_cast %3 : vector<1x32x32xf32> to vector<32x32xf32>
    %cst = arith.constant dense<0.000000e+00> : vector<32x32xf32>
    %5 = tpu.matmul %4, %4, %cst {dimension_numbers = #tpu.dot_dimension_numbers<[0], [0], [1], [1], [0, 1, 1, 1], [], []>} : vector<32x32xf32>, vector<32x32xf32>, vector<32x32xf32> -> vector<32x32xf32>
    %6 = tpu.iota {dimensions = array<i32: 0>} : vector<32x32xi32>
    %7 = tpu.iota {dimensions = array<i32: 1>} : vector<32x32xi32>
    %8 = arith.cmpi eq, %6, %7 : vector<32x32xi32>
    %cst_3 = arith.constant 1.000000e+00 : f32
    %cst_4 = arith.constant 0.000000e+00 : f32
    %9 = vector.broadcast %cst_3 : f32 to vector<32x32xf32>
    %10 = vector.broadcast %cst_4 : f32 to vector<32x32xf32>
    %11 = arith.select %8, %9, %10 : vector<32x32xi1>, vector<32x32xf32>
    %12 = arith.subf %5, %11 : vector<32x32xf32>
    %c0_5 = arith.constant 0 : index
    %c0_6 = arith.constant 0 : index
    %13 = vector.load %arg2[%c0_5, %c0_6] : memref<1x1xf32, #tpu.memory_space<vmem>>, vector<1x1xf32>
    %14 = arith.mulf %12, %12 : vector<32x32xf32>
    %15 = vector.shape_cast %14 : vector<32x32xf32> to vector<1x32x32xf32>
    %cst_7 = arith.constant dense<0.000000e+00> : vector<1xf32>
    %16 = vector.multi_reduction <add>, %15, %cst_7 [1, 2] : vector<1x32x32xf32> to vector<1xf32>
    %17 = vector.shape_cast %16 : vector<1xf32> to vector<1x1x1xf32>
    %18 = vector.extract %17[0, 0, 0] : f32 from vector<1x1x1xf32>
    %19 = vector.broadcast %18 : f32 to vector<1x1xf32>
    %20 = arith.addf %13, %19 : vector<1x1xf32>
    %c0_8 = arith.constant 0 : index
    %c0_9 = arith.constant 0 : index
    %21 = vector.load %arg2[%c0_8, %c0_9] : memref<1x1xf32, #tpu.memory_space<vmem>>, vector<1x1xf32>
    tpu.vector_store %arg2[%c0_8, %c0_9], %20 {strides = array<i32>} : memref<1x1xf32, #tpu.memory_space<vmem>>, vector<1x1xf32>,
    return
  }
  func.func @transform_0(%arg0: i32) -> (i32, i32, i32) {
    %c0_i32 = arith.constant 0 : i32
    %c0_i32_0 = arith.constant 0 : i32
    %c0_i32_1 = arith.constant 0 : i32
    return %arg0, %c0_i32, %c0_i32_0 : i32, i32, i32
  }
  func.func @transform_1(%arg0: i32) -> (i32, i32) {
    %c0_i32 = arith.constant 0 : i32
    %c0_i32_0 = arith.constant 0 : i32
    %c0_i32_1 = arith.constant 0 : i32
    return %c0_i32, %c0_i32_0 : i32, i32
  }
}

</mosaic_0001>

<bundles_post_ra>
// kernel: tpu_custom_call.1
= control target key start
LH: loop header
LB: loop body
LE: loop exit
PB: predicated region body
PF: predicated region fallthrough
CT: control target
= control target key end

     0   :  { %6 = vsyncpa [#allocation3], 0  ;;  %s341_s0 = inlined_call_operand.hbm [shape: f32[8,128], index: 0, kind: input, shape index: {}]   ;;  %s342_s1 = inlined_call_operand.hbm [shape: f32[8,128], index: 1, kind: output, shape index: {}]  }
   0x1   :  { %7 = vsyncpa [#allocation4], 0  ;;  %s262_s6 = smov 0  }
   0x2 LB: > { %s145_s7 = sadd.s32 4294967295, %s248_s6   ;;  %p146_p0 = scmp.ge.s32.totalorder %s248_s6, 1  ;;  %s248_s6 = sphi %s262_s6, %s13_s6  }
   0x3   : > { %p60_p1 = scmp.lt.s32.totalorder %s248_s6, 3  ;;  %p276_p3 = scmp.eq.s32.totalorder %s145_s7, 0 }
   0x4   : > { %s250_s10 = smov [#allocation2]   ;;  %s180_s15 = scalar_lea.hbm %s341_s0, 128 }
   0x5   : > { %p270_p2 = pnand %p146_p0, %p60_p1  ;;  %s73_s11 = sshll.u32 %s250_s10, 4  ;;  %s74_s11 = int_to_ptr.vmem [resolvable:$true] %s73_s11 }
   0x6   : > { %s347_s9 = scalar_select %p276_p3, 1, 0 }
   0x7   : > { %s346_s8 = scalar_select %p270_p2, 1, 0 }
   0x8   : > { %p162_p4 = pneg %p270_p2  ;;  %p181_p6 = scmp.ne.s32.totalorder %s341_s0, %s180_s15 }
   0x9   : > { %p187_p10 = scmp.lt.u32.totalorder %s180_s15, %s341_s0 }
   0xa   : > { %p284_p5 = pnand %p276_p3, %p162_p4 }
   0xc   : > { %p182_p7 = pneg %p284_p5 }
   0xe   : > { %p183_p8 = pnand %p182_p7, %p181_p6 }
  0x10   : > { %p184_p9 = pneg %p183_p8 }
  0x12   : > { %p189_p11 = pnand %p187_p10, %p184_p9 }
  0x14   : > { %192 = shalt.err (!%p189_p11)
}
  0x15   : > { %s193_s20 = scalar_lea.vmem %s74_s11, 128  ;;  %p201_p1 = scmp.lt.s32.totalorder %s74_s11, %s74_s11 }
  0x16   : > { %p194_p12 = scmp.ne.s32.totalorder %s74_s11, %s193_s20  ;;  %p202_p4 = scmp.lt.s32.totalorder %s193_s20, %s193_s20 }
  0x18   : > { %p196_p13 = pnand %p194_p12, %p182_p7  ;;  %p203_p3 = por %p202_p4, %p201_p1 }
  0x1a   : > { %p197_p0 = pneg %p196_p13 }
  0x1c   : > { %p204_p2 = pnand %p203_p3, %p197_p0 }
  0x1e   : > { %207 = shalt.err (!%p204_p2)
}
  0x1f   : > { %165 = dma.hbm_to_vmem [thread:$0]  (!%p284_p5), %s341_s0, 128, %s74_s11, [#allocation3]  }
  0x20   : > { %p349_p6 = scmp.ne.s32.totalorder %s346_s8, 0 }
  0x21   : > { %p350_p8 = scmp.ne.s32.totalorder (!%p349_p6), %s347_s9, 0 }
  0x22   : > { %86 = sbr.rel (%p349_p6) target bundleno = 67 (0x43), region = 24 }
  0x29   : > { %239 = dma.done.wait (%p350_p8), [#allocation3], 128  }
  0x2a   : > { %241 = vsyncadd (%p350_p8), [#allocation3], 4294967168  ;;  %s251_s23 = smov [#allocation5]   ;;  %v96_v0 = vld [vmem:[#allocation2] sm:$0xff]  ;;  %p312_p2 = scmp.eq.s32.totalorder %s145_s7, 1 }
  0x2b   : > { %s106_s24 = sshll.u32 %s251_s23, 4  ;;  %v97_v1 = vmul.f32 2.0, %v96_v0  ;;  %s107_s24 = int_to_ptr.vmem [resolvable:$true] %s106_s24 }
  0x2c   : > { %s208_s26 = scalar_lea.vmem %s107_s24, 128  ;;  %p215_p9 = scmp.lt.s32.totalorder %s107_s24, %s107_s24 }
  0x2d   : > { %98 = vst [vmem:[#allocation5] sm:$0xff] %v97_v1  ;;  %p209_p3 = scmp.ne.s32.totalorder %s107_s24, %s208_s26  ;;  %p216_p10 = scmp.lt.s32.totalorder %s208_s26, %s208_s26 }
  0x2f   : > { %p210_p5 = pnand %p209_p3, %p312_p2  ;;  %p217_p11 = por %p216_p10, %p215_p9 }
  0x31   : > { %p211_p7 = pneg %p210_p5 }
  0x33   : > { %p218_p12 = pnand %p217_p11, %p211_p7 }
  0x35   : > { %221 = shalt.err (!%p218_p12)
}
  0x36   : > { %s222_s29 = scalar_lea.hbm %s342_s1, 128 }
  0x37   : > { %p223_p13 = scmp.ne.s32.totalorder %s342_s1, %s222_s29  ;;  %p228_p4 = scmp.lt.u32.totalorder %s222_s29, %s342_s1 }
  0x39   : > { %p224_p0 = pnand %p223_p13, %p312_p2 }
  0x3b   : > { %p225_p1 = pneg %p224_p0 }
  0x3d   : > { %p230_p6 = pnand %p228_p4, %p225_p1 }
  0x3f   : > { %233 = shalt.err (!%p230_p6)
}
  0x40   : > { %159 = dma.vmem_to_hbm [thread:$0]  (%p312_p2), %s107_s24, 128, %s342_s1, [#allocation4]  }
  0x41   : > { %243 = dma.done.wait (%p312_p2), [#allocation4], 128  }
  0x42   : > { %245 = vsyncadd (%p312_p2), [#allocation4], 4294967168 }
  0x43 PF: > { %s13_s6 = sadd.s32 1, %s248_s6  }
  0x44   : > { %p10_p8 = scmp.ge.s32.totalorder %s13_s6, 4  }
  0x46   :  { %12 = sbr.rel (!%p10_p8) target bundleno = 2 (0x2), region = 53 }
  0x4d   :  { %119 = vsyncpa [#allocation3], 1 }
  0x4e   :  { %121 = vsyncpa [#allocation3 + $0x1], 1 }
  0x4f   :  { %122 = vsyncpa [#allocation4], 1 }
  0x50   :  { %124 = vsyncpa [#allocation4 + $0x1], 1 }

// kernel: translation_forward.10
= control target key start
LH: loop header
LB: loop body
LE: loop exit
PB: predicated region body
PF: predicated region fallthrough
CT: control target
= control target key end

     0   :  { %v117_v0 = vmov 0.0   ;;  %vm118_vm0 = vmmov 0   ;;  %vm45_vm1 = vcmask 261120   ;;  %s157_s1 = inlined_call_operand.vmem [shape: bf16[32,128], index: 1, kind: input, shape index: {}]   ;;  %s158_s0 = inlined_call_operand.vmem [shape: bf16[16,32], index: 0, kind: input, shape index: {}]   ;;  %s159_s2 = inlined_call_operand.vmem [shape: f32[1,128], index: 2, kind: input, shape index: {}]   ;;  %s160_s3 = inlined_call_operand.vmem [shape: f32[16,128], index: 3, kind: output, shape index: {}]  }
   0x1   :  { %104 = vmatprep.subr.bf16.mxu0 %v117_v0  ;;  %v114_v1 = vld [vmem:[%s157_s1] sm:$0xff]   ;;  %108 = vmatprep.mubr.msk.bf16.mxu0 %vm118_vm0, %v117_v0  ;;  %v115_v2 = vld [vmem:[%s157_s1 + $0x8] sm:$0xff]  }
   0x2   :  { %105 = vmatpush3.bf16.msra.mxu0 %v114_v1  ;;  %v116_v3 = vld [vmem:[%s158_s0] sm:$0xff]  }
   0x3   :  { %106 = vmatprep.subr.bf16.mxu0 %v117_v0  ;;  %v96_v4 = vld [vmem:[%s159_s2] ss:$0 sm:$0xff] }
   0x6   :  { %107 = vmatpush3.bf16.msra.mxu0 %v115_v2 }
   0x9   :  { %109 = vmatmul.mubr.msk.bf16.vlgmr.msra.gmra.mrb[0].mxu0 %vm45_vm1, %v116_v3 }
  0xdc   :  { %v83_v5 = vpop.f32.mrb[0].mxu0 }
  0xdd   :  { %v84_v6 = vadd.f32 %v96_v4, %v83_v5  ;;  %v110_v7 = vpop.f32.mrb[1].mxu0 }
  0xde   :  { %v86_v8 = vpop.f32.mrb[2].mxu0 }
  0xdf   :  { %90 = vst [vmem:[%s160_s3] sm:$0xff] %v84_v6  ;;  %v87_v9 = vadd.f32 %v96_v4, %v86_v8  ;;  %v111_v10 = vpop.f32.mrb[3].mxu0 }
  0xe1   :  { %91 = vst [vmem:[%s160_s3 + $0x8] sm:$0xff] %v87_v9 }

// kernel: translation_forward.11
= control target key start
LH: loop header
LB: loop body
LE: loop exit
PB: predicated region body
PF: predicated region fallthrough
CT: control target
= control target key end

     0   :  { %6 = vsyncpa [#allocation3], 0  ;;  %s453_s6 = smov 0   ;;  %s503_s0 = inlined_call_operand.vmem [shape: f32[18,32,32], index: 0, kind: input, shape index: {}]   ;;  %s504_s1 = inlined_call_operand.hbm [shape: f32[1,1], index: 1, kind: output, shape index: {}]  }
   0x1 LB: > { %s459_s7 = sadd.s32 4294967295, %s438_s6   ;;  %p336_p0 = scmp.ge.s32.totalorder %s438_s6, 1  ;;  %s438_s6 = sphi %s453_s6, %s12_s6  }
   0x2   : > { %p83_p1 = scmp.lt.s32.totalorder %s438_s6, 19 }
   0x4   : > { %p84_p2 = pnand %p336_p0, %p83_p1 }
   0x5   : > { %p98_p3 = scmp.lt.s32.totalorder (!%p84_p2), %s459_s7, 17  ;;  %p339_p4 = scmp.ne.s32.totalorder (!%p84_p2), %s459_s7, 0 }
   0x6   : > { %87 = sbr.rel (%p84_p2) target bundleno = 607 (0x25f), region = 24 }
   0xd   : > { %s99_s8 = scalar_select %p98_p3, %s459_s7, 17 }
   0xe   : > { %106 = sbr.rel (%p339_p4) target bundleno = 21 (0x15), region = 28  ;;  %vm107_vm0 = vcmask (!%p339_p4), 0   ;;  %v440_v0 = vmov (!%p339_p4), 0.0  }
   0xf   : > { %s348_s9 = sshll.u32 %s99_s8, 5  ;;  %108 = vst.msk [vmem:[#allocation2] sm:$0x1] (!%p339_p4), %vm107_vm0, %v440_v0 }
  0x10   : > { %s102_s12 = scalar_lea.vmem %s503_s0, %s348_s9 }
  0x15 PF: > { %v109_v1 = vld [vmem:[%s102_s12] sm:$0xff]  ;;  %v110_v2 = vld [vmem:[%s102_s12 + $0x8] sm:$0xff]  ;;  %v111_v4 = vld [vmem:[%s102_s12 + $0x10] sm:$0xff]  ;;  %vm145_vm1 = vcmask 261120   ;;  %v243_v11 = vlaneseq  ;;  %v441_v15 = vmov 0.0   ;;  %s442_s13 = smov [#allocation2]  }
  0x16   : > { %113 = vxpose.xlu0.b32.start [1/4] (short) (narrow) %v109_v1, 32  ;;  %v371_v3 = vpack.c.bf16 %v110_v2, %v109_v1  ;;  %v112_v5 = vld [vmem:[%s102_s12 + $0x18] sm:$0xff]  ;;  %v262_v48 = vld [vmem:[#allocation2] sm:$0x1]  ;;  %s294_s14 = sshll.u32 %s442_s13, 4  ;;  %vm285_vm6 = vcmask 0   ;;  %s295_s14 = int_to_ptr.vmem [resolvable:$true] %s294_s14 }
  0x17   : > { %v375_v6 = vpack.c.bf16 %v112_v5, %v111_v4  ;;  %v244_v12 = vshrl.u32 %v243_v11, 7  ;;  %v249_v14 = vand.u32 127, %v243_v11  ;;  %p389_p5 = scmp.eq.s32.totalorder %s459_s7, 17  ;;  %s402_s16 = scalar_lea.vmem %s295_s14, 16 }
  0x18   : > { %372 = vmatprep.subr.bf16.mxu0 %v371_v3  ;;  %379 = vmatprep.subr.bf16.mxu1 %v371_v3  ;;  %p403_p6 = scmp.ne.s32.totalorder %s295_s14, %s402_s16  ;;  %s408_s17 = scalar_lea.vmem %s295_s14, 32 }
  0x19   : > { %374 = vmatpush3.bf16.msra.mxu0 %v371_v3  ;;  %381 = vmatpush3.bf16.msra.mxu1 %v371_v3  ;;  %v245_v13 = vadd.s32 8, %v244_v12  ;;  %vm250_vm3 = vcmp.eq.s32.totalorder %v244_v12, %v249_v14  ;;  %v247_v18 = vadd.s32 24, %v244_v12  ;;  %v246_v20 = vadd.s32 16, %v244_v12  ;;  %p409_p9 = scmp.lt.s32.totalorder %s295_s14, %s295_s14  ;;  %p410_p10 = scmp.lt.s32.totalorder %s408_s17, %s402_s16 }
  0x1a   : > { %114 = vxpose.xlu0.b32.cont [2/4] (short) (narrow) %v110_v2, 32  ;;  %376 = vmatprep.subr.bf16.mxu0 %v375_v6  ;;  %v254_v17 = vsel %vm250_vm3, 1.0, %v441_v15  ;;  %p404_p7 = pnand %p403_p6, %p389_p5 }
  0x1b   : > { %380 = vmatprep.subr.bf16.mxu1 %v375_v6  ;;  %vm251_vm2 = vcmp.eq.s32.totalorder %v245_v13, %v249_v14  ;;  %vm253_vm4 = vcmp.eq.s32.totalorder %v247_v18, %v249_v14  ;;  %vm252_vm5 = vcmp.eq.s32.totalorder %v246_v20, %v249_v14  ;;  %p411_p11 = por %p410_p10, %p409_p9 }
  0x1c   : > { %v255_v16 = vsel %vm251_vm2, 1.0, %v441_v15  ;;  %v257_v28 = vsel %vm253_vm4, 1.0, %v441_v15  ;;  %v256_v29 = vsel %vm252_vm5, 1.0, %v441_v15  ;;  %p405_p8 = pneg %p404_p7 }
  0x1d   : > { %378 = vmatpush3.bf16.msra.mxu0 %v375_v6  ;;  %382 = vmatpush3.bf16.msra.mxu1 %v375_v6 }
  0x1e   : > { %115 = vxpose.xlu0.b32.cont [3/4] (short) (narrow) %v111_v4, 32  ;;  %p412_p12 = pnand %p411_p11, %p405_p8 }
  0x22   : > { %116 = vxpose.xlu0.b32.end [4/4] (short) (narrow) %v112_v5, 32 }
  0x96   : > { %v129_v7 = vpop.trf.xlu0 }
  0x97   : > { %365 = vmatprep.mubr.msk.f32.mxu0 %vm145_vm1, %v129_v7 }
  0x9a   : > { %v130_v8 = vpop.trf.xlu0 }
  0x9b   : > { %366 = vmatmul.mubr.msk.f32.vlgmr.msra.gmra.mrb[0].mxu0 %vm145_vm1, %v130_v8 }
  0x9e   : > { %v131_v9 = vpop.trf.xlu0 }
  0x9f   : > { %368 = vmatprep.mubr.msk.f32.mxu1 %vm145_vm1, %v131_v9 }
  0xa2   : > { %v132_v10 = vpop.trf.xlu0 }
  0xa3   : > { %369 = vmatmul.mubr.msk.f32.vlgmr.msra.gmra.mrb[0].mxu1 %vm145_vm1, %v132_v10 }
 0x16e   : > { %v367_v19 = vpop.f32.mrb[0].mxu0 }
 0x16f   : > { %v259_v21 = vsub.f32 %v367_v19, %v255_v16  ;;  %v224_v22 = vpop.f32.mrb[1].mxu0 }
 0x170   : > { %v258_v23 = vsub.f32 %v224_v22, %v254_v17 }
 0x171   : > { %v264_v24 = vmul.f32 %v259_v21, %v259_v21 }
 0x172   : > { %v263_v25 = vmul.f32 %v258_v23, %v258_v23 }
 0x173   : > { %v268_v26 = vsel %vm145_vm1, %v264_v24, 0.0 }
 0x174   : > { %v267_v27 = vsel %vm145_vm1, %v263_v25, 0.0 }
 0x175   : > { %v269_v30 = vadd.f32 %v268_v26, %v267_v27 }
 0x176   : > { %v370_v31 = vpop.f32.mrb[0].mxu1 }
 0x177   : > { %v261_v32 = vsub.f32 %v370_v31, %v257_v28  ;;  %v234_v33 = vpop.f32.mrb[1].mxu1 }
 0x178   : > { %v260_v34 = vsub.f32 %v234_v33, %v256_v29 }
 0x179   : > { %v266_v35 = vmul.f32 %v261_v32, %v261_v32 }
 0x17a   : > { %v265_v36 = vmul.f32 %v260_v34, %v260_v34 }
 0x17b   : > { %v272_v39 = vsel %vm145_vm1, %v266_v35, 0.0 }
 0x17c   : > { %v270_v37 = vsel %vm145_vm1, %v265_v36, 0.0 }
 0x17d   : > { %v271_v38 = vadd.f32 %v270_v37, %v269_v30 }
 0x17f   : > { %v273_v40 = vadd.f32 %v272_v39, %v271_v38 }
 0x181   : > { %274 = vadd.xlane.f32.xlu1 %v273_v40 }
 0x20e   : > { %v275_v41 = vpop.xlane.xlu1 %274 }
 0x20f   : > { %v276_v42 = vrot.slane %v275_v41, 4 }
 0x211   : > { %v277_v43 = vadd.f32 %v276_v42, %v275_v41 }
 0x213   : > { %v278_v44 = vrot.slane %v277_v43, 2 }
 0x215   : > { %v279_v45 = vadd.f32 %v278_v44, %v277_v43 }
 0x217   : > { %v280_v46 = vrot.slane %v279_v45, 1 }
 0x219   : > { %v281_v47 = vadd.f32 %v280_v46, %v279_v45 }
 0x21b   : > { %383 = vpush %v281_v47 }
 0x24c   : > { %s384_s15 = spop %383 }
 0x24d   : > { %v283_v49 = vstv %s384_s15 }
 0x24e   : > { %v284_v50 = vadd.f32 %v283_v49, %v262_v48 }
 0x250   : > { %286 = vst.msk [vmem:[#allocation2] sm:$0x1] %vm285_vm6, %v284_v50 }
 0x251   : > { %415 = shalt.err (!%p412_p12)
}
 0x252   : > { %s416_s20 = scalar_lea.hbm %s504_s1, 16 }
 0x253   : > { %p417_p13 = scmp.ne.s32.totalorder %s504_s1, %s416_s20  ;;  %p422_p2 = scmp.lt.u32.totalorder %s416_s20, %s504_s1 }
 0x255   : > { %p418_p0 = pnand %p417_p13, %p389_p5 }
 0x257   : > { %p419_p1 = pneg %p418_p0 }
 0x259   : > { %p424_p3 = pnand %p422_p2, %p419_p1 }
 0x25b   : > { %427 = shalt.err (!%p424_p3)
}
 0x25c   : > { %386 = dma.vmem_to_hbm [thread:$0]  (%p389_p5), %s295_s14, 16, %s504_s1, [#allocation3]  }
 0x25d   : > { %433 = dma.done.wait (%p389_p5), [#allocation3], 16  }
 0x25e   : > { %435 = vsyncadd (%p389_p5), [#allocation3], 4294967280 }
 0x25f PF: > { %s12_s6 = sadd.s32 1, %s438_s6  }
 0x260   : > { %p9_p4 = scmp.ge.s32.totalorder %s12_s6, 20  }
 0x262   :  { %11 = sbr.rel (!%p9_p4) target bundleno = 1 (0x1), region = 55 }
 0x269   :  { %307 = vsyncpa [#allocation3], 1 }
 0x26a   :  { %309 = vsyncpa [#allocation3 + $0x1], 1 }

// kernel: translation_forward.6
= control target key start
LH: loop header
LB: loop body
LE: loop exit
PB: predicated region body
PF: predicated region fallthrough
CT: control target
= control target key end

     0   :  { %v1708_v0 = vmov 0.0   ;;  %vm1709_vm0 = vmmov 0   ;;  %vm80_vm1 = vcmask 261120   ;;  %s1712_s21 = smov 80   ;;  %s1713_s22 = smov 88   ;;  %vm130_vm2 = vcmask 64512   ;;  %s2084_s2 = inlined_call_operand.vmem [shape: bf16[32,96], index: 2, kind: input, shape index: {}]   ;;  %s2085_s0 = inlined_call_operand.vmem [shape: bf16[16,32], index: 0, kind: input, shape index: {}]   ;;  %s2086_s3 = inlined_call_operand.vmem [shape: f32[1,96], index: 3, kind: input, shape index: {}]   ;;  %s2087_s1 = inlined_call_operand.vmem [shape: f32[2,1,8], index: 1, kind: input, shape index: {}]   ;;  %s2088_s4 = inlined_call_operand.vmem [shape: bf16[32,32], index: 4, kind: input, shape index: {}]   ;;  %s2089_s5 = inlined_call_operand.vmem [shape: f32[1,32], index: 5, kind: input, shape index: {}]   ;;  %s2090_s8 = inlined_call_operand.vmem [shape: bf16[32,64], index: 8, kind: input, shape index: {}]   ;;  %s2091_s10 = inlined_call_operand.vmem [shape: bf16[64,32], index: 10, kind: input, shape index: {}]   ;;  %s2092_s6 = inlined_call_operand.vmem [shape: f32[1,32], index: 6, kind: input, shape index: {}]   ;;  %s2093_s7 = inlined_call_operand.vmem [shape: f32[1,32], index: 7, kind: input, shape index: {}]   ;;  %s2094_s9 = inlined_call_operand.vmem [shape: f32[1,64], index: 9, kind: input, shape index: {}]   ;;  %s2095_s11 = inlined_call_operand.vmem [shape: f32[1,32], index: 11, kind: input, shape index: {}]   ;;  %s2096_s12 = inlined_call_operand.vmem [shape: f32[1,32], index: 12, kind: input, shape index: {}]   ;;  %s2097_s13 = inlined_call_operand.vmem [shape: f32[1,32], index: 13, kind: input, shape index: {}]   ;;  %s2098_s14 = inlined_call_operand.vmem [shape: bf16[16,32], index: 14, kind: output, shape index: {}]  }
   0x1   :  { %1493 = vmatprep.subr.bf16.mxu0 %v1708_v0  ;;  %v1656_v1 = vld [vmem:[%s2084_s2] sm:$0xff]   ;;  %1497 = vmatprep.mubr.msk.bf16.mxu0 %vm1709_vm0, %v1708_v0  ;;  %v1657_v2 = vld [vmem:[%s2084_s2 + $0x8] sm:$0xff]   ;;  %s1711_s2 = smov 96   ;;  %s1715_s23 = smov 112   ;;  %vm202_vm3 = vcmask 1043456   ;;  %vm595_vm4 = vcmask 130048  }
   0x2   :  { %1501 = vmatprep.subr.bf16.mxu1 %v1708_v0  ;;  %1503 = vmatprep.mubr.msk.bf16.mxu1 %vm1709_vm0, %v1708_v0  ;;  %v1814_v3 = vld [vmem:[%s2085_s0] sm:$0xff]   ;;  %s1710_s0 = smov 120   ;;  %s1716_s24 = smov 104   ;;  %vm597_vm5 = vcmask 195584   ;;  %vm1295_vm6 = vcmask 523264   ;;  %vm1394_vm7 = vcmask 257024  }
   0x3   :  { %1494 = vmatpush3.bf16.msra.mxu0 %v1656_v1  ;;  %v1401_v4 = vld [vmem:[%s2086_s3] ss:$0 sm:$0xff]  ;;  %s1714_s3 = smov 72   ;;  %s1718_s29 = smov 64  }
   0x4   :  { %1495 = vmatprep.subr.bf16.mxu0 %v1708_v0  ;;  %v1407_v36 = vld [vmem:[%s2087_s1] ss:$0 sm:$0xff]  ;;  %s1719_s30 = smov 48   ;;  %s1720_s15 = smov 40  }
   0x5   :  { %s1721_s18 = smov 8  }
   0x7   :  { %1496 = vmatpush3.bf16.msra.mxu0 %v1657_v2  ;;  %v1417_v2 = vld [vmem:[%s2087_s1 + $0x1] ss:$0 sm:$0xff]  ;;  %s1717_s1 = smov 56  }
   0x8   :  { %1507 = vmatprep.subr.bf16.mxu0 %v1708_v0 }
   0xa   :  { %1498 = vmatmul.mubr.msk.bf16.vlgmr.msra.gmra.mrb[0].mxu0 %vm80_vm1, %v1814_v3 }
   0xb   :  { %1509 = vmatprep.mubr.msk.bf16.mxu0 %vm1709_vm0, %v1708_v0 }
  0xdd   :  { %v118_v5 = vpop.f32.mrb[0].mxu0 }
  0xde   :  { %v119_v6 = vadd.f32 %v1401_v4, %v118_v5  ;;  %v1499_v7 = vpop.f32.mrb[1].mxu0 }
  0xdf   :  { %v121_v8 = vpop.f32.mrb[2].mxu0 }
  0xe0   :  { %v1825_v9 = vpack.c.bf16 %v119_v6, %v119_v6  ;;  %v1500_v10 = vpop.f32.mrb[3].mxu0  ;;  %v122_v11 = vadd.f32 %v1401_v4, %v121_v8 }
  0xe2   :  { %246 = vrot.lane.b32.xlu1 %v1825_v9, %s1710_s0  ;;  %128 = vrot.lane.b32.xlu0 %v1825_v9, %s1711_s2  ;;  %v1833_v12 = vpack.c.bf16 %v122_v11, %v122_v11 }
  0xe6   :  { %360 = vrot.lane.b32.xlu1 %v1825_v9, %s1712_s21  ;;  %248 = vrot.lane.b32.xlu0 %v1825_v9, %s1713_s22 }
  0xea   :  { %472 = vrot.lane.b32.xlu1 %v1825_v9, %s1714_s3  ;;  %358 = vrot.lane.b32.xlu0 %v1825_v9, %s1715_s23 }
  0xee   :  { %470 = vrot.lane.b32.xlu0 %v1825_v9, %s1716_s24  ;;  %603 = vrot.lane.b32.xlu1 %v1833_v12, %s1711_s2  ;;  %s1723_s2 = smov 24  }
  0xf2   :  { %721 = vrot.lane.b32.xlu0 %v1833_v12, %s1713_s22  ;;  %719 = vrot.lane.b32.xlu1 %v1833_v12, %s1710_s0  ;;  %s1722_s0 = smov 16  }
  0xf6   :  { %833 = vrot.lane.b32.xlu0 %v1833_v12, %s1712_s21  ;;  %831 = vrot.lane.b32.xlu1 %v1833_v12, %s1715_s23 }
  0xfa   :  { %945 = vrot.lane.b32.xlu0 %v1833_v12, %s1714_s3  ;;  %943 = vrot.lane.b32.xlu1 %v1833_v12, %s1716_s24 }
 0x154   :  { %v129_v13 = vpop.permute.xlu0 %128  ;;  %v247_v16 = vpop.permute.xlu1 %246 }
 0x155   :  { %v135_v14 = vsel %vm130_vm2, %v129_v13, 0 }
 0x156   :  { %1502 = vmatpush3.bf16.xpose.msra.mxu1 %v135_v14 }
 0x157   :  { %1513 = vmatprep.subr.bf16.mxu1 %v1708_v0 }
 0x158   :  { %v249_v15 = vpop.permute.xlu0 %248  ;;  %v361_v18 = vpop.permute.xlu1 %360 }
 0x159   :  { %v254_v17 = vsel %vm130_vm2, %v249_v15, 0  ;;  %v366_v19 = vsel %vm130_vm2, %v361_v18, 0 }
 0x15c   :  { %v473_v20 = vpop.permute.xlu1 %472  ;;  %v359_v21 = vpop.permute.xlu0 %358 }
 0x15d   :  { %1504 = vmatmul.mubr.msk.bf16.vlgmr.msra.gmra.mrb[0].mxu1 %vm130_vm2, %v1825_v9  ;;  %v478_v22 = vsel %vm130_vm2, %v473_v20, 0 }
 0x15e   :  { %1514 = vmatpush3.bf16.xpose.msra.mxu1 %v254_v17  ;;  %1515 = vmatprep.mubr.msk.bf16.mxu1 %vm1709_vm0, %v1708_v0 }
 0x15f   :  { %1525 = vmatprep.subr.bf16.mxu1 %v1708_v0 }
 0x160   :  { %v604_v23 = vpop.permute.xlu1 %603  ;;  %v471_v24 = vpop.permute.xlu0 %470 }
 0x161   :  { %v609_v25 = vsel %vm130_vm2, %v604_v23, 0 }
 0x164   :  { %v722_v26 = vpop.permute.xlu0 %721  ;;  %v720_v29 = vpop.permute.xlu1 %719 }
 0x165   :  { %1516 = vmatmul.mubr.msk.bf16.vlgmr.msra.gmra.mrb[4].mxu1 %vm130_vm2, %v247_v16  ;;  %v727_v27 = vsel %vm130_vm2, %v722_v26, 0 }
 0x166   :  { %1526 = vmatpush3.bf16.xpose.msra.mxu1 %v366_v19  ;;  %1527 = vmatprep.mubr.msk.bf16.mxu1 %vm1709_vm0, %v1708_v0 }
 0x167   :  { %1537 = vmatprep.subr.bf16.mxu1 %v1708_v0 }
 0x168   :  { %v834_v28 = vpop.permute.xlu0 %833  ;;  %v832_v32 = vpop.permute.xlu1 %831 }
 0x169   :  { %v839_v30 = vsel %vm130_vm2, %v834_v28, 0 }
 0x16c   :  { %v946_v31 = vpop.permute.xlu0 %945  ;;  %v944_v34 = vpop.permute.xlu1 %943 }
 0x16d   :  { %1528 = vmatmul.mubr.msk.bf16.vlgmr.msra.gmra.mrb[8].mxu1 %vm130_vm2, %v359_v21  ;;  %v951_v33 = vsel %vm130_vm2, %v946_v31, 0 }
 0x16e   :  { %1538 = vmatpush3.bf16.xpose.msra.mxu1 %v478_v22  ;;  %1539 = vmatprep.mubr.msk.bf16.mxu1 %vm1709_vm0, %v1708_v0 }
 0x16f   :  { %1549 = vmatprep.subr.bf16.mxu1 %v1708_v0 }
 0x175   :  { %1540 = vmatmul.mubr.msk.bf16.vlgmr.msra.gmra.mrb[12].mxu1 %vm130_vm2, %v471_v24 }
 0x176   :  { %1550 = vmatpush3.bf16.xpose.msra.mxu1 %v609_v25  ;;  %1551 = vmatprep.mubr.msk.bf16.mxu1 %vm1709_vm0, %v1708_v0 }
 0x177   :  { %1561 = vmatprep.subr.bf16.mxu1 %v1708_v0 }
 0x17d   :  { %1552 = vmatmul.mubr.msk.bf16.vlgmr.msra.gmra.mrb[16].mxu1 %vm130_vm2, %v1833_v12 }
 0x17e   :  { %1562 = vmatpush3.bf16.xpose.msra.mxu1 %v727_v27  ;;  %1563 = vmatprep.mubr.msk.bf16.mxu1 %vm1709_vm0, %v1708_v0 }
 0x17f   :  { %1573 = vmatprep.subr.bf16.mxu1 %v1708_v0 }
 0x185   :  { %1564 = vmatmul.mubr.msk.bf16.vlgmr.msra.gmra.mrb[20].mxu1 %vm130_vm2, %v720_v29 }
 0x186   :  { %1574 = vmatpush3.bf16.xpose.msra.mxu1 %v839_v30  ;;  %1575 = vmatprep.mubr.msk.bf16.mxu1 %vm1709_vm0, %v1708_v0 }
 0x187   :  { %1585 = vmatprep.subr.bf16.mxu1 %v1708_v0 }
 0x18d   :  { %1576 = vmatmul.mubr.msk.bf16.vlgmr.msra.gmra.mrb[24].mxu1 %vm130_vm2, %v832_v32 }
 0x18e   :  { %1586 = vmatpush3.bf16.xpose.msra.mxu1 %v951_v33  ;;  %1587 = vmatprep.mubr.msk.bf16.mxu1 %vm1709_vm0, %v1708_v0 }
 0x18f   :  { %1597 = vmatprep.subr.bf16.mxu1 %v1708_v0 }
 0x195   :  { %1588 = vmatmul.mubr.msk.bf16.vlgmr.msra.gmra.mrb[28].mxu1 %vm130_vm2, %v944_v34 }
 0x196   :  { %1601 = vmatprep.mubr.msk.bf16.mxu1 %vm1709_vm0, %v1708_v0 }
 0x230   :  { %v171_v35 = vpop.f32.mrb[0].mxu1 }
 0x231   :  { %v177_v37 = vmul.f32 0.35355338, %v171_v35  ;;  %v1505_v38 = vpop.f32.mrb[1].mxu1 }
 0x232   :  { %v174_v39 = vpop.f32.mrb[2].mxu1 }
 0x233   :  { %v1506_v40 = vpop.f32.mrb[3].mxu1  ;;  %v1888_v41 = vadd.f32 %v1407_v36, %v177_v37 }
 0x235   :  { %v185_v42 = vsel %vm130_vm2, %v1888_v41, -inf }
 0x236   :  { %186 = vmax.xlane.f32.xlu0 %v185_v42 }
 0x238   :  { %v290_v43 = vpop.f32.mrb[4].mxu1 }
 0x239   :  { %v296_v44 = vmul.f32 0.35355338, %v290_v43  ;;  %v1517_v45 = vpop.f32.mrb[5].mxu1 }
 0x23a   :  { %v293_v46 = vpop.f32.mrb[6].mxu1 }
 0x23b   :  { %v1518_v47 = vpop.f32.mrb[7].mxu1  ;;  %v297_v48 = vadd.f32 %v1407_v36, %v296_v44 }
 0x23d   :  { %v298_v49 = vsel %vm130_vm2, %v297_v48, -inf }
 0x23e   :  { %299 = vmax.xlane.f32.xlu1 %v298_v49 }
 0x240   :  { %v402_v50 = vpop.f32.mrb[8].mxu1 }
 0x241   :  { %v408_v51 = vmul.f32 0.35355338, %v402_v50  ;;  %v1529_v52 = vpop.f32.mrb[9].mxu1 }
 0x242   :  { %v405_v53 = vpop.f32.mrb[10].mxu1 }
 0x243   :  { %v1530_v54 = vpop.f32.mrb[11].mxu1  ;;  %v409_v55 = vadd.f32 %v1407_v36, %v408_v51 }
 0x245   :  { %v410_v56 = vsel %vm130_vm2, %v409_v55, -inf }
 0x246   :  { %411 = vmax.xlane.f32.xlu0 %v410_v56 }
 0x248   :  { %v514_v57 = vpop.f32.mrb[12].mxu1 }
 0x249   :  { %v520_v58 = vmul.f32 0.35355338, %v514_v57  ;;  %v1541_v59 = vpop.f32.mrb[13].mxu1 }
 0x24a   :  { %v517_v60 = vpop.f32.mrb[14].mxu1 }
 0x24b   :  { %v1542_v61 = vpop.f32.mrb[15].mxu1  ;;  %v1894_v62 = vadd.f32 %v1407_v36, %v520_v58 }
 0x24d   :  { %v522_v63 = vsel %vm130_vm2, %v1894_v62, -inf }
 0x24e   :  { %523 = vmax.xlane.f32.xlu0 %v522_v63 }
 0x250   :  { %v645_v1 = vpop.f32.mrb[16].mxu1 }
 0x251   :  { %v651_v4 = vmul.f32 0.35355338, %v645_v1  ;;  %v1553_v5 = vpop.f32.mrb[17].mxu1 }
 0x252   :  { %v648_v6 = vpop.f32.mrb[18].mxu1 }
 0x253   :  { %v1554_v7 = vpop.f32.mrb[19].mxu1  ;;  %v1901_v8 = vadd.f32 %v1417_v2, %v651_v4 }
 0x255   :  { %v659_v10 = vsel %vm130_vm2, %v1901_v8, -inf }
 0x256   :  { %660 = vmax.xlane.f32.xlu1 %v659_v10 }
 0x258   :  { %v763_v11 = vpop.f32.mrb[20].mxu1 }
 0x259   :  { %v769_v13 = vmul.f32 0.35355338, %v763_v11  ;;  %v1565_v14 = vpop.f32.mrb[21].mxu1 }
 0x25a   :  { %v766_v15 = vpop.f32.mrb[22].mxu1 }
 0x25b   :  { %v1566_v16 = vpop.f32.mrb[23].mxu1  ;;  %v1905_v17 = vadd.f32 %v1417_v2, %v769_v13 }
 0x25d   :  { %v771_v18 = vsel %vm130_vm2, %v1905_v17, -inf }
 0x25e   :  { %772 = vmax.xlane.f32.xlu0 %v771_v18 }
 0x260   :  { %v875_v19 = vpop.f32.mrb[24].mxu1 }
 0x261   :  { %v881_v20 = vmul.f32 0.35355338, %v875_v19  ;;  %v1577_v21 = vpop.f32.mrb[25].mxu1 }
 0x262   :  { %v878_v22 = vpop.f32.mrb[26].mxu1 }
 0x263   :  { %v1578_v23 = vpop.f32.mrb[27].mxu1  ;;  %v882_v24 = vadd.f32 %v1417_v2, %v881_v20 }
 0x265   :  { %v883_v25 = vsel %vm130_vm2, %v882_v24, -inf }
 0x266   :  { %884 = vmax.xlane.f32.xlu1 %v883_v25 }
 0x268   :  { %v987_v26 = vpop.f32.mrb[28].mxu1 }
 0x269   :  { %v1589_v27 = vpop.f32.mrb[29].mxu1  ;;  %v993_v30 = vmul.f32 0.35355338, %v987_v26 }
 0x26a   :  { %v990_v28 = vpop.f32.mrb[30].mxu1 }
 0x26b   :  { %v1590_v29 = vpop.f32.mrb[31].mxu1  ;;  %v1914_v31 = vadd.f32 %v1417_v2, %v993_v30 }
 0x26d   :  { %v995_v32 = vsel %vm130_vm2, %v1914_v31, -inf }
 0x274   :  { %310 = vrot.lane.b32.xlu0 %v1825_v9, %s1717_s1 }
 0x277   :  { %197 = vrot.lane.b32.xlu1 %v1825_v9, %s1718_s29 }
 0x293   :  { %996 = vmax.xlane.f32.xlu0 %v995_v32 }
 0x2c3   :  { %v187_v33 = vpop.xlane.xlu0 %186 }
 0x2c4   :  { %v188_v34 = vsub.f32 %v1888_v41, %v187_v33 }
 0x2c6   :  { %v189_v35 = vmul.f32 1.442695, %v188_v34 }
 0x2c8   :  { %1668 = vpow2.f32 %v189_v35 }
 0x2cb   :  { %v300_v36 = vpop.xlane.xlu1 %299 }
 0x2cc   :  { %v301_v37 = vsub.f32 %v297_v48, %v300_v36 }
 0x2ce   :  { %v302_v38 = vmul.f32 1.442695, %v301_v37 }
 0x2d0   :  { %1670 = vpow2.f32 %v302_v38 }
 0x2d2   :  { %v1919_v39 = vpop.eup %1668 }
 0x2d3   :  { %v412_v40 = vpop.xlane.xlu0 %411  ;;  %v191_v42 = vsel %vm130_vm2, %v1919_v39, 0.0 }
 0x2d4   :  { %v413_v43 = vsub.f32 %v409_v55, %v412_v40  ;;  %192 = vadd.xlane.f32.xlu1 %v191_v42 }
 0x2d6   :  { %v414_v44 = vmul.f32 1.442695, %v413_v43 }
 0x2d8   :  { %1672 = vpow2.f32 %v414_v44 }
 0x2da   :  { %v1923_v45 = vpop.eup %1670 }
 0x2db   :  { %v304_v41 = vsel %vm130_vm2, %v1923_v45, 0.0  ;;  %v524_v51 = vpop.xlane.xlu0 %523 }
 0x2dc   :  { %305 = vadd.xlane.f32.xlu0 %v304_v41  ;;  %v525_v53 = vsub.f32 %v1894_v62, %v524_v51 }
 0x2de   :  { %v526_v54 = vmul.f32 1.442695, %v525_v53 }
 0x2e0   :  { %1674 = vpow2.f32 %v526_v54 }
 0x2e2   :  { %v1927_v46 = vpop.eup %1672 }
 0x2e3   :  { %v416_v47 = vsel %vm130_vm2, %v1927_v46, 0.0  ;;  %v661_v48 = vpop.xlane.xlu1 %660 }
 0x2e4   :  { %417 = vadd.xlane.f32.xlu1 %v416_v47  ;;  %v662_v55 = vsub.f32 %v1901_v8, %v661_v48 }
 0x2e6   :  { %v663_v58 = vmul.f32 1.442695, %v662_v55 }
 0x2e8   :  { %1676 = vpow2.f32 %v663_v58 }
 0x2ea   :  { %v1675_v61 = vpop.eup %1674 }
 0x2eb   :  { %v773_v56 = vpop.xlane.xlu0 %772  ;;  %v528_v63 = vsel %vm130_vm2, %v1675_v61, 0.0 }
 0x2ec   :  { %v774_v57 = vsub.f32 %v1905_v17, %v773_v56 }
 0x2ef   :  { %v311_v7 = vpop.permute.xlu0 %310 }
 0x2f0   :  { %v316_v20 = vsel %vm202_vm3, %v311_v7, 0 }
 0x2f2   :  { %422 = vrot.lane.b32.xlu0 %v1825_v9, %s1719_s30  ;;  %v1941_v1 = vpop.eup %1676 }
 0x2f3   :  { %v885_v49 = vpop.xlane.xlu1 %884  ;;  %v665_v2 = vsel %vm130_vm2, %v1941_v1, 0.0 }
 0x2f4   :  { %v886_v59 = vsub.f32 %v882_v24, %v885_v49 }
 0x2f5   :  { %534 = vrot.lane.b32.xlu1 %v1825_v9, %s1720_s15  ;;  %v775_v9 = vmul.f32 1.442695, %v774_v57 }
 0x2f6   :  { %v887_v60 = vmul.f32 1.442695, %v886_v59 }
 0x2f7   :  { %v198_v50 = vpop.permute.xlu1 %197  ;;  %1678 = vpow2.f32 %v775_v9 }
 0x2f8   :  { %v204_v52 = vsel %vm202_vm3, %v198_v50, 0  ;;  %1680 = vpow2.f32 %v887_v60 }
 0x2f9   :  { %1508 = vmatpush3.bf16.msra.mxu0 %v204_v52 }
 0x2fa   :  { %1519 = vmatprep.subr.bf16.mxu0 %v1708_v0 }
 0x301   :  { %v1943_v62 = vpop.eup %1678 }
 0x302   :  { %v1947_v4 = vpop.eup %1680  ;;  %v777_v5 = vsel %vm130_vm2, %v1943_v62, 0.0 }
 0x303   :  { %v889_v6 = vsel %vm130_vm2, %v1947_v4, 0.0 }
 0x311   :  { %529 = vadd.xlane.f32.xlu0 %v528_v63 }
 0x315   :  { %666 = vadd.xlane.f32.xlu0 %v665_v2 }
 0x319   :  { %778 = vadd.xlane.f32.xlu1 %v777_v5  ;;  %890 = vadd.xlane.f32.xlu0 %v889_v6 }
 0x320   :  { %v997_v8 = vpop.xlane.xlu0 %996 }
 0x321   :  { %v998_v10 = vsub.f32 %v1914_v31, %v997_v8 }
 0x323   :  { %v999_v11 = vmul.f32 1.442695, %v998_v10 }
 0x325   :  { %1682 = vpow2.f32 %v999_v11 }
 0x32a   :  { %783 = vrot.lane.b32.xlu1 %v1833_v12, %s1717_s1 }
 0x32e   :  { %895 = vrot.lane.b32.xlu1 %v1833_v12, %s1719_s30 }
 0x32f   :  { %v1958_v13 = vpop.eup %1682 }
 0x330   :  { %v1001_v14 = vsel %vm130_vm2, %v1958_v13, 0.0 }
 0x331   :  { %1002 = vadd.xlane.f32.xlu0 %v1001_v14 }
 0x332   :  { %1007 = vrot.lane.b32.xlu1 %v1833_v12, %s1720_s15 }
 0x347   :  { %671 = vrot.lane.b32.xlu0 %v1833_v12, %s1718_s29 }
 0x361   :  { %v193_v15 = vpop.xlane.xlu1 %192 }
 0x362   :  { %1684 = vrcp.f32 %v193_v15 }
 0x369   :  { %v306_v16 = vpop.xlane.xlu0 %305 }
 0x36a   :  { %1686 = vrcp.f32 %v306_v16 }
 0x36c   :  { %v1685_v17 = vpop.eup %1684 }
 0x36d   :  { %v195_v18 = vmul.f32 %v1685_v17, %v1919_v39  ;;  %v423_v23 = vpop.permute.xlu0 %422 }
 0x36e   :  { %v428_v25 = vsel %vm202_vm3, %v423_v23, 0  ;;  %v1660_v23 = vld [vmem:[%s2088_s4 + $0x8] sm:$0xff]  }
 0x36f   :  { %v196_v19 = vpack.c.bf16 %v195_v18, %v195_v18 }
 0x371   :  { %1510 = vmatmul.mubr.msk.bf16.vlgmr.msra.gmra.mrb[4].mxu0 %vm130_vm2, %v196_v19  ;;  %v418_v21 = vpop.xlane.xlu1 %417 }
 0x372   :  { %1520 = vmatpush3.bf16.msra.mxu0 %v316_v20  ;;  %1688 = vrcp.f32 %v418_v21  ;;  %1521 = vmatprep.mubr.msk.bf16.mxu0 %vm1709_vm0, %v1708_v0  ;;  %v1659_v21 = vld [vmem:[%s2088_s4] sm:$0xff]  }
 0x373   :  { %1531 = vmatprep.subr.bf16.mxu0 %v1708_v0  ;;  %1598 = vmatpush3.bf16.msra.mxu1 %v1659_v21 }
 0x374   :  { %v1687_v12 = vpop.eup %1686  ;;  %1599 = vmatprep.subr.bf16.mxu1 %v1708_v0 }
 0x375   :  { %v308_v22 = vmul.f32 %v1687_v12, %v1923_v45  ;;  %v535_v28 = vpop.permute.xlu1 %534 }
 0x376   :  { %v540_v30 = vsel %vm202_vm3, %v535_v28, 0 }
 0x377   :  { %v309_v24 = vpack.c.bf16 %v308_v22, %v308_v22  ;;  %1600 = vmatpush3.bf16.msra.mxu1 %v1660_v23 }
 0x378   :  { %1613 = vmatprep.subr.bf16.mxu1 %v1708_v0 }
 0x379   :  { %1522 = vmatmul.mubr.msk.bf16.vlgmr.msra.gmra.mrb[8].mxu0 %vm130_vm2, %v309_v24 }
 0x37a   :  { %1532 = vmatpush3.bf16.msra.mxu0 %v428_v25  ;;  %1533 = vmatprep.mubr.msk.bf16.mxu0 %vm1709_vm0, %v1708_v0 }
 0x37b   :  { %1543 = vmatprep.subr.bf16.mxu0 %v1708_v0 }
 0x37c   :  { %v1689_v26 = vpop.eup %1688 }
 0x37d   :  { %v420_v27 = vmul.f32 %v1689_v26, %v1927_v46 }
 0x37f   :  { %v421_v29 = vpack.c.bf16 %v420_v27, %v420_v27 }
 0x381   :  { %1534 = vmatmul.mubr.msk.bf16.vlgmr.msra.gmra.mrb[12].mxu0 %vm130_vm2, %v421_v29 }
 0x382   :  { %1544 = vmatpush3.bf16.msra.mxu0 %v540_v30  ;;  %1545 = vmatprep.mubr.msk.bf16.mxu0 %vm1709_vm0, %v1708_v0 }
 0x383   :  { %1555 = vmatprep.subr.bf16.mxu0 %v1708_v0 }
 0x39e   :  { %v530_v31 = vpop.xlane.xlu0 %529 }
 0x39f   :  { %1690 = vrcp.f32 %v530_v31 }
 0x3a2   :  { %v667_v35 = vpop.xlane.xlu0 %666 }
 0x3a3   :  { %1692 = vrcp.f32 %v667_v35 }
 0x3a6   :  { %v779_v36 = vpop.xlane.xlu1 %778  ;;  %v891_v37 = vpop.xlane.xlu0 %890 }
 0x3a7   :  { %1694 = vrcp.f32 %v779_v36 }
 0x3a8   :  { %1696 = vrcp.f32 %v891_v37 }
 0x3a9   :  { %v1691_v32 = vpop.eup %1690 }
 0x3aa   :  { %v532_v33 = vmul.f32 %v1691_v32, %v1675_v61  ;;  %v784_v44 = vpop.permute.xlu1 %783 }
 0x3ab   :  { %v789_v46 = vsel %vm202_vm3, %v784_v44, 0 }
 0x3ac   :  { %v533_v34 = vpack.c.bf16 %v532_v33, %v532_v33 }
 0x3ad   :  { %v1693_v38 = vpop.eup %1692 }
 0x3ae   :  { %1546 = vmatmul.mubr.msk.bf16.vlgmr.msra.gmra.mrb[16].mxu0 %vm130_vm2, %v533_v34  ;;  %v669_v40 = vmul.f32 %v1693_v38, %v1941_v1  ;;  %v896_v48 = vpop.permute.xlu1 %895 }
 0x3af   :  { %1557 = vmatprep.mubr.msk.bf16.mxu0 %vm1709_vm0, %v1708_v0  ;;  %v901_v51 = vsel %vm202_vm3, %v896_v48, 0 }
 0x3b0   :  { %v670_v45 = vpack.c.bf16 %v669_v40, %v669_v40 }
 0x3b1   :  { %v1695_v41 = vpop.eup %1694 }
 0x3b2   :  { %v781_v47 = vmul.f32 %v1695_v41, %v1943_v62  ;;  %v1697_v50 = vpop.eup %1696  ;;  %v1008_v53 = vpop.permute.xlu1 %1007 }
 0x3b3   :  { %v893_v52 = vmul.f32 %v1697_v50, %v1947_v4  ;;  %v1013_v56 = vsel %vm202_vm3, %v1008_v53, 0  ;;  %v1425_v50 = vld [vmem:[%s2089_s5] ss:$0 sm:$0xff] }
 0x3b4   :  { %v782_v49 = vpack.c.bf16 %v781_v47, %v781_v47 }
 0x3b5   :  { %v894_v54 = vpack.c.bf16 %v893_v52, %v893_v52 }
 0x3be   :  { %v1003_v39 = vpop.xlane.xlu0 %1002 }
 0x3bf   :  { %1698 = vrcp.f32 %v1003_v39 }
 0x3c2   :  { %v672_v42 = vpop.permute.xlu0 %671 }
 0x3c3   :  { %v677_v43 = vsel %vm202_vm3, %v672_v42, 0 }
 0x3c4   :  { %1556 = vmatpush3.bf16.msra.mxu0 %v677_v43 }
 0x3c5   :  { %1567 = vmatprep.subr.bf16.mxu0 %v1708_v0 }
 0x3c7   :  { %1558 = vmatmul.mubr.msk.bf16.vlgmr.msra.gmra.mrb[20].mxu0 %vm130_vm2, %v670_v45 }
 0x3c8   :  { %1568 = vmatpush3.bf16.msra.mxu0 %v789_v46  ;;  %1569 = vmatprep.mubr.msk.bf16.mxu0 %vm1709_vm0, %v1708_v0 }
 0x3c9   :  { %1579 = vmatprep.subr.bf16.mxu0 %v1708_v0  ;;  %v1699_v55 = vpop.eup %1698 }
 0x3ca   :  { %v1005_v57 = vmul.f32 %v1699_v55, %v1958_v13  ;;  %v51_v55 = vunpack.c.h.bf16 %v1814_v3 }
 0x3cc   :  { %v1006_v58 = vpack.c.bf16 %v1005_v57, %v1005_v57 }
 0x3cf   :  { %1570 = vmatmul.mubr.msk.bf16.vlgmr.msra.gmra.mrb[24].mxu0 %vm130_vm2, %v782_v49 }
 0x3d0   :  { %1580 = vmatpush3.bf16.msra.mxu0 %v901_v51  ;;  %1581 = vmatprep.mubr.msk.bf16.mxu0 %vm1709_vm0, %v1708_v0  ;;  %v50_v51 = vunpack.c.l.bf16 %v1814_v3 }
 0x3d1   :  { %1591 = vmatprep.subr.bf16.mxu0 %v1708_v0 }
 0x3d7   :  { %1582 = vmatmul.mubr.msk.bf16.vlgmr.msra.gmra.mrb[28].mxu0 %vm130_vm2, %v894_v54 }
 0x3d8   :  { %1592 = vmatpush3.bf16.msra.mxu0 %v1013_v56  ;;  %1593 = vmatprep.mubr.msk.bf16.mxu0 %vm1709_vm0, %v1708_v0 }
 0x3d9   :  { %1605 = vmatprep.subr.bf16.mxu0 %v1708_v0 }
 0x3df   :  { %1594 = vmatmul.mubr.msk.bf16.vlgmr.msra.gmra.mrb[32].mxu0 %vm130_vm2, %v1006_v58 }
 0x3e0   :  { %1609 = vmatprep.mubr.msk.bf16.mxu0 %vm1709_vm0, %v1708_v0 }
 0x444   :  { %v240_v59 = vpop.f32.mrb[4].mxu0 }
 0x445   :  { %v1511_v9 = vpop.f32.mrb[5].mxu0 }
 0x446   :  { %v243_v60 = vpop.f32.mrb[6].mxu0 }
 0x447   :  { %v1512_v61 = vpop.f32.mrb[7].mxu0 }
 0x44c   :  { %v352_v63 = vpop.f32.mrb[8].mxu0 }
 0x44d   :  { %v1523_v1 = vpop.f32.mrb[9].mxu0 }
 0x44e   :  { %v355_v62 = vpop.f32.mrb[10].mxu0 }
 0x44f   :  { %v1524_v2 = vpop.f32.mrb[11].mxu0 }
 0x454   :  { %v464_v4 = vpop.f32.mrb[12].mxu0 }
 0x455   :  { %v1535_v5 = vpop.f32.mrb[13].mxu0 }
 0x456   :  { %v467_v6 = vpop.f32.mrb[14].mxu0 }
 0x457   :  { %v1536_v7 = vpop.f32.mrb[15].mxu0 }
 0x481   :  { %v576_v8 = vpop.f32.mrb[16].mxu0 }
 0x482   :  { %v1547_v10 = vpop.f32.mrb[17].mxu0 }
 0x483   :  { %v579_v11 = vpop.f32.mrb[18].mxu0  ;;  %v1661_v10 = vld [vmem:[%s2090_s8] sm:$0xff]  }
 0x484   :  { %v1548_v13 = vpop.f32.mrb[19].mxu0  ;;  %1606 = vmatpush3.bf16.msra.mxu0 %v1661_v10  ;;  %v1662_v11 = vld [vmem:[%s2090_s8 + $0x8] sm:$0xff]   ;;  %v1442_v10 = vld [vmem:[%s2097_s13] ss:$0 sm:$0xff] }
 0x485   :  { %1607 = vmatprep.subr.bf16.mxu0 %v1708_v0  ;;  %v1663_v13 = vld [vmem:[%s2091_s10] sm:$0xff]  }
 0x488   :  { %1608 = vmatpush3.bf16.msra.mxu0 %v1662_v11 }
 0x49a   :  { %v713_v14 = vpop.f32.mrb[20].mxu0 }
 0x49b   :  { %v1559_v15 = vpop.f32.mrb[21].mxu0 }
 0x49c   :  { %v716_v16 = vpop.f32.mrb[22].mxu0 }
 0x49d   :  { %v1560_v17 = vpop.f32.mrb[23].mxu0 }
 0x4a2   :  { %v825_v18 = vpop.f32.mrb[24].mxu0 }
 0x4a3   :  { %v1641_v19 = vpack.i.bf16 %v825_v18, %v352_v63  ;;  %v1571_v20 = vpop.f32.mrb[25].mxu0 }
 0x4a4   :  { %v828_v12 = vpop.f32.mrb[26].mxu0 }
 0x4a5   :  { %1642 = vrot.lane.b32.xlu1 %v1641_v19, %s1721_s18  ;;  %v1572_v22 = vpop.f32.mrb[27].mxu0  ;;  %v1429_v12 = vld [vmem:[%s2092_s6] ss:$0 sm:$0xff] }
 0x4aa   :  { %v937_v24 = vpop.f32.mrb[28].mxu0 }
 0x4ab   :  { %v1646_v25 = vpack.i.bf16 %v937_v24, %v464_v4  ;;  %v1583_v26 = vpop.f32.mrb[29].mxu0 }
 0x4ac   :  { %v940_v27 = vpop.f32.mrb[30].mxu0  ;;  %v1430_v26 = vld [vmem:[%s2093_s7] ss:$0 sm:$0xff] }
 0x4ad   :  { %1647 = vrot.lane.b32.xlu1 %v1646_v25, %s1722_s0  ;;  %v1584_v28 = vpop.f32.mrb[31].mxu0 }
 0x4b2   :  { %v1049_v29 = vpop.f32.mrb[32].mxu0 }
 0x4b3   :  { %v1651_v30 = vpack.i.bf16 %v1049_v29, %v576_v8  ;;  %v1595_v31 = vpop.f32.mrb[33].mxu0 }
 0x4b4   :  { %v1052_v32 = vpop.f32.mrb[34].mxu0  ;;  %v1665_v31 = vld [vmem:[%s2091_s10 + $0x10] sm:$0xff]  }
 0x4b5   :  { %1652 = vrot.lane.b32.xlu0 %v1651_v30, %s1723_s2  ;;  %v1596_v33 = vpop.f32.mrb[35].mxu0  ;;  %v1666_v32 = vld [vmem:[%s2091_s10 + $0x18] sm:$0xff]  }
 0x4b6   :  { %v1431_v33 = vld [vmem:[%s2094_s9] ss:$0 sm:$0xff] }
 0x517   :  { %v1643_v34 = vpop.permute.xlu1 %1642 }
 0x518   :  { %v1645_v36 = vunpack.i.h.bf16 %v1643_v34  ;;  %v1644_v37 = vunpack.i.l.bf16 %v1643_v34 }
 0x51a   :  { %v1067_v42 = vsel %vm130_vm2, %v713_v14, %v1645_v36  ;;  %v594_v43 = vsel %vm130_vm2, %v240_v59, %v1644_v37  ;;  %v1664_v14 = vld [vmem:[%s2091_s10 + $0x8] sm:$0xff]  }
 0x51f   :  { %v1648_v35 = vpop.permute.xlu1 %1647 }
 0x520   :  { %v1650_v38 = vunpack.i.h.bf16 %v1648_v35  ;;  %v1649_v39 = vunpack.i.l.bf16 %v1648_v35 }
 0x522   :  { %v1068_v41 = vsel %vm595_vm4, %v1067_v42, %v1650_v38  ;;  %v596_v46 = vsel %vm595_vm4, %v594_v43, %v1649_v39 }
 0x527   :  { %v1653_v40 = vpop.permute.xlu0 %1652 }
 0x528   :  { %v1655_v44 = vunpack.i.h.bf16 %v1653_v40  ;;  %v1654_v45 = vunpack.i.l.bf16 %v1653_v40 }
 0x52a   :  { %v1069_v47 = vsel %vm597_vm5, %v1068_v41, %v1655_v44  ;;  %v598_v48 = vsel %vm597_vm5, %v596_v46, %v1654_v45 }
 0x52b   :  { %v1070_v49 = vpack.c.bf16 %v1069_v47, %v598_v48 }
 0x52d   :  { %1602 = vmatmul.mubr.msk.bf16.vlgmr.msra.gmra.mrb[32].mxu1 %vm80_vm1, %v1070_v49 }
 0x52e   :  { %1621 = vmatprep.mubr.msk.bf16.mxu1 %vm1709_vm0, %v1708_v0  ;;  %1614 = vmatpush3.bf16.msra.mxu1 %v1663_v13 }
 0x52f   :  { %1615 = vmatprep.subr.bf16.mxu1 %v1708_v0 }
 0x532   :  { %1616 = vmatpush3.bf16.msra.mxu1 %v1664_v14 }
 0x533   :  { %1617 = vmatprep.subr.bf16.mxu1 %v1708_v0 }
 0x536   :  { %1618 = vmatpush3.bf16.msra.mxu1 %v1665_v31 }
 0x537   :  { %1619 = vmatprep.subr.bf16.mxu1 %v1708_v0  ;;  %v1435_v0 = vld [vmem:[%s2095_s11] ss:$0 sm:$0xff] }
 0x53a   :  { %1620 = vmatpush3.bf16.msra.mxu1 %v1666_v32 }
 0x600   :  { %v1131_v52 = vpop.f32.mrb[32].mxu1 }
 0x601   :  { %v1132_v53 = vadd.f32 %v1425_v50, %v1131_v52  ;;  %v1603_v54 = vpop.f32.mrb[33].mxu1 }
 0x602   :  { %v1134_v56 = vpop.f32.mrb[34].mxu1 }
 0x603   :  { %v1135_v57 = vadd.f32 %v1425_v50, %v1134_v56  ;;  %v1604_v58 = vpop.f32.mrb[35].mxu1  ;;  %v1138_v59 = vadd.f32 %v1132_v53, %v50_v51 }
 0x605   :  { %v1142_v9 = vsel %vm80_vm1, %v1138_v59, 0.0  ;;  %v1139_v60 = vadd.f32 %v1135_v57, %v51_v55 }
 0x606   :  { %1143 = vadd.xlane.f32.xlu1 %v1142_v9 }
 0x607   :  { %v1145_v61 = vsel %vm80_vm1, %v1139_v60, 0.0 }
 0x608   :  { %1146 = vadd.xlane.f32.xlu0 %v1145_v61 }
 0x693   :  { %v1144_v63 = vpop.xlane.xlu1 %1143 }
 0x694   :  { %v1149_v1 = vmul.f32 0.03125, %v1144_v63 }
 0x695   :  { %v1147_v62 = vpop.xlane.xlu0 %1146 }
 0x696   :  { %v1151_v2 = vsub.f32 %v1138_v59, %v1149_v1  ;;  %v1150_v4 = vmul.f32 0.03125, %v1147_v62 }
 0x698   :  { %v1152_v5 = vsub.f32 %v1139_v60, %v1150_v4  ;;  %v1153_v6 = vmul.f32 %v1151_v2, %v1151_v2 }
 0x69a   :  { %v1155_v3 = vsel %vm80_vm1, %v1153_v6, 0.0  ;;  %v1154_v7 = vmul.f32 %v1152_v5, %v1152_v5 }
 0x69b   :  { %1156 = vadd.xlane.f32.xlu0 %v1155_v3  ;;  %v1441_v3 = vld [vmem:[%s2096_s12] ss:$0 sm:$0xff] }
 0x69c   :  { %v1158_v8 = vsel %vm80_vm1, %v1154_v7, 0.0 }
 0x69d   :  { %1159 = vadd.xlane.f32.xlu1 %v1158_v8 }
 0x728   :  { %v1157_v15 = vpop.xlane.xlu0 %1156 }
 0x729   :  { %v1161_v16 = vmul.f32 0.03125, %v1157_v15 }
 0x72a   :  { %v1160_v17 = vpop.xlane.xlu1 %1159 }
 0x72b   :  { %v1163_v18 = vadd.f32 1e-05, %v1161_v16  ;;  %v1162_v19 = vmul.f32 0.03125, %v1160_v17 }
 0x72d   :  { %1700 = vrsqrt.f32 %v1163_v18  ;;  %v1164_v20 = vadd.f32 1e-05, %v1162_v19 }
 0x72f   :  { %1702 = vrsqrt.f32 %v1164_v20 }
 0x737   :  { %v1701_v21 = vpop.eup %1700 }
 0x738   :  { %v1167_v22 = vmul.f32 %v1701_v21, %v1151_v2 }
 0x739   :  { %v1703_v23 = vpop.eup %1702 }
 0x73a   :  { %v1175_v24 = vmul.f32 %v1429_v12, %v1167_v22  ;;  %v1168_v25 = vmul.f32 %v1703_v23, %v1152_v5 }
 0x73c   :  { %v1176_v27 = vmul.f32 %v1429_v12, %v1168_v25  ;;  %v1183_v28 = vadd.f32 %v1430_v26, %v1175_v24 }
 0x73e   :  { %v1184_v29 = vadd.f32 %v1430_v26, %v1176_v27 }
 0x740   :  { %v1185_v30 = vpack.c.bf16 %v1184_v29, %v1183_v28 }
 0x742   :  { %1610 = vmatmul.mubr.msk.bf16.vlgmr.msra.gmra.mrb[36].mxu0 %vm80_vm1, %v1185_v30 }
 0x815   :  { %v1246_v34 = vpop.f32.mrb[36].mxu0 }
 0x816   :  { %v1247_v35 = vadd.f32 %v1431_v33, %v1246_v34  ;;  %v1611_v36 = vpop.f32.mrb[37].mxu0 }
 0x817   :  { %v1249_v37 = vpop.f32.mrb[38].mxu0 }
 0x818   :  { %v1250_v38 = vadd.f32 %v1431_v33, %v1249_v37  ;;  %v1612_v39 = vpop.f32.mrb[39].mxu0  ;;  %v1253_v40 = vmax.f32 %v1247_v35, 0.0 }
 0x81a   :  { %v1254_v42 = vmax.f32 %v1250_v38, 0.0 }
 0x81c   :  { %v1255_v43 = vpack.c.bf16 %v1254_v42, %v1253_v40 }
 0x81e   :  { %1622 = vmatmul.mubr.msk.bf16.vlgmr.msra.gmra.mrb[36].mxu1 %vm1295_vm6, %v1255_v43 }
 0x8f1   :  { %v1333_v44 = vpop.f32.mrb[36].mxu1 }
 0x8f2   :  { %v1334_v45 = vadd.f32 %v1435_v0, %v1333_v44  ;;  %v1623_v41 = vpop.f32.mrb[37].mxu1 }
 0x8f3   :  { %v1336_v46 = vpop.f32.mrb[38].mxu1 }
 0x8f4   :  { %v1337_v47 = vadd.f32 %v1435_v0, %v1336_v46  ;;  %v1624_v48 = vpop.f32.mrb[39].mxu1  ;;  %v1340_v49 = vadd.f32 %v1334_v45, %v1183_v28 }
 0x8f6   :  { %v1344_v50 = vsel %vm80_vm1, %v1340_v49, 0.0  ;;  %v1341_v51 = vadd.f32 %v1337_v47, %v1184_v29 }
 0x8f7   :  { %1345 = vadd.xlane.f32.xlu0 %v1344_v50 }
 0x8f8   :  { %v1347_v52 = vsel %vm80_vm1, %v1341_v51, 0.0 }
 0x8f9   :  { %1348 = vadd.xlane.f32.xlu1 %v1347_v52 }
 0x984   :  { %v1346_v53 = vpop.xlane.xlu0 %1345 }
 0x985   :  { %v1350_v54 = vmul.f32 0.03125, %v1346_v53 }
 0x986   :  { %v1349_v55 = vpop.xlane.xlu1 %1348 }
 0x987   :  { %v1352_v56 = vsub.f32 %v1340_v49, %v1350_v54  ;;  %v1351_v57 = vmul.f32 0.03125, %v1349_v55 }
 0x989   :  { %v1353_v58 = vsub.f32 %v1341_v51, %v1351_v57  ;;  %v1354_v59 = vmul.f32 %v1352_v56, %v1352_v56 }
 0x98b   :  { %v1356_v9 = vsel %vm80_vm1, %v1354_v59, 0.0  ;;  %v1355_v60 = vmul.f32 %v1353_v58, %v1353_v58 }
 0x98c   :  { %1357 = vadd.xlane.f32.xlu0 %v1356_v9 }
 0x98d   :  { %v1359_v61 = vsel %vm80_vm1, %v1355_v60, 0.0 }
 0x98e   :  { %1360 = vadd.xlane.f32.xlu1 %v1359_v61 }
 0xa19   :  { %v1358_v63 = vpop.xlane.xlu0 %1357 }
 0xa1a   :  { %v1362_v1 = vmul.f32 0.03125, %v1358_v63 }
 0xa1b   :  { %v1361_v62 = vpop.xlane.xlu1 %1360 }
 0xa1c   :  { %v1364_v2 = vadd.f32 1e-05, %v1362_v1  ;;  %v1363_v4 = vmul.f32 0.03125, %v1361_v62 }
 0xa1e   :  { %1704 = vrsqrt.f32 %v1364_v2  ;;  %v1365_v5 = vadd.f32 1e-05, %v1363_v4 }
 0xa20   :  { %1706 = vrsqrt.f32 %v1365_v5 }
 0xa28   :  { %v1705_v6 = vpop.eup %1704 }
 0xa29   :  { %v1368_v7 = vmul.f32 %v1705_v6, %v1352_v56 }
 0xa2a   :  { %v1707_v8 = vpop.eup %1706 }
 0xa2b   :  { %v1376_v11 = vmul.f32 %v1441_v3, %v1368_v7  ;;  %v1369_v13 = vmul.f32 %v1707_v8, %v1353_v58 }
 0xa2d   :  { %v1384_v14 = vadd.f32 %v1442_v10, %v1376_v11  ;;  %v1377_v15 = vmul.f32 %v1441_v3, %v1369_v13 }
 0xa2f   :  { %v1445_v16 = vpack.c.bf16 %v1384_v14, %v1384_v14  ;;  %v1385_v17 = vadd.f32 %v1442_v10, %v1377_v15 }
 0xa31   :  { %1395 = vst.msk [vmem:[%s2098_s14] sm:$0xf] %vm1394_vm7, %v1445_v16  ;;  %v1446_v18 = vpack.c.bf16 %v1385_v17, %v1385_v17 }
 0xa33   :  { %1396 = vst.msk [vmem:[%s2098_s14 + $0x4] sm:$0xf] %vm1394_vm7, %v1446_v18 }

// kernel: translation_forward.8
= control target key start
LH: loop header
LB: loop body
LE: loop exit
PB: predicated region body
PF: predicated region fallthrough
CT: control target
= control target key end

     0   :  { %s4463_s0 = inlined_call_operand.vmem [shape: bf16[16,32], index: 0, kind: input, shape index: {}]   ;;  %s4464_s1 = inlined_call_operand.vmem [shape: bf16[16,32], index: 1, kind: input, shape index: {}]   ;;  %s4465_s2 = inlined_call_operand.vmem [shape: f32[8,8], index: 2, kind: input, shape index: {}]   ;;  %s4466_s3 = inlined_call_operand.vmem [shape: f32[2,1,8], index: 3, kind: input, shape index: {}]   ;;  %s4467_s4 = inlined_call_operand.vmem [shape: f32[2,1,8], index: 4, kind: input, shape index: {}]   ;;  %s4468_s5 = inlined_call_operand.vmem [shape: bf16[32,96], index: 5, kind: input, shape index: {}]   ;;  %s4469_s6 = inlined_call_operand.vmem [shape: f32[1,96], index: 6, kind: input, shape index: {}]   ;;  %s4470_s7 = inlined_call_operand.vmem [shape: bf16[32,32], index: 7, kind: input, shape index: {}]   ;;  %s4471_s8 = inlined_call_operand.hbm [shape: f32[1,32], index: 8, kind: input, shape index: {}]   ;;  %s4472_s9 = inlined_call_operand.vmem [shape: bf16[32,32], index: 9, kind: input, shape index: {}]   ;;  %s4473_s10 = inlined_call_operand.hbm [shape: f32[1,32], index: 10, kind: input, shape index: {}]   ;;  %s4474_s11 = inlined_call_operand.vmem [shape: bf16[32,64], index: 11, kind: input, shape index: {}]   ;;  %s4475_s12 = inlined_call_operand.hbm [shape: f32[1,64], index: 12, kind: input, shape index: {}]   ;;  %s4476_s13 = inlined_call_operand.vmem [shape: bf16[32,32], index: 13, kind: input, shape index: {}]   ;;  %s4477_s14 = inlined_call_operand.hbm [shape: f32[1,32], index: 14, kind: input, shape index: {}]   ;;  %s4478_s15 = inlined_call_operand.hbm [shape: f32[1,32], index: 15, kind: input, shape index: {}]   ;;  %s4479_s16 = inlined_call_operand.hbm [shape: f32[1,32], index: 16, kind: input, shape index: {}]   ;;  %s4480_s17 = inlined_call_operand.hbm [shape: f32[1,32], index: 17, kind: input, shape index: {}]   ;;  %s4481_s18 = inlined_call_operand.hbm [shape: f32[1,32], index: 18, kind: input, shape index: {}]   ;;  %s4482_s19 = inlined_call_operand.vmem [shape: bf16[32,64], index: 19, kind: input, shape index: {}]   ;;  %s4483_s20 = inlined_call_operand.hbm [shape: f32[1,64], index: 20, kind: input, shape index: {}]   ;;  %s4484_s21 = inlined_call_operand.vmem [shape: bf16[64,32], index: 21, kind: input, shape index: {}]   ;;  %s4485_s22 = inlined_call_operand.hbm [shape: f32[1,32], index: 22, kind: input, shape index: {}]   ;;  %s4486_s23 = inlined_call_operand.hbm [shape: f32[1,32], index: 23, kind: input, shape index: {}]   ;;  %s4487_s24 = inlined_call_operand.hbm [shape: f32[1,32], index: 24, kind: input, shape index: {}]   ;;  %s4488_s25 = inlined_call_operand.vmem [shape: bf16[16,32], index: 25, kind: output, shape index: {}]  }
   0x1   :  { %4495 = sst [smem:[#allocation28_spill]] %s4463_s0 }
   0x2   :  { %4496 = sst [smem:[#allocation29_spill]] %s4464_s1 }
   0x3   :  { %4497 = sst [smem:[#allocation30_spill]] %s4465_s2 }
   0x4   :  { %4498 = sst [smem:[#allocation31_spill]] %s4466_s3 }
   0x5   :  { %4499 = sst [smem:[#allocation32_spill]] %s4467_s4 }
   0x6   :  { %4500 = sst [smem:[#allocation33_spill]] %s4468_s5 }
   0x7   :  { %4501 = sst [smem:[#allocation34_spill]] %s4469_s6 }
   0x8   :  { %4502 = sst [smem:[#allocation35_spill]] %s4470_s7 }
   0x9   :  { %4503 = sst [smem:[#allocation36_spill]] %s4471_s8 }
   0xa   :  { %4504 = sst [smem:[#allocation37_spill]] %s4472_s9 }
   0xb   :  { %30 = vsyncpa [#allocation3], 0 }
   0xc   :  { %31 = vsyncpa [#allocation5], 0 }
   0xd   :  { %32 = vsyncpa [#allocation8], 0 }
   0xe   :  { %33 = vsyncpa [#allocation11], 0 }
   0xf   :  { %34 = vsyncpa [#allocation14], 0 }
  0x10   :  { %35 = vsyncpa [#allocation17], 0 }
  0x11   :  { %36 = vsyncpa [#allocation20], 0  ;;  %s3630_s29 = smov [#allocation4]   ;;  %s3631_s6 = smov [#allocation7]  }
  0x12   :  { %s71_s2 = sshll.u32 %s3630_s29, 4  ;;  %s95_s30 = sshll.u32 %s3631_s6, 4  ;;  %s72_s2 = int_to_ptr.vmem [resolvable:$true] %s71_s2  ;;  %s96_s30 = int_to_ptr.vmem [resolvable:$true] %s95_s30 }
  0x13   :  { %s3352_s26 = scalar_lea.hbm %s4473_s10, 16 }
  0x14   :  { %p3353_p0 = scmp.ne.s32.totalorder %s4473_s10, %s3352_s26  ;;  %p3356_p1 = scmp.lt.u32.totalorder %s3352_s26, %s4473_s10 }
  0x16   :  { %p3358_p2 = pnand %p3356_p1, %p3353_p0 }
  0x18   :  { %3361 = shalt.err (!%p3358_p2)
}
  0x19   :  { %s3362_s28 = scalar_lea.vmem %s72_s2, 16  ;;  %s3366_s9 = scalar_lea.vmem %s72_s2, 32 }
  0x1a   :  { %p3363_p3 = scmp.ne.s32.totalorder %s72_s2, %s3362_s28  ;;  %p3367_p4 = scmp.lt.s32.totalorder %s72_s2, %s72_s2 }
  0x1b   :  { %p3368_p5 = scmp.lt.s32.totalorder %s3366_s9, %s3362_s28 }
  0x1d   :  { %p3369_p6 = por %p3368_p5, %p3367_p4 }
  0x1f   :  { %p3370_p7 = pnand %p3369_p6, %p3363_p3 }
  0x21   :  { %3373 = shalt.err (!%p3370_p7)
}
  0x22   :  { %74 = dma.hbm_to_vmem [thread:$0]  %s4473_s10, 16, %s72_s2, [#allocation5]  }
  0x23   :  { %s3374_s7 = scalar_lea.hbm %s4477_s14, 16 }
  0x24   :  { %p3375_p8 = scmp.ne.s32.totalorder %s4477_s14, %s3374_s7  ;;  %p3378_p9 = scmp.lt.u32.totalorder %s3374_s7, %s4477_s14 }
  0x26   :  { %p3380_p10 = pnand %p3378_p9, %p3375_p8 }
  0x28   :  { %3383 = shalt.err (!%p3380_p10)
}
  0x29   :  { %s3384_s27 = scalar_lea.vmem %s96_s30, 16  ;;  %s3388_s4 = scalar_lea.vmem %s96_s30, 32 }
  0x2a   :  { %p3385_p11 = scmp.ne.s32.totalorder %s96_s30, %s3384_s27  ;;  %p3389_p12 = scmp.lt.s32.totalorder %s96_s30, %s96_s30 }
  0x2b   :  { %p3390_p13 = scmp.lt.s32.totalorder %s3388_s4, %s3384_s27 }
  0x2d   :  { %p3391_p0 = por %p3390_p13, %p3389_p12 }
  0x2f   :  { %p3392_p1 = pnand %p3391_p0, %p3385_p11 }
  0x31   :  { %3395 = shalt.err (!%p3392_p1)
}
  0x32   :  { %98 = dma.hbm_to_vmem [thread:$0]  %s4477_s14, 16, %s96_s30, [#allocation8]  }
  0x33   :  { %s3632_s28 = smov [#allocation10]   ;;  %s3633_s5 = smov [#allocation13]  }
  0x34   :  { %s115_s9 = sshll.u32 %s3632_s28, 4  ;;  %s135_s0 = sshll.u32 %s3633_s5, 4  ;;  %s116_s9 = int_to_ptr.vmem [resolvable:$true] %s115_s9  ;;  %s136_s0 = int_to_ptr.vmem [resolvable:$true] %s135_s0 }
  0x35   :  { %s3396_s7 = scalar_lea.hbm %s4479_s16, 16 }
  0x36   :  { %p3397_p2 = scmp.ne.s32.totalorder %s4479_s16, %s3396_s7  ;;  %p3400_p3 = scmp.lt.u32.totalorder %s3396_s7, %s4479_s16 }
  0x38   :  { %p3402_p4 = pnand %p3400_p3, %p3397_p2 }
  0x3a   :  { %3405 = shalt.err (!%p3402_p4)
}
  0x3b   :  { %s3406_s14 = scalar_lea.vmem %s116_s9, 16  ;;  %s3410_s30 = scalar_lea.vmem %s116_s9, 32 }
  0x3c   :  { %p3407_p5 = scmp.ne.s32.totalorder %s116_s9, %s3406_s14  ;;  %p3411_p6 = scmp.lt.s32.totalorder %s116_s9, %s116_s9 }
  0x3d   :  { %p3412_p7 = scmp.lt.s32.totalorder %s3410_s30, %s3406_s14 }
  0x3f   :  { %p3413_p8 = por %p3412_p7, %p3411_p6 }
  0x41   :  { %p3414_p9 = pnand %p3413_p8, %p3407_p5 }
  0x43   :  { %3417 = shalt.err (!%p3414_p9)
}
  0x44   :  { %118 = dma.hbm_to_vmem [thread:$0]  %s4479_s16, 16, %s116_s9, [#allocation11]  }
  0x45   :  { %s3418_s28 = scalar_lea.hbm %s4481_s18, 16 }
  0x46   :  { %p3419_p10 = scmp.ne.s32.totalorder %s4481_s18, %s3418_s28  ;;  %p3422_p11 = scmp.lt.u32.totalorder %s3418_s28, %s4481_s18 }
  0x48   :  { %p3424_p12 = pnand %p3422_p11, %p3419_p10 }
  0x4a   :  { %3427 = shalt.err (!%p3424_p12)
}
  0x4b   :  { %s3428_s3 = scalar_lea.vmem %s136_s0, 16  ;;  %s3432_s26 = scalar_lea.vmem %s136_s0, 32 }
  0x4c   :  { %p3429_p13 = scmp.ne.s32.totalorder %s136_s0, %s3428_s3  ;;  %p3433_p0 = scmp.lt.s32.totalorder %s136_s0, %s136_s0 }
  0x4d   :  { %p3434_p1 = scmp.lt.s32.totalorder %s3432_s26, %s3428_s3 }
  0x4f   :  { %p3435_p2 = por %p3434_p1, %p3433_p0 }
  0x51   :  { %p3436_p3 = pnand %p3435_p2, %p3429_p13 }
  0x53   :  { %3439 = shalt.err (!%p3436_p3)
}
  0x54   :  { %138 = dma.hbm_to_vmem [thread:$0]  %s4481_s18, 16, %s136_s0, [#allocation14]  }
  0x55   :  { %s3634_s1 = smov [#allocation16]   ;;  %s3635_s14 = smov [#allocation2]  }
  0x56   :  { %s159_s8 = sshll.u32 %s3634_s1, 4  ;;  %s59_s30 = sshll.u32 %s3635_s14, 4  ;;  %s160_s8 = int_to_ptr.vmem [resolvable:$true] %s159_s8  ;;  %s60_s30 = int_to_ptr.vmem [resolvable:$true] %s59_s30 }
  0x57   :  { %s3440_s10 = scalar_lea.hbm %s4485_s22, 16 }
  0x58   :  { %p3441_p4 = scmp.ne.s32.totalorder %s4485_s22, %s3440_s10  ;;  %p3444_p5 = scmp.lt.u32.totalorder %s3440_s10, %s4485_s22 }
  0x5a   :  { %p3446_p6 = pnand %p3444_p5, %p3441_p4 }
  0x5c   :  { %3449 = shalt.err (!%p3446_p6)
}
  0x5d   :  { %s3450_s18 = scalar_lea.vmem %s160_s8, 16  ;;  %s3454_s0 = scalar_lea.vmem %s160_s8, 32 }
  0x5e   :  { %p3451_p7 = scmp.ne.s32.totalorder %s160_s8, %s3450_s18  ;;  %p3455_p8 = scmp.lt.s32.totalorder %s160_s8, %s160_s8 }
  0x5f   :  { %p3456_p9 = scmp.lt.s32.totalorder %s3454_s0, %s3450_s18 }
  0x61   :  { %p3457_p10 = por %p3456_p9, %p3455_p8 }
  0x63   :  { %p3458_p11 = pnand %p3457_p10, %p3451_p7 }
  0x65   :  { %3461 = shalt.err (!%p3458_p11)
}
  0x66   :  { %162 = dma.hbm_to_vmem [thread:$0]  %s4485_s22, 16, %s160_s8, [#allocation17]  }
  0x67   :  { %s4505_s16 = sld [smem:[#allocation36_spill]] }
  0x6d   :  { %s3462_s9 = scalar_lea.hbm %s4505_s16, 16 }
  0x6e   :  { %p3463_p12 = scmp.ne.s32.totalorder %s4505_s16, %s3462_s9  ;;  %p3466_p13 = scmp.lt.u32.totalorder %s3462_s9, %s4505_s16 }
  0x70   :  { %p3468_p0 = pnand %p3466_p13, %p3463_p12 }
  0x72   :  { %3471 = shalt.err (!%p3468_p0)
}
  0x73   :  { %s3472_s10 = scalar_lea.vmem %s60_s30, 16  ;;  %s3476_s2 = scalar_lea.vmem %s60_s30, 32 }
  0x74   :  { %p3473_p1 = scmp.ne.s32.totalorder %s60_s30, %s3472_s10  ;;  %p3477_p2 = scmp.lt.s32.totalorder %s60_s30, %s60_s30 }
  0x75   :  { %p3478_p3 = scmp.lt.s32.totalorder %s3476_s2, %s3472_s10 }
  0x77   :  { %p3479_p4 = por %p3478_p3, %p3477_p2 }
  0x79   :  { %p3480_p5 = pnand %p3479_p4, %p3473_p1 }
  0x7b   :  { %3483 = shalt.err (!%p3480_p5)
}
  0x7c   :  { %62 = dma.hbm_to_vmem [thread:$0]  %s4505_s16, 16, %s60_s30, [#allocation3]  }
  0x7d   :  { %s3636_s28 = smov [#allocation6]   ;;  %s3637_s29 = smov [#allocation9]  }
  0x7e   :  { %s83_s5 = sshll.u32 %s3636_s28, 4  ;;  %s105_s18 = sshll.u32 %s3637_s29, 4  ;;  %s84_s5 = int_to_ptr.vmem [resolvable:$true] %s83_s5  ;;  %s106_s18 = int_to_ptr.vmem [resolvable:$true] %s105_s18 }
  0x7f   :  { %s3484_s7 = scalar_lea.hbm %s4475_s12, 16 }
  0x80   :  { %p3485_p6 = scmp.ne.s32.totalorder %s4475_s12, %s3484_s7  ;;  %p3488_p7 = scmp.lt.u32.totalorder %s3484_s7, %s4475_s12 }
  0x82   :  { %p3490_p8 = pnand %p3488_p7, %p3485_p6 }
  0x84   :  { %3493 = shalt.err (!%p3490_p8)
}
  0x85   :  { %s3494_s30 = scalar_lea.vmem %s84_s5, 16  ;;  %s3498_s16 = scalar_lea.vmem %s84_s5, 32 }
  0x86   :  { %p3495_p9 = scmp.ne.s32.totalorder %s84_s5, %s3494_s30  ;;  %p3499_p10 = scmp.lt.s32.totalorder %s84_s5, %s84_s5 }
  0x87   :  { %p3500_p11 = scmp.lt.s32.totalorder %s3498_s16, %s3494_s30 }
  0x89   :  { %p3501_p12 = por %p3500_p11, %p3499_p10 }
  0x8b   :  { %p3502_p13 = pnand %p3501_p12, %p3495_p9 }
  0x8d   :  { %3505 = shalt.err (!%p3502_p13)
}
  0x8e   :  { %86 = dma.hbm_to_vmem [thread:$0]  %s4475_s12, 16, %s84_s5, [#allocation5]  }
  0x8f   :  { %s3506_s2 = scalar_lea.hbm %s4478_s15, 16 }
  0x90   :  { %p3507_p0 = scmp.ne.s32.totalorder %s4478_s15, %s3506_s2  ;;  %p3510_p1 = scmp.lt.u32.totalorder %s3506_s2, %s4478_s15 }
  0x92   :  { %p3512_p2 = pnand %p3510_p1, %p3507_p0 }
  0x94   :  { %3515 = shalt.err (!%p3512_p2)
}
  0x95   :  { %s3516_s0 = scalar_lea.vmem %s106_s18, 16  ;;  %s3520_s6 = scalar_lea.vmem %s106_s18, 32 }
  0x96   :  { %p3517_p3 = scmp.ne.s32.totalorder %s106_s18, %s3516_s0  ;;  %p3521_p4 = scmp.lt.s32.totalorder %s106_s18, %s106_s18 }
  0x97   :  { %p3522_p5 = scmp.lt.s32.totalorder %s3520_s6, %s3516_s0 }
  0x99   :  { %p3523_p6 = por %p3522_p5, %p3521_p4 }
  0x9b   :  { %p3524_p7 = pnand %p3523_p6, %p3517_p3 }
  0x9d   :  { %3527 = shalt.err (!%p3524_p7)
}
  0x9e   :  { %108 = dma.hbm_to_vmem [thread:$0]  %s4478_s15, 16, %s106_s18, [#allocation8]  }
  0x9f   :  { %s3638_s7 = smov [#allocation12]   ;;  %s3639_s26 = smov [#allocation15]  }
  0xa0   :  { %s125_s3 = sshll.u32 %s3638_s7, 4  ;;  %s147_s9 = sshll.u32 %s3639_s26, 4  ;;  %s126_s3 = int_to_ptr.vmem [resolvable:$true] %s125_s3  ;;  %s148_s9 = int_to_ptr.vmem [resolvable:$true] %s147_s9 }
  0xa1   :  { %s3528_s16 = scalar_lea.hbm %s4480_s17, 16 }
  0xa2   :  { %p3529_p8 = scmp.ne.s32.totalorder %s4480_s17, %s3528_s16  ;;  %p3532_p9 = scmp.lt.u32.totalorder %s3528_s16, %s4480_s17 }
  0xa4   :  { %p3534_p10 = pnand %p3532_p9, %p3529_p8 }
  0xa6   :  { %3537 = shalt.err (!%p3534_p10)
}
  0xa7   :  { %s3538_s15 = scalar_lea.vmem %s126_s3, 16  ;;  %s3542_s18 = scalar_lea.vmem %s126_s3, 32 }
  0xa8   :  { %p3539_p11 = scmp.ne.s32.totalorder %s126_s3, %s3538_s15  ;;  %p3543_p12 = scmp.lt.s32.totalorder %s126_s3, %s126_s3 }
  0xa9   :  { %p3544_p13 = scmp.lt.s32.totalorder %s3542_s18, %s3538_s15 }
  0xab   :  { %p3545_p0 = por %p3544_p13, %p3543_p12 }
  0xad   :  { %p3546_p1 = pnand %p3545_p0, %p3539_p11 }
  0xaf   :  { %3549 = shalt.err (!%p3546_p1)
}
  0xb0   :  { %128 = dma.hbm_to_vmem [thread:$0]  %s4480_s17, 16, %s126_s3, [#allocation11]  }
  0xb1   :  { %s3550_s29 = scalar_lea.hbm %s4483_s20, 16 }
  0xb2   :  { %p3551_p2 = scmp.ne.s32.totalorder %s4483_s20, %s3550_s29  ;;  %p3554_p3 = scmp.lt.u32.totalorder %s3550_s29, %s4483_s20 }
  0xb4   :  { %p3556_p4 = pnand %p3554_p3, %p3551_p2 }
  0xb6   :  { %3559 = shalt.err (!%p3556_p4)
}
  0xb7   :  { %s3560_s7 = scalar_lea.vmem %s148_s9, 16  ;;  %s3564_s26 = scalar_lea.vmem %s148_s9, 32 }
  0xb8   :  { %p3561_p5 = scmp.ne.s32.totalorder %s148_s9, %s3560_s7  ;;  %p3565_p6 = scmp.lt.s32.totalorder %s148_s9, %s148_s9 }
  0xb9   :  { %p3566_p7 = scmp.lt.s32.totalorder %s3564_s26, %s3560_s7 }
  0xbb   :  { %p3567_p8 = por %p3566_p7, %p3565_p6 }
  0xbd   :  { %p3568_p9 = pnand %p3567_p8, %p3561_p5 }
  0xbf   :  { %3571 = shalt.err (!%p3568_p9)
}
  0xc0   :  { %150 = dma.hbm_to_vmem [thread:$0]  %s4483_s20, 16, %s148_s9, [#allocation14]  }
  0xc1   :  { %s3640_s1 = smov [#allocation18]   ;;  %s3641_s16 = smov [#allocation19]  }
  0xc2   :  { %s169_s30 = sshll.u32 %s3640_s1, 4  ;;  %s179_s14 = sshll.u32 %s3641_s16, 4  ;;  %s170_s30 = int_to_ptr.vmem [resolvable:$true] %s169_s30  ;;  %s180_s14 = int_to_ptr.vmem [resolvable:$true] %s179_s14 }
  0xc3   :  { %s3572_s10 = scalar_lea.hbm %s4486_s23, 16 }
  0xc4   :  { %p3573_p10 = scmp.ne.s32.totalorder %s4486_s23, %s3572_s10  ;;  %p3576_p11 = scmp.lt.u32.totalorder %s3572_s10, %s4486_s23 }
  0xc6   :  { %p3578_p12 = pnand %p3576_p11, %p3573_p10 }
  0xc8   :  { %3581 = shalt.err (!%p3578_p12)
}
  0xc9   :  { %s3582_s20 = scalar_lea.vmem %s170_s30, 16  ;;  %s3586_s9 = scalar_lea.vmem %s170_s30, 32 }
  0xca   :  { %p3583_p13 = scmp.ne.s32.totalorder %s170_s30, %s3582_s20  ;;  %p3587_p0 = scmp.lt.s32.totalorder %s170_s30, %s170_s30 }
  0xcb   :  { %p3588_p1 = scmp.lt.s32.totalorder %s3586_s9, %s3582_s20 }
  0xcd   :  { %p3589_p2 = por %p3588_p1, %p3587_p0 }
  0xcf   :  { %p3590_p3 = pnand %p3589_p2, %p3583_p13 }
  0xd1   :  { %3593 = shalt.err (!%p3590_p3)
}
  0xd2   :  { %172 = dma.hbm_to_vmem [thread:$0]  %s4486_s23, 16, %s170_s30, [#allocation17]  }
  0xd3   :  { %s3594_s6 = scalar_lea.hbm %s4487_s24, 16 }
  0xd4   :  { %p3595_p4 = scmp.ne.s32.totalorder %s4487_s24, %s3594_s6  ;;  %p3598_p5 = scmp.lt.u32.totalorder %s3594_s6, %s4487_s24 }
  0xd6   :  { %p3600_p6 = pnand %p3598_p5, %p3595_p4 }
  0xd8   :  { %3603 = shalt.err (!%p3600_p6)
}
  0xd9   :  { %s3604_s17 = scalar_lea.vmem %s180_s14, 16  ;;  %s3608_s3 = scalar_lea.vmem %s180_s14, 32 }
  0xda   :  { %p3605_p7 = scmp.ne.s32.totalorder %s180_s14, %s3604_s17  ;;  %p3609_p8 = scmp.lt.s32.totalorder %s180_s14, %s180_s14 }
  0xdb   :  { %p3610_p9 = scmp.lt.s32.totalorder %s3608_s3, %s3604_s17 }
  0xdd   :  { %p3611_p10 = por %p3610_p9, %p3609_p8 }
  0xdf   :  { %p3612_p11 = pnand %p3611_p10, %p3605_p7 }
  0xe1   :  { %3615 = shalt.err (!%p3612_p11)
}
  0xe2   :  { %182 = dma.hbm_to_vmem [thread:$0]  %s4487_s24, 16, %s180_s14, [#allocation20]  }
  0xe3   :  { %3616 = dma.done.wait [#allocation3], 16  }
  0xe4   :  { %3617 = vsyncadd [#allocation3], 4294967280 }
  0xe5   :  { %3618 = dma.done.wait [#allocation5], 32  }
  0xe6   :  { %3619 = vsyncadd [#allocation5], 4294967264 }
  0xe7   :  { %3620 = dma.done.wait [#allocation8], 32  }
  0xe8   :  { %3621 = vsyncadd [#allocation8], 4294967264 }
  0xe9   :  { %3622 = dma.done.wait [#allocation11], 32  }
  0xea   :  { %3623 = vsyncadd [#allocation11], 4294967264 }
  0xeb   :  { %3624 = dma.done.wait [#allocation14], 32  }
  0xec   :  { %3625 = vsyncadd [#allocation14], 4294967264 }
  0xed   :  { %3626 = dma.done.wait [#allocation17], 32  }
  0xee   :  { %3627 = vsyncadd [#allocation17], 4294967264 }
  0xef   :  { %3628 = dma.done.wait [#allocation20], 16  }
  0xf0   :  { %3629 = vsyncadd [#allocation20], 4294967280  ;;  %v3642_v0 = vmov 0.0   ;;  %vm3643_vm0 = vmmov 0   ;;  %s4506_s16 = sld [smem:[#allocation33_spill]]  ;;  %s4507_s15 = sld [smem:[#allocation28_spill]] }
  0xf1   :  { %2947 = vmatprep.subr.bf16.mxu1 %v3642_v0  ;;  %2951 = vmatprep.mubr.msk.bf16.mxu1 %vm3643_vm0, %v3642_v0  ;;  %vm254_vm1 = vcmask 261120   ;;  %s4508_s22 = sld [smem:[#allocation34_spill]]  ;;  %s3644_s20 = smov 120   ;;  %vm312_vm2 = vcmask 64512   ;;  %vm378_vm3 = vcmask 1043456   ;;  %vm771_vm4 = vcmask 130048  }
  0xf2   :  { %2961 = vmatprep.subr.bf16.mxu0 %v3642_v0  ;;  %2963 = vmatprep.mubr.msk.bf16.mxu0 %vm3643_vm0, %v3642_v0  ;;  %s3645_s9 = smov 96   ;;  %s3646_s8 = smov 80   ;;  %vm773_vm5 = vcmask 195584   ;;  %vm2667_vm6 = vcmask 523264   ;;  %vm2766_vm7 = vcmask 257024  }
  0xf3   :  { %s3647_s28 = smov 88   ;;  %s3648_s29 = smov 72  }
  0xf4   :  { %s3649_s0 = smov 112   ;;  %s3650_s6 = smov 104  }
  0xf5   :  { %s4509_s7 = sld [smem:[#allocation30_spill]]  ;;  %s4510_s3 = sld [smem:[#allocation31_spill]] }
  0xf6   :  { %v3257_v1 = vld [vmem:[%s4506_s16] sm:$0xff]   ;;  %v3258_v2 = vld [vmem:[%s4506_s16 + $0x8] sm:$0xff]   ;;  %s3651_s24 = smov 56   ;;  %s3652_s30 = smov 64  }
  0xf7   :  { %2948 = vmatpush3.bf16.msra.mxu1 %v3257_v1  ;;  %v3947_v3 = vld [vmem:[%s4507_s15] sm:$0xff]   ;;  %s3653_s16 = smov 48   ;;  %s3654_s14 = smov 40  }
  0xf8   :  { %2949 = vmatprep.subr.bf16.mxu1 %v3642_v0  ;;  %v2780_v4 = vld [vmem:[%s4508_s22] ss:$0 sm:$0xff]  ;;  %s4511_s10 = sld [smem:[#allocation35_spill]]  ;;  %s3655_s15 = smov 8  }
  0xf9   :  { %s3656_s22 = smov 16   ;;  %s3657_s12 = smov 24  }
  0xfa   :  { %s4512_s1 = sld [smem:[#allocation29_spill]] }
  0xfb   :  { %2950 = vmatpush3.bf16.msra.mxu1 %v3258_v2  ;;  %v299_v35 = vld [vmem:[%s4509_s7] sm:$0xff] }
  0xfc   :  { %2955 = vmatprep.subr.bf16.mxu1 %v3642_v0  ;;  %v2785_v36 = vld [vmem:[%s4510_s3] ss:$0 sm:$0xff]  ;;  %v2795_v2 = vld [vmem:[%s4510_s3 + $0x1] ss:$0 sm:$0xff] }
  0xfd   :  { %v307_v37 = vadd.f32 %v2785_v36, %v299_v35 }
  0xfe   :  { %2952 = vmatmul.mubr.msk.bf16.vlgmr.msra.gmra.mrb[0].mxu1 %vm254_vm1, %v3947_v3 }
  0xff   :  { %2957 = vmatprep.mubr.msk.bf16.mxu1 %vm3643_vm0, %v3642_v0 }
 0x1d1   :  { %v292_v5 = vpop.f32.mrb[0].mxu1 }
 0x1d2   :  { %v293_v6 = vadd.f32 %v2780_v4, %v292_v5  ;;  %v2953_v7 = vpop.f32.mrb[1].mxu1  ;;  %v783_v5 = vadd.f32 %v2795_v2, %v299_v35 }
 0x1d3   :  { %v295_v8 = vpop.f32.mrb[2].mxu1 }
 0x1d4   :  { %v3958_v9 = vpack.c.bf16 %v293_v6, %v293_v6  ;;  %v2954_v10 = vpop.f32.mrb[3].mxu1  ;;  %v296_v11 = vadd.f32 %v2780_v4, %v295_v8 }
 0x1d6   :  { %422 = vrot.lane.b32.xlu1 %v3958_v9, %s3644_s20  ;;  %310 = vrot.lane.b32.xlu0 %v3958_v9, %s3645_s9  ;;  %v3972_v12 = vpack.c.bf16 %v296_v11, %v296_v11 }
 0x1da   :  { %536 = vrot.lane.b32.xlu1 %v3958_v9, %s3646_s8  ;;  %424 = vrot.lane.b32.xlu0 %v3958_v9, %s3647_s28 }
 0x1de   :  { %648 = vrot.lane.b32.xlu1 %v3958_v9, %s3648_s29  ;;  %534 = vrot.lane.b32.xlu0 %v3958_v9, %s3649_s0 }
 0x1e2   :  { %646 = vrot.lane.b32.xlu0 %v3958_v9, %s3650_s6  ;;  %786 = vrot.lane.b32.xlu1 %v3972_v12, %s3645_s9 }
 0x1e6   :  { %898 = vrot.lane.b32.xlu0 %v3972_v12, %s3647_s28  ;;  %896 = vrot.lane.b32.xlu1 %v3972_v12, %s3644_s20 }
 0x1ea   :  { %1010 = vrot.lane.b32.xlu0 %v3972_v12, %s3646_s8  ;;  %1008 = vrot.lane.b32.xlu1 %v3972_v12, %s3649_s0 }
 0x1ee   :  { %1122 = vrot.lane.b32.xlu0 %v3972_v12, %s3648_s29  ;;  %1120 = vrot.lane.b32.xlu1 %v3972_v12, %s3650_s6 }
 0x248   :  { %v311_v13 = vpop.permute.xlu0 %310  ;;  %v423_v16 = vpop.permute.xlu1 %422 }
 0x249   :  { %v317_v14 = vsel %vm312_vm2, %v311_v13, 0 }
 0x24a   :  { %2956 = vmatpush3.bf16.xpose.msra.mxu1 %v317_v14 }
 0x24b   :  { %2967 = vmatprep.subr.bf16.mxu1 %v3642_v0 }
 0x24c   :  { %v425_v15 = vpop.permute.xlu0 %424  ;;  %v537_v18 = vpop.permute.xlu1 %536 }
 0x24d   :  { %v430_v17 = vsel %vm312_vm2, %v425_v15, 0  ;;  %v542_v19 = vsel %vm312_vm2, %v537_v18, 0 }
 0x250   :  { %v649_v20 = vpop.permute.xlu1 %648  ;;  %v535_v21 = vpop.permute.xlu0 %534 }
 0x251   :  { %2958 = vmatmul.mubr.msk.bf16.vlgmr.msra.gmra.mrb[4].mxu1 %vm312_vm2, %v3958_v9  ;;  %v654_v22 = vsel %vm312_vm2, %v649_v20, 0 }
 0x252   :  { %2968 = vmatpush3.bf16.xpose.msra.mxu1 %v430_v17  ;;  %2969 = vmatprep.mubr.msk.bf16.mxu1 %vm3643_vm0, %v3642_v0 }
 0x253   :  { %2979 = vmatprep.subr.bf16.mxu1 %v3642_v0 }
 0x254   :  { %v787_v23 = vpop.permute.xlu1 %786  ;;  %v647_v24 = vpop.permute.xlu0 %646 }
 0x255   :  { %v792_v25 = vsel %vm312_vm2, %v787_v23, 0 }
 0x258   :  { %v899_v26 = vpop.permute.xlu0 %898  ;;  %v897_v29 = vpop.permute.xlu1 %896 }
 0x259   :  { %2970 = vmatmul.mubr.msk.bf16.vlgmr.msra.gmra.mrb[8].mxu1 %vm312_vm2, %v423_v16  ;;  %v904_v27 = vsel %vm312_vm2, %v899_v26, 0 }
 0x25a   :  { %2980 = vmatpush3.bf16.xpose.msra.mxu1 %v542_v19  ;;  %2981 = vmatprep.mubr.msk.bf16.mxu1 %vm3643_vm0, %v3642_v0 }
 0x25b   :  { %2991 = vmatprep.subr.bf16.mxu1 %v3642_v0 }
 0x25c   :  { %v1011_v28 = vpop.permute.xlu0 %1010  ;;  %v1009_v32 = vpop.permute.xlu1 %1008 }
 0x25d   :  { %v1016_v30 = vsel %vm312_vm2, %v1011_v28, 0 }
 0x260   :  { %v1123_v31 = vpop.permute.xlu0 %1122  ;;  %v1121_v34 = vpop.permute.xlu1 %1120 }
 0x261   :  { %2982 = vmatmul.mubr.msk.bf16.vlgmr.msra.gmra.mrb[12].mxu1 %vm312_vm2, %v535_v21  ;;  %v1128_v33 = vsel %vm312_vm2, %v1123_v31, 0 }
 0x262   :  { %2992 = vmatpush3.bf16.xpose.msra.mxu1 %v654_v22  ;;  %2993 = vmatprep.mubr.msk.bf16.mxu1 %vm3643_vm0, %v3642_v0 }
 0x263   :  { %3003 = vmatprep.subr.bf16.mxu1 %v3642_v0 }
 0x269   :  { %2994 = vmatmul.mubr.msk.bf16.vlgmr.msra.gmra.mrb[16].mxu1 %vm312_vm2, %v647_v24 }
 0x26a   :  { %3004 = vmatpush3.bf16.xpose.msra.mxu1 %v792_v25  ;;  %3005 = vmatprep.mubr.msk.bf16.mxu1 %vm3643_vm0, %v3642_v0 }
 0x26b   :  { %3015 = vmatprep.subr.bf16.mxu1 %v3642_v0 }
 0x271   :  { %3006 = vmatmul.mubr.msk.bf16.vlgmr.msra.gmra.mrb[20].mxu1 %vm312_vm2, %v3972_v12 }
 0x272   :  { %3016 = vmatpush3.bf16.xpose.msra.mxu1 %v904_v27  ;;  %3017 = vmatprep.mubr.msk.bf16.mxu1 %vm3643_vm0, %v3642_v0 }
 0x273   :  { %3027 = vmatprep.subr.bf16.mxu1 %v3642_v0 }
 0x279   :  { %3018 = vmatmul.mubr.msk.bf16.vlgmr.msra.gmra.mrb[24].mxu1 %vm312_vm2, %v897_v29 }
 0x27a   :  { %3028 = vmatpush3.bf16.xpose.msra.mxu1 %v1016_v30  ;;  %3029 = vmatprep.mubr.msk.bf16.mxu1 %vm3643_vm0, %v3642_v0 }
 0x27b   :  { %3039 = vmatprep.subr.bf16.mxu1 %v3642_v0 }
 0x281   :  { %3030 = vmatmul.mubr.msk.bf16.vlgmr.msra.gmra.mrb[28].mxu1 %vm312_vm2, %v1009_v32 }
 0x282   :  { %3040 = vmatpush3.bf16.xpose.msra.mxu1 %v1128_v33  ;;  %3041 = vmatprep.mubr.msk.bf16.mxu1 %vm3643_vm0, %v3642_v0 }
 0x283   :  { %3051 = vmatprep.subr.bf16.mxu1 %v3642_v0 }
 0x289   :  { %3042 = vmatmul.mubr.msk.bf16.vlgmr.msra.gmra.mrb[32].mxu1 %vm312_vm2, %v1121_v34 }
 0x28a   :  { %3055 = vmatprep.mubr.msk.bf16.mxu1 %vm3643_vm0, %v3642_v0 }
 0x324   :  { %v353_v38 = vpop.f32.mrb[4].mxu1 }
 0x325   :  { %v359_v39 = vmul.f32 0.35355338, %v353_v38  ;;  %v2959_v40 = vpop.f32.mrb[5].mxu1 }
 0x326   :  { %v356_v41 = vpop.f32.mrb[6].mxu1 }
 0x327   :  { %v2960_v42 = vpop.f32.mrb[7].mxu1  ;;  %v4038_v43 = vadd.f32 %v359_v39, %v307_v37 }
 0x329   :  { %v361_v44 = vsel %vm312_vm2, %v4038_v43, -inf }
 0x32a   :  { %362 = vmax.xlane.f32.xlu0 %v361_v44 }
 0x32c   :  { %v466_v45 = vpop.f32.mrb[8].mxu1 }
 0x32d   :  { %v472_v46 = vmul.f32 0.35355338, %v466_v45  ;;  %v2971_v47 = vpop.f32.mrb[9].mxu1 }
 0x32e   :  { %v469_v48 = vpop.f32.mrb[10].mxu1 }
 0x32f   :  { %v2972_v49 = vpop.f32.mrb[11].mxu1  ;;  %v4042_v50 = vadd.f32 %v472_v46, %v307_v37 }
 0x331   :  { %v474_v51 = vsel %vm312_vm2, %v4042_v50, -inf }
 0x332   :  { %475 = vmax.xlane.f32.xlu1 %v474_v51 }
 0x334   :  { %v578_v52 = vpop.f32.mrb[12].mxu1 }
 0x335   :  { %v584_v53 = vmul.f32 0.35355338, %v578_v52  ;;  %v2983_v54 = vpop.f32.mrb[13].mxu1 }
 0x336   :  { %v581_v55 = vpop.f32.mrb[14].mxu1 }
 0x337   :  { %v2984_v56 = vpop.f32.mrb[15].mxu1  ;;  %v585_v57 = vadd.f32 %v584_v53, %v307_v37 }
 0x339   :  { %v586_v58 = vsel %vm312_vm2, %v585_v57, -inf }
 0x33a   :  { %587 = vmax.xlane.f32.xlu0 %v586_v58 }
 0x33c   :  { %v690_v59 = vpop.f32.mrb[16].mxu1 }
 0x33d   :  { %v696_v60 = vmul.f32 0.35355338, %v690_v59  ;;  %v2995_v61 = vpop.f32.mrb[17].mxu1 }
 0x33e   :  { %v693_v62 = vpop.f32.mrb[18].mxu1 }
 0x33f   :  { %v2996_v63 = vpop.f32.mrb[19].mxu1  ;;  %v4047_v1 = vadd.f32 %v696_v60, %v307_v37 }
 0x341   :  { %v698_v4 = vsel %vm312_vm2, %v4047_v1, -inf }
 0x342   :  { %699 = vmax.xlane.f32.xlu0 %v698_v4 }
 0x344   :  { %v828_v6 = vpop.f32.mrb[20].mxu1 }
 0x345   :  { %v834_v7 = vmul.f32 0.35355338, %v828_v6  ;;  %v3007_v8 = vpop.f32.mrb[21].mxu1 }
 0x346   :  { %v831_v10 = vpop.f32.mrb[22].mxu1 }
 0x347   :  { %v3008_v11 = vpop.f32.mrb[23].mxu1  ;;  %v4054_v13 = vadd.f32 %v834_v7, %v783_v5 }
 0x349   :  { %v836_v14 = vsel %vm312_vm2, %v4054_v13, -inf }
 0x34a   :  { %837 = vmax.xlane.f32.xlu1 %v836_v14 }
 0x34c   :  { %v940_v15 = vpop.f32.mrb[24].mxu1 }
 0x34d   :  { %v946_v16 = vmul.f32 0.35355338, %v940_v15  ;;  %v3019_v17 = vpop.f32.mrb[25].mxu1 }
 0x34e   :  { %v943_v18 = vpop.f32.mrb[26].mxu1 }
 0x34f   :  { %v3020_v19 = vpop.f32.mrb[27].mxu1  ;;  %v4058_v20 = vadd.f32 %v946_v16, %v783_v5 }
 0x351   :  { %v948_v21 = vsel %vm312_vm2, %v4058_v20, -inf }
 0x352   :  { %949 = vmax.xlane.f32.xlu0 %v948_v21 }
 0x354   :  { %v1052_v22 = vpop.f32.mrb[28].mxu1 }
 0x355   :  { %v1058_v23 = vmul.f32 0.35355338, %v1052_v22  ;;  %v3031_v24 = vpop.f32.mrb[29].mxu1 }
 0x356   :  { %v1055_v25 = vpop.f32.mrb[30].mxu1 }
 0x357   :  { %v3032_v26 = vpop.f32.mrb[31].mxu1  ;;  %v1059_v27 = vadd.f32 %v1058_v23, %v783_v5 }
 0x359   :  { %v1060_v28 = vsel %vm312_vm2, %v1059_v27, -inf }
 0x35a   :  { %1061 = vmax.xlane.f32.xlu1 %v1060_v28 }
 0x35c   :  { %v1164_v29 = vpop.f32.mrb[32].mxu1 }
 0x35d   :  { %v3043_v30 = vpop.f32.mrb[33].mxu1  ;;  %v1170_v33 = vmul.f32 0.35355338, %v1164_v29 }
 0x35e   :  { %v1167_v31 = vpop.f32.mrb[34].mxu1 }
 0x35f   :  { %v3044_v32 = vpop.f32.mrb[35].mxu1  ;;  %v4067_v34 = vadd.f32 %v1170_v33, %v783_v5 }
 0x361   :  { %v1172_v35 = vsel %vm312_vm2, %v4067_v34, -inf }
 0x368   :  { %486 = vrot.lane.b32.xlu0 %v3958_v9, %s3651_s24 }
 0x36b   :  { %373 = vrot.lane.b32.xlu1 %v3958_v9, %s3652_s30 }
 0x387   :  { %1173 = vmax.xlane.f32.xlu0 %v1172_v35 }
 0x3b7   :  { %v363_v36 = vpop.xlane.xlu0 %362 }
 0x3b8   :  { %v364_v37 = vsub.f32 %v4038_v43, %v363_v36 }
 0x3ba   :  { %v365_v38 = vmul.f32 1.442695, %v364_v37 }
 0x3bc   :  { %3276 = vpow2.f32 %v365_v38 }
 0x3bf   :  { %v476_v39 = vpop.xlane.xlu1 %475 }
 0x3c0   :  { %v477_v40 = vsub.f32 %v4042_v50, %v476_v39 }
 0x3c2   :  { %v478_v41 = vmul.f32 1.442695, %v477_v40 }
 0x3c4   :  { %3278 = vpow2.f32 %v478_v41 }
 0x3c6   :  { %v4073_v42 = vpop.eup %3276 }
 0x3c7   :  { %v588_v44 = vpop.xlane.xlu0 %587  ;;  %v367_v45 = vsel %vm312_vm2, %v4073_v42, 0.0 }
 0x3c8   :  { %v589_v46 = vsub.f32 %v585_v57, %v588_v44  ;;  %368 = vadd.xlane.f32.xlu1 %v367_v45 }
 0x3ca   :  { %v590_v47 = vmul.f32 1.442695, %v589_v46 }
 0x3cc   :  { %3280 = vpow2.f32 %v590_v47 }
 0x3ce   :  { %v4077_v48 = vpop.eup %3278 }
 0x3cf   :  { %v480_v43 = vsel %vm312_vm2, %v4077_v48, 0.0  ;;  %v700_v54 = vpop.xlane.xlu0 %699 }
 0x3d0   :  { %481 = vadd.xlane.f32.xlu0 %v480_v43  ;;  %v701_v56 = vsub.f32 %v4047_v1, %v700_v54 }
 0x3d2   :  { %v702_v57 = vmul.f32 1.442695, %v701_v56 }
 0x3d4   :  { %3282 = vpow2.f32 %v702_v57 }
 0x3d6   :  { %v4081_v49 = vpop.eup %3280 }
 0x3d7   :  { %v592_v50 = vsel %vm312_vm2, %v4081_v49, 0.0  ;;  %v838_v51 = vpop.xlane.xlu1 %837 }
 0x3d8   :  { %593 = vadd.xlane.f32.xlu1 %v592_v50  ;;  %v839_v58 = vsub.f32 %v4054_v13, %v838_v51 }
 0x3da   :  { %v840_v61 = vmul.f32 1.442695, %v839_v58 }
 0x3dc   :  { %3284 = vpow2.f32 %v840_v61 }
 0x3de   :  { %v3283_v2 = vpop.eup %3282 }
 0x3df   :  { %v950_v59 = vpop.xlane.xlu0 %949  ;;  %v704_v4 = vsel %vm312_vm2, %v3283_v2, 0.0 }
 0x3e0   :  { %v951_v60 = vsub.f32 %v4058_v20, %v950_v59 }
 0x3e3   :  { %v487_v11 = vpop.permute.xlu0 %486 }
 0x3e4   :  { %v492_v23 = vsel %vm378_vm3, %v487_v11, 0 }
 0x3e6   :  { %598 = vrot.lane.b32.xlu0 %v3958_v9, %s3653_s16  ;;  %v4095_v5 = vpop.eup %3284 }
 0x3e7   :  { %v1062_v52 = vpop.xlane.xlu1 %1061  ;;  %v842_v6 = vsel %vm312_vm2, %v4095_v5, 0.0 }
 0x3e8   :  { %v1063_v62 = vsub.f32 %v1059_v27, %v1062_v52 }
 0x3e9   :  { %710 = vrot.lane.b32.xlu1 %v3958_v9, %s3654_s14  ;;  %v952_v9 = vmul.f32 1.442695, %v951_v60 }
 0x3ea   :  { %v1064_v63 = vmul.f32 1.442695, %v1063_v62 }
 0x3eb   :  { %v374_v53 = vpop.permute.xlu1 %373  ;;  %3286 = vpow2.f32 %v952_v9 }
 0x3ec   :  { %v380_v55 = vsel %vm378_vm3, %v374_v53, 0  ;;  %3288 = vpow2.f32 %v1064_v63 }
 0x3ed   :  { %2962 = vmatpush3.bf16.msra.mxu0 %v380_v55 }
 0x3ee   :  { %2973 = vmatprep.subr.bf16.mxu0 %v3642_v0 }
 0x3f5   :  { %v4097_v1 = vpop.eup %3286 }
 0x3f6   :  { %v4101_v7 = vpop.eup %3288  ;;  %v954_v8 = vsel %vm312_vm2, %v4097_v1, 0.0 }
 0x3f7   :  { %v1066_v10 = vsel %vm312_vm2, %v4101_v7, 0.0 }
 0x405   :  { %705 = vadd.xlane.f32.xlu0 %v704_v4 }
 0x409   :  { %843 = vadd.xlane.f32.xlu0 %v842_v6 }
 0x40d   :  { %955 = vadd.xlane.f32.xlu1 %v954_v8  ;;  %1067 = vadd.xlane.f32.xlu0 %v1066_v10 }
 0x414   :  { %v1174_v13 = vpop.xlane.xlu0 %1173 }
 0x415   :  { %v1175_v14 = vsub.f32 %v4067_v34, %v1174_v13 }
 0x417   :  { %v1176_v15 = vmul.f32 1.442695, %v1175_v14 }
 0x419   :  { %3290 = vpow2.f32 %v1176_v15 }
 0x41e   :  { %960 = vrot.lane.b32.xlu1 %v3972_v12, %s3651_s24 }
 0x422   :  { %1072 = vrot.lane.b32.xlu1 %v3972_v12, %s3653_s16  ;;  %s4513_s16 = sld [smem:[#allocation37_spill]] }
 0x423   :  { %v4112_v16 = vpop.eup %3290 }
 0x424   :  { %v1178_v17 = vsel %vm312_vm2, %v4112_v16, 0.0 }
 0x425   :  { %1179 = vadd.xlane.f32.xlu0 %v1178_v17 }
 0x426   :  { %1184 = vrot.lane.b32.xlu1 %v3972_v12, %s3654_s14 }
 0x43b   :  { %848 = vrot.lane.b32.xlu0 %v3972_v12, %s3652_s30 }
 0x455   :  { %v369_v18 = vpop.xlane.xlu1 %368 }
 0x456   :  { %3292 = vrcp.f32 %v369_v18 }
 0x45d   :  { %v482_v19 = vpop.xlane.xlu0 %481 }
 0x45e   :  { %3294 = vrcp.f32 %v482_v19 }
 0x460   :  { %v3293_v20 = vpop.eup %3292 }
 0x461   :  { %v371_v21 = vmul.f32 %v3293_v20, %v4073_v42  ;;  %v599_v26 = vpop.permute.xlu0 %598 }
 0x462   :  { %v604_v28 = vsel %vm378_vm3, %v599_v26, 0  ;;  %v3261_v26 = vld [vmem:[%s4511_s10 + $0x8] sm:$0xff]  }
 0x463   :  { %v372_v22 = vpack.c.bf16 %v371_v21, %v371_v21 }
 0x465   :  { %2964 = vmatmul.mubr.msk.bf16.vlgmr.msra.gmra.mrb[0].mxu0 %vm312_vm2, %v372_v22  ;;  %v594_v24 = vpop.xlane.xlu1 %593  ;;  %v3260_v22 = vld [vmem:[%s4511_s10] sm:$0xff]  }
 0x466   :  { %2974 = vmatpush3.bf16.msra.mxu0 %v492_v23  ;;  %3296 = vrcp.f32 %v594_v24  ;;  %2975 = vmatprep.mubr.msk.bf16.mxu0 %vm3643_vm0, %v3642_v0 }
 0x467   :  { %2985 = vmatprep.subr.bf16.mxu0 %v3642_v0  ;;  %3052 = vmatpush3.bf16.msra.mxu1 %v3260_v22 }
 0x468   :  { %v3295_v12 = vpop.eup %3294  ;;  %3053 = vmatprep.subr.bf16.mxu1 %v3642_v0 }
 0x469   :  { %v484_v25 = vmul.f32 %v3295_v12, %v4077_v48  ;;  %v711_v31 = vpop.permute.xlu1 %710 }
 0x46a   :  { %v716_v33 = vsel %vm378_vm3, %v711_v31, 0 }
 0x46b   :  { %v485_v27 = vpack.c.bf16 %v484_v25, %v484_v25  ;;  %3054 = vmatpush3.bf16.msra.mxu1 %v3261_v26 }
 0x46c   :  { %3067 = vmatprep.subr.bf16.mxu1 %v3642_v0 }
 0x46d   :  { %2976 = vmatmul.mubr.msk.bf16.vlgmr.msra.gmra.mrb[4].mxu0 %vm312_vm2, %v485_v27 }
 0x46e   :  { %2986 = vmatpush3.bf16.msra.mxu0 %v604_v28  ;;  %2987 = vmatprep.mubr.msk.bf16.mxu0 %vm3643_vm0, %v3642_v0 }
 0x46f   :  { %2997 = vmatprep.subr.bf16.mxu0 %v3642_v0 }
 0x470   :  { %v3297_v29 = vpop.eup %3296 }
 0x471   :  { %v596_v30 = vmul.f32 %v3297_v29, %v4081_v49 }
 0x473   :  { %v597_v32 = vpack.c.bf16 %v596_v30, %v596_v30 }
 0x475   :  { %2988 = vmatmul.mubr.msk.bf16.vlgmr.msra.gmra.mrb[8].mxu0 %vm312_vm2, %v597_v32 }
 0x476   :  { %2998 = vmatpush3.bf16.msra.mxu0 %v716_v33  ;;  %2999 = vmatprep.mubr.msk.bf16.mxu0 %vm3643_vm0, %v3642_v0 }
 0x477   :  { %3009 = vmatprep.subr.bf16.mxu0 %v3642_v0 }
 0x492   :  { %v706_v34 = vpop.xlane.xlu0 %705 }
 0x493   :  { %3298 = vrcp.f32 %v706_v34 }
 0x496   :  { %v844_v38 = vpop.xlane.xlu0 %843 }
 0x497   :  { %3300 = vrcp.f32 %v844_v38 }
 0x49a   :  { %v956_v39 = vpop.xlane.xlu1 %955  ;;  %v1068_v40 = vpop.xlane.xlu0 %1067 }
 0x49b   :  { %3302 = vrcp.f32 %v956_v39 }
 0x49c   :  { %3304 = vrcp.f32 %v1068_v40 }
 0x49d   :  { %v3299_v35 = vpop.eup %3298 }
 0x49e   :  { %v708_v36 = vmul.f32 %v3299_v35, %v3283_v2  ;;  %v961_v47 = vpop.permute.xlu1 %960 }
 0x49f   :  { %v966_v49 = vsel %vm378_vm3, %v961_v47, 0 }
 0x4a0   :  { %v709_v37 = vpack.c.bf16 %v708_v36, %v708_v36 }
 0x4a1   :  { %v3301_v41 = vpop.eup %3300 }
 0x4a2   :  { %3000 = vmatmul.mubr.msk.bf16.vlgmr.msra.gmra.mrb[12].mxu0 %vm312_vm2, %v709_v37  ;;  %v846_v44 = vmul.f32 %v3301_v41, %v4095_v5  ;;  %v1073_v51 = vpop.permute.xlu1 %1072 }
 0x4a3   :  { %3011 = vmatprep.mubr.msk.bf16.mxu0 %vm3643_vm0, %v3642_v0  ;;  %v1078_v54 = vsel %vm378_vm3, %v1073_v51, 0 }
 0x4a4   :  { %v847_v48 = vpack.c.bf16 %v846_v44, %v846_v44 }
 0x4a5   :  { %v3303_v43 = vpop.eup %3302 }
 0x4a6   :  { %v958_v50 = vmul.f32 %v3303_v43, %v4097_v1  ;;  %v3305_v53 = vpop.eup %3304  ;;  %v1185_v56 = vpop.permute.xlu1 %1184 }
 0x4a7   :  { %v1070_v55 = vmul.f32 %v3305_v53, %v4101_v7  ;;  %v1190_v59 = vsel %vm378_vm3, %v1185_v56, 0  ;;  %v2804_v53 = vld [vmem:[#allocation2] ss:$0 sm:$0xff] }
 0x4a8   :  { %v959_v52 = vpack.c.bf16 %v958_v50, %v958_v50 }
 0x4a9   :  { %v1071_v57 = vpack.c.bf16 %v1070_v55, %v1070_v55 }
 0x4b2   :  { %v1180_v42 = vpop.xlane.xlu0 %1179 }
 0x4b3   :  { %3306 = vrcp.f32 %v1180_v42 }
 0x4b6   :  { %v849_v45 = vpop.permute.xlu0 %848 }
 0x4b7   :  { %v854_v46 = vsel %vm378_vm3, %v849_v45, 0 }
 0x4b8   :  { %3010 = vmatpush3.bf16.msra.mxu0 %v854_v46 }
 0x4b9   :  { %3021 = vmatprep.subr.bf16.mxu0 %v3642_v0 }
 0x4bb   :  { %3012 = vmatmul.mubr.msk.bf16.vlgmr.msra.gmra.mrb[16].mxu0 %vm312_vm2, %v847_v48 }
 0x4bc   :  { %3022 = vmatpush3.bf16.msra.mxu0 %v966_v49  ;;  %3023 = vmatprep.mubr.msk.bf16.mxu0 %vm3643_vm0, %v3642_v0 }
 0x4bd   :  { %3033 = vmatprep.subr.bf16.mxu0 %v3642_v0  ;;  %v3307_v58 = vpop.eup %3306 }
 0x4be   :  { %v1182_v60 = vmul.f32 %v3307_v58, %v4112_v16  ;;  %v223_v58 = vunpack.c.h.bf16 %v3947_v3 }
 0x4c0   :  { %v1183_v61 = vpack.c.bf16 %v1182_v60, %v1182_v60 }
 0x4c3   :  { %3024 = vmatmul.mubr.msk.bf16.vlgmr.msra.gmra.mrb[20].mxu0 %vm312_vm2, %v959_v52 }
 0x4c4   :  { %3034 = vmatpush3.bf16.msra.mxu0 %v1078_v54  ;;  %3035 = vmatprep.mubr.msk.bf16.mxu0 %vm3643_vm0, %v3642_v0  ;;  %v222_v54 = vunpack.c.l.bf16 %v3947_v3 }
 0x4c5   :  { %3045 = vmatprep.subr.bf16.mxu0 %v3642_v0 }
 0x4cb   :  { %3036 = vmatmul.mubr.msk.bf16.vlgmr.msra.gmra.mrb[24].mxu0 %vm312_vm2, %v1071_v57 }
 0x4cc   :  { %3046 = vmatpush3.bf16.msra.mxu0 %v1190_v59  ;;  %3047 = vmatprep.mubr.msk.bf16.mxu0 %vm3643_vm0, %v3642_v0 }
 0x4cd   :  { %3059 = vmatprep.subr.bf16.mxu0 %v3642_v0 }
 0x4d3   :  { %3048 = vmatmul.mubr.msk.bf16.vlgmr.msra.gmra.mrb[28].mxu0 %vm312_vm2, %v1183_v61 }
 0x4d4   :  { %3063 = vmatprep.mubr.msk.bf16.mxu0 %vm3643_vm0, %v3642_v0 }
 0x538   :  { %v416_v62 = vpop.f32.mrb[0].mxu0 }
 0x539   :  { %v2965_v9 = vpop.f32.mrb[1].mxu0 }
 0x53a   :  { %v419_v63 = vpop.f32.mrb[2].mxu0 }
 0x53b   :  { %v2966_v2 = vpop.f32.mrb[3].mxu0 }
 0x540   :  { %v528_v4 = vpop.f32.mrb[4].mxu0 }
 0x541   :  { %v2977_v5 = vpop.f32.mrb[5].mxu0 }
 0x542   :  { %v531_v1 = vpop.f32.mrb[6].mxu0 }
 0x543   :  { %v2978_v6 = vpop.f32.mrb[7].mxu0 }
 0x548   :  { %v640_v7 = vpop.f32.mrb[8].mxu0 }
 0x549   :  { %v2989_v8 = vpop.f32.mrb[9].mxu0 }
 0x54a   :  { %v643_v10 = vpop.f32.mrb[10].mxu0 }
 0x54b   :  { %v2990_v11 = vpop.f32.mrb[11].mxu0 }
 0x575   :  { %v752_v13 = vpop.f32.mrb[12].mxu0 }
 0x576   :  { %v3001_v14 = vpop.f32.mrb[13].mxu0 }
 0x577   :  { %v755_v15 = vpop.f32.mrb[14].mxu0  ;;  %v3262_v14 = vld [vmem:[%s4474_s11] sm:$0xff]  }
 0x578   :  { %v3002_v16 = vpop.f32.mrb[15].mxu0  ;;  %v3263_v15 = vld [vmem:[%s4474_s11 + $0x8] sm:$0xff]  }
 0x579   :  { %v3264_v16 = vld [vmem:[%s4512_s1] sm:$0xff]  }
 0x58e   :  { %v890_v17 = vpop.f32.mrb[16].mxu0 }
 0x58f   :  { %v3013_v18 = vpop.f32.mrb[17].mxu0 }
 0x590   :  { %v893_v19 = vpop.f32.mrb[18].mxu0  ;;  %v3266_v18 = vld [vmem:[%s4513_s16 + $0x8] sm:$0xff]  }
 0x591   :  { %v3014_v20 = vpop.f32.mrb[19].mxu0 }
 0x596   :  { %v1002_v21 = vpop.f32.mrb[20].mxu0 }
 0x597   :  { %v3227_v23 = vpack.i.bf16 %v1002_v21, %v528_v4  ;;  %v3025_v24 = vpop.f32.mrb[21].mxu0 }
 0x598   :  { %v1005_v12 = vpop.f32.mrb[22].mxu0 }
 0x599   :  { %3228 = vrot.lane.b32.xlu1 %v3227_v23, %s3655_s15  ;;  %v3026_v25 = vpop.f32.mrb[23].mxu0 }
 0x59a   :  { %v2808_v25 = vld [vmem:[#allocation9] ss:$0 sm:$0xff] }
 0x59e   :  { %v1114_v27 = vpop.f32.mrb[24].mxu0 }
 0x59f   :  { %v3232_v28 = vpack.i.bf16 %v1114_v27, %v640_v7  ;;  %v3037_v29 = vpop.f32.mrb[25].mxu0 }
 0x5a0   :  { %v1117_v30 = vpop.f32.mrb[26].mxu0 }
 0x5a1   :  { %3233 = vrot.lane.b32.xlu1 %v3232_v28, %s3656_s22  ;;  %v3038_v31 = vpop.f32.mrb[27].mxu0  ;;  %v2809_v30 = vld [vmem:[#allocation10] ss:$0 sm:$0xff] }
 0x5a6   :  { %v1226_v32 = vpop.f32.mrb[28].mxu0 }
 0x5a7   :  { %v3237_v33 = vpack.i.bf16 %v1226_v32, %v752_v13  ;;  %v3049_v34 = vpop.f32.mrb[29].mxu0 }
 0x5a8   :  { %v1229_v35 = vpop.f32.mrb[30].mxu0 }
 0x5a9   :  { %3238 = vrot.lane.b32.xlu0 %v3237_v33, %s3657_s12  ;;  %v3050_v36 = vpop.f32.mrb[31].mxu0  ;;  %v2814_v35 = vld [vmem:[#allocation6] ss:$0 sm:$0xff] }
 0x60b   :  { %v3229_v37 = vpop.permute.xlu1 %3228 }
 0x60c   :  { %v3231_v39 = vunpack.i.h.bf16 %v3229_v37  ;;  %v3230_v40 = vunpack.i.l.bf16 %v3229_v37 }
 0x60e   :  { %v1244_v45 = vsel %vm312_vm2, %v890_v17, %v3231_v39  ;;  %v770_v46 = vsel %vm312_vm2, %v416_v62, %v3230_v40  ;;  %v3265_v17 = vld [vmem:[%s4513_s16] sm:$0xff]  }
 0x60f   :  { %3060 = vmatpush3.bf16.msra.mxu0 %v3265_v17 }
 0x610   :  { %3061 = vmatprep.subr.bf16.mxu0 %v3642_v0 }
 0x613   :  { %v3234_v38 = vpop.permute.xlu1 %3233  ;;  %3062 = vmatpush3.bf16.msra.mxu0 %v3266_v18 }
 0x614   :  { %v3236_v41 = vunpack.i.h.bf16 %v3234_v38  ;;  %v3235_v42 = vunpack.i.l.bf16 %v3234_v38  ;;  %3075 = vmatprep.subr.bf16.mxu0 %v3642_v0 }
 0x616   :  { %v1245_v43 = vsel %vm771_vm4, %v1244_v45, %v3236_v41  ;;  %v772_v49 = vsel %vm771_vm4, %v770_v46, %v3235_v42  ;;  %v2810_v45 = vld [vmem:[#allocation4] ss:$0 sm:$0xff] }
 0x61b   :  { %v3239_v44 = vpop.permute.xlu0 %3238 }
 0x61c   :  { %v3241_v47 = vunpack.i.h.bf16 %v3239_v44  ;;  %v3240_v48 = vunpack.i.l.bf16 %v3239_v44 }
 0x61e   :  { %v1246_v50 = vsel %vm773_vm5, %v1245_v43, %v3241_v47  ;;  %v774_v51 = vsel %vm773_vm5, %v772_v49, %v3240_v48 }
 0x61f   :  { %v1247_v52 = vpack.c.bf16 %v1246_v50, %v774_v51 }
 0x621   :  { %3056 = vmatmul.mubr.msk.bf16.vlgmr.msra.gmra.mrb[36].mxu1 %vm254_vm1, %v1247_v52 }
 0x622   :  { %3071 = vmatprep.mubr.msk.bf16.mxu1 %vm3643_vm0, %v3642_v0  ;;  %3068 = vmatpush3.bf16.msra.mxu1 %v3262_v14 }
 0x623   :  { %3069 = vmatprep.subr.bf16.mxu1 %v3642_v0 }
 0x626   :  { %3070 = vmatpush3.bf16.msra.mxu1 %v3263_v15 }
 0x627   :  { %3081 = vmatprep.subr.bf16.mxu1 %v3642_v0 }
 0x629   :  { %3072 = vmatmul.mubr.msk.bf16.vlgmr.msra.gmra.mrb[40].mxu1 %vm254_vm1, %v3264_v16 }
 0x62a   :  { %3083 = vmatprep.mubr.msk.bf16.mxu1 %vm3643_vm0, %v3642_v0 }
 0x6f4   :  { %v1308_v55 = vpop.f32.mrb[36].mxu1 }
 0x6f5   :  { %v1309_v56 = vadd.f32 %v2804_v53, %v1308_v55  ;;  %v3057_v57 = vpop.f32.mrb[37].mxu1 }
 0x6f6   :  { %v1311_v59 = vpop.f32.mrb[38].mxu1 }
 0x6f7   :  { %v1312_v60 = vadd.f32 %v2804_v53, %v1311_v59  ;;  %v3058_v61 = vpop.f32.mrb[39].mxu1  ;;  %v1315_v62 = vadd.f32 %v1309_v56, %v222_v54 }
 0x6f9   :  { %v1319_v9 = vsel %vm254_vm1, %v1315_v62, 0.0  ;;  %v1316_v63 = vadd.f32 %v1312_v60, %v223_v58 }
 0x6fa   :  { %1320 = vadd.xlane.f32.xlu1 %v1319_v9 }
 0x6fb   :  { %v1322_v2 = vsel %vm254_vm1, %v1316_v63, 0.0 }
 0x6fc   :  { %1323 = vadd.xlane.f32.xlu0 %v1322_v2  ;;  %v1495_v36 = vpop.f32.mrb[40].mxu1 }
 0x6fd   :  { %v1496_v37 = vadd.f32 %v2814_v35, %v1495_v36  ;;  %v3073_v38 = vpop.f32.mrb[41].mxu1 }
 0x6fe   :  { %v1498_v39 = vpop.f32.mrb[42].mxu1 }
 0x6ff   :  { %v4222_v40 = vpack.c.bf16 %v1496_v37, %v1496_v37  ;;  %v1499_v41 = vadd.f32 %v2814_v35, %v1498_v39  ;;  %v3074_v42 = vpop.f32.mrb[43].mxu1 }
 0x701   :  { %v1509_v44 = vsel %vm312_vm2, %v4222_v40, 0  ;;  %v4242_v55 = vpack.c.bf16 %v1499_v41, %v1499_v41 }
 0x703   :  { %v1980_v9 = vsel %vm312_vm2, %v4242_v55, 0 }
 0x787   :  { %v1321_v4 = vpop.xlane.xlu1 %1320 }
 0x788   :  { %v1326_v5 = vmul.f32 0.03125, %v1321_v4 }
 0x789   :  { %v1324_v1 = vpop.xlane.xlu0 %1323 }
 0x78a   :  { %v1328_v6 = vsub.f32 %v1315_v62, %v1326_v5  ;;  %v1327_v7 = vmul.f32 0.03125, %v1324_v1 }
 0x78c   :  { %v1329_v8 = vsub.f32 %v1316_v63, %v1327_v7  ;;  %v1330_v10 = vmul.f32 %v1328_v6, %v1328_v6 }
 0x78e   :  { %v1332_v3 = vsel %vm254_vm1, %v1330_v10, 0.0  ;;  %v1331_v11 = vmul.f32 %v1329_v8, %v1329_v8 }
 0x78f   :  { %1333 = vadd.xlane.f32.xlu0 %v1332_v3 }
 0x790   :  { %v1335_v13 = vsel %vm254_vm1, %v1331_v11, 0.0 }
 0x791   :  { %1336 = vadd.xlane.f32.xlu1 %v1335_v13 }
 0x7a5   :  { %1623 = vrot.lane.b32.xlu0 %v4222_v40, %s3644_s20 }
 0x81c   :  { %v1334_v19 = vpop.xlane.xlu0 %1333 }
 0x81d   :  { %v1338_v20 = vmul.f32 0.03125, %v1334_v19 }
 0x81e   :  { %v1337_v21 = vpop.xlane.xlu1 %1336 }
 0x81f   :  { %v1340_v22 = vadd.f32 1e-05, %v1338_v20  ;;  %v1339_v23 = vmul.f32 0.03125, %v1337_v21 }
 0x820   :  { %v1624_v43 = vpop.permute.xlu0 %1623 }
 0x821   :  { %3308 = vrsqrt.f32 %v1340_v22  ;;  %v1341_v24 = vadd.f32 1e-05, %v1339_v23  ;;  %v1629_v52 = vsel %vm312_vm2, %v1624_v43, 0 }
 0x823   :  { %3310 = vrsqrt.f32 %v1341_v24 }
 0x82b   :  { %v3309_v12 = vpop.eup %3308 }
 0x82c   :  { %v1344_v26 = vmul.f32 %v3309_v12, %v1328_v6 }
 0x82d   :  { %v3311_v27 = vpop.eup %3310 }
 0x82e   :  { %v1352_v28 = vmul.f32 %v2808_v25, %v1344_v26  ;;  %v1345_v29 = vmul.f32 %v3311_v27, %v1329_v8 }
 0x830   :  { %v1353_v31 = vmul.f32 %v2808_v25, %v1345_v29  ;;  %v4213_v32 = vadd.f32 %v2809_v30, %v1352_v28 }
 0x832   :  { %v4215_v33 = vadd.f32 %v2809_v30, %v1353_v31 }
 0x834   :  { %v1362_v34 = vpack.c.bf16 %v4215_v33, %v4213_v32 }
 0x836   :  { %3064 = vmatmul.mubr.msk.bf16.vlgmr.msra.gmra.mrb[32].mxu0 %vm254_vm1, %v1362_v34 }
 0x837   :  { %3077 = vmatprep.mubr.msk.bf16.mxu0 %vm3643_vm0, %v3642_v0  ;;  %3076 = vmatpush3.bf16.xpose.msra.mxu0 %v1509_v44 }
 0x838   :  { %3087 = vmatprep.subr.bf16.mxu0 %v3642_v0 }
 0x909   :  { %v1423_v46 = vpop.f32.mrb[32].mxu0 }
 0x90a   :  { %v1424_v47 = vadd.f32 %v2810_v45, %v1423_v46  ;;  %v3065_v48 = vpop.f32.mrb[33].mxu0 }
 0x90b   :  { %v1426_v49 = vpop.f32.mrb[34].mxu0 }
 0x90c   :  { %v1503_v50 = vpack.c.bf16 %v1424_v47, %v1424_v47  ;;  %v3066_v51 = vpop.f32.mrb[35].mxu0  ;;  %v1427_v53 = vadd.f32 %v2810_v45, %v1426_v49 }
 0x90e   :  { %1733 = vrot.lane.b32.xlu0 %v1503_v50, %s3649_s0  ;;  %1621 = vrot.lane.b32.xlu1 %v1503_v50, %s3644_s20  ;;  %v1974_v54 = vpack.c.bf16 %v1427_v53, %v1427_v53 }
 0x90f   :  { %3078 = vmatmul.mubr.msk.bf16.vlgmr.msra.gmra.mrb[36].mxu0 %vm312_vm2, %v1503_v50 }
 0x910   :  { %3088 = vmatpush3.bf16.xpose.msra.mxu0 %v1629_v52  ;;  %3089 = vmatprep.mubr.msk.bf16.mxu0 %vm3643_vm0, %v3642_v0 }
 0x911   :  { %3099 = vmatprep.subr.bf16.mxu0 %v3642_v0 }
 0x912   :  { %1845 = vrot.lane.b32.xlu0 %v1503_v50, %s3650_s6  ;;  %1735 = vrot.lane.b32.xlu1 %v4222_v40, %s3649_s0 }
 0x916   :  { %1847 = vrot.lane.b32.xlu1 %v4222_v40, %s3650_s6  ;;  %2092 = vrot.lane.b32.xlu0 %v1974_v54, %s3644_s20 }
 0x91a   :  { %2094 = vrot.lane.b32.xlu1 %v4242_v55, %s3644_s20  ;;  %2204 = vrot.lane.b32.xlu0 %v1974_v54, %s3649_s0 }
 0x91e   :  { %2206 = vrot.lane.b32.xlu1 %v4242_v55, %s3649_s0  ;;  %2316 = vrot.lane.b32.xlu0 %v1974_v54, %s3650_s6  ;;  %s4514_s0 = sld [smem:[#allocation32_spill]] }
 0x922   :  { %2318 = vrot.lane.b32.xlu1 %v4242_v55, %s3650_s6 }
 0x924   :  { %v2820_v11 = vld [vmem:[%s4514_s0] ss:$0 sm:$0xff]  ;;  %v2830_v44 = vld [vmem:[%s4514_s0 + $0x1] ss:$0 sm:$0xff] }
 0x980   :  { %v1622_v56 = vpop.permute.xlu1 %1621  ;;  %v1734_v60 = vpop.permute.xlu0 %1733 }
 0x981   :  { %3090 = vmatmul.mubr.msk.bf16.vlgmr.msra.gmra.mrb[40].mxu0 %vm312_vm2, %v1622_v56 }
 0x982   :  { %3101 = vmatprep.mubr.msk.bf16.mxu0 %vm3643_vm0, %v3642_v0 }
 0x984   :  { %v1736_v57 = vpop.permute.xlu1 %1735  ;;  %v1846_v62 = vpop.permute.xlu0 %1845 }
 0x985   :  { %v1741_v58 = vsel %vm312_vm2, %v1736_v57, 0 }
 0x986   :  { %3100 = vmatpush3.bf16.xpose.msra.mxu0 %v1741_v58 }
 0x987   :  { %3111 = vmatprep.subr.bf16.mxu0 %v3642_v0 }
 0x988   :  { %v1848_v59 = vpop.permute.xlu1 %1847  ;;  %v2093_v5 = vpop.permute.xlu0 %2092 }
 0x989   :  { %v1853_v61 = vsel %vm312_vm2, %v1848_v59, 0 }
 0x98c   :  { %v2095_v63 = vpop.permute.xlu1 %2094  ;;  %v2205_v7 = vpop.permute.xlu0 %2204 }
 0x98d   :  { %3102 = vmatmul.mubr.msk.bf16.vlgmr.msra.gmra.mrb[44].mxu0 %vm312_vm2, %v1734_v60  ;;  %v2100_v2 = vsel %vm312_vm2, %v2095_v63, 0 }
 0x98e   :  { %3112 = vmatpush3.bf16.xpose.msra.mxu0 %v1853_v61  ;;  %3113 = vmatprep.mubr.msk.bf16.mxu0 %vm3643_vm0, %v3642_v0 }
 0x98f   :  { %3123 = vmatprep.subr.bf16.mxu0 %v3642_v0 }
 0x990   :  { %v2207_v4 = vpop.permute.xlu1 %2206  ;;  %v2317_v10 = vpop.permute.xlu0 %2316 }
 0x991   :  { %v2212_v1 = vsel %vm312_vm2, %v2207_v4, 0 }
 0x994   :  { %v2319_v6 = vpop.permute.xlu1 %2318 }
 0x995   :  { %3114 = vmatmul.mubr.msk.bf16.vlgmr.msra.gmra.mrb[48].mxu0 %vm312_vm2, %v1846_v62  ;;  %v2324_v8 = vsel %vm312_vm2, %v2319_v6, 0 }
 0x996   :  { %3124 = vmatpush3.bf16.xpose.msra.mxu0 %v1980_v9  ;;  %3125 = vmatprep.mubr.msk.bf16.mxu0 %vm3643_vm0, %v3642_v0 }
 0x997   :  { %3135 = vmatprep.subr.bf16.mxu0 %v3642_v0 }
 0x99d   :  { %3126 = vmatmul.mubr.msk.bf16.vlgmr.msra.gmra.mrb[52].mxu0 %vm312_vm2, %v1974_v54 }
 0x99e   :  { %3136 = vmatpush3.bf16.xpose.msra.mxu0 %v2100_v2  ;;  %3137 = vmatprep.mubr.msk.bf16.mxu0 %vm3643_vm0, %v3642_v0 }
 0x99f   :  { %3147 = vmatprep.subr.bf16.mxu0 %v3642_v0 }
 0x9a5   :  { %3138 = vmatmul.mubr.msk.bf16.vlgmr.msra.gmra.mrb[56].mxu0 %vm312_vm2, %v2093_v5 }
 0x9a6   :  { %3148 = vmatpush3.bf16.xpose.msra.mxu0 %v2212_v1  ;;  %3149 = vmatprep.mubr.msk.bf16.mxu0 %vm3643_vm0, %v3642_v0 }
 0x9a7   :  { %3159 = vmatprep.subr.bf16.mxu0 %v3642_v0 }
 0x9ad   :  { %3150 = vmatmul.mubr.msk.bf16.vlgmr.msra.gmra.mrb[60].mxu0 %vm312_vm2, %v2205_v7 }
 0x9ae   :  { %3160 = vmatpush3.bf16.xpose.msra.mxu0 %v2324_v8  ;;  %3161 = vmatprep.mubr.msk.bf16.mxu0 %vm3643_vm0, %v3642_v0 }
 0x9af   :  { %3171 = vmatprep.subr.bf16.mxu0 %v3642_v0 }
 0x9b5   :  { %3162 = vmatmul.mubr.msk.bf16.vlgmr.msra.gmra.mrb[64].mxu0 %vm312_vm2, %v2317_v10 }
 0x9b6   :  { %3175 = vmatprep.mubr.msk.bf16.mxu0 %vm3643_vm0, %v3642_v0 }
 0x9e2   :  { %v1545_v3 = vpop.f32.mrb[36].mxu0 }
 0x9e3   :  { %v1551_v13 = vmul.f32 0.35355338, %v1545_v3  ;;  %v3079_v14 = vpop.f32.mrb[37].mxu0 }
 0x9e4   :  { %v1548_v15 = vpop.f32.mrb[38].mxu0 }
 0x9e5   :  { %v3080_v16 = vpop.f32.mrb[39].mxu0  ;;  %v1558_v17 = vadd.f32 %v2820_v11, %v1551_v13 }
 0x9e7   :  { %v1559_v18 = vsel %vm312_vm2, %v1558_v17, -inf }
 0x9e8   :  { %1560 = vmax.xlane.f32.xlu1 %v1559_v18 }
 0xa54   :  { %v1665_v19 = vpop.f32.mrb[40].mxu0 }
 0xa55   :  { %v1671_v20 = vmul.f32 0.35355338, %v1665_v19  ;;  %v3091_v21 = vpop.f32.mrb[41].mxu0 }
 0xa56   :  { %v1668_v22 = vpop.f32.mrb[42].mxu0 }
 0xa57   :  { %v3092_v23 = vpop.f32.mrb[43].mxu0  ;;  %v4290_v24 = vadd.f32 %v2820_v11, %v1671_v20 }
 0xa59   :  { %v1673_v12 = vsel %vm312_vm2, %v4290_v24, -inf }
 0xa5a   :  { %1674 = vmax.xlane.f32.xlu0 %v1673_v12 }
 0xa60   :  { %v1777_v25 = vpop.f32.mrb[44].mxu0 }
 0xa61   :  { %v1783_v26 = vmul.f32 0.35355338, %v1777_v25  ;;  %v3103_v27 = vpop.f32.mrb[45].mxu0 }
 0xa62   :  { %v1780_v28 = vpop.f32.mrb[46].mxu0 }
 0xa63   :  { %v3104_v29 = vpop.f32.mrb[47].mxu0  ;;  %v1784_v30 = vadd.f32 %v2820_v11, %v1783_v26 }
 0xa65   :  { %v1785_v31 = vsel %vm312_vm2, %v1784_v30, -inf }
 0xa66   :  { %1786 = vmax.xlane.f32.xlu0 %v1785_v31 }
 0xa68   :  { %v1889_v34 = vpop.f32.mrb[48].mxu0 }
 0xa69   :  { %v1895_v35 = vmul.f32 0.35355338, %v1889_v34  ;;  %v3115_v36 = vpop.f32.mrb[49].mxu0 }
 0xa6a   :  { %v1892_v37 = vpop.f32.mrb[50].mxu0 }
 0xa6b   :  { %v3116_v38 = vpop.f32.mrb[51].mxu0  ;;  %v1896_v39 = vadd.f32 %v2820_v11, %v1895_v35 }
 0xa6d   :  { %v1897_v41 = vsel %vm312_vm2, %v1896_v39, -inf }
 0xa6e   :  { %1898 = vmax.xlane.f32.xlu1 %v1897_v41 }
 0xa70   :  { %v2016_v42 = vpop.f32.mrb[52].mxu0 }
 0xa71   :  { %v2022_v45 = vmul.f32 0.35355338, %v2016_v42  ;;  %v3127_v46 = vpop.f32.mrb[53].mxu0 }
 0xa72   :  { %v2019_v47 = vpop.f32.mrb[54].mxu0 }
 0xa73   :  { %v3128_v48 = vpop.f32.mrb[55].mxu0  ;;  %v2029_v43 = vadd.f32 %v2830_v44, %v2022_v45 }
 0xa75   :  { %v2030_v49 = vsel %vm312_vm2, %v2029_v43, -inf  ;;  %v1561_v6 = vpop.xlane.xlu1 %1560 }
 0xa76   :  { %2031 = vmax.xlane.f32.xlu0 %v2030_v49  ;;  %v1562_v7 = vsub.f32 %v1558_v17, %v1561_v6 }
 0xa78   :  { %v2136_v50 = vpop.f32.mrb[56].mxu0  ;;  %v1563_v8 = vmul.f32 1.442695, %v1562_v7 }
 0xa79   :  { %v2142_v51 = vmul.f32 0.35355338, %v2136_v50  ;;  %v3139_v52 = vpop.f32.mrb[57].mxu0 }
 0xa7a   :  { %v2139_v53 = vpop.f32.mrb[58].mxu0  ;;  %3312 = vpow2.f32 %v1563_v8 }
 0xa7b   :  { %v3140_v54 = vpop.f32.mrb[59].mxu0  ;;  %v4300_v56 = vadd.f32 %v2830_v44, %v2142_v51 }
 0xa7d   :  { %v2144_v57 = vsel %vm312_vm2, %v4300_v56, -inf }
 0xa7e   :  { %2145 = vmax.xlane.f32.xlu1 %v2144_v57 }
 0xa80   :  { %v2248_v58 = vpop.f32.mrb[60].mxu0 }
 0xa81   :  { %v2254_v59 = vmul.f32 0.35355338, %v2248_v58  ;;  %v3151_v60 = vpop.f32.mrb[61].mxu0 }
 0xa82   :  { %v2251_v61 = vpop.f32.mrb[62].mxu0 }
 0xa83   :  { %v3152_v62 = vpop.f32.mrb[63].mxu0  ;;  %v2255_v9 = vadd.f32 %v2830_v44, %v2254_v59 }
 0xa84   :  { %v4310_v13 = vpop.eup %3312 }
 0xa85   :  { %v2256_v63 = vsel %vm312_vm2, %v2255_v9, -inf  ;;  %v1565_v14 = vsel %vm312_vm2, %v4310_v13, 0.0 }
 0xa86   :  { %2257 = vmax.xlane.f32.xlu0 %v2256_v63 }
 0xa88   :  { %v2360_v2 = vpop.f32.mrb[64].mxu0 }
 0xa89   :  { %v3163_v4 = vpop.f32.mrb[65].mxu0  ;;  %v2366_v10 = vmul.f32 0.35355338, %v2360_v2 }
 0xa8a   :  { %v2363_v5 = vpop.f32.mrb[66].mxu0 }
 0xa8b   :  { %v3164_v1 = vpop.f32.mrb[67].mxu0  ;;  %v2367_v3 = vadd.f32 %v2830_v44, %v2366_v10 }
 0xa8d   :  { %v2368_v11 = vsel %vm312_vm2, %v2367_v3, -inf }
 0xa8f   :  { %1685 = vrot.lane.b32.xlu1 %v4222_v40, %s3647_s28 }
 0xa9c   :  { %1572 = vrot.lane.b32.xlu0 %v4222_v40, %s3645_s9 }
 0xab3   :  { %2369 = vmax.xlane.f32.xlu1 %v2368_v11 }
 0xabb   :  { %1566 = vadd.xlane.f32.xlu0 %v1565_v14 }
 0xac4   :  { %1797 = vrot.lane.b32.xlu1 %v4222_v40, %s3646_s8 }
 0xae7   :  { %v1675_v15 = vpop.xlane.xlu0 %1674 }
 0xae8   :  { %v1676_v16 = vsub.f32 %v4290_v24, %v1675_v15 }
 0xaea   :  { %v1677_v17 = vmul.f32 1.442695, %v1676_v16 }
 0xaec   :  { %3314 = vpow2.f32 %v1677_v17 }
 0xaf3   :  { %v1787_v18 = vpop.xlane.xlu0 %1786 }
 0xaf4   :  { %v1788_v19 = vsub.f32 %v1784_v30, %v1787_v18 }
 0xaf6   :  { %v4317_v20 = vpop.eup %3314  ;;  %v1789_v21 = vmul.f32 1.442695, %v1788_v19 }
 0xaf7   :  { %v1679_v22 = vsel %vm312_vm2, %v4317_v20, 0.0 }
 0xaf8   :  { %3316 = vpow2.f32 %v1789_v21  ;;  %1680 = vadd.xlane.f32.xlu1 %v1679_v22 }
 0xafb   :  { %v1899_v23 = vpop.xlane.xlu1 %1898 }
 0xafc   :  { %v1900_v12 = vsub.f32 %v1896_v39, %v1899_v23 }
 0xafe   :  { %v1901_v25 = vmul.f32 1.442695, %v1900_v12 }
 0xb00   :  { %3318 = vpow2.f32 %v1901_v25 }
 0xb02   :  { %v4321_v26 = vpop.eup %3316 }
 0xb03   :  { %v2032_v27 = vpop.xlane.xlu0 %2031  ;;  %v1791_v24 = vsel %vm312_vm2, %v4321_v26, 0.0 }
 0xb04   :  { %v2033_v28 = vsub.f32 %v2029_v43, %v2032_v27  ;;  %1792 = vadd.xlane.f32.xlu0 %v1791_v24 }
 0xb06   :  { %v2034_v29 = vmul.f32 1.442695, %v2033_v28 }
 0xb08   :  { %3320 = vpow2.f32 %v2034_v29 }
 0xb0a   :  { %v4325_v30 = vpop.eup %3318 }
 0xb0b   :  { %v1903_v31 = vsel %vm312_vm2, %v4325_v30, 0.0  ;;  %v2146_v42 = vpop.xlane.xlu1 %2145 }
 0xb0c   :  { %1904 = vadd.xlane.f32.xlu1 %v1903_v31  ;;  %v2147_v45 = vsub.f32 %v4300_v56, %v2146_v42 }
 0xb0e   :  { %v2148_v47 = vmul.f32 1.442695, %v2147_v45 }
 0xb12   :  { %v4329_v34 = vpop.eup %3320 }
 0xb13   :  { %v2258_v35 = vpop.xlane.xlu0 %2257  ;;  %v2036_v36 = vsel %vm312_vm2, %v4329_v34, 0.0 }
 0xb14   :  { %v2259_v37 = vsub.f32 %v2255_v9, %v2258_v35  ;;  %2037 = vadd.xlane.f32.xlu1 %v2036_v36 }
 0xb16   :  { %v2260_v38 = vmul.f32 1.442695, %v2259_v37 }
 0xb17   :  { %v1573_v39 = vpop.permute.xlu0 %1572 }
 0xb18   :  { %3322 = vpow2.f32 %v2260_v38  ;;  %v1578_v41 = vsel %vm378_vm3, %v1573_v39, 0 }
 0xb19   :  { %3082 = vmatpush3.bf16.msra.mxu1 %v1578_v41  ;;  %3324 = vpow2.f32 %v2148_v47 }
 0xb1a   :  { %1909 = vrot.lane.b32.xlu0 %v4222_v40, %s3648_s29  ;;  %3093 = vmatprep.subr.bf16.mxu1 %v3642_v0  ;;  %v1686_v40 = vpop.permute.xlu1 %1685 }
 0xb1b   :  { %v1691_v59 = vsel %vm378_vm3, %v1686_v40, 0 }
 0xb22   :  { %v4337_v44 = vpop.eup %3322 }
 0xb23   :  { %v2262_v46 = vsel %vm312_vm2, %v4337_v44, 0.0  ;;  %v4342_v48 = vpop.eup %3324 }
 0xb24   :  { %2263 = vadd.xlane.f32.xlu1 %v2262_v46  ;;  %v2150_v43 = vsel %vm312_vm2, %v4342_v48, 0.0 }
 0xb39   :  { %2151 = vadd.xlane.f32.xlu0 %v2150_v43 }
 0xb40   :  { %v2370_v49 = vpop.xlane.xlu1 %2369 }
 0xb41   :  { %v2371_v50 = vsub.f32 %v2367_v3, %v2370_v49 }
 0xb43   :  { %v2372_v51 = vmul.f32 1.442695, %v2371_v50 }
 0xb44   :  { %v1798_v60 = vpop.permute.xlu1 %1797 }
 0xb45   :  { %3326 = vpow2.f32 %v2372_v51  ;;  %v1803_v4 = vsel %vm378_vm3, %v1798_v60, 0  ;;  %v3267_v60 = vld [vmem:[%s4476_s13] sm:$0xff]  }
 0xb46   :  { %3172 = vmatpush3.bf16.msra.mxu0 %v3267_v60 }
 0xb47   :  { %3173 = vmatprep.subr.bf16.mxu0 %v3642_v0 }
 0xb48   :  { %v1567_v52 = vpop.xlane.xlu0 %1566 }
 0xb49   :  { %3328 = vrcp.f32 %v1567_v52 }
 0xb4f   :  { %v4346_v53 = vpop.eup %3326  ;;  %2156 = vrot.lane.b32.xlu0 %v4242_v55, %s3647_s28 }
 0xb50   :  { %v2374_v54 = vsel %vm312_vm2, %v4346_v53, 0.0 }
 0xb51   :  { %2375 = vadd.xlane.f32.xlu1 %v2374_v54 }
 0xb53   :  { %v3329_v56 = vpop.eup %3328  ;;  %2268 = vrot.lane.b32.xlu0 %v4242_v55, %s3646_s8 }
 0xb54   :  { %v1569_v57 = vmul.f32 %v3329_v56, %v4310_v13 }
 0xb56   :  { %v1570_v58 = vpack.c.bf16 %v1569_v57, %v1569_v57 }
 0xb57   :  { %2380 = vrot.lane.b32.xlu0 %v4242_v55, %s3648_s29 }
 0xb58   :  { %3084 = vmatmul.mubr.msk.bf16.vlgmr.msra.gmra.mrb[44].mxu1 %vm312_vm2, %v1570_v58 }
 0xb59   :  { %3094 = vmatpush3.bf16.msra.mxu1 %v1691_v59  ;;  %3095 = vmatprep.mubr.msk.bf16.mxu1 %vm3643_vm0, %v3642_v0 }
 0xb5a   :  { %3105 = vmatprep.subr.bf16.mxu1 %v3642_v0 }
 0xb62   :  { %2043 = vrot.lane.b32.xlu1 %v4242_v55, %s3645_s9 }
 0xb85   :  { %v1681_v61 = vpop.xlane.xlu1 %1680 }
 0xb86   :  { %3330 = vrcp.f32 %v1681_v61 }
 0xb90   :  { %v3331_v62 = vpop.eup %3330 }
 0xb91   :  { %v1683_v9 = vmul.f32 %v3331_v62, %v4317_v20  ;;  %v1793_v63 = vpop.xlane.xlu0 %1792 }
 0xb92   :  { %3332 = vrcp.f32 %v1793_v63 }
 0xb93   :  { %v1684_v2 = vpack.c.bf16 %v1683_v9, %v1683_v9 }
 0xb95   :  { %3096 = vmatmul.mubr.msk.bf16.vlgmr.msra.gmra.mrb[48].mxu1 %vm312_vm2, %v1684_v2  ;;  %v1910_v6 = vpop.permute.xlu0 %1909  ;;  %v3268_v2 = vld [vmem:[%s4476_s13 + $0x8] sm:$0xff]  }
 0xb96   :  { %3106 = vmatpush3.bf16.msra.mxu1 %v1803_v4  ;;  %3107 = vmatprep.mubr.msk.bf16.mxu1 %vm3643_vm0, %v3642_v0  ;;  %v1915_v8 = vsel %vm378_vm3, %v1910_v6, 0 }
 0xb97   :  { %3117 = vmatprep.subr.bf16.mxu1 %v3642_v0  ;;  %3174 = vmatpush3.bf16.msra.mxu0 %v3268_v2 }
 0xb98   :  { %3187 = vmatprep.subr.bf16.mxu0 %v3642_v0 }
 0xb99   :  { %v1905_v55 = vpop.xlane.xlu1 %1904 }
 0xb9a   :  { %3334 = vrcp.f32 %v1905_v55 }
 0xb9c   :  { %v3333_v5 = vpop.eup %3332 }
 0xb9d   :  { %v1795_v1 = vmul.f32 %v3333_v5, %v4321_v26 }
 0xb9f   :  { %v1796_v7 = vpack.c.bf16 %v1795_v1, %v1795_v1 }
 0xba1   :  { %3108 = vmatmul.mubr.msk.bf16.vlgmr.msra.gmra.mrb[52].mxu1 %vm312_vm2, %v1796_v7  ;;  %v2038_v13 = vpop.xlane.xlu1 %2037 }
 0xba2   :  { %3118 = vmatpush3.bf16.msra.mxu1 %v1915_v8  ;;  %3119 = vmatprep.mubr.msk.bf16.mxu1 %vm3643_vm0, %v3642_v0  ;;  %3336 = vrcp.f32 %v2038_v13 }
 0xba3   :  { %3129 = vmatprep.subr.bf16.mxu1 %v3642_v0 }
 0xba4   :  { %v3335_v10 = vpop.eup %3334 }
 0xba5   :  { %v1907_v3 = vmul.f32 %v3335_v10, %v4325_v30 }
 0xba7   :  { %v1908_v11 = vpack.c.bf16 %v1907_v3, %v1907_v3 }
 0xba9   :  { %3120 = vmatmul.mubr.msk.bf16.vlgmr.msra.gmra.mrb[56].mxu1 %vm312_vm2, %v1908_v11 }
 0xbaa   :  { %3131 = vmatprep.mubr.msk.bf16.mxu1 %vm3643_vm0, %v3642_v0 }
 0xbac   :  { %v3337_v16 = vpop.eup %3336 }
 0xbad   :  { %v2040_v18 = vmul.f32 %v3337_v16, %v4329_v34 }
 0xbaf   :  { %v2041_v22 = vpack.c.bf16 %v2040_v18, %v2040_v18 }
 0xbb1   :  { %v2264_v15 = vpop.xlane.xlu1 %2263 }
 0xbc6   :  { %v2152_v14 = vpop.xlane.xlu0 %2151 }
 0xbc7   :  { %3338 = vrcp.f32 %v2152_v14 }
 0xbc8   :  { %3340 = vrcp.f32 %v2264_v15 }
 0xbca   :  { %v2157_v21 = vpop.permute.xlu0 %2156 }
 0xbcb   :  { %v2162_v12 = vsel %vm378_vm3, %v2157_v21, 0 }
 0xbce   :  { %v2269_v26 = vpop.permute.xlu0 %2268 }
 0xbcf   :  { %v2274_v28 = vsel %vm378_vm3, %v2269_v26, 0 }
 0xbd1   :  { %v3339_v23 = vpop.eup %3338 }
 0xbd2   :  { %v2154_v25 = vmul.f32 %v3339_v23, %v4342_v48  ;;  %v3341_v24 = vpop.eup %3340  ;;  %v2381_v30 = vpop.permute.xlu0 %2380 }
 0xbd3   :  { %v2266_v29 = vmul.f32 %v3341_v24, %v4337_v44  ;;  %v2386_v35 = vsel %vm378_vm3, %v2381_v30, 0 }
 0xbd4   :  { %v2155_v27 = vpack.c.bf16 %v2154_v25, %v2154_v25 }
 0xbd5   :  { %v2267_v31 = vpack.c.bf16 %v2266_v29, %v2266_v29 }
 0xbde   :  { %v2376_v17 = vpop.xlane.xlu1 %2375 }
 0xbdf   :  { %3342 = vrcp.f32 %v2376_v17 }
 0xbe2   :  { %v2044_v19 = vpop.permute.xlu1 %2043 }
 0xbe3   :  { %v2049_v20 = vsel %vm378_vm3, %v2044_v19, 0 }
 0xbe4   :  { %3130 = vmatpush3.bf16.msra.mxu1 %v2049_v20 }
 0xbe5   :  { %3141 = vmatprep.subr.bf16.mxu1 %v3642_v0 }
 0xbe7   :  { %3132 = vmatmul.mubr.msk.bf16.vlgmr.msra.gmra.mrb[60].mxu1 %vm312_vm2, %v2041_v22 }
 0xbe8   :  { %3142 = vmatpush3.bf16.msra.mxu1 %v2162_v12  ;;  %3143 = vmatprep.mubr.msk.bf16.mxu1 %vm3643_vm0, %v3642_v0 }
 0xbe9   :  { %3153 = vmatprep.subr.bf16.mxu1 %v3642_v0  ;;  %v3343_v34 = vpop.eup %3342 }
 0xbea   :  { %v2378_v36 = vmul.f32 %v3343_v34, %v4346_v53 }
 0xbec   :  { %v2379_v37 = vpack.c.bf16 %v2378_v36, %v2378_v36 }
 0xbef   :  { %3144 = vmatmul.mubr.msk.bf16.vlgmr.msra.gmra.mrb[64].mxu1 %vm312_vm2, %v2155_v27 }
 0xbf0   :  { %3154 = vmatpush3.bf16.msra.mxu1 %v2274_v28  ;;  %3155 = vmatprep.mubr.msk.bf16.mxu1 %vm3643_vm0, %v3642_v0  ;;  %v2838_v28 = vld [vmem:[#allocation7] ss:$0 sm:$0xff] }
 0xbf1   :  { %3165 = vmatprep.subr.bf16.mxu1 %v3642_v0 }
 0xbf7   :  { %3156 = vmatmul.mubr.msk.bf16.vlgmr.msra.gmra.mrb[68].mxu1 %vm312_vm2, %v2267_v31 }
 0xbf8   :  { %3166 = vmatpush3.bf16.msra.mxu1 %v2386_v35  ;;  %3167 = vmatprep.mubr.msk.bf16.mxu1 %vm3643_vm0, %v3642_v0 }
 0xbf9   :  { %3179 = vmatprep.subr.bf16.mxu1 %v3642_v0 }
 0xbff   :  { %3168 = vmatmul.mubr.msk.bf16.vlgmr.msra.gmra.mrb[72].mxu1 %vm312_vm2, %v2379_v37 }
 0xc00   :  { %3183 = vmatprep.mubr.msk.bf16.mxu1 %vm3643_vm0, %v3642_v0 }
 0xc2b   :  { %v1614_v38 = vpop.f32.mrb[44].mxu1 }
 0xc2c   :  { %v3085_v39 = vpop.f32.mrb[45].mxu1 }
 0xc2d   :  { %v1617_v41 = vpop.f32.mrb[46].mxu1 }
 0xc2e   :  { %v3086_v42 = vpop.f32.mrb[47].mxu1 }
 0xc68   :  { %v1727_v44 = vpop.f32.mrb[48].mxu1 }
 0xc69   :  { %v3097_v45 = vpop.f32.mrb[49].mxu1 }
 0xc6a   :  { %v1730_v46 = vpop.f32.mrb[50].mxu1 }
 0xc6b   :  { %v3098_v47 = vpop.f32.mrb[51].mxu1 }
 0xc74   :  { %v1839_v48 = vpop.f32.mrb[52].mxu1 }
 0xc75   :  { %v3109_v43 = vpop.f32.mrb[53].mxu1 }
 0xc76   :  { %v1842_v40 = vpop.f32.mrb[54].mxu1 }
 0xc77   :  { %v3110_v49 = vpop.f32.mrb[55].mxu1 }
 0xc7c   :  { %v1951_v50 = vpop.f32.mrb[56].mxu1 }
 0xc7d   :  { %v3121_v51 = vpop.f32.mrb[57].mxu1 }
 0xc7e   :  { %v1954_v52 = vpop.f32.mrb[58].mxu1  ;;  %v3271_v51 = vld [vmem:[%s4484_s21] sm:$0xff]  }
 0xc7f   :  { %v3122_v53 = vpop.f32.mrb[59].mxu1  ;;  %v3272_v52 = vld [vmem:[%s4484_s21 + $0x8] sm:$0xff]  }
 0xcba   :  { %v2085_v54 = vpop.f32.mrb[60].mxu1 }
 0xcbb   :  { %v3133_v56 = vpop.f32.mrb[61].mxu1 }
 0xcbc   :  { %v2088_v57 = vpop.f32.mrb[62].mxu1 }
 0xcbd   :  { %v3134_v58 = vpop.f32.mrb[63].mxu1 }
 0xcc2   :  { %v2198_v59 = vpop.f32.mrb[64].mxu1 }
 0xcc3   :  { %v3242_v61 = vpack.i.bf16 %v2198_v59, %v1727_v44  ;;  %v3145_v62 = vpop.f32.mrb[65].mxu1 }
 0xcc4   :  { %v2201_v9 = vpop.f32.mrb[66].mxu1  ;;  %v2842_v62 = vld [vmem:[#allocation12] ss:$0 sm:$0xff] }
 0xcc5   :  { %3243 = vrot.lane.b32.xlu1 %v3242_v61, %s3655_s15  ;;  %v3146_v63 = vpop.f32.mrb[67].mxu1 }
 0xcca   :  { %v2310_v4 = vpop.f32.mrb[68].mxu1 }
 0xccb   :  { %v3247_v55 = vpack.i.bf16 %v2310_v4, %v1839_v48  ;;  %v3157_v5 = vpop.f32.mrb[69].mxu1  ;;  %v2843_v4 = vld [vmem:[#allocation13] ss:$0 sm:$0xff] }
 0xccc   :  { %v2313_v1 = vpop.f32.mrb[70].mxu1 }
 0xccd   :  { %3248 = vrot.lane.b32.xlu0 %v3247_v55, %s3656_s22  ;;  %v3158_v6 = vpop.f32.mrb[71].mxu1 }
 0xcd2   :  { %v2422_v7 = vpop.f32.mrb[72].mxu1 }
 0xcd3   :  { %v3252_v8 = vpack.i.bf16 %v2422_v7, %v1951_v50  ;;  %v3169_v10 = vpop.f32.mrb[73].mxu1  ;;  %v3270_v50 = vld [vmem:[%s4482_s19 + $0x8] sm:$0xff]   ;;  %v3273_v7 = vld [vmem:[%s4484_s21 + $0x10] sm:$0xff]  }
 0xcd4   :  { %v2425_v3 = vpop.f32.mrb[74].mxu1  ;;  %v2844_v10 = vld [vmem:[#allocation15] ss:$0 sm:$0xff] }
 0xcd5   :  { %3253 = vrot.lane.b32.xlu1 %v3252_v8, %s3657_s12  ;;  %v3170_v11 = vpop.f32.mrb[75].mxu1  ;;  %v3274_v8 = vld [vmem:[%s4484_s21 + $0x18] sm:$0xff]  }
 0xd37   :  { %v3244_v13 = vpop.permute.xlu1 %3243 }
 0xd38   :  { %v3246_v15 = vunpack.i.h.bf16 %v3244_v13  ;;  %v3245_v16 = vunpack.i.l.bf16 %v3244_v13 }
 0xd3a   :  { %v2440_v20 = vsel %vm312_vm2, %v2085_v54, %v3246_v15  ;;  %v1969_v21 = vsel %vm312_vm2, %v1614_v38, %v3245_v16 }
 0xd3f   :  { %v3249_v14 = vpop.permute.xlu0 %3248 }
 0xd40   :  { %v3251_v17 = vunpack.i.h.bf16 %v3249_v14  ;;  %v3250_v18 = vunpack.i.l.bf16 %v3249_v14 }
 0xd42   :  { %v2441_v12 = vsel %vm771_vm4, %v2440_v20, %v3251_v17  ;;  %v1970_v25 = vsel %vm771_vm4, %v1969_v21, %v3250_v18  ;;  %v2848_v20 = vld [vmem:[#allocation16] ss:$0 sm:$0xff] }
 0xd47   :  { %v3254_v19 = vpop.permute.xlu1 %3253 }
 0xd48   :  { %v3256_v22 = vunpack.i.h.bf16 %v3254_v19  ;;  %v3255_v23 = vunpack.i.l.bf16 %v3254_v19 }
 0xd4a   :  { %v2442_v26 = vsel %vm773_vm5, %v2441_v12, %v3256_v22  ;;  %v1971_v27 = vsel %vm773_vm5, %v1970_v25, %v3255_v23 }
 0xd4b   :  { %v2443_v24 = vpack.c.bf16 %v2442_v26, %v1971_v27 }
 0xd4d   :  { %3176 = vmatmul.mubr.msk.bf16.vlgmr.msra.gmra.mrb[68].mxu0 %vm254_vm1, %v2443_v24 }
 0xd4e   :  { %3195 = vmatprep.mubr.msk.bf16.mxu0 %vm3643_vm0, %v3642_v0  ;;  %3188 = vmatpush3.bf16.msra.mxu0 %v3271_v51 }
 0xd4f   :  { %3189 = vmatprep.subr.bf16.mxu0 %v3642_v0 }
 0xd52   :  { %3190 = vmatpush3.bf16.msra.mxu0 %v3272_v52 }
 0xd53   :  { %3191 = vmatprep.subr.bf16.mxu0 %v3642_v0 }
 0xd56   :  { %3192 = vmatpush3.bf16.msra.mxu0 %v3273_v7 }
 0xd57   :  { %3193 = vmatprep.subr.bf16.mxu0 %v3642_v0 }
 0xd5a   :  { %3194 = vmatpush3.bf16.msra.mxu0 %v3274_v8 }
 0xe20   :  { %v2504_v29 = vpop.f32.mrb[68].mxu0 }
 0xe21   :  { %v2505_v30 = vadd.f32 %v2838_v28, %v2504_v29  ;;  %v3177_v31 = vpop.f32.mrb[69].mxu0 }
 0xe22   :  { %v2507_v34 = vpop.f32.mrb[70].mxu0 }
 0xe23   :  { %v2508_v35 = vadd.f32 %v2838_v28, %v2507_v34  ;;  %v3178_v36 = vpop.f32.mrb[71].mxu0  ;;  %v2511_v37 = vadd.f32 %v2505_v30, %v4213_v32 }
 0xe25   :  { %v2515_v38 = vsel %vm254_vm1, %v2511_v37, 0.0  ;;  %v2512_v39 = vadd.f32 %v2508_v35, %v4215_v33  ;;  %v3269_v33 = vld [vmem:[%s4482_s19] sm:$0xff]  }
 0xe26   :  { %2516 = vadd.xlane.f32.xlu0 %v2515_v38  ;;  %3180 = vmatpush3.bf16.msra.mxu1 %v3269_v33  ;;  %v2855_v33 = vld [vmem:[#allocation19] ss:$0 sm:$0xff] }
 0xe27   :  { %v2518_v41 = vsel %vm254_vm1, %v2512_v39, 0.0  ;;  %3181 = vmatprep.subr.bf16.mxu1 %v3642_v0 }
 0xe28   :  { %2519 = vadd.xlane.f32.xlu1 %v2518_v41 }
 0xe2a   :  { %3182 = vmatpush3.bf16.msra.mxu1 %v3270_v50 }
 0xeb3   :  { %v2517_v42 = vpop.xlane.xlu0 %2516 }
 0xeb4   :  { %v2521_v44 = vmul.f32 0.03125, %v2517_v42 }
 0xeb5   :  { %v2520_v45 = vpop.xlane.xlu1 %2519 }
 0xeb6   :  { %v2523_v46 = vsub.f32 %v2511_v37, %v2521_v44  ;;  %v2522_v47 = vmul.f32 0.03125, %v2520_v45 }
 0xeb8   :  { %v2524_v48 = vsub.f32 %v2512_v39, %v2522_v47  ;;  %v2525_v43 = vmul.f32 %v2523_v46, %v2523_v46 }
 0xeba   :  { %v2527_v40 = vsel %vm254_vm1, %v2525_v43, 0.0  ;;  %v2526_v49 = vmul.f32 %v2524_v48, %v2524_v48 }
 0xebb   :  { %2528 = vadd.xlane.f32.xlu0 %v2527_v40  ;;  %v2854_v40 = vld [vmem:[#allocation18] ss:$0 sm:$0xff] }
 0xebc   :  { %v2530_v32 = vsel %vm254_vm1, %v2526_v49, 0.0 }
 0xebf   :  { %2531 = vadd.xlane.f32.xlu0 %v2530_v32 }
 0xf48   :  { %v2529_v53 = vpop.xlane.xlu0 %2528 }
 0xf49   :  { %v2533_v54 = vmul.f32 0.03125, %v2529_v53 }
 0xf4b   :  { %v2535_v56 = vadd.f32 1e-05, %v2533_v54 }
 0xf4c   :  { %v2532_v57 = vpop.xlane.xlu0 %2531 }
 0xf4d   :  { %3344 = vrsqrt.f32 %v2535_v56  ;;  %v2534_v58 = vmul.f32 0.03125, %v2532_v57 }
 0xf4f   :  { %v2536_v59 = vadd.f32 1e-05, %v2534_v58 }
 0xf51   :  { %3346 = vrsqrt.f32 %v2536_v59 }
 0xf57   :  { %v3345_v60 = vpop.eup %3344 }
 0xf58   :  { %v2539_v61 = vmul.f32 %v3345_v60, %v2523_v46 }
 0xf5a   :  { %v2547_v63 = vmul.f32 %v2842_v62, %v2539_v61 }
 0xf5b   :  { %v3347_v9 = vpop.eup %3346 }
 0xf5c   :  { %v2540_v2 = vmul.f32 %v3347_v9, %v2524_v48  ;;  %v2555_v5 = vadd.f32 %v2843_v4, %v2547_v63 }
 0xf5e   :  { %v2548_v55 = vmul.f32 %v2842_v62, %v2540_v2 }
 0xf60   :  { %v2556_v1 = vadd.f32 %v2843_v4, %v2548_v55 }
 0xf62   :  { %v2557_v6 = vpack.c.bf16 %v2556_v1, %v2555_v5 }
 0xf64   :  { %3184 = vmatmul.mubr.msk.bf16.vlgmr.msra.gmra.mrb[76].mxu1 %vm254_vm1, %v2557_v6 }
0x1037   :  { %v2618_v3 = vpop.f32.mrb[76].mxu1 }
0x1038   :  { %v2619_v11 = vadd.f32 %v2844_v10, %v2618_v3  ;;  %v3185_v13 = vpop.f32.mrb[77].mxu1 }
0x1039   :  { %v2621_v14 = vpop.f32.mrb[78].mxu1 }
0x103a   :  { %v2622_v15 = vadd.f32 %v2844_v10, %v2621_v14  ;;  %v3186_v16 = vpop.f32.mrb[79].mxu1  ;;  %v2625_v17 = vmax.f32 %v2619_v11, 0.0 }
0x103c   :  { %v2626_v18 = vmax.f32 %v2622_v15, 0.0 }
0x103e   :  { %v2627_v19 = vpack.c.bf16 %v2626_v18, %v2625_v17 }
0x1040   :  { %3196 = vmatmul.mubr.msk.bf16.vlgmr.msra.gmra.mrb[72].mxu0 %vm2667_vm6, %v2627_v19 }
0x1113   :  { %v2705_v21 = vpop.f32.mrb[72].mxu0 }
0x1114   :  { %v2706_v0 = vadd.f32 %v2848_v20, %v2705_v21  ;;  %v3197_v22 = vpop.f32.mrb[73].mxu0 }
0x1115   :  { %v2708_v23 = vpop.f32.mrb[74].mxu0 }
0x1116   :  { %v2709_v12 = vadd.f32 %v2848_v20, %v2708_v23  ;;  %v3198_v25 = vpop.f32.mrb[75].mxu0  ;;  %v2712_v26 = vadd.f32 %v2706_v0, %v2555_v5 }
0x1118   :  { %v2716_v27 = vsel %vm254_vm1, %v2712_v26, 0.0  ;;  %v2713_v24 = vadd.f32 %v2709_v12, %v2556_v1 }
0x1119   :  { %2717 = vadd.xlane.f32.xlu1 %v2716_v27 }
0x111a   :  { %v2719_v28 = vsel %vm254_vm1, %v2713_v24, 0.0 }
0x111b   :  { %2720 = vadd.xlane.f32.xlu0 %v2719_v28 }
0x11a6   :  { %v2718_v29 = vpop.xlane.xlu1 %2717 }
0x11a7   :  { %v2722_v30 = vmul.f32 0.03125, %v2718_v29 }
0x11a8   :  { %v2721_v31 = vpop.xlane.xlu0 %2720 }
0x11a9   :  { %v2724_v34 = vsub.f32 %v2712_v26, %v2722_v30  ;;  %v2723_v35 = vmul.f32 0.03125, %v2721_v31 }
0x11ab   :  { %v2725_v36 = vsub.f32 %v2713_v24, %v2723_v35  ;;  %v2726_v37 = vmul.f32 %v2724_v34, %v2724_v34 }
0x11ad   :  { %v2728_v38 = vsel %vm254_vm1, %v2726_v37, 0.0  ;;  %v2727_v39 = vmul.f32 %v2725_v36, %v2725_v36 }
0x11ae   :  { %2729 = vadd.xlane.f32.xlu1 %v2728_v38 }
0x11af   :  { %v2731_v41 = vsel %vm254_vm1, %v2727_v39, 0.0 }
0x11b0   :  { %2732 = vadd.xlane.f32.xlu0 %v2731_v41 }
0x123b   :  { %v2730_v42 = vpop.xlane.xlu1 %2729 }
0x123c   :  { %v2734_v44 = vmul.f32 0.03125, %v2730_v42 }
0x123d   :  { %v2733_v45 = vpop.xlane.xlu0 %2732 }
0x123e   :  { %v2736_v46 = vadd.f32 1e-05, %v2734_v44  ;;  %v2735_v47 = vmul.f32 0.03125, %v2733_v45 }
0x1240   :  { %3348 = vrsqrt.f32 %v2736_v46  ;;  %v2737_v48 = vadd.f32 1e-05, %v2735_v47 }
0x1242   :  { %3350 = vrsqrt.f32 %v2737_v48 }
0x124a   :  { %v3349_v43 = vpop.eup %3348 }
0x124b   :  { %v2740_v49 = vmul.f32 %v3349_v43, %v2724_v34 }
0x124c   :  { %v3351_v32 = vpop.eup %3350 }
0x124d   :  { %v2748_v50 = vmul.f32 %v2854_v40, %v2740_v49  ;;  %v2741_v51 = vmul.f32 %v3351_v32, %v2725_v36 }
0x124f   :  { %v2756_v52 = vadd.f32 %v2855_v33, %v2748_v50  ;;  %v2749_v53 = vmul.f32 %v2854_v40, %v2741_v51 }
0x1251   :  { %v2858_v54 = vpack.c.bf16 %v2756_v52, %v2756_v52  ;;  %v2757_v56 = vadd.f32 %v2855_v33, %v2749_v53 }
0x1253   :  { %2767 = vst.msk [vmem:[%s4488_s25] sm:$0xf] %vm2766_vm7, %v2858_v54  ;;  %v2859_v57 = vpack.c.bf16 %v2757_v56, %v2757_v56 }
0x1255   :  { %2768 = vst.msk [vmem:[%s4488_s25 + $0x4] sm:$0xf] %vm2766_vm7, %v2859_v57 }
0x1256   :  { %2773 = vsyncpa [#allocation3], 1 }
0x1257   :  { %2774 = vsyncpa [#allocation5], 1 }
0x1258   :  { %2775 = vsyncpa [#allocation8], 1 }
0x1259   :  { %2776 = vsyncpa [#allocation11], 1 }
0x125a   :  { %2777 = vsyncpa [#allocation14], 1 }
0x125b   :  { %2778 = vsyncpa [#allocation17], 1 }
0x125c   :  { %2779 = vsyncpa [#allocation20], 1 }

// kernel: translation_forward.9
= control target key start
LH: loop header
LB: loop body
LE: loop exit
PB: predicated region body
PF: predicated region fallthrough
CT: control target
= control target key end

     0   :  { %v3194_v0 = vmov 0.0   ;;  %vm3195_vm0 = vmmov 0   ;;  %vm115_vm1 = vcmask 261120   ;;  %s3196_s28 = smov 120   ;;  %s3941_s29 = smov 72   ;;  %vm173_vm2 = vcmask 64512   ;;  %s3907_s5 = inlined_call_operand.vmem [shape: bf16[32,96], index: 5, kind: input, shape index: {}]   ;;  %s3908_s0 = inlined_call_operand.vmem [shape: bf16[16,32], index: 0, kind: input, shape index: {}]   ;;  %s3909_s6 = inlined_call_operand.vmem [shape: f32[1,96], index: 6, kind: input, shape index: {}]   ;;  %s3910_s2 = inlined_call_operand.vmem [shape: f32[8,8], index: 2, kind: input, shape index: {}]   ;;  %s3911_s3 = inlined_call_operand.vmem [shape: f32[2,1,8], index: 3, kind: input, shape index: {}]   ;;  %s3912_s7 = inlined_call_operand.vmem [shape: bf16[32,32], index: 7, kind: input, shape index: {}]   ;;  %s3913_s8 = inlined_call_operand.vmem [shape: f32[1,32], index: 8, kind: input, shape index: {}]   ;;  %s3914_s11 = inlined_call_operand.vmem [shape: bf16[32,64], index: 11, kind: input, shape index: {}]   ;;  %s3915_s1 = inlined_call_operand.vmem [shape: bf16[16,32], index: 1, kind: input, shape index: {}]   ;;  %s3916_s9 = inlined_call_operand.vmem [shape: bf16[32,32], index: 9, kind: input, shape index: {}]   ;;  %s3917_s15 = inlined_call_operand.vmem [shape: f32[1,32], index: 15, kind: input, shape index: {}]   ;;  %s3918_s16 = inlined_call_operand.vmem [shape: f32[1,32], index: 16, kind: input, shape index: {}]   ;;  %s3919_s12 = inlined_call_operand.vmem [shape: f32[1,64], index: 12, kind: input, shape index: {}]   ;;  %s3920_s10 = inlined_call_operand.vmem [shape: f32[1,32], index: 10, kind: input, shape index: {}]   ;;  %s3921_s4 = inlined_call_operand.vmem [shape: f32[2,1,8], index: 4, kind: input, shape index: {}]   ;;  %s3922_s13 = inlined_call_operand.vmem [shape: bf16[32,32], index: 13, kind: input, shape index: {}]   ;;  %s3923_s14 = inlined_call_operand.vmem [shape: f32[1,32], index: 14, kind: input, shape index: {}]   ;;  %s3924_s19 = inlined_call_operand.vmem [shape: bf16[32,64], index: 19, kind: input, shape index: {}]   ;;  %s3925_s21 = inlined_call_operand.vmem [shape: bf16[64,32], index: 21, kind: input, shape index: {}]   ;;  %s3926_s17 = inlined_call_operand.vmem [shape: f32[1,32], index: 17, kind: input, shape index: {}]   ;;  %s3927_s18 = inlined_call_operand.vmem [shape: f32[1,32], index: 18, kind: input, shape index: {}]   ;;  %s3928_s20 = inlined_call_operand.vmem [shape: f32[1,64], index: 20, kind: input, shape index: {}]   ;;  %s3929_s22 = inlined_call_operand.vmem [shape: f32[1,32], index: 22, kind: input, shape index: {}]   ;;  %s3930_s23 = inlined_call_operand.vmem [shape: f32[1,32], index: 23, kind: input, shape index: {}]   ;;  %s3931_s24 = inlined_call_operand.vmem [shape: f32[1,32], index: 24, kind: input, shape index: {}]   ;;  %s3932_s25 = inlined_call_operand.vmem [shape: bf16[16,32], index: 25, kind: output, shape index: {}]  }
   0x1   :  { %3947 = sst [smem:[#allocation2_spill]] %s3907_s5  ;;  %2801 = vmatprep.subr.bf16.mxu1 %v3194_v0  ;;  %2805 = vmatprep.mubr.msk.bf16.mxu1 %vm3195_vm0, %v3194_v0  ;;  %s3199_s5 = smov 88   ;;  %vm239_vm3 = vcmask 1043456   ;;  %vm632_vm4 = vcmask 130048   ;;  %vm634_vm5 = vcmask 195584   ;;  %vm2528_vm6 = vcmask 523264  }
   0x2   :  { %3948 = sst [smem:[#allocation3_spill]] %s3908_s0  ;;  %2815 = vmatprep.subr.bf16.mxu0 %v3194_v0  ;;  %2817 = vmatprep.mubr.msk.bf16.mxu0 %vm3195_vm0, %v3194_v0  ;;  %s3203_s30 = smov 56   ;;  %vm2627_vm7 = vcmask 257024  }
   0x3   :  { %3949 = sst [smem:[#allocation4_spill]] %s3909_s6  ;;  %s3958_s0 = sld [smem:[#allocation3_spill]] }
   0x4   :  { %3950 = sst [smem:[#allocation5_spill]] %s3910_s2  ;;  %s3201_s6 = smov 112  }
   0x5   :  { %3951 = sst [smem:[#allocation6_spill]] %s3911_s3  ;;  %s3959_s3 = sld [smem:[#allocation4_spill]] }
   0x6   :  { %3952 = sst [smem:[#allocation7_spill]] %s3912_s7  ;;  %s3943_s7 = smov 80  }
   0x7   :  { %3953 = sst [smem:[#allocation8_spill]] %s3913_s8  ;;  %s3957_s8 = sld [smem:[#allocation2_spill]] }
   0x8   :  { %3954 = sst [smem:[#allocation9_spill]] %s3914_s11  ;;  %s3960_s2 = sld [smem:[#allocation5_spill]] }
   0x9   :  { %3955 = sst [smem:[#allocation10_spill]] %s3915_s1  ;;  %v3355_v3 = vld [vmem:[%s3958_s0] sm:$0xff]   ;;  %s3961_s1 = sld [smem:[#allocation6_spill]] }
   0xa   :  { %3956 = sst [smem:[#allocation11_spill]] %s3916_s9  ;;  %s3945_s9 = smov 96  }
   0xb   :  { %v2634_v4 = vld [vmem:[%s3959_s3] ss:$0 sm:$0xff]  ;;  %s3204_s11 = smov 64   ;;  %s3206_s26 = smov 40  }
   0xc   :  { %s3962_s27 = sld [smem:[#allocation7_spill]]  ;;  %s3940_s3 = smov 8  }
   0xd   :  { %v3099_v1 = vld [vmem:[%s3957_s8] sm:$0xff]   ;;  %v3100_v2 = vld [vmem:[%s3957_s8 + $0x8] sm:$0xff]   ;;  %s3202_s8 = smov 104   ;;  %s3964_s0 = sld [smem:[#allocation9_spill]] }
   0xe   :  { %2802 = vmatpush3.bf16.msra.mxu1 %v3099_v1  ;;  %v160_v35 = vld [vmem:[%s3960_s2] sm:$0xff]  ;;  %s3205_s2 = smov 48  }
   0xf   :  { %2803 = vmatprep.subr.bf16.mxu1 %v3194_v0  ;;  %v2639_v36 = vld [vmem:[%s3961_s1] ss:$0 sm:$0xff] }
  0x10   :  { %v168_v37 = vadd.f32 %v2639_v36, %v160_v35 }
  0x12   :  { %2804 = vmatpush3.bf16.msra.mxu1 %v3100_v2  ;;  %v2649_v2 = vld [vmem:[%s3961_s1 + $0x1] ss:$0 sm:$0xff] }
  0x13   :  { %2809 = vmatprep.subr.bf16.mxu1 %v3194_v0 }
  0x15   :  { %2806 = vmatmul.mubr.msk.bf16.vlgmr.msra.gmra.mrb[0].mxu1 %vm115_vm1, %v3355_v3 }
  0x16   :  { %2811 = vmatprep.mubr.msk.bf16.mxu1 %vm3195_vm0, %v3194_v0 }
  0xe8   :  { %v153_v5 = vpop.f32.mrb[0].mxu1 }
  0xe9   :  { %v154_v6 = vadd.f32 %v2634_v4, %v153_v5  ;;  %v2807_v7 = vpop.f32.mrb[1].mxu1  ;;  %v644_v5 = vadd.f32 %v2649_v2, %v160_v35 }
  0xea   :  { %v156_v8 = vpop.f32.mrb[2].mxu1 }
  0xeb   :  { %v3366_v9 = vpack.c.bf16 %v154_v6, %v154_v6  ;;  %v2808_v10 = vpop.f32.mrb[3].mxu1  ;;  %v157_v11 = vadd.f32 %v2634_v4, %v156_v8 }
  0xed   :  { %283 = vrot.lane.b32.xlu1 %v3366_v9, %s3196_s28  ;;  %171 = vrot.lane.b32.xlu0 %v3366_v9, %s3945_s9  ;;  %v3380_v12 = vpack.c.bf16 %v157_v11, %v157_v11 }
  0xf1   :  { %397 = vrot.lane.b32.xlu1 %v3366_v9, %s3943_s7  ;;  %285 = vrot.lane.b32.xlu0 %v3366_v9, %s3199_s5 }
  0xf5   :  { %509 = vrot.lane.b32.xlu1 %v3366_v9, %s3941_s29  ;;  %395 = vrot.lane.b32.xlu0 %v3366_v9, %s3201_s6 }
  0xf9   :  { %507 = vrot.lane.b32.xlu0 %v3366_v9, %s3202_s8  ;;  %647 = vrot.lane.b32.xlu1 %v3380_v12, %s3945_s9  ;;  %s3966_s9 = sld [smem:[#allocation11_spill]] }
  0xfd   :  { %759 = vrot.lane.b32.xlu0 %v3380_v12, %s3199_s5  ;;  %757 = vrot.lane.b32.xlu1 %v3380_v12, %s3196_s28 }
 0x101   :  { %871 = vrot.lane.b32.xlu0 %v3380_v12, %s3943_s7  ;;  %869 = vrot.lane.b32.xlu1 %v3380_v12, %s3201_s6  ;;  %s3971_s7 = smov 16  }
 0x105   :  { %983 = vrot.lane.b32.xlu0 %v3380_v12, %s3941_s29  ;;  %981 = vrot.lane.b32.xlu1 %v3380_v12, %s3202_s8  ;;  %s3972_s29 = smov 24  }
 0x15f   :  { %v172_v13 = vpop.permute.xlu0 %171  ;;  %v284_v16 = vpop.permute.xlu1 %283 }
 0x160   :  { %v178_v14 = vsel %vm173_vm2, %v172_v13, 0 }
 0x161   :  { %2810 = vmatpush3.bf16.xpose.msra.mxu1 %v178_v14 }
 0x162   :  { %2821 = vmatprep.subr.bf16.mxu1 %v3194_v0 }
 0x163   :  { %v286_v15 = vpop.permute.xlu0 %285  ;;  %v398_v18 = vpop.permute.xlu1 %397 }
 0x164   :  { %v291_v17 = vsel %vm173_vm2, %v286_v15, 0  ;;  %v403_v19 = vsel %vm173_vm2, %v398_v18, 0 }
 0x167   :  { %v510_v20 = vpop.permute.xlu1 %509  ;;  %v396_v21 = vpop.permute.xlu0 %395 }
 0x168   :  { %2812 = vmatmul.mubr.msk.bf16.vlgmr.msra.gmra.mrb[4].mxu1 %vm173_vm2, %v3366_v9  ;;  %v515_v22 = vsel %vm173_vm2, %v510_v20, 0 }
 0x169   :  { %2822 = vmatpush3.bf16.xpose.msra.mxu1 %v291_v17  ;;  %2823 = vmatprep.mubr.msk.bf16.mxu1 %vm3195_vm0, %v3194_v0 }
 0x16a   :  { %2833 = vmatprep.subr.bf16.mxu1 %v3194_v0 }
 0x16b   :  { %v648_v23 = vpop.permute.xlu1 %647  ;;  %v508_v24 = vpop.permute.xlu0 %507 }
 0x16c   :  { %v653_v25 = vsel %vm173_vm2, %v648_v23, 0 }
 0x16f   :  { %v760_v26 = vpop.permute.xlu0 %759  ;;  %v758_v29 = vpop.permute.xlu1 %757 }
 0x170   :  { %2824 = vmatmul.mubr.msk.bf16.vlgmr.msra.gmra.mrb[8].mxu1 %vm173_vm2, %v284_v16  ;;  %v765_v27 = vsel %vm173_vm2, %v760_v26, 0 }
 0x171   :  { %2834 = vmatpush3.bf16.xpose.msra.mxu1 %v403_v19  ;;  %2835 = vmatprep.mubr.msk.bf16.mxu1 %vm3195_vm0, %v3194_v0 }
 0x172   :  { %2845 = vmatprep.subr.bf16.mxu1 %v3194_v0 }
 0x173   :  { %v872_v28 = vpop.permute.xlu0 %871  ;;  %v870_v32 = vpop.permute.xlu1 %869 }
 0x174   :  { %v877_v30 = vsel %vm173_vm2, %v872_v28, 0 }
 0x177   :  { %v984_v31 = vpop.permute.xlu0 %983  ;;  %v982_v34 = vpop.permute.xlu1 %981 }
 0x178   :  { %2836 = vmatmul.mubr.msk.bf16.vlgmr.msra.gmra.mrb[12].mxu1 %vm173_vm2, %v396_v21  ;;  %v989_v33 = vsel %vm173_vm2, %v984_v31, 0 }
 0x179   :  { %2846 = vmatpush3.bf16.xpose.msra.mxu1 %v515_v22  ;;  %2847 = vmatprep.mubr.msk.bf16.mxu1 %vm3195_vm0, %v3194_v0 }
 0x17a   :  { %2857 = vmatprep.subr.bf16.mxu1 %v3194_v0 }
 0x180   :  { %2848 = vmatmul.mubr.msk.bf16.vlgmr.msra.gmra.mrb[16].mxu1 %vm173_vm2, %v508_v24 }
 0x181   :  { %2858 = vmatpush3.bf16.xpose.msra.mxu1 %v653_v25  ;;  %2859 = vmatprep.mubr.msk.bf16.mxu1 %vm3195_vm0, %v3194_v0 }
 0x182   :  { %2869 = vmatprep.subr.bf16.mxu1 %v3194_v0 }
 0x188   :  { %2860 = vmatmul.mubr.msk.bf16.vlgmr.msra.gmra.mrb[20].mxu1 %vm173_vm2, %v3380_v12 }
 0x189   :  { %2870 = vmatpush3.bf16.xpose.msra.mxu1 %v765_v27  ;;  %2871 = vmatprep.mubr.msk.bf16.mxu1 %vm3195_vm0, %v3194_v0 }
 0x18a   :  { %2881 = vmatprep.subr.bf16.mxu1 %v3194_v0 }
 0x190   :  { %2872 = vmatmul.mubr.msk.bf16.vlgmr.msra.gmra.mrb[24].mxu1 %vm173_vm2, %v758_v29 }
 0x191   :  { %2882 = vmatpush3.bf16.xpose.msra.mxu1 %v877_v30  ;;  %2883 = vmatprep.mubr.msk.bf16.mxu1 %vm3195_vm0, %v3194_v0 }
 0x192   :  { %2893 = vmatprep.subr.bf16.mxu1 %v3194_v0 }
 0x198   :  { %2884 = vmatmul.mubr.msk.bf16.vlgmr.msra.gmra.mrb[28].mxu1 %vm173_vm2, %v870_v32 }
 0x199   :  { %2894 = vmatpush3.bf16.xpose.msra.mxu1 %v989_v33  ;;  %2895 = vmatprep.mubr.msk.bf16.mxu1 %vm3195_vm0, %v3194_v0 }
 0x19a   :  { %2905 = vmatprep.subr.bf16.mxu1 %v3194_v0 }
 0x1a0   :  { %2896 = vmatmul.mubr.msk.bf16.vlgmr.msra.gmra.mrb[32].mxu1 %vm173_vm2, %v982_v34 }
 0x1a1   :  { %2909 = vmatprep.mubr.msk.bf16.mxu1 %vm3195_vm0, %v3194_v0 }
 0x23b   :  { %v214_v38 = vpop.f32.mrb[4].mxu1 }
 0x23c   :  { %v220_v39 = vmul.f32 0.35355338, %v214_v38  ;;  %v2813_v40 = vpop.f32.mrb[5].mxu1 }
 0x23d   :  { %v217_v41 = vpop.f32.mrb[6].mxu1 }
 0x23e   :  { %v2814_v42 = vpop.f32.mrb[7].mxu1  ;;  %v3446_v43 = vadd.f32 %v220_v39, %v168_v37 }
 0x240   :  { %v222_v44 = vsel %vm173_vm2, %v3446_v43, -inf }
 0x241   :  { %223 = vmax.xlane.f32.xlu0 %v222_v44 }
 0x243   :  { %v327_v45 = vpop.f32.mrb[8].mxu1 }
 0x244   :  { %v333_v46 = vmul.f32 0.35355338, %v327_v45  ;;  %v2825_v47 = vpop.f32.mrb[9].mxu1 }
 0x245   :  { %v330_v48 = vpop.f32.mrb[10].mxu1 }
 0x246   :  { %v2826_v49 = vpop.f32.mrb[11].mxu1  ;;  %v3450_v50 = vadd.f32 %v333_v46, %v168_v37 }
 0x248   :  { %v335_v51 = vsel %vm173_vm2, %v3450_v50, -inf }
 0x249   :  { %336 = vmax.xlane.f32.xlu1 %v335_v51 }
 0x24b   :  { %v439_v52 = vpop.f32.mrb[12].mxu1 }
 0x24c   :  { %v445_v53 = vmul.f32 0.35355338, %v439_v52  ;;  %v2837_v54 = vpop.f32.mrb[13].mxu1 }
 0x24d   :  { %v442_v55 = vpop.f32.mrb[14].mxu1 }
 0x24e   :  { %v2838_v56 = vpop.f32.mrb[15].mxu1  ;;  %v446_v57 = vadd.f32 %v445_v53, %v168_v37 }
 0x250   :  { %v447_v58 = vsel %vm173_vm2, %v446_v57, -inf }
 0x251   :  { %448 = vmax.xlane.f32.xlu0 %v447_v58 }
 0x253   :  { %v551_v59 = vpop.f32.mrb[16].mxu1 }
 0x254   :  { %v557_v60 = vmul.f32 0.35355338, %v551_v59  ;;  %v2849_v61 = vpop.f32.mrb[17].mxu1 }
 0x255   :  { %v554_v62 = vpop.f32.mrb[18].mxu1 }
 0x256   :  { %v2850_v63 = vpop.f32.mrb[19].mxu1  ;;  %v3455_v1 = vadd.f32 %v557_v60, %v168_v37 }
 0x258   :  { %v559_v4 = vsel %vm173_vm2, %v3455_v1, -inf }
 0x259   :  { %560 = vmax.xlane.f32.xlu0 %v559_v4 }
 0x25b   :  { %v689_v6 = vpop.f32.mrb[20].mxu1 }
 0x25c   :  { %v695_v7 = vmul.f32 0.35355338, %v689_v6  ;;  %v2861_v8 = vpop.f32.mrb[21].mxu1 }
 0x25d   :  { %v692_v10 = vpop.f32.mrb[22].mxu1 }
 0x25e   :  { %v2862_v11 = vpop.f32.mrb[23].mxu1  ;;  %v3462_v13 = vadd.f32 %v695_v7, %v644_v5 }
 0x260   :  { %v697_v14 = vsel %vm173_vm2, %v3462_v13, -inf }
 0x261   :  { %698 = vmax.xlane.f32.xlu1 %v697_v14 }
 0x263   :  { %v801_v15 = vpop.f32.mrb[24].mxu1 }
 0x264   :  { %v807_v16 = vmul.f32 0.35355338, %v801_v15  ;;  %v2873_v17 = vpop.f32.mrb[25].mxu1 }
 0x265   :  { %v804_v18 = vpop.f32.mrb[26].mxu1 }
 0x266   :  { %v2874_v19 = vpop.f32.mrb[27].mxu1  ;;  %v3466_v20 = vadd.f32 %v807_v16, %v644_v5 }
 0x268   :  { %v809_v21 = vsel %vm173_vm2, %v3466_v20, -inf }
 0x269   :  { %810 = vmax.xlane.f32.xlu0 %v809_v21 }
 0x26b   :  { %v913_v22 = vpop.f32.mrb[28].mxu1 }
 0x26c   :  { %v919_v23 = vmul.f32 0.35355338, %v913_v22  ;;  %v2885_v24 = vpop.f32.mrb[29].mxu1 }
 0x26d   :  { %v916_v25 = vpop.f32.mrb[30].mxu1 }
 0x26e   :  { %v2886_v26 = vpop.f32.mrb[31].mxu1  ;;  %v920_v27 = vadd.f32 %v919_v23, %v644_v5 }
 0x270   :  { %v921_v28 = vsel %vm173_vm2, %v920_v27, -inf }
 0x271   :  { %922 = vmax.xlane.f32.xlu1 %v921_v28 }
 0x273   :  { %v1025_v29 = vpop.f32.mrb[32].mxu1 }
 0x274   :  { %v2897_v30 = vpop.f32.mrb[33].mxu1  ;;  %v1031_v33 = vmul.f32 0.35355338, %v1025_v29 }
 0x275   :  { %v1028_v31 = vpop.f32.mrb[34].mxu1 }
 0x276   :  { %v2898_v32 = vpop.f32.mrb[35].mxu1  ;;  %v3475_v34 = vadd.f32 %v1031_v33, %v644_v5 }
 0x278   :  { %v1033_v35 = vsel %vm173_vm2, %v3475_v34, -inf }
 0x27f   :  { %347 = vrot.lane.b32.xlu0 %v3366_v9, %s3203_s30 }
 0x282   :  { %234 = vrot.lane.b32.xlu1 %v3366_v9, %s3204_s11 }
 0x29e   :  { %1034 = vmax.xlane.f32.xlu0 %v1033_v35 }
 0x2ce   :  { %v224_v36 = vpop.xlane.xlu0 %223 }
 0x2cf   :  { %v225_v37 = vsub.f32 %v3446_v43, %v224_v36 }
 0x2d1   :  { %v226_v38 = vmul.f32 1.442695, %v225_v37 }
 0x2d3   :  { %3118 = vpow2.f32 %v226_v38 }
 0x2d6   :  { %v337_v39 = vpop.xlane.xlu1 %336 }
 0x2d7   :  { %v338_v40 = vsub.f32 %v3450_v50, %v337_v39 }
 0x2d9   :  { %v339_v41 = vmul.f32 1.442695, %v338_v40 }
 0x2db   :  { %3120 = vpow2.f32 %v339_v41 }
 0x2dd   :  { %v3481_v42 = vpop.eup %3118 }
 0x2de   :  { %v449_v44 = vpop.xlane.xlu0 %448  ;;  %v228_v45 = vsel %vm173_vm2, %v3481_v42, 0.0 }
 0x2df   :  { %v450_v46 = vsub.f32 %v446_v57, %v449_v44  ;;  %229 = vadd.xlane.f32.xlu1 %v228_v45 }
 0x2e1   :  { %v451_v47 = vmul.f32 1.442695, %v450_v46 }
 0x2e3   :  { %3122 = vpow2.f32 %v451_v47 }
 0x2e5   :  { %v3485_v48 = vpop.eup %3120 }
 0x2e6   :  { %v341_v43 = vsel %vm173_vm2, %v3485_v48, 0.0  ;;  %v561_v54 = vpop.xlane.xlu0 %560 }
 0x2e7   :  { %342 = vadd.xlane.f32.xlu0 %v341_v43  ;;  %v562_v56 = vsub.f32 %v3455_v1, %v561_v54 }
 0x2e9   :  { %v563_v57 = vmul.f32 1.442695, %v562_v56 }
 0x2eb   :  { %3124 = vpow2.f32 %v563_v57 }
 0x2ed   :  { %v3489_v49 = vpop.eup %3122 }
 0x2ee   :  { %v453_v50 = vsel %vm173_vm2, %v3489_v49, 0.0  ;;  %v699_v51 = vpop.xlane.xlu1 %698 }
 0x2ef   :  { %454 = vadd.xlane.f32.xlu1 %v453_v50  ;;  %v700_v58 = vsub.f32 %v3462_v13, %v699_v51 }
 0x2f1   :  { %v701_v61 = vmul.f32 1.442695, %v700_v58 }
 0x2f3   :  { %3126 = vpow2.f32 %v701_v61 }
 0x2f5   :  { %v3125_v2 = vpop.eup %3124 }
 0x2f6   :  { %v811_v59 = vpop.xlane.xlu0 %810  ;;  %v565_v4 = vsel %vm173_vm2, %v3125_v2, 0.0 }
 0x2f7   :  { %v812_v60 = vsub.f32 %v3466_v20, %v811_v59 }
 0x2fa   :  { %v348_v11 = vpop.permute.xlu0 %347 }
 0x2fb   :  { %v353_v23 = vsel %vm239_vm3, %v348_v11, 0 }
 0x2fd   :  { %459 = vrot.lane.b32.xlu0 %v3366_v9, %s3205_s2  ;;  %v3503_v5 = vpop.eup %3126 }
 0x2fe   :  { %v923_v52 = vpop.xlane.xlu1 %922  ;;  %v703_v6 = vsel %vm173_vm2, %v3503_v5, 0.0 }
 0x2ff   :  { %v924_v62 = vsub.f32 %v920_v27, %v923_v52 }
 0x300   :  { %571 = vrot.lane.b32.xlu1 %v3366_v9, %s3206_s26  ;;  %v813_v9 = vmul.f32 1.442695, %v812_v60 }
 0x301   :  { %v925_v63 = vmul.f32 1.442695, %v924_v62 }
 0x302   :  { %v235_v53 = vpop.permute.xlu1 %234  ;;  %3128 = vpow2.f32 %v813_v9 }
 0x303   :  { %v241_v55 = vsel %vm239_vm3, %v235_v53, 0  ;;  %3130 = vpow2.f32 %v925_v63 }
 0x304   :  { %2816 = vmatpush3.bf16.msra.mxu0 %v241_v55 }
 0x305   :  { %2827 = vmatprep.subr.bf16.mxu0 %v3194_v0 }
 0x30c   :  { %v3505_v1 = vpop.eup %3128 }
 0x30d   :  { %v3509_v7 = vpop.eup %3130  ;;  %v815_v8 = vsel %vm173_vm2, %v3505_v1, 0.0 }
 0x30e   :  { %v927_v10 = vsel %vm173_vm2, %v3509_v7, 0.0 }
 0x31c   :  { %566 = vadd.xlane.f32.xlu0 %v565_v4 }
 0x320   :  { %704 = vadd.xlane.f32.xlu0 %v703_v6 }
 0x324   :  { %816 = vadd.xlane.f32.xlu1 %v815_v8  ;;  %928 = vadd.xlane.f32.xlu0 %v927_v10 }
 0x32b   :  { %v1035_v13 = vpop.xlane.xlu0 %1034 }
 0x32c   :  { %v1036_v14 = vsub.f32 %v3475_v34, %v1035_v13 }
 0x32e   :  { %v1037_v15 = vmul.f32 1.442695, %v1036_v14 }
 0x330   :  { %3132 = vpow2.f32 %v1037_v15 }
 0x335   :  { %821 = vrot.lane.b32.xlu1 %v3380_v12, %s3203_s30 }
 0x339   :  { %933 = vrot.lane.b32.xlu1 %v3380_v12, %s3205_s2  ;;  %s3939_s2 = smov 16  }
 0x33a   :  { %v3520_v16 = vpop.eup %3132 }
 0x33b   :  { %v1039_v17 = vsel %vm173_vm2, %v3520_v16, 0.0 }
 0x33c   :  { %1040 = vadd.xlane.f32.xlu0 %v1039_v17 }
 0x33d   :  { %1045 = vrot.lane.b32.xlu1 %v3380_v12, %s3206_s26  ;;  %s3938_s26 = smov 24  }
 0x352   :  { %709 = vrot.lane.b32.xlu0 %v3380_v12, %s3204_s11 }
 0x36c   :  { %v230_v18 = vpop.xlane.xlu1 %229 }
 0x36d   :  { %3134 = vrcp.f32 %v230_v18 }
 0x374   :  { %v343_v19 = vpop.xlane.xlu0 %342 }
 0x375   :  { %3136 = vrcp.f32 %v343_v19 }
 0x377   :  { %v3135_v20 = vpop.eup %3134 }
 0x378   :  { %v232_v21 = vmul.f32 %v3135_v20, %v3481_v42  ;;  %v460_v26 = vpop.permute.xlu0 %459 }
 0x379   :  { %v465_v28 = vsel %vm239_vm3, %v460_v26, 0  ;;  %v3103_v26 = vld [vmem:[%s3962_s27 + $0x8] sm:$0xff]  }
 0x37a   :  { %v233_v22 = vpack.c.bf16 %v232_v21, %v232_v21 }
 0x37c   :  { %2818 = vmatmul.mubr.msk.bf16.vlgmr.msra.gmra.mrb[0].mxu0 %vm173_vm2, %v233_v22  ;;  %v455_v24 = vpop.xlane.xlu1 %454 }
 0x37d   :  { %2828 = vmatpush3.bf16.msra.mxu0 %v353_v23  ;;  %3138 = vrcp.f32 %v455_v24  ;;  %2829 = vmatprep.mubr.msk.bf16.mxu0 %vm3195_vm0, %v3194_v0  ;;  %v3102_v24 = vld [vmem:[%s3962_s27] sm:$0xff]   ;;  %s3963_s27 = sld [smem:[#allocation8_spill]] }
 0x37e   :  { %2839 = vmatprep.subr.bf16.mxu0 %v3194_v0  ;;  %2906 = vmatpush3.bf16.msra.mxu1 %v3102_v24 }
 0x37f   :  { %v3137_v12 = vpop.eup %3136  ;;  %2907 = vmatprep.subr.bf16.mxu1 %v3194_v0 }
 0x380   :  { %v345_v25 = vmul.f32 %v3137_v12, %v3485_v48  ;;  %v572_v31 = vpop.permute.xlu1 %571 }
 0x381   :  { %v577_v33 = vsel %vm239_vm3, %v572_v31, 0 }
 0x382   :  { %v346_v27 = vpack.c.bf16 %v345_v25, %v345_v25  ;;  %2908 = vmatpush3.bf16.msra.mxu1 %v3103_v26 }
 0x383   :  { %2921 = vmatprep.subr.bf16.mxu1 %v3194_v0 }
 0x384   :  { %2830 = vmatmul.mubr.msk.bf16.vlgmr.msra.gmra.mrb[4].mxu0 %vm173_vm2, %v346_v27 }
 0x385   :  { %2840 = vmatpush3.bf16.msra.mxu0 %v465_v28  ;;  %2841 = vmatprep.mubr.msk.bf16.mxu0 %vm3195_vm0, %v3194_v0 }
 0x386   :  { %2851 = vmatprep.subr.bf16.mxu0 %v3194_v0 }
 0x387   :  { %v3139_v29 = vpop.eup %3138 }
 0x388   :  { %v457_v30 = vmul.f32 %v3139_v29, %v3489_v49 }
 0x38a   :  { %v458_v32 = vpack.c.bf16 %v457_v30, %v457_v30 }
 0x38c   :  { %2842 = vmatmul.mubr.msk.bf16.vlgmr.msra.gmra.mrb[8].mxu0 %vm173_vm2, %v458_v32 }
 0x38d   :  { %2852 = vmatpush3.bf16.msra.mxu0 %v577_v33  ;;  %2853 = vmatprep.mubr.msk.bf16.mxu0 %vm3195_vm0, %v3194_v0 }
 0x38e   :  { %2863 = vmatprep.subr.bf16.mxu0 %v3194_v0 }
 0x3a9   :  { %v567_v34 = vpop.xlane.xlu0 %566 }
 0x3aa   :  { %3140 = vrcp.f32 %v567_v34 }
 0x3ad   :  { %v705_v38 = vpop.xlane.xlu0 %704 }
 0x3ae   :  { %3142 = vrcp.f32 %v705_v38 }
 0x3b1   :  { %v817_v39 = vpop.xlane.xlu1 %816  ;;  %v929_v40 = vpop.xlane.xlu0 %928 }
 0x3b2   :  { %3144 = vrcp.f32 %v817_v39 }
 0x3b3   :  { %3146 = vrcp.f32 %v929_v40 }
 0x3b4   :  { %v3141_v35 = vpop.eup %3140 }
 0x3b5   :  { %v569_v36 = vmul.f32 %v3141_v35, %v3125_v2  ;;  %v822_v47 = vpop.permute.xlu1 %821 }
 0x3b6   :  { %v827_v49 = vsel %vm239_vm3, %v822_v47, 0 }
 0x3b7   :  { %v570_v37 = vpack.c.bf16 %v569_v36, %v569_v36 }
 0x3b8   :  { %v3143_v41 = vpop.eup %3142 }
 0x3b9   :  { %2854 = vmatmul.mubr.msk.bf16.vlgmr.msra.gmra.mrb[12].mxu0 %vm173_vm2, %v570_v37  ;;  %v707_v44 = vmul.f32 %v3143_v41, %v3503_v5  ;;  %v934_v51 = vpop.permute.xlu1 %933 }
 0x3ba   :  { %2865 = vmatprep.mubr.msk.bf16.mxu0 %vm3195_vm0, %v3194_v0  ;;  %v939_v54 = vsel %vm239_vm3, %v934_v51, 0 }
 0x3bb   :  { %v708_v48 = vpack.c.bf16 %v707_v44, %v707_v44 }
 0x3bc   :  { %v3145_v43 = vpop.eup %3144 }
 0x3bd   :  { %v819_v50 = vmul.f32 %v3145_v43, %v3505_v1  ;;  %v3147_v53 = vpop.eup %3146  ;;  %v1046_v56 = vpop.permute.xlu1 %1045 }
 0x3be   :  { %v931_v55 = vmul.f32 %v3147_v53, %v3509_v7  ;;  %v1051_v59 = vsel %vm239_vm3, %v1046_v56, 0  ;;  %v2658_v53 = vld [vmem:[%s3963_s27] ss:$0 sm:$0xff]  ;;  %s3970_s27 = smov 8  }
 0x3bf   :  { %v820_v52 = vpack.c.bf16 %v819_v50, %v819_v50 }
 0x3c0   :  { %v932_v57 = vpack.c.bf16 %v931_v55, %v931_v55 }
 0x3c9   :  { %v1041_v42 = vpop.xlane.xlu0 %1040 }
 0x3ca   :  { %3148 = vrcp.f32 %v1041_v42 }
 0x3cd   :  { %v710_v45 = vpop.permute.xlu0 %709 }
 0x3ce   :  { %v715_v46 = vsel %vm239_vm3, %v710_v45, 0 }
 0x3cf   :  { %2864 = vmatpush3.bf16.msra.mxu0 %v715_v46 }
 0x3d0   :  { %2875 = vmatprep.subr.bf16.mxu0 %v3194_v0 }
 0x3d2   :  { %2866 = vmatmul.mubr.msk.bf16.vlgmr.msra.gmra.mrb[16].mxu0 %vm173_vm2, %v708_v48 }
 0x3d3   :  { %2876 = vmatpush3.bf16.msra.mxu0 %v827_v49  ;;  %2877 = vmatprep.mubr.msk.bf16.mxu0 %vm3195_vm0, %v3194_v0 }
 0x3d4   :  { %2887 = vmatprep.subr.bf16.mxu0 %v3194_v0  ;;  %v3149_v58 = vpop.eup %3148 }
 0x3d5   :  { %v1043_v60 = vmul.f32 %v3149_v58, %v3520_v16  ;;  %v84_v58 = vunpack.c.h.bf16 %v3355_v3 }
 0x3d7   :  { %v1044_v61 = vpack.c.bf16 %v1043_v60, %v1043_v60 }
 0x3da   :  { %2878 = vmatmul.mubr.msk.bf16.vlgmr.msra.gmra.mrb[20].mxu0 %vm173_vm2, %v820_v52 }
 0x3db   :  { %2888 = vmatpush3.bf16.msra.mxu0 %v939_v54  ;;  %2889 = vmatprep.mubr.msk.bf16.mxu0 %vm3195_vm0, %v3194_v0  ;;  %v83_v54 = vunpack.c.l.bf16 %v3355_v3 }
 0x3dc   :  { %2899 = vmatprep.subr.bf16.mxu0 %v3194_v0 }
 0x3e2   :  { %2890 = vmatmul.mubr.msk.bf16.vlgmr.msra.gmra.mrb[24].mxu0 %vm173_vm2, %v932_v57 }
 0x3e3   :  { %2900 = vmatpush3.bf16.msra.mxu0 %v1051_v59  ;;  %2901 = vmatprep.mubr.msk.bf16.mxu0 %vm3195_vm0, %v3194_v0 }
 0x3e4   :  { %2913 = vmatprep.subr.bf16.mxu0 %v3194_v0 }
 0x3ea   :  { %2902 = vmatmul.mubr.msk.bf16.vlgmr.msra.gmra.mrb[28].mxu0 %vm173_vm2, %v1044_v61 }
 0x3eb   :  { %2917 = vmatprep.mubr.msk.bf16.mxu0 %vm3195_vm0, %v3194_v0 }
 0x44f   :  { %v277_v62 = vpop.f32.mrb[0].mxu0 }
 0x450   :  { %v2819_v9 = vpop.f32.mrb[1].mxu0 }
 0x451   :  { %v280_v63 = vpop.f32.mrb[2].mxu0 }
 0x452   :  { %v2820_v2 = vpop.f32.mrb[3].mxu0 }
 0x457   :  { %v389_v4 = vpop.f32.mrb[4].mxu0 }
 0x458   :  { %v2831_v5 = vpop.f32.mrb[5].mxu0 }
 0x459   :  { %v392_v1 = vpop.f32.mrb[6].mxu0 }
 0x45a   :  { %v2832_v6 = vpop.f32.mrb[7].mxu0 }
 0x45f   :  { %v501_v7 = vpop.f32.mrb[8].mxu0 }
 0x460   :  { %v2843_v8 = vpop.f32.mrb[9].mxu0 }
 0x461   :  { %v504_v10 = vpop.f32.mrb[10].mxu0 }
 0x462   :  { %v2844_v11 = vpop.f32.mrb[11].mxu0 }
 0x48c   :  { %v613_v13 = vpop.f32.mrb[12].mxu0 }
 0x48d   :  { %v2855_v14 = vpop.f32.mrb[13].mxu0 }
 0x48e   :  { %v616_v15 = vpop.f32.mrb[14].mxu0  ;;  %v3104_v14 = vld [vmem:[%s3964_s0] sm:$0xff]  }
 0x48f   :  { %v2856_v16 = vpop.f32.mrb[15].mxu0  ;;  %v3105_v15 = vld [vmem:[%s3964_s0 + $0x8] sm:$0xff]   ;;  %s3969_s0 = smov 72  }
 0x4a5   :  { %v751_v17 = vpop.f32.mrb[16].mxu0 }
 0x4a6   :  { %v2867_v18 = vpop.f32.mrb[17].mxu0 }
 0x4a7   :  { %v754_v19 = vpop.f32.mrb[18].mxu0  ;;  %v3108_v18 = vld [vmem:[%s3966_s9 + $0x8] sm:$0xff]  }
 0x4a8   :  { %v2868_v20 = vpop.f32.mrb[19].mxu0 }
 0x4ad   :  { %v863_v21 = vpop.f32.mrb[20].mxu0 }
 0x4ae   :  { %v3069_v22 = vpack.i.bf16 %v863_v21, %v389_v4  ;;  %v2879_v23 = vpop.f32.mrb[21].mxu0 }
 0x4af   :  { %v866_v12 = vpop.f32.mrb[22].mxu0 }
 0x4b0   :  { %3070 = vrot.lane.b32.xlu1 %v3069_v22, %s3940_s3  ;;  %v2880_v25 = vpop.f32.mrb[23].mxu0  ;;  %s3965_s3 = sld [smem:[#allocation10_spill]] }
 0x4b1   :  { %v2662_v25 = vld [vmem:[%s3917_s15] ss:$0 sm:$0xff] }
 0x4b5   :  { %v975_v27 = vpop.f32.mrb[24].mxu0 }
 0x4b6   :  { %v3074_v28 = vpack.i.bf16 %v975_v27, %v501_v7  ;;  %v2891_v29 = vpop.f32.mrb[25].mxu0  ;;  %v3106_v16 = vld [vmem:[%s3965_s3] sm:$0xff]  }
 0x4b7   :  { %v978_v30 = vpop.f32.mrb[26].mxu0 }
 0x4b8   :  { %3075 = vrot.lane.b32.xlu1 %v3074_v28, %s3939_s2  ;;  %v2892_v31 = vpop.f32.mrb[27].mxu0  ;;  %v2663_v30 = vld [vmem:[%s3918_s16] ss:$0 sm:$0xff] }
 0x4bd   :  { %v1087_v32 = vpop.f32.mrb[28].mxu0 }
 0x4be   :  { %v3079_v33 = vpack.i.bf16 %v1087_v32, %v613_v13  ;;  %v2903_v34 = vpop.f32.mrb[29].mxu0 }
 0x4bf   :  { %v1090_v35 = vpop.f32.mrb[30].mxu0 }
 0x4c0   :  { %3080 = vrot.lane.b32.xlu0 %v3079_v33, %s3938_s26  ;;  %v2904_v36 = vpop.f32.mrb[31].mxu0  ;;  %v2668_v35 = vld [vmem:[%s3919_s12] ss:$0 sm:$0xff] }
 0x522   :  { %v3071_v37 = vpop.permute.xlu1 %3070 }
 0x523   :  { %v3073_v39 = vunpack.i.h.bf16 %v3071_v37  ;;  %v3072_v40 = vunpack.i.l.bf16 %v3071_v37 }
 0x525   :  { %v1105_v45 = vsel %vm173_vm2, %v751_v17, %v3073_v39  ;;  %v631_v46 = vsel %vm173_vm2, %v277_v62, %v3072_v40  ;;  %v3107_v17 = vld [vmem:[%s3966_s9] sm:$0xff]  }
 0x526   :  { %2914 = vmatpush3.bf16.msra.mxu0 %v3107_v17 }
 0x527   :  { %2915 = vmatprep.subr.bf16.mxu0 %v3194_v0 }
 0x52a   :  { %v3076_v38 = vpop.permute.xlu1 %3075  ;;  %2916 = vmatpush3.bf16.msra.mxu0 %v3108_v18 }
 0x52b   :  { %v3078_v41 = vunpack.i.h.bf16 %v3076_v38  ;;  %v3077_v42 = vunpack.i.l.bf16 %v3076_v38  ;;  %2929 = vmatprep.subr.bf16.mxu0 %v3194_v0 }
 0x52d   :  { %v1106_v43 = vsel %vm632_vm4, %v1105_v45, %v3078_v41  ;;  %v633_v49 = vsel %vm632_vm4, %v631_v46, %v3077_v42  ;;  %v2664_v45 = vld [vmem:[%s3920_s10] ss:$0 sm:$0xff] }
 0x532   :  { %v3081_v44 = vpop.permute.xlu0 %3080 }
 0x533   :  { %v3083_v47 = vunpack.i.h.bf16 %v3081_v44  ;;  %v3082_v48 = vunpack.i.l.bf16 %v3081_v44 }
 0x535   :  { %v1107_v50 = vsel %vm634_vm5, %v1106_v43, %v3083_v47  ;;  %v635_v51 = vsel %vm634_vm5, %v633_v49, %v3082_v48 }
 0x536   :  { %v1108_v52 = vpack.c.bf16 %v1107_v50, %v635_v51 }
 0x538   :  { %2910 = vmatmul.mubr.msk.bf16.vlgmr.msra.gmra.mrb[36].mxu1 %vm115_vm1, %v1108_v52 }
 0x539   :  { %2925 = vmatprep.mubr.msk.bf16.mxu1 %vm3195_vm0, %v3194_v0  ;;  %2922 = vmatpush3.bf16.msra.mxu1 %v3104_v14 }
 0x53a   :  { %2923 = vmatprep.subr.bf16.mxu1 %v3194_v0 }
 0x53d   :  { %2924 = vmatpush3.bf16.msra.mxu1 %v3105_v15 }
 0x53e   :  { %2935 = vmatprep.subr.bf16.mxu1 %v3194_v0 }
 0x540   :  { %2926 = vmatmul.mubr.msk.bf16.vlgmr.msra.gmra.mrb[40].mxu1 %vm115_vm1, %v3106_v16 }
 0x541   :  { %2937 = vmatprep.mubr.msk.bf16.mxu1 %vm3195_vm0, %v3194_v0 }
 0x60b   :  { %v1169_v55 = vpop.f32.mrb[36].mxu1 }
 0x60c   :  { %v1170_v56 = vadd.f32 %v2658_v53, %v1169_v55  ;;  %v2911_v57 = vpop.f32.mrb[37].mxu1 }
 0x60d   :  { %v1172_v59 = vpop.f32.mrb[38].mxu1 }
 0x60e   :  { %v1173_v60 = vadd.f32 %v2658_v53, %v1172_v59  ;;  %v2912_v61 = vpop.f32.mrb[39].mxu1  ;;  %v1176_v62 = vadd.f32 %v1170_v56, %v83_v54 }
 0x610   :  { %v1180_v9 = vsel %vm115_vm1, %v1176_v62, 0.0  ;;  %v1177_v63 = vadd.f32 %v1173_v60, %v84_v58 }
 0x611   :  { %1181 = vadd.xlane.f32.xlu1 %v1180_v9 }
 0x612   :  { %v1183_v2 = vsel %vm115_vm1, %v1177_v63, 0.0 }
 0x613   :  { %1184 = vadd.xlane.f32.xlu0 %v1183_v2  ;;  %v1356_v36 = vpop.f32.mrb[40].mxu1 }
 0x614   :  { %v1357_v37 = vadd.f32 %v2668_v35, %v1356_v36  ;;  %v2927_v38 = vpop.f32.mrb[41].mxu1 }
 0x615   :  { %v1359_v39 = vpop.f32.mrb[42].mxu1 }
 0x616   :  { %v3642_v40 = vpack.c.bf16 %v1357_v37, %v1357_v37  ;;  %v1360_v41 = vadd.f32 %v2668_v35, %v1359_v39  ;;  %v2928_v42 = vpop.f32.mrb[43].mxu1 }
 0x618   :  { %v1370_v44 = vsel %vm173_vm2, %v3642_v40, 0  ;;  %v3665_v55 = vpack.c.bf16 %v1360_v41, %v1360_v41 }
 0x61a   :  { %v1841_v9 = vsel %vm173_vm2, %v3665_v55, 0 }
 0x69e   :  { %v1182_v4 = vpop.xlane.xlu1 %1181 }
 0x69f   :  { %v1187_v5 = vmul.f32 0.03125, %v1182_v4 }
 0x6a0   :  { %v1185_v1 = vpop.xlane.xlu0 %1184 }
 0x6a1   :  { %v1189_v6 = vsub.f32 %v1176_v62, %v1187_v5  ;;  %v1188_v7 = vmul.f32 0.03125, %v1185_v1 }
 0x6a3   :  { %v1190_v8 = vsub.f32 %v1177_v63, %v1188_v7  ;;  %v1191_v10 = vmul.f32 %v1189_v6, %v1189_v6 }
 0x6a5   :  { %v1193_v3 = vsel %vm115_vm1, %v1191_v10, 0.0  ;;  %v1192_v11 = vmul.f32 %v1190_v8, %v1190_v8 }
 0x6a6   :  { %1194 = vadd.xlane.f32.xlu0 %v1193_v3 }
 0x6a7   :  { %v1196_v13 = vsel %vm115_vm1, %v1192_v11, 0.0  ;;  %v2674_v11 = vld [vmem:[%s3921_s4] ss:$0 sm:$0xff] }
 0x6a8   :  { %1197 = vadd.xlane.f32.xlu1 %v1196_v13 }
 0x6bc   :  { %1484 = vrot.lane.b32.xlu0 %v3642_v40, %s3196_s28 }
 0x733   :  { %v1195_v19 = vpop.xlane.xlu0 %1194 }
 0x734   :  { %v1199_v20 = vmul.f32 0.03125, %v1195_v19 }
 0x735   :  { %v1198_v21 = vpop.xlane.xlu1 %1197 }
 0x736   :  { %v1201_v22 = vadd.f32 1e-05, %v1199_v20  ;;  %v1200_v23 = vmul.f32 0.03125, %v1198_v21 }
 0x737   :  { %v1485_v43 = vpop.permute.xlu0 %1484 }
 0x738   :  { %3150 = vrsqrt.f32 %v1201_v22  ;;  %v1202_v24 = vadd.f32 1e-05, %v1200_v23  ;;  %v1490_v52 = vsel %vm173_vm2, %v1485_v43, 0 }
 0x73a   :  { %3152 = vrsqrt.f32 %v1202_v24 }
 0x742   :  { %v3151_v12 = vpop.eup %3150 }
 0x743   :  { %v1205_v26 = vmul.f32 %v3151_v12, %v1189_v6 }
 0x744   :  { %v3153_v27 = vpop.eup %3152 }
 0x745   :  { %v1213_v28 = vmul.f32 %v2662_v25, %v1205_v26  ;;  %v1206_v29 = vmul.f32 %v3153_v27, %v1190_v8 }
 0x747   :  { %v1214_v31 = vmul.f32 %v2662_v25, %v1206_v29  ;;  %v3630_v32 = vadd.f32 %v2663_v30, %v1213_v28 }
 0x749   :  { %v3632_v33 = vadd.f32 %v2663_v30, %v1214_v31 }
 0x74b   :  { %v1223_v34 = vpack.c.bf16 %v3632_v33, %v3630_v32 }
 0x74d   :  { %2918 = vmatmul.mubr.msk.bf16.vlgmr.msra.gmra.mrb[32].mxu0 %vm115_vm1, %v1223_v34 }
 0x74e   :  { %2931 = vmatprep.mubr.msk.bf16.mxu0 %vm3195_vm0, %v3194_v0  ;;  %2930 = vmatpush3.bf16.xpose.msra.mxu0 %v1370_v44  ;;  %v2684_v44 = vld [vmem:[%s3921_s4 + $0x1] ss:$0 sm:$0xff]  ;;  %s3967_s4 = smov 96  }
 0x74f   :  { %2941 = vmatprep.subr.bf16.mxu0 %v3194_v0 }
 0x820   :  { %v1284_v46 = vpop.f32.mrb[32].mxu0 }
 0x821   :  { %v1285_v47 = vadd.f32 %v2664_v45, %v1284_v46  ;;  %v2919_v48 = vpop.f32.mrb[33].mxu0 }
 0x822   :  { %v1287_v49 = vpop.f32.mrb[34].mxu0 }
 0x823   :  { %v1364_v50 = vpack.c.bf16 %v1285_v47, %v1285_v47  ;;  %v2920_v51 = vpop.f32.mrb[35].mxu0  ;;  %v1288_v53 = vadd.f32 %v2664_v45, %v1287_v49 }
 0x825   :  { %1594 = vrot.lane.b32.xlu0 %v1364_v50, %s3201_s6  ;;  %1482 = vrot.lane.b32.xlu1 %v1364_v50, %s3196_s28  ;;  %v1835_v54 = vpack.c.bf16 %v1288_v53, %v1288_v53 }
 0x826   :  { %2932 = vmatmul.mubr.msk.bf16.vlgmr.msra.gmra.mrb[36].mxu0 %vm173_vm2, %v1364_v50 }
 0x827   :  { %2942 = vmatpush3.bf16.xpose.msra.mxu0 %v1490_v52  ;;  %2943 = vmatprep.mubr.msk.bf16.mxu0 %vm3195_vm0, %v3194_v0 }
 0x828   :  { %2953 = vmatprep.subr.bf16.mxu0 %v3194_v0 }
 0x829   :  { %1706 = vrot.lane.b32.xlu0 %v1364_v50, %s3202_s8  ;;  %1596 = vrot.lane.b32.xlu1 %v3642_v40, %s3201_s6 }
 0x82d   :  { %1708 = vrot.lane.b32.xlu1 %v3642_v40, %s3202_s8  ;;  %1953 = vrot.lane.b32.xlu0 %v1835_v54, %s3196_s28 }
 0x831   :  { %1955 = vrot.lane.b32.xlu1 %v3665_v55, %s3196_s28  ;;  %2065 = vrot.lane.b32.xlu0 %v1835_v54, %s3201_s6 }
 0x835   :  { %2067 = vrot.lane.b32.xlu1 %v3665_v55, %s3201_s6  ;;  %2177 = vrot.lane.b32.xlu0 %v1835_v54, %s3202_s8 }
 0x839   :  { %2179 = vrot.lane.b32.xlu1 %v3665_v55, %s3202_s8  ;;  %s3968_s8 = smov 80  }
 0x897   :  { %v1483_v56 = vpop.permute.xlu1 %1482  ;;  %v1595_v60 = vpop.permute.xlu0 %1594 }
 0x898   :  { %2944 = vmatmul.mubr.msk.bf16.vlgmr.msra.gmra.mrb[40].mxu0 %vm173_vm2, %v1483_v56 }
 0x899   :  { %2955 = vmatprep.mubr.msk.bf16.mxu0 %vm3195_vm0, %v3194_v0 }
 0x89b   :  { %v1597_v57 = vpop.permute.xlu1 %1596  ;;  %v1707_v62 = vpop.permute.xlu0 %1706 }
 0x89c   :  { %v1602_v58 = vsel %vm173_vm2, %v1597_v57, 0 }
 0x89d   :  { %2954 = vmatpush3.bf16.xpose.msra.mxu0 %v1602_v58 }
 0x89e   :  { %2965 = vmatprep.subr.bf16.mxu0 %v3194_v0 }
 0x89f   :  { %v1709_v59 = vpop.permute.xlu1 %1708  ;;  %v1954_v5 = vpop.permute.xlu0 %1953 }
 0x8a0   :  { %v1714_v61 = vsel %vm173_vm2, %v1709_v59, 0 }
 0x8a3   :  { %v1956_v63 = vpop.permute.xlu1 %1955  ;;  %v2066_v7 = vpop.permute.xlu0 %2065 }
 0x8a4   :  { %2956 = vmatmul.mubr.msk.bf16.vlgmr.msra.gmra.mrb[44].mxu0 %vm173_vm2, %v1595_v60  ;;  %v1961_v2 = vsel %vm173_vm2, %v1956_v63, 0 }
 0x8a5   :  { %2966 = vmatpush3.bf16.xpose.msra.mxu0 %v1714_v61  ;;  %2967 = vmatprep.mubr.msk.bf16.mxu0 %vm3195_vm0, %v3194_v0 }
 0x8a6   :  { %2977 = vmatprep.subr.bf16.mxu0 %v3194_v0 }
 0x8a7   :  { %v2068_v4 = vpop.permute.xlu1 %2067  ;;  %v2178_v10 = vpop.permute.xlu0 %2177 }
 0x8a8   :  { %v2073_v1 = vsel %vm173_vm2, %v2068_v4, 0 }
 0x8ab   :  { %v2180_v6 = vpop.permute.xlu1 %2179 }
 0x8ac   :  { %2968 = vmatmul.mubr.msk.bf16.vlgmr.msra.gmra.mrb[48].mxu0 %vm173_vm2, %v1707_v62  ;;  %v2185_v8 = vsel %vm173_vm2, %v2180_v6, 0 }
 0x8ad   :  { %2978 = vmatpush3.bf16.xpose.msra.mxu0 %v1841_v9  ;;  %2979 = vmatprep.mubr.msk.bf16.mxu0 %vm3195_vm0, %v3194_v0 }
 0x8ae   :  { %2989 = vmatprep.subr.bf16.mxu0 %v3194_v0 }
 0x8b4   :  { %2980 = vmatmul.mubr.msk.bf16.vlgmr.msra.gmra.mrb[52].mxu0 %vm173_vm2, %v1835_v54 }
 0x8b5   :  { %2990 = vmatpush3.bf16.xpose.msra.mxu0 %v1961_v2  ;;  %2991 = vmatprep.mubr.msk.bf16.mxu0 %vm3195_vm0, %v3194_v0 }
 0x8b6   :  { %3001 = vmatprep.subr.bf16.mxu0 %v3194_v0 }
 0x8bc   :  { %2992 = vmatmul.mubr.msk.bf16.vlgmr.msra.gmra.mrb[56].mxu0 %vm173_vm2, %v1954_v5 }
 0x8bd   :  { %3002 = vmatpush3.bf16.xpose.msra.mxu0 %v2073_v1  ;;  %3003 = vmatprep.mubr.msk.bf16.mxu0 %vm3195_vm0, %v3194_v0 }
 0x8be   :  { %3013 = vmatprep.subr.bf16.mxu0 %v3194_v0 }
 0x8c4   :  { %3004 = vmatmul.mubr.msk.bf16.vlgmr.msra.gmra.mrb[60].mxu0 %vm173_vm2, %v2066_v7 }
 0x8c5   :  { %3014 = vmatpush3.bf16.xpose.msra.mxu0 %v2185_v8  ;;  %3015 = vmatprep.mubr.msk.bf16.mxu0 %vm3195_vm0, %v3194_v0 }
 0x8c6   :  { %3025 = vmatprep.subr.bf16.mxu0 %v3194_v0 }
 0x8cc   :  { %3016 = vmatmul.mubr.msk.bf16.vlgmr.msra.gmra.mrb[64].mxu0 %vm173_vm2, %v2178_v10 }
 0x8cd   :  { %3029 = vmatprep.mubr.msk.bf16.mxu0 %vm3195_vm0, %v3194_v0 }
 0x8f9   :  { %v1406_v3 = vpop.f32.mrb[36].mxu0 }
 0x8fa   :  { %v1412_v13 = vmul.f32 0.35355338, %v1406_v3  ;;  %v2933_v14 = vpop.f32.mrb[37].mxu0 }
 0x8fb   :  { %v1409_v15 = vpop.f32.mrb[38].mxu0 }
 0x8fc   :  { %v2934_v16 = vpop.f32.mrb[39].mxu0  ;;  %v1419_v17 = vadd.f32 %v2674_v11, %v1412_v13 }
 0x8fe   :  { %v1420_v18 = vsel %vm173_vm2, %v1419_v17, -inf }
 0x8ff   :  { %1421 = vmax.xlane.f32.xlu1 %v1420_v18 }
 0x96b   :  { %v1526_v19 = vpop.f32.mrb[40].mxu0 }
 0x96c   :  { %v1532_v20 = vmul.f32 0.35355338, %v1526_v19  ;;  %v2945_v21 = vpop.f32.mrb[41].mxu0 }
 0x96d   :  { %v1529_v22 = vpop.f32.mrb[42].mxu0 }
 0x96e   :  { %v2946_v23 = vpop.f32.mrb[43].mxu0  ;;  %v3713_v24 = vadd.f32 %v2674_v11, %v1532_v20 }
 0x970   :  { %v1534_v12 = vsel %vm173_vm2, %v3713_v24, -inf }
 0x971   :  { %1535 = vmax.xlane.f32.xlu0 %v1534_v12 }
 0x977   :  { %v1638_v25 = vpop.f32.mrb[44].mxu0 }
 0x978   :  { %v1644_v26 = vmul.f32 0.35355338, %v1638_v25  ;;  %v2957_v27 = vpop.f32.mrb[45].mxu0 }
 0x979   :  { %v1641_v28 = vpop.f32.mrb[46].mxu0 }
 0x97a   :  { %v2958_v29 = vpop.f32.mrb[47].mxu0  ;;  %v1645_v30 = vadd.f32 %v2674_v11, %v1644_v26 }
 0x97c   :  { %v1646_v31 = vsel %vm173_vm2, %v1645_v30, -inf }
 0x97d   :  { %1647 = vmax.xlane.f32.xlu0 %v1646_v31 }
 0x97f   :  { %v1750_v34 = vpop.f32.mrb[48].mxu0 }
 0x980   :  { %v1756_v35 = vmul.f32 0.35355338, %v1750_v34  ;;  %v2969_v36 = vpop.f32.mrb[49].mxu0 }
 0x981   :  { %v1753_v37 = vpop.f32.mrb[50].mxu0 }
 0x982   :  { %v2970_v38 = vpop.f32.mrb[51].mxu0  ;;  %v1757_v39 = vadd.f32 %v2674_v11, %v1756_v35 }
 0x984   :  { %v1758_v41 = vsel %vm173_vm2, %v1757_v39, -inf }
 0x985   :  { %1759 = vmax.xlane.f32.xlu1 %v1758_v41 }
 0x987   :  { %v1877_v42 = vpop.f32.mrb[52].mxu0 }
 0x988   :  { %v1883_v45 = vmul.f32 0.35355338, %v1877_v42  ;;  %v2981_v46 = vpop.f32.mrb[53].mxu0 }
 0x989   :  { %v1880_v47 = vpop.f32.mrb[54].mxu0 }
 0x98a   :  { %v2982_v48 = vpop.f32.mrb[55].mxu0  ;;  %v1890_v43 = vadd.f32 %v2684_v44, %v1883_v45 }
 0x98c   :  { %v1891_v49 = vsel %vm173_vm2, %v1890_v43, -inf  ;;  %v1422_v6 = vpop.xlane.xlu1 %1421 }
 0x98d   :  { %1892 = vmax.xlane.f32.xlu0 %v1891_v49  ;;  %v1423_v7 = vsub.f32 %v1419_v17, %v1422_v6 }
 0x98f   :  { %v1997_v50 = vpop.f32.mrb[56].mxu0  ;;  %v1424_v8 = vmul.f32 1.442695, %v1423_v7 }
 0x990   :  { %v2003_v51 = vmul.f32 0.35355338, %v1997_v50  ;;  %v2993_v52 = vpop.f32.mrb[57].mxu0 }
 0x991   :  { %v2000_v53 = vpop.f32.mrb[58].mxu0  ;;  %3154 = vpow2.f32 %v1424_v8 }
 0x992   :  { %v2994_v54 = vpop.f32.mrb[59].mxu0  ;;  %v3723_v56 = vadd.f32 %v2684_v44, %v2003_v51 }
 0x994   :  { %v2005_v57 = vsel %vm173_vm2, %v3723_v56, -inf }
 0x995   :  { %2006 = vmax.xlane.f32.xlu1 %v2005_v57 }
 0x997   :  { %v2109_v58 = vpop.f32.mrb[60].mxu0 }
 0x998   :  { %v2115_v59 = vmul.f32 0.35355338, %v2109_v58  ;;  %v3005_v60 = vpop.f32.mrb[61].mxu0 }
 0x999   :  { %v2112_v61 = vpop.f32.mrb[62].mxu0 }
 0x99a   :  { %v3006_v62 = vpop.f32.mrb[63].mxu0  ;;  %v2116_v9 = vadd.f32 %v2684_v44, %v2115_v59 }
 0x99b   :  { %v3733_v13 = vpop.eup %3154 }
 0x99c   :  { %v2117_v63 = vsel %vm173_vm2, %v2116_v9, -inf  ;;  %v1426_v14 = vsel %vm173_vm2, %v3733_v13, 0.0 }
 0x99d   :  { %2118 = vmax.xlane.f32.xlu0 %v2117_v63 }
 0x99f   :  { %v2221_v2 = vpop.f32.mrb[64].mxu0 }
 0x9a0   :  { %v3017_v4 = vpop.f32.mrb[65].mxu0  ;;  %v2227_v10 = vmul.f32 0.35355338, %v2221_v2 }
 0x9a1   :  { %v2224_v5 = vpop.f32.mrb[66].mxu0 }
 0x9a2   :  { %v3018_v1 = vpop.f32.mrb[67].mxu0  ;;  %v2228_v3 = vadd.f32 %v2684_v44, %v2227_v10 }
 0x9a4   :  { %v2229_v11 = vsel %vm173_vm2, %v2228_v3, -inf }
 0x9a6   :  { %1546 = vrot.lane.b32.xlu1 %v3642_v40, %s3199_s5 }
 0x9b3   :  { %1433 = vrot.lane.b32.xlu0 %v3642_v40, %s3967_s4 }
 0x9ca   :  { %2230 = vmax.xlane.f32.xlu1 %v2229_v11 }
 0x9d2   :  { %1427 = vadd.xlane.f32.xlu0 %v1426_v14 }
 0x9db   :  { %1658 = vrot.lane.b32.xlu1 %v3642_v40, %s3968_s8 }
 0x9fe   :  { %v1536_v15 = vpop.xlane.xlu0 %1535 }
 0x9ff   :  { %v1537_v16 = vsub.f32 %v3713_v24, %v1536_v15 }
 0xa01   :  { %v1538_v17 = vmul.f32 1.442695, %v1537_v16 }
 0xa03   :  { %3156 = vpow2.f32 %v1538_v17 }
 0xa0a   :  { %v1648_v18 = vpop.xlane.xlu0 %1647 }
 0xa0b   :  { %v1649_v19 = vsub.f32 %v1645_v30, %v1648_v18 }
 0xa0d   :  { %v3740_v20 = vpop.eup %3156  ;;  %v1650_v21 = vmul.f32 1.442695, %v1649_v19 }
 0xa0e   :  { %v1540_v22 = vsel %vm173_vm2, %v3740_v20, 0.0 }
 0xa0f   :  { %3158 = vpow2.f32 %v1650_v21  ;;  %1541 = vadd.xlane.f32.xlu1 %v1540_v22 }
 0xa12   :  { %v1760_v23 = vpop.xlane.xlu1 %1759 }
 0xa13   :  { %v1761_v12 = vsub.f32 %v1757_v39, %v1760_v23 }
 0xa15   :  { %v1762_v25 = vmul.f32 1.442695, %v1761_v12 }
 0xa17   :  { %3160 = vpow2.f32 %v1762_v25 }
 0xa19   :  { %v3744_v26 = vpop.eup %3158 }
 0xa1a   :  { %v1893_v27 = vpop.xlane.xlu0 %1892  ;;  %v1652_v24 = vsel %vm173_vm2, %v3744_v26, 0.0 }
 0xa1b   :  { %v1894_v28 = vsub.f32 %v1890_v43, %v1893_v27  ;;  %1653 = vadd.xlane.f32.xlu0 %v1652_v24 }
 0xa1d   :  { %v1895_v29 = vmul.f32 1.442695, %v1894_v28 }
 0xa1f   :  { %3162 = vpow2.f32 %v1895_v29 }
 0xa21   :  { %v3748_v30 = vpop.eup %3160 }
 0xa22   :  { %v1764_v31 = vsel %vm173_vm2, %v3748_v30, 0.0  ;;  %v2007_v42 = vpop.xlane.xlu1 %2006 }
 0xa23   :  { %1765 = vadd.xlane.f32.xlu1 %v1764_v31  ;;  %v2008_v45 = vsub.f32 %v3723_v56, %v2007_v42 }
 0xa25   :  { %v2009_v47 = vmul.f32 1.442695, %v2008_v45 }
 0xa29   :  { %v3752_v34 = vpop.eup %3162 }
 0xa2a   :  { %v2119_v35 = vpop.xlane.xlu0 %2118  ;;  %v1897_v36 = vsel %vm173_vm2, %v3752_v34, 0.0 }
 0xa2b   :  { %v2120_v37 = vsub.f32 %v2116_v9, %v2119_v35  ;;  %1898 = vadd.xlane.f32.xlu1 %v1897_v36 }
 0xa2d   :  { %v2121_v38 = vmul.f32 1.442695, %v2120_v37 }
 0xa2e   :  { %v1434_v39 = vpop.permute.xlu0 %1433 }
 0xa2f   :  { %3164 = vpow2.f32 %v2121_v38  ;;  %v1439_v41 = vsel %vm239_vm3, %v1434_v39, 0 }
 0xa30   :  { %2936 = vmatpush3.bf16.msra.mxu1 %v1439_v41  ;;  %3166 = vpow2.f32 %v2009_v47 }
 0xa31   :  { %1770 = vrot.lane.b32.xlu0 %v3642_v40, %s3969_s0  ;;  %2947 = vmatprep.subr.bf16.mxu1 %v3194_v0  ;;  %v1547_v40 = vpop.permute.xlu1 %1546 }
 0xa32   :  { %v1552_v59 = vsel %vm239_vm3, %v1547_v40, 0 }
 0xa39   :  { %v3760_v44 = vpop.eup %3164 }
 0xa3a   :  { %v2123_v46 = vsel %vm173_vm2, %v3760_v44, 0.0  ;;  %v3765_v48 = vpop.eup %3166 }
 0xa3b   :  { %2124 = vadd.xlane.f32.xlu1 %v2123_v46  ;;  %v2011_v43 = vsel %vm173_vm2, %v3765_v48, 0.0 }
 0xa50   :  { %2012 = vadd.xlane.f32.xlu0 %v2011_v43 }
 0xa57   :  { %v2231_v49 = vpop.xlane.xlu1 %2230 }
 0xa58   :  { %v2232_v50 = vsub.f32 %v2228_v3, %v2231_v49 }
 0xa5a   :  { %v2233_v51 = vmul.f32 1.442695, %v2232_v50 }
 0xa5b   :  { %v1659_v60 = vpop.permute.xlu1 %1658 }
 0xa5c   :  { %3168 = vpow2.f32 %v2233_v51  ;;  %v1664_v4 = vsel %vm239_vm3, %v1659_v60, 0 }
 0xa5f   :  { %v1428_v52 = vpop.xlane.xlu0 %1427 }
 0xa60   :  { %3170 = vrcp.f32 %v1428_v52 }
 0xa66   :  { %v3769_v53 = vpop.eup %3168  ;;  %2017 = vrot.lane.b32.xlu0 %v3665_v55, %s3199_s5 }
 0xa67   :  { %v2235_v54 = vsel %vm173_vm2, %v3769_v53, 0.0 }
 0xa68   :  { %2236 = vadd.xlane.f32.xlu1 %v2235_v54 }
 0xa6a   :  { %v3171_v56 = vpop.eup %3170  ;;  %2129 = vrot.lane.b32.xlu0 %v3665_v55, %s3968_s8 }
 0xa6b   :  { %v1430_v57 = vmul.f32 %v3171_v56, %v3733_v13 }
 0xa6d   :  { %v1431_v58 = vpack.c.bf16 %v1430_v57, %v1430_v57 }
 0xa6e   :  { %2241 = vrot.lane.b32.xlu0 %v3665_v55, %s3969_s0 }
 0xa6f   :  { %2938 = vmatmul.mubr.msk.bf16.vlgmr.msra.gmra.mrb[44].mxu1 %vm173_vm2, %v1431_v58 }
 0xa70   :  { %2948 = vmatpush3.bf16.msra.mxu1 %v1552_v59  ;;  %2949 = vmatprep.mubr.msk.bf16.mxu1 %vm3195_vm0, %v3194_v0 }
 0xa71   :  { %2959 = vmatprep.subr.bf16.mxu1 %v3194_v0 }
 0xa79   :  { %1904 = vrot.lane.b32.xlu1 %v3665_v55, %s3967_s4 }
 0xa9c   :  { %v1542_v61 = vpop.xlane.xlu1 %1541 }
 0xa9d   :  { %3172 = vrcp.f32 %v1542_v61 }
 0xaa7   :  { %v3173_v62 = vpop.eup %3172 }
 0xaa8   :  { %v1544_v9 = vmul.f32 %v3173_v62, %v3740_v20  ;;  %v1654_v63 = vpop.xlane.xlu0 %1653  ;;  %v3109_v62 = vld [vmem:[%s3922_s13] sm:$0xff]  }
 0xaa9   :  { %3174 = vrcp.f32 %v1654_v63  ;;  %3026 = vmatpush3.bf16.msra.mxu0 %v3109_v62  ;;  %v2696_v62 = vld [vmem:[%s3926_s17] ss:$0 sm:$0xff] }
 0xaaa   :  { %v1545_v2 = vpack.c.bf16 %v1544_v9, %v1544_v9  ;;  %3027 = vmatprep.subr.bf16.mxu0 %v3194_v0 }
 0xaac   :  { %2950 = vmatmul.mubr.msk.bf16.vlgmr.msra.gmra.mrb[48].mxu1 %vm173_vm2, %v1545_v2  ;;  %v1771_v6 = vpop.permute.xlu0 %1770  ;;  %v3110_v2 = vld [vmem:[%s3922_s13 + $0x8] sm:$0xff]  }
 0xaad   :  { %2960 = vmatpush3.bf16.msra.mxu1 %v1664_v4  ;;  %2961 = vmatprep.mubr.msk.bf16.mxu1 %vm3195_vm0, %v3194_v0  ;;  %v1776_v8 = vsel %vm239_vm3, %v1771_v6, 0 }
 0xaae   :  { %2971 = vmatprep.subr.bf16.mxu1 %v3194_v0  ;;  %3028 = vmatpush3.bf16.msra.mxu0 %v3110_v2 }
 0xaaf   :  { %3041 = vmatprep.subr.bf16.mxu0 %v3194_v0 }
 0xab0   :  { %v1766_v55 = vpop.xlane.xlu1 %1765 }
 0xab1   :  { %3176 = vrcp.f32 %v1766_v55 }
 0xab3   :  { %v3175_v5 = vpop.eup %3174 }
 0xab4   :  { %v1656_v1 = vmul.f32 %v3175_v5, %v3744_v26 }
 0xab6   :  { %v1657_v7 = vpack.c.bf16 %v1656_v1, %v1656_v1 }
 0xab8   :  { %2962 = vmatmul.mubr.msk.bf16.vlgmr.msra.gmra.mrb[52].mxu1 %vm173_vm2, %v1657_v7  ;;  %v1899_v13 = vpop.xlane.xlu1 %1898 }
 0xab9   :  { %2972 = vmatpush3.bf16.msra.mxu1 %v1776_v8  ;;  %2973 = vmatprep.mubr.msk.bf16.mxu1 %vm3195_vm0, %v3194_v0  ;;  %3178 = vrcp.f32 %v1899_v13 }
 0xaba   :  { %2983 = vmatprep.subr.bf16.mxu1 %v3194_v0 }
 0xabb   :  { %v3177_v10 = vpop.eup %3176 }
 0xabc   :  { %v1768_v3 = vmul.f32 %v3177_v10, %v3748_v30 }
 0xabe   :  { %v1769_v11 = vpack.c.bf16 %v1768_v3, %v1768_v3 }
 0xac0   :  { %2974 = vmatmul.mubr.msk.bf16.vlgmr.msra.gmra.mrb[56].mxu1 %vm173_vm2, %v1769_v11 }
 0xac1   :  { %2985 = vmatprep.mubr.msk.bf16.mxu1 %vm3195_vm0, %v3194_v0 }
 0xac3   :  { %v3179_v16 = vpop.eup %3178 }
 0xac4   :  { %v1901_v18 = vmul.f32 %v3179_v16, %v3752_v34 }
 0xac6   :  { %v1902_v22 = vpack.c.bf16 %v1901_v18, %v1901_v18 }
 0xac8   :  { %v2125_v15 = vpop.xlane.xlu1 %2124 }
 0xadd   :  { %v2013_v14 = vpop.xlane.xlu0 %2012 }
 0xade   :  { %3180 = vrcp.f32 %v2013_v14 }
 0xadf   :  { %3182 = vrcp.f32 %v2125_v15 }
 0xae1   :  { %v2018_v21 = vpop.permute.xlu0 %2017 }
 0xae2   :  { %v2023_v12 = vsel %vm239_vm3, %v2018_v21, 0 }
 0xae5   :  { %v2130_v26 = vpop.permute.xlu0 %2129 }
 0xae6   :  { %v2135_v28 = vsel %vm239_vm3, %v2130_v26, 0 }
 0xae8   :  { %v3181_v23 = vpop.eup %3180 }
 0xae9   :  { %v2015_v25 = vmul.f32 %v3181_v23, %v3765_v48  ;;  %v3183_v24 = vpop.eup %3182  ;;  %v2242_v30 = vpop.permute.xlu0 %2241 }
 0xaea   :  { %v2127_v29 = vmul.f32 %v3183_v24, %v3760_v44  ;;  %v2247_v35 = vsel %vm239_vm3, %v2242_v30, 0 }
 0xaeb   :  { %v2016_v27 = vpack.c.bf16 %v2015_v25, %v2015_v25 }
 0xaec   :  { %v2128_v31 = vpack.c.bf16 %v2127_v29, %v2127_v29 }
 0xaf5   :  { %v2237_v17 = vpop.xlane.xlu1 %2236 }
 0xaf6   :  { %3184 = vrcp.f32 %v2237_v17 }
 0xaf9   :  { %v1905_v19 = vpop.permute.xlu1 %1904 }
 0xafa   :  { %v1910_v20 = vsel %vm239_vm3, %v1905_v19, 0 }
 0xafb   :  { %2984 = vmatpush3.bf16.msra.mxu1 %v1910_v20 }
 0xafc   :  { %2995 = vmatprep.subr.bf16.mxu1 %v3194_v0 }
 0xafe   :  { %2986 = vmatmul.mubr.msk.bf16.vlgmr.msra.gmra.mrb[60].mxu1 %vm173_vm2, %v1902_v22 }
 0xaff   :  { %2996 = vmatpush3.bf16.msra.mxu1 %v2023_v12  ;;  %2997 = vmatprep.mubr.msk.bf16.mxu1 %vm3195_vm0, %v3194_v0 }
 0xb00   :  { %3007 = vmatprep.subr.bf16.mxu1 %v3194_v0  ;;  %v3185_v34 = vpop.eup %3184 }
 0xb01   :  { %v2239_v36 = vmul.f32 %v3185_v34, %v3769_v53 }
 0xb03   :  { %v2240_v37 = vpack.c.bf16 %v2239_v36, %v2239_v36 }
 0xb06   :  { %2998 = vmatmul.mubr.msk.bf16.vlgmr.msra.gmra.mrb[64].mxu1 %vm173_vm2, %v2016_v27 }
 0xb07   :  { %3008 = vmatpush3.bf16.msra.mxu1 %v2135_v28  ;;  %3009 = vmatprep.mubr.msk.bf16.mxu1 %vm3195_vm0, %v3194_v0  ;;  %v2692_v28 = vld [vmem:[%s3923_s14] ss:$0 sm:$0xff] }
 0xb08   :  { %3019 = vmatprep.subr.bf16.mxu1 %v3194_v0 }
 0xb0e   :  { %3010 = vmatmul.mubr.msk.bf16.vlgmr.msra.gmra.mrb[68].mxu1 %vm173_vm2, %v2128_v31 }
 0xb0f   :  { %3020 = vmatpush3.bf16.msra.mxu1 %v2247_v35  ;;  %3021 = vmatprep.mubr.msk.bf16.mxu1 %vm3195_vm0, %v3194_v0 }
 0xb10   :  { %3033 = vmatprep.subr.bf16.mxu1 %v3194_v0 }
 0xb16   :  { %3022 = vmatmul.mubr.msk.bf16.vlgmr.msra.gmra.mrb[72].mxu1 %vm173_vm2, %v2240_v37 }
 0xb17   :  { %3037 = vmatprep.mubr.msk.bf16.mxu1 %vm3195_vm0, %v3194_v0 }
 0xb42   :  { %v1475_v38 = vpop.f32.mrb[44].mxu1 }
 0xb43   :  { %v2939_v39 = vpop.f32.mrb[45].mxu1 }
 0xb44   :  { %v1478_v41 = vpop.f32.mrb[46].mxu1 }
 0xb45   :  { %v2940_v42 = vpop.f32.mrb[47].mxu1 }
 0xb7f   :  { %v1588_v44 = vpop.f32.mrb[48].mxu1 }
 0xb80   :  { %v2951_v45 = vpop.f32.mrb[49].mxu1 }
 0xb81   :  { %v1591_v46 = vpop.f32.mrb[50].mxu1 }
 0xb82   :  { %v2952_v47 = vpop.f32.mrb[51].mxu1 }
 0xb8b   :  { %v1700_v48 = vpop.f32.mrb[52].mxu1 }
 0xb8c   :  { %v2963_v43 = vpop.f32.mrb[53].mxu1 }
 0xb8d   :  { %v1703_v40 = vpop.f32.mrb[54].mxu1 }
 0xb8e   :  { %v2964_v49 = vpop.f32.mrb[55].mxu1 }
 0xb93   :  { %v1812_v50 = vpop.f32.mrb[56].mxu1 }
 0xb94   :  { %v2975_v51 = vpop.f32.mrb[57].mxu1 }
 0xb95   :  { %v1815_v52 = vpop.f32.mrb[58].mxu1  ;;  %v3113_v51 = vld [vmem:[%s3925_s21] sm:$0xff]  }
 0xb96   :  { %v2976_v53 = vpop.f32.mrb[59].mxu1  ;;  %v3114_v52 = vld [vmem:[%s3925_s21 + $0x8] sm:$0xff]  }
 0xbd1   :  { %v1946_v54 = vpop.f32.mrb[60].mxu1 }
 0xbd2   :  { %v2987_v56 = vpop.f32.mrb[61].mxu1 }
 0xbd3   :  { %v1949_v57 = vpop.f32.mrb[62].mxu1 }
 0xbd4   :  { %v2988_v58 = vpop.f32.mrb[63].mxu1 }
 0xbd9   :  { %v2059_v59 = vpop.f32.mrb[64].mxu1 }
 0xbda   :  { %v3084_v60 = vpack.i.bf16 %v2059_v59, %v1588_v44  ;;  %v2999_v61 = vpop.f32.mrb[65].mxu1 }
 0xbdb   :  { %v2062_v9 = vpop.f32.mrb[66].mxu1 }
 0xbdc   :  { %3085 = vrot.lane.b32.xlu1 %v3084_v60, %s3970_s27  ;;  %v3000_v63 = vpop.f32.mrb[67].mxu1 }
 0xbe1   :  { %v2171_v4 = vpop.f32.mrb[68].mxu1 }
 0xbe2   :  { %v3089_v55 = vpack.i.bf16 %v2171_v4, %v1700_v48  ;;  %v3011_v5 = vpop.f32.mrb[69].mxu1  ;;  %v2697_v4 = vld [vmem:[%s3927_s18] ss:$0 sm:$0xff] }
 0xbe3   :  { %v2174_v1 = vpop.f32.mrb[70].mxu1 }
 0xbe4   :  { %3090 = vrot.lane.b32.xlu0 %v3089_v55, %s3971_s7  ;;  %v3012_v6 = vpop.f32.mrb[71].mxu1 }
 0xbe9   :  { %v2283_v7 = vpop.f32.mrb[72].mxu1 }
 0xbea   :  { %v3094_v8 = vpack.i.bf16 %v2283_v7, %v1812_v50  ;;  %v3023_v10 = vpop.f32.mrb[73].mxu1  ;;  %v3112_v50 = vld [vmem:[%s3924_s19 + $0x8] sm:$0xff]   ;;  %v3115_v7 = vld [vmem:[%s3925_s21 + $0x10] sm:$0xff]  }
 0xbeb   :  { %v2286_v3 = vpop.f32.mrb[74].mxu1  ;;  %v2698_v10 = vld [vmem:[%s3928_s20] ss:$0 sm:$0xff] }
 0xbec   :  { %3095 = vrot.lane.b32.xlu1 %v3094_v8, %s3972_s29  ;;  %v3024_v11 = vpop.f32.mrb[75].mxu1  ;;  %v3116_v8 = vld [vmem:[%s3925_s21 + $0x18] sm:$0xff]  }
 0xc4e   :  { %v3086_v13 = vpop.permute.xlu1 %3085 }
 0xc4f   :  { %v3088_v15 = vunpack.i.h.bf16 %v3086_v13  ;;  %v3087_v16 = vunpack.i.l.bf16 %v3086_v13 }
 0xc51   :  { %v2301_v20 = vsel %vm173_vm2, %v1946_v54, %v3088_v15  ;;  %v1830_v21 = vsel %vm173_vm2, %v1475_v38, %v3087_v16 }
 0xc56   :  { %v3091_v14 = vpop.permute.xlu0 %3090 }
 0xc57   :  { %v3093_v17 = vunpack.i.h.bf16 %v3091_v14  ;;  %v3092_v18 = vunpack.i.l.bf16 %v3091_v14 }
 0xc59   :  { %v2302_v12 = vsel %vm632_vm4, %v2301_v20, %v3093_v17  ;;  %v1831_v25 = vsel %vm632_vm4, %v1830_v21, %v3092_v18 }
 0xc5e   :  { %v3096_v19 = vpop.permute.xlu1 %3095 }
 0xc5f   :  { %v3098_v22 = vunpack.i.h.bf16 %v3096_v19  ;;  %v3097_v23 = vunpack.i.l.bf16 %v3096_v19 }
 0xc61   :  { %v2303_v26 = vsel %vm634_vm5, %v2302_v12, %v3098_v22  ;;  %v1832_v27 = vsel %vm634_vm5, %v1831_v25, %v3097_v23 }
 0xc62   :  { %v2304_v24 = vpack.c.bf16 %v2303_v26, %v1832_v27 }
 0xc64   :  { %3030 = vmatmul.mubr.msk.bf16.vlgmr.msra.gmra.mrb[68].mxu0 %vm115_vm1, %v2304_v24 }
 0xc65   :  { %3049 = vmatprep.mubr.msk.bf16.mxu0 %vm3195_vm0, %v3194_v0  ;;  %3042 = vmatpush3.bf16.msra.mxu0 %v3113_v51 }
 0xc66   :  { %3043 = vmatprep.subr.bf16.mxu0 %v3194_v0 }
 0xc69   :  { %3044 = vmatpush3.bf16.msra.mxu0 %v3114_v52 }
 0xc6a   :  { %3045 = vmatprep.subr.bf16.mxu0 %v3194_v0 }
 0xc6d   :  { %3046 = vmatpush3.bf16.msra.mxu0 %v3115_v7 }
 0xc6e   :  { %3047 = vmatprep.subr.bf16.mxu0 %v3194_v0 }
 0xc71   :  { %3048 = vmatpush3.bf16.msra.mxu0 %v3116_v8 }
 0xd37   :  { %v2365_v29 = vpop.f32.mrb[68].mxu0 }
 0xd38   :  { %v2366_v30 = vadd.f32 %v2692_v28, %v2365_v29  ;;  %v3031_v31 = vpop.f32.mrb[69].mxu0 }
 0xd39   :  { %v2368_v34 = vpop.f32.mrb[70].mxu0 }
 0xd3a   :  { %v2369_v35 = vadd.f32 %v2692_v28, %v2368_v34  ;;  %v3032_v36 = vpop.f32.mrb[71].mxu0  ;;  %v2372_v37 = vadd.f32 %v2366_v30, %v3630_v32 }
 0xd3c   :  { %v2376_v38 = vsel %vm115_vm1, %v2372_v37, 0.0  ;;  %v2373_v39 = vadd.f32 %v2369_v35, %v3632_v33  ;;  %v3111_v33 = vld [vmem:[%s3924_s19] sm:$0xff]  }
 0xd3d   :  { %2377 = vadd.xlane.f32.xlu0 %v2376_v38  ;;  %3034 = vmatpush3.bf16.msra.mxu1 %v3111_v33  ;;  %v2709_v33 = vld [vmem:[%s3931_s24] ss:$0 sm:$0xff] }
 0xd3e   :  { %v2379_v41 = vsel %vm115_vm1, %v2373_v39, 0.0  ;;  %3035 = vmatprep.subr.bf16.mxu1 %v3194_v0  ;;  %v2702_v0 = vld [vmem:[%s3929_s22] ss:$0 sm:$0xff] }
 0xd3f   :  { %2380 = vadd.xlane.f32.xlu1 %v2379_v41 }
 0xd41   :  { %3036 = vmatpush3.bf16.msra.mxu1 %v3112_v50 }
 0xdca   :  { %v2378_v42 = vpop.xlane.xlu0 %2377 }
 0xdcb   :  { %v2382_v44 = vmul.f32 0.03125, %v2378_v42 }
 0xdcc   :  { %v2381_v45 = vpop.xlane.xlu1 %2380 }
 0xdcd   :  { %v2384_v46 = vsub.f32 %v2372_v37, %v2382_v44  ;;  %v2383_v47 = vmul.f32 0.03125, %v2381_v45 }
 0xdcf   :  { %v2385_v48 = vsub.f32 %v2373_v39, %v2383_v47  ;;  %v2386_v43 = vmul.f32 %v2384_v46, %v2384_v46 }
 0xdd1   :  { %v2388_v40 = vsel %vm115_vm1, %v2386_v43, 0.0  ;;  %v2387_v49 = vmul.f32 %v2385_v48, %v2385_v48 }
 0xdd2   :  { %2389 = vadd.xlane.f32.xlu0 %v2388_v40  ;;  %v2708_v40 = vld [vmem:[%s3930_s23] ss:$0 sm:$0xff] }
 0xdd3   :  { %v2391_v32 = vsel %vm115_vm1, %v2387_v49, 0.0 }
 0xdd6   :  { %2392 = vadd.xlane.f32.xlu0 %v2391_v32 }
 0xe5f   :  { %v2390_v53 = vpop.xlane.xlu0 %2389 }
 0xe60   :  { %v2394_v54 = vmul.f32 0.03125, %v2390_v53 }
 0xe62   :  { %v2396_v56 = vadd.f32 1e-05, %v2394_v54 }
 0xe63   :  { %v2393_v57 = vpop.xlane.xlu0 %2392 }
 0xe64   :  { %3186 = vrsqrt.f32 %v2396_v56  ;;  %v2395_v58 = vmul.f32 0.03125, %v2393_v57 }
 0xe66   :  { %v2397_v59 = vadd.f32 1e-05, %v2395_v58 }
 0xe68   :  { %3188 = vrsqrt.f32 %v2397_v59 }
 0xe6e   :  { %v3187_v60 = vpop.eup %3186 }
 0xe6f   :  { %v2400_v61 = vmul.f32 %v3187_v60, %v2384_v46 }
 0xe71   :  { %v2408_v63 = vmul.f32 %v2696_v62, %v2400_v61 }
 0xe72   :  { %v3189_v9 = vpop.eup %3188 }
 0xe73   :  { %v2401_v2 = vmul.f32 %v3189_v9, %v2385_v48  ;;  %v2416_v5 = vadd.f32 %v2697_v4, %v2408_v63 }
 0xe75   :  { %v2409_v55 = vmul.f32 %v2696_v62, %v2401_v2 }
 0xe77   :  { %v2417_v1 = vadd.f32 %v2697_v4, %v2409_v55 }
 0xe79   :  { %v2418_v6 = vpack.c.bf16 %v2417_v1, %v2416_v5 }
 0xe7b   :  { %3038 = vmatmul.mubr.msk.bf16.vlgmr.msra.gmra.mrb[76].mxu1 %vm115_vm1, %v2418_v6 }
 0xf4e   :  { %v2479_v3 = vpop.f32.mrb[76].mxu1 }
 0xf4f   :  { %v2480_v11 = vadd.f32 %v2698_v10, %v2479_v3  ;;  %v3039_v13 = vpop.f32.mrb[77].mxu1 }
 0xf50   :  { %v2482_v14 = vpop.f32.mrb[78].mxu1 }
 0xf51   :  { %v2483_v15 = vadd.f32 %v2698_v10, %v2482_v14  ;;  %v3040_v16 = vpop.f32.mrb[79].mxu1  ;;  %v2486_v17 = vmax.f32 %v2480_v11, 0.0 }
 0xf53   :  { %v2487_v18 = vmax.f32 %v2483_v15, 0.0 }
 0xf55   :  { %v2488_v19 = vpack.c.bf16 %v2487_v18, %v2486_v17 }
 0xf57   :  { %3050 = vmatmul.mubr.msk.bf16.vlgmr.msra.gmra.mrb[72].mxu0 %vm2528_vm6, %v2488_v19 }
0x102a   :  { %v2566_v20 = vpop.f32.mrb[72].mxu0 }
0x102b   :  { %v2567_v21 = vadd.f32 %v2702_v0, %v2566_v20  ;;  %v3051_v22 = vpop.f32.mrb[73].mxu0 }
0x102c   :  { %v2569_v23 = vpop.f32.mrb[74].mxu0 }
0x102d   :  { %v2570_v12 = vadd.f32 %v2702_v0, %v2569_v23  ;;  %v3052_v25 = vpop.f32.mrb[75].mxu0  ;;  %v2573_v26 = vadd.f32 %v2567_v21, %v2416_v5 }
0x102f   :  { %v2577_v27 = vsel %vm115_vm1, %v2573_v26, 0.0  ;;  %v2574_v24 = vadd.f32 %v2570_v12, %v2417_v1 }
0x1030   :  { %2578 = vadd.xlane.f32.xlu1 %v2577_v27 }
0x1031   :  { %v2580_v28 = vsel %vm115_vm1, %v2574_v24, 0.0 }
0x1032   :  { %2581 = vadd.xlane.f32.xlu0 %v2580_v28 }
0x10bd   :  { %v2579_v29 = vpop.xlane.xlu1 %2578 }
0x10be   :  { %v2583_v30 = vmul.f32 0.03125, %v2579_v29 }
0x10bf   :  { %v2582_v31 = vpop.xlane.xlu0 %2581 }
0x10c0   :  { %v2585_v34 = vsub.f32 %v2573_v26, %v2583_v30  ;;  %v2584_v35 = vmul.f32 0.03125, %v2582_v31 }
0x10c2   :  { %v2586_v36 = vsub.f32 %v2574_v24, %v2584_v35  ;;  %v2587_v37 = vmul.f32 %v2585_v34, %v2585_v34 }
0x10c4   :  { %v2589_v38 = vsel %vm115_vm1, %v2587_v37, 0.0  ;;  %v2588_v39 = vmul.f32 %v2586_v36, %v2586_v36 }
0x10c5   :  { %2590 = vadd.xlane.f32.xlu1 %v2589_v38 }
0x10c6   :  { %v2592_v41 = vsel %vm115_vm1, %v2588_v39, 0.0 }
0x10c7   :  { %2593 = vadd.xlane.f32.xlu0 %v2592_v41 }
0x1152   :  { %v2591_v42 = vpop.xlane.xlu1 %2590 }
0x1153   :  { %v2595_v44 = vmul.f32 0.03125, %v2591_v42 }
0x1154   :  { %v2594_v45 = vpop.xlane.xlu0 %2593 }
0x1155   :  { %v2597_v46 = vadd.f32 1e-05, %v2595_v44  ;;  %v2596_v47 = vmul.f32 0.03125, %v2594_v45 }
0x1157   :  { %3190 = vrsqrt.f32 %v2597_v46  ;;  %v2598_v48 = vadd.f32 1e-05, %v2596_v47 }
0x1159   :  { %3192 = vrsqrt.f32 %v2598_v48 }
0x1161   :  { %v3191_v43 = vpop.eup %3190 }
0x1162   :  { %v2601_v49 = vmul.f32 %v3191_v43, %v2585_v34 }
0x1163   :  { %v3193_v32 = vpop.eup %3192 }
0x1164   :  { %v2609_v50 = vmul.f32 %v2708_v40, %v2601_v49  ;;  %v2602_v51 = vmul.f32 %v3193_v32, %v2586_v36 }
0x1166   :  { %v2617_v52 = vadd.f32 %v2709_v33, %v2609_v50  ;;  %v2610_v53 = vmul.f32 %v2708_v40, %v2602_v51 }
0x1168   :  { %v2712_v54 = vpack.c.bf16 %v2617_v52, %v2617_v52  ;;  %v2618_v56 = vadd.f32 %v2709_v33, %v2610_v53 }
0x116a   :  { %2628 = vst.msk [vmem:[%s3932_s25] sm:$0xf] %vm2627_vm7, %v2712_v54  ;;  %v2713_v57 = vpack.c.bf16 %v2618_v56, %v2618_v56 }
0x116c   :  { %2629 = vst.msk [vmem:[%s3932_s25 + $0x4] sm:$0xf] %vm2627_vm7, %v2713_v57 }

</bundles_post_ra>
